<compile_context>
chip_gen: v5e
topology: v5e:2x2
jax: 0.10.0
libtpu: 0.0.40
codegen_flags: <defaults>
</compile_context>

<pallas_src>
import functools

import jax
import jax.numpy as jnp
from jax import lax
from jax.experimental import pallas as pl
from jax.experimental.pallas import tpu as pltpu

LN1_EPS = 1e-6       # channels_first LayerNorm eps (ConvNeXt default)
LN2_EPS = 1e-5       # nn.LayerNorm default eps
SECURE_EPS = 1e-6    # clamp for the NNMF reconstruction ("secure tensor")
L1_EPS = 1e-12       # F.normalize eps


# --------------------------------------------------------------------------- #
# device / feature helpers
# --------------------------------------------------------------------------- #
def _device_vmem_bytes():
    try:
        return int(pltpu.get_tpu_info().vmem_capacity_bytes)
    except Exception:
        return 64 * 1024 * 1024                      # conservative (v7x per-core VMEM)


def _vmem_limit_bytes():
    # ~40 MiB on 64 MiB parts (v7x), up to 100 MiB on 128 MiB parts (v5e/v6e).
    cap = _device_vmem_bytes()
    return int(min(100 * 1024 * 1024, max(32 * 1024 * 1024, cap - 24 * 1024 * 1024)))


def _probe_copy_kernel(x_ref, o_ref):
    o_ref[...] = x_ref[...]


@functools.lru_cache(maxsize=None)
def _single_buffer_supported():
    """True iff pl.BlockSpec(..., pipeline_mode=pl.Buffered(1)) compiles & runs here."""
    try:
        spec = pl.BlockSpec((8, 128), lambda i: (0, 0), pipeline_mode=pl.Buffered(1))
        out = pl.pallas_call(
            _probe_copy_kernel,
            out_shape=jax.ShapeDtypeStruct((8, 128), jnp.float32),
            grid=(2,),
            in_specs=[spec],
            out_specs=pl.BlockSpec((8, 128), lambda i: (0, 0)),
        )(jnp.ones((8, 128), jnp.float32))
        jax.block_until_ready(out)
        return True
    except Exception:
        return False


def _const_spec(block_shape, index_map):
    # grid-invariant operand: single-buffer it when supported (halves its VMEM).
    if _single_buffer_supported():
        return pl.BlockSpec(block_shape, index_map, pipeline_mode=pl.Buffered(1))
    return pl.BlockSpec(block_shape, index_map)


def _gelu_tanh(x):
    # tanh-approximate GELU: one EUP tanh instead of a rational erf on the VALU.
    # TODO(synk): nn.GELU() default is exact erf; tanh approx differs by ~<1e-3.
    c = 0.7978845608028654  # sqrt(2/pi)
    return 0.5 * x * (1.0 + jnp.tanh(c * (x + 0.044715 * x * x * x)))


# --------------------------------------------------------------------------- #
# Kernel A: fused norm1(channels_first) + ReLU + L1, then the NNMF grouped 3x3
# conv via multiplicative updates, then the first residual add.
# Grid: N // b_blk steps ('parallel'), b_blk images per step.
# --------------------------------------------------------------------------- #
def nnmf_kernel(x_ref, g1_ref, b1_ref, wd_ref, wt_ref, o_ref, *,
                H, W, C, groups, n_iter, b_blk):
    HW = H * W
    rows = b_blk * HW
    cg = C // groups
    grouped = len(wd_ref.shape) == 4

    # ---- NCHW -> token-major inside VMEM (saves an XLA transpose pass over HBM)
    cols = [jnp.transpose(x_ref[b], (1, 0)) for b in range(b_blk)]      # (HW, C) each
    x = cols[0] if b_blk == 1 else jnp.concatenate(cols, axis=0)        # (rows, C) f32

    # ---- fused channels-first LayerNorm + ReLU + per-position L1 normalize
    mu = jnp.mean(x, axis=-1, keepdims=True)
    var = jnp.mean((x - mu) ** 2, axis=-1, keepdims=True)
    xn = (x - mu) * lax.rsqrt(var + LN1_EPS) * g1_ref[...] + b1_ref[...]
    a = jnp.maximum(xn, 0.0)
    a = a * (1.0 / jnp.maximum(jnp.sum(a, axis=-1, keepdims=True), L1_EPS))

    # ---- 3x3 edge-validity masks built in-kernel from a lane-dense iota
    #      (replaces the padded (9, HW, 1) HBM input and its in-loop broadcasts).
    #      Float arithmetic (+0.5 guard) avoids integer div/mod; exact for these sizes.
    p = lax.broadcasted_iota(jnp.int32, (rows, C), 0).astype(jnp.float32)
    gr = jnp.floor((p + 0.5) * (1.0 / W))              # global row id (b*H + y)
    xc = p - gr * W                                    # column within the image
    yc = gr - jnp.floor((gr + 0.5) * (1.0 / H)) * H    # row within the image
    row_ok = {-1: yc >= 0.5, 1: yc <= H - 1.5}
    col_ok = {-1: xc >= 0.5, 1: xc <= W - 1.5}

    def stencil(piece, dy, dx):
        # realize the "same"-padded 3x3 tap: sublane rotate (XLU) + border mask (VPU).
        # Cross-image wrap rows are exactly the masked border rows, so packing
        # b_blk images into one row axis is transparent.
        shift = (-(dy * W + dx)) % rows
        if shift:
            piece = pltpu.roll(piece, shift, 0)
        if dy:
            piece = jnp.where(row_ok[dy], piece, 0.0)
        if dx:
            piece = jnp.where(col_ok[dx], piece, 0.0)
        return piece

    def conv3x3(src_f32, w_ref):
        # 9 per-tap matmuls (bf16 operands, f32 accumulate), each consumed
        # immediately by its roll/mask epilogue -> no (rows, 9C) intermediate.
        # When the per-head width is lane-aligned, contract per group (K=Cg)
        # instead of the dense block-diagonal matrix.
        src = src_f32.astype(jnp.bfloat16)
        acc_even = acc_odd = None
        for t in range(9):
            dy, dx = t // 3 - 1, t % 3 - 1
            if grouped:
                parts = [
                    jnp.dot(src[:, g * cg:(g + 1) * cg], w_ref[t, g],
                            preferred_element_type=jnp.float32)
                    for g in range(groups)
                ]
                piece = parts[0] if groups == 1 else jnp.concatenate(parts, axis=-1)
            else:
                piece = jnp.dot(src, w_ref[t], preferred_element_type=jnp.float32)
            piece = stencil(piece, dy, dx)
            if t % 2 == 0:                 # pairwise accumulators: shorter dep chain
                acc_even = piece if acc_even is None else acc_even + piece
            else:
                acc_odd = piece if acc_odd is None else acc_odd + piece
        return acc_even + acc_odd

    def body(_, h):
        recon = jnp.maximum(conv3x3(h, wt_ref), SECURE_EPS)       # conv_transpose(h, W)
        r = pl.reciprocal(recon, approx=True)                     # EUP reciprocal ...
        r = r * (2.0 - recon * r)                                 # ... + 1 Newton step
        ratio = a * r                                             # a / recon
        h_new = h * conv3x3(ratio, wd_ref)                        # h *= conv(a/recon, W)
        denom = jnp.maximum(jnp.sum(h_new, axis=-1, keepdims=True), L1_EPS)
        return h_new * (1.0 / denom)                              # exact recip (stability)

    # TODO(synk): h init (uniform 1/C) + update scheme reconstructed (source absent).
    h0 = jnp.full((rows, C), 1.0 / C, jnp.float32)
    h_final = lax.fori_loop(0, n_iter, body, h0)

    o_ref[...] = x + h_final                 # fused residual: x + attn(relu(norm1(x)))


# --------------------------------------------------------------------------- #
# Kernel B: nn.LayerNorm + MLP (Linear -> GELU -> Linear) + residual,
# reading the token-major residual stream, writing channels-first NCHW blocks.
# Grid: (N, HW // tile_hw), both 'parallel'.
# --------------------------------------------------------------------------- #
def mlp_kernel(s_ref, g_ref, b_ref, w1_ref, b1_ref, w2_ref, b2_ref, o_ref):
    s = s_ref[0]                                          # (tile_hw, C) token-major f32
    mu = jnp.mean(s, axis=-1, keepdims=True)
    var = jnp.mean((s - mu) ** 2, axis=-1, keepdims=True)
    xn = (s - mu) * lax.rsqrt(var + LN2_EPS) * g_ref[...] + b_ref[...]
    h1 = jnp.dot(xn.astype(jnp.bfloat16), w1_ref[...],
                 preferred_element_type=jnp.float32) + b1_ref[...]
    h1 = _gelu_tanh(h1)
    y = jnp.dot(h1.astype(jnp.bfloat16), w2_ref[...],
                preferred_element_type=jnp.float32) + b2_ref[...]
    # Dropout(p=0.0) is identity.  Residual, then store channels-first so the
    # wrapper needs no NHWC->NCHW pass over HBM.
    o_ref[0] = jnp.transpose(s + y, (1, 0))


# --------------------------------------------------------------------------- #
# Weight preprocessing (pure jnp; jit-safe, stays on device).
# --------------------------------------------------------------------------- #
def prepare_nnmf_weights(attn_w, groups, grouped):
    """abs + per-out-channel L1 norm, packed into per-tap bf16 matmul matrices.

    Returns (9, G, Cg, Cg) when `grouped`, else dense block-diagonal (9, C, C):
    index 0 = spatial tap, matmul layout [in_channel, out_channel] (conv) /
    [out_channel, in_channel] with spatially-flipped taps (conv_transpose).
    """
    C_out, C_in_g, KH, KW = attn_w.shape
    C = C_out
    cg = C // groups
    w = jnp.abs(attn_w.astype(jnp.float32))
    w = w / jnp.maximum(jnp.sum(w, axis=(1, 2, 3), keepdims=True), L1_EPS)
    wg = w.reshape(groups, cg, C_in_g, KH * KW)              # (g, co_g, ci_g, 9)
    wd_g = jnp.transpose(wg, (3, 0, 2, 1))                   # (9, g, ci_g, co_g)
    wt_g = jnp.transpose(wd_g[::-1], (0, 1, 3, 2))           # (9, g, co_g, ci_g)
    if grouped:
        return wd_g.astype(jnp.bfloat16), wt_g.astype(jnp.bfloat16)
    eye = jnp.eye(groups, dtype=jnp.float32)

    def dense(tap):                                          # (9,g,a,b) -> block-diag (9,C,C)
        return (eye[None, :, None, :, None] * tap[:, :, :, None, :]).reshape(KH * KW, C, C)

    return dense(wd_g).astype(jnp.bfloat16), dense(wt_g).astype(jnp.bfloat16)


# --------------------------------------------------------------------------- #
# Forward wrapper.
# --------------------------------------------------------------------------- #
def block_forward(x_nchw, params, *, num_heads, n_iterations):
    N, C, H, W = x_nchw.shape
    HW = H * W
    limit = _vmem_limit_bytes()

    x3 = x_nchw.reshape(N, C, HW).astype(jnp.float32)        # free reshape (stays NCHW)

    # grouped per-head contraction only when the head width is lane-aligned.
    cg = C // num_heads
    use_grouped = num_heads > 1 and cg % 128 == 0
    wd, wt = prepare_nnmf_weights(params["attn_w"], num_heads, use_grouped)
    g1 = params["norm1_w"].reshape(1, C).astype(jnp.float32)
    b1 = params["norm1_b"].reshape(1, C).astype(jnp.float32)

    # 2 images per NNMF step when the working set fits: two independent 25-iter
    # chains give the scheduler matmuls to fill the roll/mask/reciprocal bubbles.
    per_image = HW * C * 4
    b_blk = 2 if (N % 2 == 0 and 10 * 2 * per_image + 4 * wd.size <= limit) else 1
    rows = b_blk * HW

    w_idx = (lambda n: (0, 0, 0)) if wd.ndim == 3 else (lambda n: (0, 0, 0, 0))

    s_tok = pl.pallas_call(
        functools.partial(nnmf_kernel, H=H, W=W, C=C, groups=num_heads,
                          n_iter=n_iterations, b_blk=b_blk),
        out_shape=jax.ShapeDtypeStruct((N * HW, C), jnp.float32),
        grid=(N // b_blk,),
        in_specs=[
            pl.BlockSpec((b_blk, C, HW), lambda n: (n, 0, 0)),
            _const_spec((1, C), lambda n: (0, 0)),
            _const_spec((1, C), lambda n: (0, 0)),
            _const_spec(wd.shape, w_idx),
            _const_spec(wt.shape, w_idx),
        ],
        out_specs=pl.BlockSpec((rows, C), lambda n: (n, 0)),
        compiler_params=pltpu.CompilerParams(
            dimension_semantics=("parallel",),
            vmem_limit_bytes=limit,
        ),
    )(x3, g1, b1, wd, wt)

    # Residual stream (x + attn) is already fused into s_tok, so kernel B needs
    # only one activation input and no input-side transpose.
    s3 = s_tok.reshape(N, HW, C)
    Hd = params["mlp_w1"].shape[1]

    # token tile for the MLP: as large as the budget allows (amortizes grid
    # overhead); must be HW itself or a lane-aligned (x128) divisor of HW.
    cap_rows = 2048 if limit >= 96 * 1024 * 1024 else 1024
    tile_hw = HW
    if HW > cap_rows:
        for d in range(cap_rows, 127, -1):
            if HW % d == 0 and d % 128 == 0:
                tile_hw = d
                break
        # TODO(synk): if HW has no lane-aligned divisor <= cap_rows the full-HW
        # block is kept; extremely large HW*mlp_hidden on v7x would then want an
        # in-kernel row-chunked MLP loop.

    y3 = pl.pallas_call(
        mlp_kernel,
        out_shape=jax.ShapeDtypeStruct((N, C, HW), jnp.float32),
        grid=(N, HW // tile_hw),
        in_specs=[
            pl.BlockSpec((1, tile_hw, C), lambda n, j: (n, j, 0)),
            _const_spec((1, C), lambda n, j: (0, 0)),
            _const_spec((1, C), lambda n, j: (0, 0)),
            _const_spec((C, Hd), lambda n, j: (0, 0)),
            _const_spec((1, Hd), lambda n, j: (0, 0)),
            _const_spec((Hd, C), lambda n, j: (0, 0)),
            _const_spec((1, C), lambda n, j: (0, 0)),
        ],
        out_specs=pl.BlockSpec((1, C, tile_hw), lambda n, j: (n, 0, j)),
        compiler_params=pltpu.CompilerParams(
            dimension_semantics=("parallel", "parallel"),
            vmem_limit_bytes=limit,
        ),
    )(s3,
      params["norm2_w"].reshape(1, C).astype(jnp.float32),
      params["norm2_b"].reshape(1, C).astype(jnp.float32),
      params["mlp_w1"].astype(jnp.bfloat16),
      params["mlp_b1"].reshape(1, Hd).astype(jnp.float32),
      params["mlp_w2"].astype(jnp.bfloat16),
      params["mlp_b2"].reshape(1, C).astype(jnp.float32))

    return y3.reshape(N, C, H, W)


def init_params(key, dim, num_heads, mlp_ratio):
    hidden = int(dim * mlp_ratio)
    k = jax.random.split(key, 3)
    return {
        "norm1_w": jnp.ones((dim,), jnp.float32),
        "norm1_b": jnp.zeros((dim,), jnp.float32),
        # NNMFConv2d weight: (out_ch, in_ch // groups, k, k), torch.rand-like init
        "attn_w": jax.random.uniform(k[0], (dim, dim // num_heads, 3, 3), jnp.float32),
        "norm2_w": jnp.ones((dim,), jnp.float32),
        "norm2_b": jnp.zeros((dim,), jnp.float32),
        "mlp_w1": 0.02 * jax.random.normal(k[1], (dim, hidden), jnp.float32),
        "mlp_b1": jnp.zeros((hidden,), jnp.float32),
        "mlp_w2": 0.02 * jax.random.normal(k[2], (hidden, dim), jnp.float32),
        "mlp_b2": jnp.zeros((dim,), jnp.float32),
    }


if __name__ == "__main__":
    key = jax.random.PRNGKey(0)
    kx, kp = jax.random.split(key)

    N, C, H, W = 2, 8, 8, 8          # dim = embed_dim = 8
    num_heads = 2                    # groups of the NNMF grouped conv
    x = jax.random.normal(kx, (N, C, H, W), jnp.float32)
    params = init_params(kp, dim=C, num_heads=num_heads, mlp_ratio=4)

    _single_buffer_supported()       # run the Buffered(1) feature probe outside jit

    fwd = jax.jit(functools.partial(block_forward, num_heads=num_heads, n_iterations=25))
    out = jax.block_until_ready(fwd(x, params))

    assert out.shape == (N, C, H, W)
    assert bool(jnp.all(jnp.isfinite(out)))
    print("KERNEL_OK")
</pallas_src>

<mosaic_0001>
module attributes {stable_mosaic.version = 11 : i64} {
  func.func @_probe_copy_kernel(%arg0: i32, %arg1: memref<8x128xf32, #tpu.memory_space<vmem>>, %arg2: memref<8x128xf32, #tpu.memory_space<vmem>>) attributes {dimension_semantics = [#tpu.dimension_semantics<arbitrary>], iteration_bounds = array<i64: 2>, scalar_prefetch = 0 : i64, scratch_operands = 0 : i64, tpu.core_type = #tpu.core_type<tc>, window_params = [{pipeline_mode = #tpu.pipeline_mode<synchronous>, transform_indices = @transform_0, window_bounds = array<i64: 8, 128>}, {pipeline_mode = #tpu.pipeline_mode<synchronous>, transform_indices = @transform_1, window_bounds = array<i64: 8, 128>}]} {
    %c0 = arith.constant 0 : index
    %c0_0 = arith.constant 0 : index
    %0 = vector.load %arg1[%c0, %c0_0] : memref<8x128xf32, #tpu.memory_space<vmem>>, vector<8x128xf32>
    %c0_1 = arith.constant 0 : index
    %c0_2 = arith.constant 0 : index
    %1 = vector.load %arg2[%c0_1, %c0_2] : memref<8x128xf32, #tpu.memory_space<vmem>>, vector<8x128xf32>
    tpu.vector_store %arg2[%c0_1, %c0_2], %0 {strides = array<i32>} : memref<8x128xf32, #tpu.memory_space<vmem>>, vector<8x128xf32>,
    return
  }
  func.func @transform_0(%arg0: i32) -> (i32, i32) {
    %c0_i32 = arith.constant 0 : i32
    %c0_i32_0 = arith.constant 0 : i32
    %c0_i32_1 = arith.constant 0 : i32
    return %c0_i32, %c0_i32_0 : i32, i32
  }
  func.func @transform_1(%arg0: i32) -> (i32, i32) {
    %c0_i32 = arith.constant 0 : i32
    %c0_i32_0 = arith.constant 0 : i32
    %c0_i32_1 = arith.constant 0 : i32
    return %c0_i32, %c0_i32_0 : i32, i32
  }
}

module attributes {stable_mosaic.version = 11 : i64} {
  func.func @mlp_kernel(%arg0: i32, %arg1: i32, %arg2: memref<1x64x8xf32, #tpu.memory_space<vmem>>, %arg3: memref<1x8xf32, #tpu.memory_space<vmem>>, %arg4: memref<1x8xf32, #tpu.memory_space<vmem>>, %arg5: memref<8x32xbf16, #tpu.memory_space<vmem>>, %arg6: memref<1x32xf32, #tpu.memory_space<vmem>>, %arg7: memref<32x8xbf16, #tpu.memory_space<vmem>>, %arg8: memref<1x8xf32, #tpu.memory_space<vmem>>, %arg9: memref<1x8x64xf32, #tpu.memory_space<vmem>>) attributes {dimension_semantics = [#tpu.dimension_semantics<parallel>, #tpu.dimension_semantics<parallel>], iteration_bounds = array<i64: 2, 1>, scalar_prefetch = 0 : i64, scratch_operands = 0 : i64, tpu.core_type = #tpu.core_type<tc>, window_params = [{transform_indices = @transform_0, window_bounds = array<i64: 1, 64, 8>}, {pipeline_mode = #tpu.pipeline_mode<synchronous>, transform_indices = @transform_1, window_bounds = array<i64: 1, 8>}, {pipeline_mode = #tpu.pipeline_mode<synchronous>, transform_indices = @transform_2, window_bounds = array<i64: 1, 8>}, {pipeline_mode = #tpu.pipeline_mode<synchronous>, transform_indices = @transform_3, window_bounds = array<i64: 8, 32>}, {pipeline_mode = #tpu.pipeline_mode<synchronous>, transform_indices = @transform_4, window_bounds = array<i64: 1, 32>}, {pipeline_mode = #tpu.pipeline_mode<synchronous>, transform_indices = @transform_5, window_bounds = array<i64: 32, 8>}, {pipeline_mode = #tpu.pipeline_mode<synchronous>, transform_indices = @transform_6, window_bounds = array<i64: 1, 8>}, {transform_indices = @transform_7, window_bounds = array<i64: 1, 8, 64>}]} {
    %c0 = arith.constant 0 : index
    %c0_0 = arith.constant 0 : index
    %c0_1 = arith.constant 0 : index
    %0 = vector.load %arg2[%c0, %c0_0, %c0_1] : memref<1x64x8xf32, #tpu.memory_space<vmem>>, vector<1x64x8xf32>
    %1 = vector.shape_cast %0 : vector<1x64x8xf32> to vector<64x8xf32>
    %cst = arith.constant dense<0.000000e+00> : vector<64xf32>
    %2 = vector.multi_reduction <add>, %1, %cst [1] : vector<64x8xf32> to vector<64xf32>
    %3 = vector.shape_cast %2 : vector<64xf32> to vector<64x1xf32>
    %cst_2 = arith.constant 8.000000e+00 : f32
    %4 = vector.broadcast %cst_2 : f32 to vector<64x1xf32>
    %5 = arith.divf %3, %4 : vector<64x1xf32>
    %6 = vector.broadcast %5 : vector<64x1xf32> to vector<64x8xf32>
    %7 = arith.subf %1, %6 : vector<64x8xf32>
    %8 = arith.mulf %7, %7 : vector<64x8xf32>
    %cst_3 = arith.constant dense<0.000000e+00> : vector<64xf32>
    %9 = vector.multi_reduction <add>, %8, %cst_3 [1] : vector<64x8xf32> to vector<64xf32>
    %10 = vector.shape_cast %9 : vector<64xf32> to vector<64x1xf32>
    %cst_4 = arith.constant 8.000000e+00 : f32
    %11 = vector.broadcast %cst_4 : f32 to vector<64x1xf32>
    %12 = arith.divf %10, %11 : vector<64x1xf32>
    %13 = vector.broadcast %5 : vector<64x1xf32> to vector<64x8xf32>
    %14 = arith.subf %1, %13 : vector<64x8xf32>
    %cst_5 = arith.constant 9.99999974E-6 : f32
    %15 = vector.broadcast %cst_5 : f32 to vector<64x1xf32>
    %16 = arith.addf %12, %15 : vector<64x1xf32>
    %17 = math.rsqrt %16 : vector<64x1xf32>
    %18 = vector.broadcast %17 : vector<64x1xf32> to vector<64x8xf32>
    %19 = arith.mulf %14, %18 : vector<64x8xf32>
    %c0_6 = arith.constant 0 : index
    %c0_7 = arith.constant 0 : index
    %20 = vector.load %arg3[%c0_6, %c0_7] : memref<1x8xf32, #tpu.memory_space<vmem>>, vector<1x8xf32>
    %21 = vector.broadcast %20 : vector<1x8xf32> to vector<64x8xf32>
    %22 = arith.mulf %19, %21 : vector<64x8xf32>
    %c0_8 = arith.constant 0 : index
    %c0_9 = arith.constant 0 : index
    %23 = vector.load %arg4[%c0_8, %c0_9] : memref<1x8xf32, #tpu.memory_space<vmem>>, vector<1x8xf32>
    %24 = vector.broadcast %23 : vector<1x8xf32> to vector<64x8xf32>
    %25 = arith.addf %22, %24 : vector<64x8xf32>
    %26 = arith.truncf %25 : vector<64x8xf32> to vector<64x8xbf16>
    %c0_10 = arith.constant 0 : index
    %c0_11 = arith.constant 0 : index
    %27 = vector.load %arg5[%c0_10, %c0_11] : memref<8x32xbf16, #tpu.memory_space<vmem>>, vector<8x32xbf16>
    %cst_12 = arith.constant dense<0.000000e+00> : vector<64x32xf32>
    %28 = tpu.matmul %26, %27, %cst_12 {dimension_numbers = #tpu.dot_dimension_numbers<[1], [0], [0], [1], [0, 0, 1, 1], [], []>} : vector<64x8xbf16>, vector<8x32xbf16>, vector<64x32xf32> -> vector<64x32xf32>
    %c0_13 = arith.constant 0 : index
    %c0_14 = arith.constant 0 : index
    %29 = vector.load %arg6[%c0_13, %c0_14] : memref<1x32xf32, #tpu.memory_space<vmem>>, vector<1x32xf32>
    %30 = vector.broadcast %29 : vector<1x32xf32> to vector<64x32xf32>
    %31 = arith.addf %28, %30 : vector<64x32xf32>
    %cst_15 = arith.constant 5.000000e-01 : f32
    %32 = vector.broadcast %cst_15 : f32 to vector<64x32xf32>
    %33 = arith.mulf %32, %31 : vector<64x32xf32>
    %cst_16 = arith.constant 4.471500e-02 : f32
    %34 = vector.broadcast %cst_16 : f32 to vector<64x32xf32>
    %35 = arith.mulf %34, %31 : vector<64x32xf32>
    %36 = arith.mulf %35, %31 : vector<64x32xf32>
    %37 = arith.mulf %36, %31 : vector<64x32xf32>
    %38 = arith.addf %31, %37 : vector<64x32xf32>
    %cst_17 = arith.constant 0.797884583 : f32
    %39 = vector.broadcast %cst_17 : f32 to vector<64x32xf32>
    %40 = arith.mulf %39, %38 : vector<64x32xf32>
    %41 = math.tanh %40 : vector<64x32xf32>
    %cst_18 = arith.constant 1.000000e+00 : f32
    %42 = vector.broadcast %cst_18 : f32 to vector<64x32xf32>
    %43 = arith.addf %42, %41 : vector<64x32xf32>
    %44 = arith.mulf %33, %43 : vector<64x32xf32>
    %45 = arith.truncf %44 : vector<64x32xf32> to vector<64x32xbf16>
    %c0_19 = arith.constant 0 : index
    %c0_20 = arith.constant 0 : index
    %46 = vector.load %arg7[%c0_19, %c0_20] : memref<32x8xbf16, #tpu.memory_space<vmem>>, vector<32x8xbf16>
    %cst_21 = arith.constant dense<0.000000e+00> : vector<64x8xf32>
    %47 = tpu.matmul %45, %46, %cst_21 {dimension_numbers = #tpu.dot_dimension_numbers<[1], [0], [0], [1], [0, 0, 1, 1], [], []>} : vector<64x32xbf16>, vector<32x8xbf16>, vector<64x8xf32> -> vector<64x8xf32>
    %c0_22 = arith.constant 0 : index
    %c0_23 = arith.constant 0 : index
    %48 = vector.load %arg8[%c0_22, %c0_23] : memref<1x8xf32, #tpu.memory_space<vmem>>, vector<1x8xf32>
    %49 = vector.broadcast %48 : vector<1x8xf32> to vector<64x8xf32>
    %50 = arith.addf %47, %49 : vector<64x8xf32>
    %51 = arith.addf %1, %50 : vector<64x8xf32>
    %52 = tpu.transpose %51, [1, 0] : vector<64x8xf32> -> vector<8x64xf32>
    %c0_24 = arith.constant 0 : index
    %c0_25 = arith.constant 0 : index
    %c0_26 = arith.constant 0 : index
    %53 = vector.load %arg9[%c0_24, %c0_25, %c0_26] : memref<1x8x64xf32, #tpu.memory_space<vmem>>, vector<1x8x64xf32>
    %54 = vector.shape_cast %53 : vector<1x8x64xf32> to vector<8x64xf32>
    %55 = vector.shape_cast %52 : vector<8x64xf32> to vector<1x8x64xf32>
    tpu.vector_store %arg9[%c0_24, %c0_25, %c0_26], %55 {strides = array<i32>} : memref<1x8x64xf32, #tpu.memory_space<vmem>>, vector<1x8x64xf32>,
    return
  }
  func.func @transform_0(%arg0: i32, %arg1: i32) -> (i32, i32, i32) {
    %c0_i32 = arith.constant 0 : i32
    %c0_i32_0 = arith.constant 0 : i32
    return %arg0, %arg1, %c0_i32 : i32, i32, i32
  }
  func.func @transform_1(%arg0: i32, %arg1: i32) -> (i32, i32) {
    %c0_i32 = arith.constant 0 : i32
    %c0_i32_0 = arith.constant 0 : i32
    %c0_i32_1 = arith.constant 0 : i32
    return %c0_i32, %c0_i32_0 : i32, i32
  }
  func.func @transform_2(%arg0: i32, %arg1: i32) -> (i32, i32) {
    %c0_i32 = arith.constant 0 : i32
    %c0_i32_0 = arith.constant 0 : i32
    %c0_i32_1 = arith.constant 0 : i32
    return %c0_i32, %c0_i32_0 : i32, i32
  }
  func.func @transform_3(%arg0: i32, %arg1: i32) -> (i32, i32) {
    %c0_i32 = arith.constant 0 : i32
    %c0_i32_0 = arith.constant 0 : i32
    %c0_i32_1 = arith.constant 0 : i32
    return %c0_i32, %c0_i32_0 : i32, i32
  }
  func.func @transform_4(%arg0: i32, %arg1: i32) -> (i32, i32) {
    %c0_i32 = arith.constant 0 : i32
    %c0_i32_0 = arith.constant 0 : i32
    %c0_i32_1 = arith.constant 0 : i32
    return %c0_i32, %c0_i32_0 : i32, i32
  }
  func.func @transform_5(%arg0: i32, %arg1: i32) -> (i32, i32) {
    %c0_i32 = arith.constant 0 : i32
    %c0_i32_0 = arith.constant 0 : i32
    %c0_i32_1 = arith.constant 0 : i32
    return %c0_i32, %c0_i32_0 : i32, i32
  }
  func.func @transform_6(%arg0: i32, %arg1: i32) -> (i32, i32) {
    %c0_i32 = arith.constant 0 : i32
    %c0_i32_0 = arith.constant 0 : i32
    %c0_i32_1 = arith.constant 0 : i32
    return %c0_i32, %c0_i32_0 : i32, i32
  }
  func.func @transform_7(%arg0: i32, %arg1: i32) -> (i32, i32, i32) {
    %c0_i32 = arith.constant 0 : i32
    %c0_i32_0 = arith.constant 0 : i32
    return %arg0, %c0_i32, %arg1 : i32, i32, i32
  }
}

module attributes {stable_mosaic.version = 11 : i64} {
  func.func @nnmf_kernel(%arg0: i32, %arg1: memref<2x8x64xf32, #tpu.memory_space<vmem>>, %arg2: memref<1x8xf32, #tpu.memory_space<vmem>>, %arg3: memref<1x8xf32, #tpu.memory_space<vmem>>, %arg4: memref<9x8x8xbf16, #tpu.memory_space<vmem>>, %arg5: memref<9x8x8xbf16, #tpu.memory_space<vmem>>, %arg6: memref<128x8xf32, #tpu.memory_space<vmem>>) attributes {dimension_semantics = [#tpu.dimension_semantics<parallel>], iteration_bounds = array<i64: 1>, scalar_prefetch = 0 : i64, scratch_operands = 0 : i64, tpu.core_type = #tpu.core_type<tc>, window_params = [{transform_indices = @transform_0, window_bounds = array<i64: 2, 8, 64>}, {pipeline_mode = #tpu.pipeline_mode<synchronous>, transform_indices = @transform_1, window_bounds = array<i64: 1, 8>}, {pipeline_mode = #tpu.pipeline_mode<synchronous>, transform_indices = @transform_2, window_bounds = array<i64: 1, 8>}, {pipeline_mode = #tpu.pipeline_mode<synchronous>, transform_indices = @transform_3, window_bounds = array<i64: 9, 8, 8>}, {pipeline_mode = #tpu.pipeline_mode<synchronous>, transform_indices = @transform_4, window_bounds = array<i64: 9, 8, 8>}, {transform_indices = @transform_5, window_bounds = array<i64: 128, 8>}]} {
    %c0 = arith.constant 0 : index
    %c0_0 = arith.constant 0 : index
    %c0_1 = arith.constant 0 : index
    %0 = vector.load %arg1[%c0, %c0_0, %c0_1] : memref<2x8x64xf32, #tpu.memory_space<vmem>>, vector<1x8x64xf32>
    %1 = vector.shape_cast %0 : vector<1x8x64xf32> to vector<8x64xf32>
    %2 = tpu.transpose %1, [1, 0] : vector<8x64xf32> -> vector<64x8xf32>
    %c1 = arith.constant 1 : index
    %c0_2 = arith.constant 0 : index
    %c0_3 = arith.constant 0 : index
    %3 = vector.load %arg1[%c1, %c0_2, %c0_3] : memref<2x8x64xf32, #tpu.memory_space<vmem>>, vector<1x8x64xf32>
    %4 = vector.shape_cast %3 : vector<1x8x64xf32> to vector<8x64xf32>
    %5 = tpu.transpose %4, [1, 0] : vector<8x64xf32> -> vector<64x8xf32>
    %6 = tpu.concatenate %2, %5 in 0 : vector<64x8xf32>, vector<64x8xf32> -> vector<128x8xf32>
    %cst = arith.constant dense<0.000000e+00> : vector<128xf32>
    %7 = vector.multi_reduction <add>, %6, %cst [1] : vector<128x8xf32> to vector<128xf32>
    %8 = vector.shape_cast %7 : vector<128xf32> to vector<128x1xf32>
    %cst_4 = arith.constant 8.000000e+00 : f32
    %9 = vector.broadcast %cst_4 : f32 to vector<128x1xf32>
    %10 = arith.divf %8, %9 : vector<128x1xf32>
    %11 = vector.broadcast %10 : vector<128x1xf32> to vector<128x8xf32>
    %12 = arith.subf %6, %11 : vector<128x8xf32>
    %13 = arith.mulf %12, %12 : vector<128x8xf32>
    %cst_5 = arith.constant dense<0.000000e+00> : vector<128xf32>
    %14 = vector.multi_reduction <add>, %13, %cst_5 [1] : vector<128x8xf32> to vector<128xf32>
    %15 = vector.shape_cast %14 : vector<128xf32> to vector<128x1xf32>
    %cst_6 = arith.constant 8.000000e+00 : f32
    %16 = vector.broadcast %cst_6 : f32 to vector<128x1xf32>
    %17 = arith.divf %15, %16 : vector<128x1xf32>
    %18 = vector.broadcast %10 : vector<128x1xf32> to vector<128x8xf32>
    %19 = arith.subf %6, %18 : vector<128x8xf32>
    %cst_7 = arith.constant 9.99999997E-7 : f32
    %20 = vector.broadcast %cst_7 : f32 to vector<128x1xf32>
    %21 = arith.addf %17, %20 : vector<128x1xf32>
    %22 = math.rsqrt %21 : vector<128x1xf32>
    %23 = vector.broadcast %22 : vector<128x1xf32> to vector<128x8xf32>
    %24 = arith.mulf %19, %23 : vector<128x8xf32>
    %c0_8 = arith.constant 0 : index
    %c0_9 = arith.constant 0 : index
    %25 = vector.load %arg2[%c0_8, %c0_9] : memref<1x8xf32, #tpu.memory_space<vmem>>, vector<1x8xf32>
    %26 = vector.broadcast %25 : vector<1x8xf32> to vector<128x8xf32>
    %27 = arith.mulf %24, %26 : vector<128x8xf32>
    %c0_10 = arith.constant 0 : index
    %c0_11 = arith.constant 0 : index
    %28 = vector.load %arg3[%c0_10, %c0_11] : memref<1x8xf32, #tpu.memory_space<vmem>>, vector<1x8xf32>
    %29 = vector.broadcast %28 : vector<1x8xf32> to vector<128x8xf32>
    %30 = arith.addf %27, %29 : vector<128x8xf32>
    %cst_12 = arith.constant 0.000000e+00 : f32
    %31 = vector.broadcast %cst_12 : f32 to vector<128x8xf32>
    %32 = arith.maximumf %30, %31 : vector<128x8xf32>
    %cst_13 = arith.constant dense<0.000000e+00> : vector<128xf32>
    %33 = vector.multi_reduction <add>, %32, %cst_13 [1] : vector<128x8xf32> to vector<128xf32>
    %34 = vector.shape_cast %33 : vector<128xf32> to vector<128x1xf32>
    %cst_14 = arith.constant 9.99999996E-13 : f32
    %35 = vector.broadcast %cst_14 : f32 to vector<128x1xf32>
    %36 = arith.maximumf %34, %35 : vector<128x1xf32>
    %cst_15 = arith.constant 1.000000e+00 : f32
    %37 = vector.broadcast %cst_15 : f32 to vector<128x1xf32>
    %38 = arith.divf %37, %36 : vector<128x1xf32>
    %39 = vector.broadcast %38 : vector<128x1xf32> to vector<128x8xf32>
    %40 = arith.mulf %32, %39 : vector<128x8xf32>
    %41 = tpu.iota {dimensions = array<i32: 0>} : vector<128x8xi32>
    %42 = arith.sitofp %41 : vector<128x8xi32> to vector<128x8xf32>
    %cst_16 = arith.constant 5.000000e-01 : f32
    %43 = vector.broadcast %cst_16 : f32 to vector<128x8xf32>
    %44 = arith.addf %42, %43 : vector<128x8xf32>
    %cst_17 = arith.constant 1.250000e-01 : f32
    %45 = vector.broadcast %cst_17 : f32 to vector<128x8xf32>
    %46 = arith.mulf %44, %45 : vector<128x8xf32>
    %47 = math.floor %46 : vector<128x8xf32>
    %cst_18 = arith.constant 8.000000e+00 : f32
    %48 = vector.broadcast %cst_18 : f32 to vector<128x8xf32>
    %49 = arith.mulf %47, %48 : vector<128x8xf32>
    %50 = arith.subf %42, %49 : vector<128x8xf32>
    %cst_19 = arith.constant 5.000000e-01 : f32
    %51 = vector.broadcast %cst_19 : f32 to vector<128x8xf32>
    %52 = arith.addf %47, %51 : vector<128x8xf32>
    %cst_20 = arith.constant 1.250000e-01 : f32
    %53 = vector.broadcast %cst_20 : f32 to vector<128x8xf32>
    %54 = arith.mulf %52, %53 : vector<128x8xf32>
    %55 = math.floor %54 : vector<128x8xf32>
    %cst_21 = arith.constant 8.000000e+00 : f32
    %56 = vector.broadcast %cst_21 : f32 to vector<128x8xf32>
    %57 = arith.mulf %55, %56 : vector<128x8xf32>
    %58 = arith.subf %47, %57 : vector<128x8xf32>
    %cst_22 = arith.constant 5.000000e-01 : f32
    %59 = vector.broadcast %cst_22 : f32 to vector<128x8xf32>
    %60 = arith.cmpf oge, %58, %59 : vector<128x8xf32>
    %cst_23 = arith.constant 6.500000e+00 : f32
    %61 = vector.broadcast %cst_23 : f32 to vector<128x8xf32>
    %62 = arith.cmpf ole, %58, %61 : vector<128x8xf32>
    %cst_24 = arith.constant 5.000000e-01 : f32
    %63 = vector.broadcast %cst_24 : f32 to vector<128x8xf32>
    %64 = arith.cmpf oge, %50, %63 : vector<128x8xf32>
    %cst_25 = arith.constant 6.500000e+00 : f32
    %65 = vector.broadcast %cst_25 : f32 to vector<128x8xf32>
    %66 = arith.cmpf ole, %50, %65 : vector<128x8xf32>
    %cst_26 = arith.constant 1.250000e-01 : f32
    %67 = vector.broadcast %cst_26 : f32 to vector<128x8xf32>
    %c0_i32 = arith.constant 0 : i32
    %c25_i32 = arith.constant 25 : i32
    %68 = arith.addi %c0_i32, %c25_i32 : i32
    %c1_i32 = arith.constant 1 : i32
    %69 = scf.for %arg7 = %c0_i32 to %68 step %c1_i32 iter_args(%arg8 = %67) -> (vector<128x8xf32>)  : i32 {
      %72 = arith.truncf %arg8 : vector<128x8xf32> to vector<128x8xbf16>
      %c0_29 = arith.constant 0 : index
      %c0_30 = arith.constant 0 : index
      %c0_31 = arith.constant 0 : index
      %73 = vector.load %arg5[%c0_29, %c0_30, %c0_31] : memref<9x8x8xbf16, #tpu.memory_space<vmem>>, vector<1x8x8xbf16>
      %74 = vector.shape_cast %73 : vector<1x8x8xbf16> to vector<8x8xbf16>
      %cst_32 = arith.constant dense<0.000000e+00> : vector<128x8xf32>
      %75 = tpu.matmul %72, %74, %cst_32 {dimension_numbers = #tpu.dot_dimension_numbers<[1], [0], [0], [1], [0, 0, 1, 1], [], []>} : vector<128x8xbf16>, vector<8x8xbf16>, vector<128x8xf32> -> vector<128x8xf32>
      %c9_i32 = arith.constant 9 : i32
      %76 = tpu.dynamic_rotate %75 by %c9_i32 dim 0 : vector<128x8xf32>, i32 -> vector<128x8xf32>
      %cst_33 = arith.constant 0.000000e+00 : f32
      %77 = vector.broadcast %cst_33 : f32 to vector<128x8xf32>
      %78 = arith.select %60, %76, %77 : vector<128x8xi1>, vector<128x8xf32>
      %cst_34 = arith.constant 0.000000e+00 : f32
      %79 = vector.broadcast %cst_34 : f32 to vector<128x8xf32>
      %80 = arith.select %64, %78, %79 : vector<128x8xi1>, vector<128x8xf32>
      %c1_35 = arith.constant 1 : index
      %c0_36 = arith.constant 0 : index
      %c0_37 = arith.constant 0 : index
      %81 = vector.load %arg5[%c1_35, %c0_36, %c0_37] : memref<9x8x8xbf16, #tpu.memory_space<vmem>>, vector<1x8x8xbf16>
      %82 = vector.shape_cast %81 : vector<1x8x8xbf16> to vector<8x8xbf16>
      %cst_38 = arith.constant dense<0.000000e+00> : vector<128x8xf32>
      %83 = tpu.matmul %72, %82, %cst_38 {dimension_numbers = #tpu.dot_dimension_numbers<[1], [0], [0], [1], [0, 0, 1, 1], [], []>} : vector<128x8xbf16>, vector<8x8xbf16>, vector<128x8xf32> -> vector<128x8xf32>
      %c8_i32 = arith.constant 8 : i32
      %84 = tpu.dynamic_rotate %83 by %c8_i32 dim 0 : vector<128x8xf32>, i32 -> vector<128x8xf32>
      %cst_39 = arith.constant 0.000000e+00 : f32
      %85 = vector.broadcast %cst_39 : f32 to vector<128x8xf32>
      %86 = arith.select %60, %84, %85 : vector<128x8xi1>, vector<128x8xf32>
      %c2 = arith.constant 2 : index
      %c0_40 = arith.constant 0 : index
      %c0_41 = arith.constant 0 : index
      %87 = vector.load %arg5[%c2, %c0_40, %c0_41] : memref<9x8x8xbf16, #tpu.memory_space<vmem>>, vector<1x8x8xbf16>
      %88 = vector.shape_cast %87 : vector<1x8x8xbf16> to vector<8x8xbf16>
      %cst_42 = arith.constant dense<0.000000e+00> : vector<128x8xf32>
      %89 = tpu.matmul %72, %88, %cst_42 {dimension_numbers = #tpu.dot_dimension_numbers<[1], [0], [0], [1], [0, 0, 1, 1], [], []>} : vector<128x8xbf16>, vector<8x8xbf16>, vector<128x8xf32> -> vector<128x8xf32>
      %c7_i32 = arith.constant 7 : i32
      %90 = tpu.dynamic_rotate %89 by %c7_i32 dim 0 : vector<128x8xf32>, i32 -> vector<128x8xf32>
      %cst_43 = arith.constant 0.000000e+00 : f32
      %91 = vector.broadcast %cst_43 : f32 to vector<128x8xf32>
      %92 = arith.select %60, %90, %91 : vector<128x8xi1>, vector<128x8xf32>
      %cst_44 = arith.constant 0.000000e+00 : f32
      %93 = vector.broadcast %cst_44 : f32 to vector<128x8xf32>
      %94 = arith.select %66, %92, %93 : vector<128x8xi1>, vector<128x8xf32>
      %95 = arith.addf %80, %94 : vector<128x8xf32>
      %c3 = arith.constant 3 : index
      %c0_45 = arith.constant 0 : index
      %c0_46 = arith.constant 0 : index
      %96 = vector.load %arg5[%c3, %c0_45, %c0_46] : memref<9x8x8xbf16, #tpu.memory_space<vmem>>, vector<1x8x8xbf16>
      %97 = vector.shape_cast %96 : vector<1x8x8xbf16> to vector<8x8xbf16>
      %cst_47 = arith.constant dense<0.000000e+00> : vector<128x8xf32>
      %98 = tpu.matmul %72, %97, %cst_47 {dimension_numbers = #tpu.dot_dimension_numbers<[1], [0], [0], [1], [0, 0, 1, 1], [], []>} : vector<128x8xbf16>, vector<8x8xbf16>, vector<128x8xf32> -> vector<128x8xf32>
      %c1_i32_48 = arith.constant 1 : i32
      %99 = tpu.dynamic_rotate %98 by %c1_i32_48 dim 0 : vector<128x8xf32>, i32 -> vector<128x8xf32>
      %cst_49 = arith.constant 0.000000e+00 : f32
      %100 = vector.broadcast %cst_49 : f32 to vector<128x8xf32>
      %101 = arith.select %64, %99, %100 : vector<128x8xi1>, vector<128x8xf32>
      %102 = arith.addf %86, %101 : vector<128x8xf32>
      %c4 = arith.constant 4 : index
      %c0_50 = arith.constant 0 : index
      %c0_51 = arith.constant 0 : index
      %103 = vector.load %arg5[%c4, %c0_50, %c0_51] : memref<9x8x8xbf16, #tpu.memory_space<vmem>>, vector<1x8x8xbf16>
      %104 = vector.shape_cast %103 : vector<1x8x8xbf16> to vector<8x8xbf16>
      %cst_52 = arith.constant dense<0.000000e+00> : vector<128x8xf32>
      %105 = tpu.matmul %72, %104, %cst_52 {dimension_numbers = #tpu.dot_dimension_numbers<[1], [0], [0], [1], [0, 0, 1, 1], [], []>} : vector<128x8xbf16>, vector<8x8xbf16>, vector<128x8xf32> -> vector<128x8xf32>
      %106 = arith.addf %95, %105 : vector<128x8xf32>
      %c5 = arith.constant 5 : index
      %c0_53 = arith.constant 0 : index
      %c0_54 = arith.constant 0 : index
      %107 = vector.load %arg5[%c5, %c0_53, %c0_54] : memref<9x8x8xbf16, #tpu.memory_space<vmem>>, vector<1x8x8xbf16>
      %108 = vector.shape_cast %107 : vector<1x8x8xbf16> to vector<8x8xbf16>
      %cst_55 = arith.constant dense<0.000000e+00> : vector<128x8xf32>
      %109 = tpu.matmul %72, %108, %cst_55 {dimension_numbers = #tpu.dot_dimension_numbers<[1], [0], [0], [1], [0, 0, 1, 1], [], []>} : vector<128x8xbf16>, vector<8x8xbf16>, vector<128x8xf32> -> vector<128x8xf32>
      %c127_i32 = arith.constant 127 : i32
      %110 = tpu.dynamic_rotate %109 by %c127_i32 dim 0 : vector<128x8xf32>, i32 -> vector<128x8xf32>
      %cst_56 = arith.constant 0.000000e+00 : f32
      %111 = vector.broadcast %cst_56 : f32 to vector<128x8xf32>
      %112 = arith.select %66, %110, %111 : vector<128x8xi1>, vector<128x8xf32>
      %113 = arith.addf %102, %112 : vector<128x8xf32>
      %c6 = arith.constant 6 : index
      %c0_57 = arith.constant 0 : index
      %c0_58 = arith.constant 0 : index
      %114 = vector.load %arg5[%c6, %c0_57, %c0_58] : memref<9x8x8xbf16, #tpu.memory_space<vmem>>, vector<1x8x8xbf16>
      %115 = vector.shape_cast %114 : vector<1x8x8xbf16> to vector<8x8xbf16>
      %cst_59 = arith.constant dense<0.000000e+00> : vector<128x8xf32>
      %116 = tpu.matmul %72, %115, %cst_59 {dimension_numbers = #tpu.dot_dimension_numbers<[1], [0], [0], [1], [0, 0, 1, 1], [], []>} : vector<128x8xbf16>, vector<8x8xbf16>, vector<128x8xf32> -> vector<128x8xf32>
      %c121_i32 = arith.constant 121 : i32
      %117 = tpu.dynamic_rotate %116 by %c121_i32 dim 0 : vector<128x8xf32>, i32 -> vector<128x8xf32>
      %cst_60 = arith.constant 0.000000e+00 : f32
      %118 = vector.broadcast %cst_60 : f32 to vector<128x8xf32>
      %119 = arith.select %62, %117, %118 : vector<128x8xi1>, vector<128x8xf32>
      %cst_61 = arith.constant 0.000000e+00 : f32
      %120 = vector.broadcast %cst_61 : f32 to vector<128x8xf32>
      %121 = arith.select %64, %119, %120 : vector<128x8xi1>, vector<128x8xf32>
      %122 = arith.addf %106, %121 : vector<128x8xf32>
      %c7 = arith.constant 7 : index
      %c0_62 = arith.constant 0 : index
      %c0_63 = arith.constant 0 : index
      %123 = vector.load %arg5[%c7, %c0_62, %c0_63] : memref<9x8x8xbf16, #tpu.memory_space<vmem>>, vector<1x8x8xbf16>
      %124 = vector.shape_cast %123 : vector<1x8x8xbf16> to vector<8x8xbf16>
      %cst_64 = arith.constant dense<0.000000e+00> : vector<128x8xf32>
      %125 = tpu.matmul %72, %124, %cst_64 {dimension_numbers = #tpu.dot_dimension_numbers<[1], [0], [0], [1], [0, 0, 1, 1], [], []>} : vector<128x8xbf16>, vector<8x8xbf16>, vector<128x8xf32> -> vector<128x8xf32>
      %c120_i32 = arith.constant 120 : i32
      %126 = tpu.dynamic_rotate %125 by %c120_i32 dim 0 : vector<128x8xf32>, i32 -> vector<128x8xf32>
      %cst_65 = arith.constant 0.000000e+00 : f32
      %127 = vector.broadcast %cst_65 : f32 to vector<128x8xf32>
      %128 = arith.select %62, %126, %127 : vector<128x8xi1>, vector<128x8xf32>
      %129 = arith.addf %113, %128 : vector<128x8xf32>
      %c8 = arith.constant 8 : index
      %c0_66 = arith.constant 0 : index
      %c0_67 = arith.constant 0 : index
      %130 = vector.load %arg5[%c8, %c0_66, %c0_67] : memref<9x8x8xbf16, #tpu.memory_space<vmem>>, vector<1x8x8xbf16>
      %131 = vector.shape_cast %130 : vector<1x8x8xbf16> to vector<8x8xbf16>
      %cst_68 = arith.constant dense<0.000000e+00> : vector<128x8xf32>
      %132 = tpu.matmul %72, %131, %cst_68 {dimension_numbers = #tpu.dot_dimension_numbers<[1], [0], [0], [1], [0, 0, 1, 1], [], []>} : vector<128x8xbf16>, vector<8x8xbf16>, vector<128x8xf32> -> vector<128x8xf32>
      %c119_i32 = arith.constant 119 : i32
      %133 = tpu.dynamic_rotate %132 by %c119_i32 dim 0 : vector<128x8xf32>, i32 -> vector<128x8xf32>
      %cst_69 = arith.constant 0.000000e+00 : f32
      %134 = vector.broadcast %cst_69 : f32 to vector<128x8xf32>
      %135 = arith.select %62, %133, %134 : vector<128x8xi1>, vector<128x8xf32>
      %cst_70 = arith.constant 0.000000e+00 : f32
      %136 = vector.broadcast %cst_70 : f32 to vector<128x8xf32>
      %137 = arith.select %66, %135, %136 : vector<128x8xi1>, vector<128x8xf32>
      %138 = arith.addf %122, %137 : vector<128x8xf32>
      %139 = arith.addf %138, %129 : vector<128x8xf32>
      %cst_71 = arith.constant 9.99999997E-7 : f32
      %140 = vector.broadcast %cst_71 : f32 to vector<128x8xf32>
      %141 = arith.maximumf %139, %140 : vector<128x8xf32>
      %142 = tpu.reciprocal %141 {approx = true} : vector<128x8xf32> -> vector<128x8xf32>
      %143 = arith.mulf %141, %142 : vector<128x8xf32>
      %cst_72 = arith.constant 2.000000e+00 : f32
      %144 = vector.broadcast %cst_72 : f32 to vector<128x8xf32>
      %145 = arith.subf %144, %143 : vector<128x8xf32>
      %146 = arith.mulf %142, %145 : vector<128x8xf32>
      %147 = arith.mulf %40, %146 : vector<128x8xf32>
      %148 = arith.truncf %147 : vector<128x8xf32> to vector<128x8xbf16>
      %c0_73 = arith.constant 0 : index
      %c0_74 = arith.constant 0 : index
      %c0_75 = arith.constant 0 : index
      %149 = vector.load %arg4[%c0_73, %c0_74, %c0_75] : memref<9x8x8xbf16, #tpu.memory_space<vmem>>, vector<1x8x8xbf16>
      %150 = vector.shape_cast %149 : vector<1x8x8xbf16> to vector<8x8xbf16>
      %cst_76 = arith.constant dense<0.000000e+00> : vector<128x8xf32>
      %151 = tpu.matmul %148, %150, %cst_76 {dimension_numbers = #tpu.dot_dimension_numbers<[1], [0], [0], [1], [0, 0, 1, 1], [], []>} : vector<128x8xbf16>, vector<8x8xbf16>, vector<128x8xf32> -> vector<128x8xf32>
      %c9_i32_77 = arith.constant 9 : i32
      %152 = tpu.dynamic_rotate %151 by %c9_i32_77 dim 0 : vector<128x8xf32>, i32 -> vector<128x8xf32>
      %cst_78 = arith.constant 0.000000e+00 : f32
      %153 = vector.broadcast %cst_78 : f32 to vector<128x8xf32>
      %154 = arith.select %60, %152, %153 : vector<128x8xi1>, vector<128x8xf32>
      %cst_79 = arith.constant 0.000000e+00 : f32
      %155 = vector.broadcast %cst_79 : f32 to vector<128x8xf32>
      %156 = arith.select %64, %154, %155 : vector<128x8xi1>, vector<128x8xf32>
      %c1_80 = arith.constant 1 : index
      %c0_81 = arith.constant 0 : index
      %c0_82 = arith.constant 0 : index
      %157 = vector.load %arg4[%c1_80, %c0_81, %c0_82] : memref<9x8x8xbf16, #tpu.memory_space<vmem>>, vector<1x8x8xbf16>
      %158 = vector.shape_cast %157 : vector<1x8x8xbf16> to vector<8x8xbf16>
      %cst_83 = arith.constant dense<0.000000e+00> : vector<128x8xf32>
      %159 = tpu.matmul %148, %158, %cst_83 {dimension_numbers = #tpu.dot_dimension_numbers<[1], [0], [0], [1], [0, 0, 1, 1], [], []>} : vector<128x8xbf16>, vector<8x8xbf16>, vector<128x8xf32> -> vector<128x8xf32>
      %c8_i32_84 = arith.constant 8 : i32
      %160 = tpu.dynamic_rotate %159 by %c8_i32_84 dim 0 : vector<128x8xf32>, i32 -> vector<128x8xf32>
      %cst_85 = arith.constant 0.000000e+00 : f32
      %161 = vector.broadcast %cst_85 : f32 to vector<128x8xf32>
      %162 = arith.select %60, %160, %161 : vector<128x8xi1>, vector<128x8xf32>
      %c2_86 = arith.constant 2 : index
      %c0_87 = arith.constant 0 : index
      %c0_88 = arith.constant 0 : index
      %163 = vector.load %arg4[%c2_86, %c0_87, %c0_88] : memref<9x8x8xbf16, #tpu.memory_space<vmem>>, vector<1x8x8xbf16>
      %164 = vector.shape_cast %163 : vector<1x8x8xbf16> to vector<8x8xbf16>
      %cst_89 = arith.constant dense<0.000000e+00> : vector<128x8xf32>
      %165 = tpu.matmul %148, %164, %cst_89 {dimension_numbers = #tpu.dot_dimension_numbers<[1], [0], [0], [1], [0, 0, 1, 1], [], []>} : vector<128x8xbf16>, vector<8x8xbf16>, vector<128x8xf32> -> vector<128x8xf32>
      %c7_i32_90 = arith.constant 7 : i32
      %166 = tpu.dynamic_rotate %165 by %c7_i32_90 dim 0 : vector<128x8xf32>, i32 -> vector<128x8xf32>
      %cst_91 = arith.constant 0.000000e+00 : f32
      %167 = vector.broadcast %cst_91 : f32 to vector<128x8xf32>
      %168 = arith.select %60, %166, %167 : vector<128x8xi1>, vector<128x8xf32>
      %cst_92 = arith.constant 0.000000e+00 : f32
      %169 = vector.broadcast %cst_92 : f32 to vector<128x8xf32>
      %170 = arith.select %66, %168, %169 : vector<128x8xi1>, vector<128x8xf32>
      %171 = arith.addf %156, %170 : vector<128x8xf32>
      %c3_93 = arith.constant 3 : index
      %c0_94 = arith.constant 0 : index
      %c0_95 = arith.constant 0 : index
      %172 = vector.load %arg4[%c3_93, %c0_94, %c0_95] : memref<9x8x8xbf16, #tpu.memory_space<vmem>>, vector<1x8x8xbf16>
      %173 = vector.shape_cast %172 : vector<1x8x8xbf16> to vector<8x8xbf16>
      %cst_96 = arith.constant dense<0.000000e+00> : vector<128x8xf32>
      %174 = tpu.matmul %148, %173, %cst_96 {dimension_numbers = #tpu.dot_dimension_numbers<[1], [0], [0], [1], [0, 0, 1, 1], [], []>} : vector<128x8xbf16>, vector<8x8xbf16>, vector<128x8xf32> -> vector<128x8xf32>
      %c1_i32_97 = arith.constant 1 : i32
      %175 = tpu.dynamic_rotate %174 by %c1_i32_97 dim 0 : vector<128x8xf32>, i32 -> vector<128x8xf32>
      %cst_98 = arith.constant 0.000000e+00 : f32
      %176 = vector.broadcast %cst_98 : f32 to vector<128x8xf32>
      %177 = arith.select %64, %175, %176 : vector<128x8xi1>, vector<128x8xf32>
      %178 = arith.addf %162, %177 : vector<128x8xf32>
      %c4_99 = arith.constant 4 : index
      %c0_100 = arith.constant 0 : index
      %c0_101 = arith.constant 0 : index
      %179 = vector.load %arg4[%c4_99, %c0_100, %c0_101] : memref<9x8x8xbf16, #tpu.memory_space<vmem>>, vector<1x8x8xbf16>
      %180 = vector.shape_cast %179 : vector<1x8x8xbf16> to vector<8x8xbf16>
      %cst_102 = arith.constant dense<0.000000e+00> : vector<128x8xf32>
      %181 = tpu.matmul %148, %180, %cst_102 {dimension_numbers = #tpu.dot_dimension_numbers<[1], [0], [0], [1], [0, 0, 1, 1], [], []>} : vector<128x8xbf16>, vector<8x8xbf16>, vector<128x8xf32> -> vector<128x8xf32>
      %182 = arith.addf %171, %181 : vector<128x8xf32>
      %c5_103 = arith.constant 5 : index
      %c0_104 = arith.constant 0 : index
      %c0_105 = arith.constant 0 : index
      %183 = vector.load %arg4[%c5_103, %c0_104, %c0_105] : memref<9x8x8xbf16, #tpu.memory_space<vmem>>, vector<1x8x8xbf16>
      %184 = vector.shape_cast %183 : vector<1x8x8xbf16> to vector<8x8xbf16>
      %cst_106 = arith.constant dense<0.000000e+00> : vector<128x8xf32>
      %185 = tpu.matmul %148, %184, %cst_106 {dimension_numbers = #tpu.dot_dimension_numbers<[1], [0], [0], [1], [0, 0, 1, 1], [], []>} : vector<128x8xbf16>, vector<8x8xbf16>, vector<128x8xf32> -> vector<128x8xf32>
      %c127_i32_107 = arith.constant 127 : i32
      %186 = tpu.dynamic_rotate %185 by %c127_i32_107 dim 0 : vector<128x8xf32>, i32 -> vector<128x8xf32>
      %cst_108 = arith.constant 0.000000e+00 : f32
      %187 = vector.broadcast %cst_108 : f32 to vector<128x8xf32>
      %188 = arith.select %66, %186, %187 : vector<128x8xi1>, vector<128x8xf32>
      %189 = arith.addf %178, %188 : vector<128x8xf32>
      %c6_109 = arith.constant 6 : index
      %c0_110 = arith.constant 0 : index
      %c0_111 = arith.constant 0 : index
      %190 = vector.load %arg4[%c6_109, %c0_110, %c0_111] : memref<9x8x8xbf16, #tpu.memory_space<vmem>>, vector<1x8x8xbf16>
      %191 = vector.shape_cast %190 : vector<1x8x8xbf16> to vector<8x8xbf16>
      %cst_112 = arith.constant dense<0.000000e+00> : vector<128x8xf32>
      %192 = tpu.matmul %148, %191, %cst_112 {dimension_numbers = #tpu.dot_dimension_numbers<[1], [0], [0], [1], [0, 0, 1, 1], [], []>} : vector<128x8xbf16>, vector<8x8xbf16>, vector<128x8xf32> -> vector<128x8xf32>
      %c121_i32_113 = arith.constant 121 : i32
      %193 = tpu.dynamic_rotate %192 by %c121_i32_113 dim 0 : vector<128x8xf32>, i32 -> vector<128x8xf32>
      %cst_114 = arith.constant 0.000000e+00 : f32
      %194 = vector.broadcast %cst_114 : f32 to vector<128x8xf32>
      %195 = arith.select %62, %193, %194 : vector<128x8xi1>, vector<128x8xf32>
      %cst_115 = arith.constant 0.000000e+00 : f32
      %196 = vector.broadcast %cst_115 : f32 to vector<128x8xf32>
      %197 = arith.select %64, %195, %196 : vector<128x8xi1>, vector<128x8xf32>
      %198 = arith.addf %182, %197 : vector<128x8xf32>
      %c7_116 = arith.constant 7 : index
      %c0_117 = arith.constant 0 : index
      %c0_118 = arith.constant 0 : index
      %199 = vector.load %arg4[%c7_116, %c0_117, %c0_118] : memref<9x8x8xbf16, #tpu.memory_space<vmem>>, vector<1x8x8xbf16>
      %200 = vector.shape_cast %199 : vector<1x8x8xbf16> to vector<8x8xbf16>
      %cst_119 = arith.constant dense<0.000000e+00> : vector<128x8xf32>
      %201 = tpu.matmul %148, %200, %cst_119 {dimension_numbers = #tpu.dot_dimension_numbers<[1], [0], [0], [1], [0, 0, 1, 1], [], []>} : vector<128x8xbf16>, vector<8x8xbf16>, vector<128x8xf32> -> vector<128x8xf32>
      %c120_i32_120 = arith.constant 120 : i32
      %202 = tpu.dynamic_rotate %201 by %c120_i32_120 dim 0 : vector<128x8xf32>, i32 -> vector<128x8xf32>
      %cst_121 = arith.constant 0.000000e+00 : f32
      %203 = vector.broadcast %cst_121 : f32 to vector<128x8xf32>
      %204 = arith.select %62, %202, %203 : vector<128x8xi1>, vector<128x8xf32>
      %205 = arith.addf %189, %204 : vector<128x8xf32>
      %c8_122 = arith.constant 8 : index
      %c0_123 = arith.constant 0 : index
      %c0_124 = arith.constant 0 : index
      %206 = vector.load %arg4[%c8_122, %c0_123, %c0_124] : memref<9x8x8xbf16, #tpu.memory_space<vmem>>, vector<1x8x8xbf16>
      %207 = vector.shape_cast %206 : vector<1x8x8xbf16> to vector<8x8xbf16>
      %cst_125 = arith.constant dense<0.000000e+00> : vector<128x8xf32>
      %208 = tpu.matmul %148, %207, %cst_125 {dimension_numbers = #tpu.dot_dimension_numbers<[1], [0], [0], [1], [0, 0, 1, 1], [], []>} : vector<128x8xbf16>, vector<8x8xbf16>, vector<128x8xf32> -> vector<128x8xf32>
      %c119_i32_126 = arith.constant 119 : i32
      %209 = tpu.dynamic_rotate %208 by %c119_i32_126 dim 0 : vector<128x8xf32>, i32 -> vector<128x8xf32>
      %cst_127 = arith.constant 0.000000e+00 : f32
      %210 = vector.broadcast %cst_127 : f32 to vector<128x8xf32>
      %211 = arith.select %62, %209, %210 : vector<128x8xi1>, vector<128x8xf32>
      %cst_128 = arith.constant 0.000000e+00 : f32
      %212 = vector.broadcast %cst_128 : f32 to vector<128x8xf32>
      %213 = arith.select %66, %211, %212 : vector<128x8xi1>, vector<128x8xf32>
      %214 = arith.addf %198, %213 : vector<128x8xf32>
      %215 = arith.addf %214, %205 : vector<128x8xf32>
      %216 = arith.mulf %arg8, %215 : vector<128x8xf32>
      %cst_129 = arith.constant dense<0.000000e+00> : vector<128xf32>
      %217 = vector.multi_reduction <add>, %216, %cst_129 [1] : vector<128x8xf32> to vector<128xf32>
      %218 = vector.shape_cast %217 : vector<128xf32> to vector<128x1xf32>
      %cst_130 = arith.constant 9.99999996E-13 : f32
      %219 = vector.broadcast %cst_130 : f32 to vector<128x1xf32>
      %220 = arith.maximumf %218, %219 : vector<128x1xf32>
      %cst_131 = arith.constant 1.000000e+00 : f32
      %221 = vector.broadcast %cst_131 : f32 to vector<128x1xf32>
      %222 = arith.divf %221, %220 : vector<128x1xf32>
      %223 = vector.broadcast %222 : vector<128x1xf32> to vector<128x8xf32>
      %224 = arith.mulf %216, %223 : vector<128x8xf32>
      scf.yield %224 : vector<128x8xf32>
    }
    %70 = arith.addf %6, %69 : vector<128x8xf32>
    %c0_27 = arith.constant 0 : index
    %c0_28 = arith.constant 0 : index
    %71 = vector.load %arg6[%c0_27, %c0_28] : memref<128x8xf32, #tpu.memory_space<vmem>>, vector<128x8xf32>
    tpu.vector_store %arg6[%c0_27, %c0_28], %70 {strides = array<i32>} : memref<128x8xf32, #tpu.memory_space<vmem>>, vector<128x8xf32>,
    return
  }
  func.func @transform_0(%arg0: i32) -> (i32, i32, i32) {
    %c0_i32 = arith.constant 0 : i32
    %c0_i32_0 = arith.constant 0 : i32
    %c0_i32_1 = arith.constant 0 : i32
    return %arg0, %c0_i32, %c0_i32_0 : i32, i32, i32
  }
  func.func @transform_1(%arg0: i32) -> (i32, i32) {
    %c0_i32 = arith.constant 0 : i32
    %c0_i32_0 = arith.constant 0 : i32
    %c0_i32_1 = arith.constant 0 : i32
    return %c0_i32, %c0_i32_0 : i32, i32
  }
  func.func @transform_2(%arg0: i32) -> (i32, i32) {
    %c0_i32 = arith.constant 0 : i32
    %c0_i32_0 = arith.constant 0 : i32
    %c0_i32_1 = arith.constant 0 : i32
    return %c0_i32, %c0_i32_0 : i32, i32
  }
  func.func @transform_3(%arg0: i32) -> (i32, i32, i32) {
    %c0_i32 = arith.constant 0 : i32
    %c0_i32_0 = arith.constant 0 : i32
    %c0_i32_1 = arith.constant 0 : i32
    %c0_i32_2 = arith.constant 0 : i32
    return %c0_i32, %c0_i32_0, %c0_i32_1 : i32, i32, i32
  }
  func.func @transform_4(%arg0: i32) -> (i32, i32, i32) {
    %c0_i32 = arith.constant 0 : i32
    %c0_i32_0 = arith.constant 0 : i32
    %c0_i32_1 = arith.constant 0 : i32
    %c0_i32_2 = arith.constant 0 : i32
    return %c0_i32, %c0_i32_0, %c0_i32_1 : i32, i32, i32
  }
  func.func @transform_5(%arg0: i32) -> (i32, i32) {
    %c0_i32 = arith.constant 0 : i32
    %c0_i32_0 = arith.constant 0 : i32
    return %arg0, %c0_i32 : i32, i32
  }
}

</mosaic_0001>

<bundles_post_ra>
// kernel: tpu_custom_call.1
= control target key start
LH: loop header
LB: loop body
LE: loop exit
PB: predicated region body
PF: predicated region fallthrough
CT: control target
= control target key end

     0   :  { %6 = vsyncpa [#allocation3], 0  ;;  %s286_s0 = inlined_call_operand.hbm [shape: f32[8,128], index: 0, kind: input, shape index: {}]   ;;  %s287_s1 = inlined_call_operand.hbm [shape: f32[8,128], index: 1, kind: output, shape index: {}]  }
   0x1   :  { %7 = vsyncpa [#allocation4], 0  ;;  %s269_s6 = smov 0  }
   0x2 LB: > { %s148_s7 = sadd.s32 4294967295, %s255_s6   ;;  %p149_p0 = scmp.ge.s32.totalorder %s255_s6, 1  ;;  %s255_s6 = sphi %s269_s6, %s13_s6  }
   0x3   : > { %p60_p1 = scmp.lt.s32.totalorder %s255_s6, 3  ;;  %s72_s10 = sshll.u32 %s286_s0, 4  ;;  %s73_s10 = int_to_ptr.hbm [resolvable:$true] %s72_s10 }
   0x4   : > { %p169_p3 = scmp.eq.s32.totalorder %s148_s7, 0  ;;  %s257_s11 = smov [#allocation2]  }
   0x5   : > { %p61_p2 = pnand %p149_p0, %p60_p1  ;;  %s74_s12 = sshll.u32 %s257_s11, 4  ;;  %s75_s12 = int_to_ptr.vmem [resolvable:$true] %s74_s12 }
   0x7   : > { %p165_p4 = pneg %p61_p2  ;;  %87 = sbr.rel (%p61_p2) target bundleno = 19 (0x13), region = 24 }
   0x9   : > { %p166_p5 = pnand %p169_p3, %p165_p4 }
   0xb   : > { %168 = dma.hbm_to_vmem [thread:$0]  (!%p166_p5), %s73_s10, 128, %s75_s12, [#allocation3]  }
   0xc   : > { %246 = dma.done.wait (%p169_p3), [#allocation3], 128  }
   0xd   : > { %248 = vsyncadd (%p169_p3), [#allocation3], 4294967168  ;;  %s258_s13 = smov [#allocation5]   ;;  %s108_s17 = sshll.u32 %s287_s1, 4  ;;  %v98_v0 = vld [vmem:[#allocation2] sm:$0xff]  ;;  %s109_s17 = int_to_ptr.hbm [resolvable:$true] %s108_s17 }
   0xe   : > { %s106_s14 = sshll.u32 %s258_s13, 4  ;;  %p171_p6 = scmp.eq.s32.totalorder %s148_s7, 1  ;;  %99 = vst [vmem:[#allocation5] sm:$0xff] %v98_v0  ;;  %s107_s14 = int_to_ptr.vmem [resolvable:$true] %s106_s14 }
  0x10   : > { %162 = dma.vmem_to_hbm [thread:$0]  (%p171_p6), %s107_s14, 128, %s109_s17, [#allocation4]  }
  0x11   : > { %250 = dma.done.wait (%p171_p6), [#allocation4], 128  }
  0x12   : > { %252 = vsyncadd (%p171_p6), [#allocation4], 4294967168 }
  0x13 PF: > { %s13_s6 = sadd.s32 1, %s255_s6  }
  0x14   : > { %p10_p7 = scmp.ge.s32.totalorder %s13_s6, 4  }
  0x16   :  { %12 = sbr.rel (!%p10_p7) target bundleno = 2 (0x2), region = 53 }
  0x1b   :  { %122 = vsyncpa [#allocation3], 1 }
  0x1c   :  { %124 = vsyncpa [#allocation3 + $0x1], 1 }
  0x1d   :  { %125 = vsyncpa [#allocation4], 1 }
  0x1e   :  { %127 = vsyncpa [#allocation4 + $0x1], 1 }

// kernel: block_forward.3
= control target key start
LH: loop header
LB: loop body
LE: loop exit
PB: predicated region body
PF: predicated region fallthrough
CT: control target
= control target key end

     0   :  { %s1002_s24 = smov 0   ;;  %s1004_s25 = smov 0   ;;  %s1238_s0 = inlined_call_operand.vmem [shape: f32[2,64,8], index: 0, kind: input, shape index: {}]   ;;  %s1239_s1 = inlined_call_operand.vmem [shape: f32[1,8], index: 1, kind: input, shape index: {}]   ;;  %s1240_s2 = inlined_call_operand.vmem [shape: f32[1,8], index: 2, kind: input, shape index: {}]   ;;  %s1241_s3 = inlined_call_operand.vmem [shape: bf16[8,32], index: 3, kind: input, shape index: {}]   ;;  %s1242_s4 = inlined_call_operand.vmem [shape: f32[1,32], index: 4, kind: input, shape index: {}]   ;;  %s1243_s5 = inlined_call_operand.vmem [shape: bf16[32,8], index: 5, kind: input, shape index: {}]   ;;  %s1244_s6 = inlined_call_operand.vmem [shape: f32[1,8], index: 6, kind: input, shape index: {}]   ;;  %s1245_s7 = inlined_call_operand.vmem [shape: f32[2,8,64], index: 7, kind: output, shape index: {}]  }
   0x1   :  { %s1006_s26 = smov 0  }
   0x2 LB: > { %s29_s27 = sadd.s32 1, %s955_s25  ;;  %p845_p0 = scmp.ge.s32.totalorder %s959_s26, 1  ;;  %s959_s26 = sphi %s1006_s26, %s17_s26   ;;  %s955_s25 = sphi %s1004_s25, %s1251_s25   ;;  %s951_s24 = sphi %s1002_s24, %s1250_s24  }
   0x3   : > { %p31_p1 = scmp.ge.s32.totalorder %s29_s27, 2  ;;  %p258_p2 = scmp.lt.s32.totalorder %s959_s26, 3 }
   0x5   : > { %s1253_s27 = smov (%p31_p1, %s29_s27), 0  ;;  %p259_p3 = pnand %p845_p0, %p258_p2 }
   0x6   : > { %p297_p4 = scmp.lt.s32.totalorder (!%p259_p3), %s951_s24, 1 }
   0x7   : > { %262 = sbr.rel (%p259_p3) target bundleno = 750 (0x2ee), region = 48 }
   0xc   : > { %s1255_s24 = smov (!%p297_p4, %s951_s24), 1  ;;  %vm322_vm0 = vcmask 64512   ;;  %v961_v16 = vmov 8.0   ;;  %vm551_vm2 = vcmask 1043456  }
   0xd   : > { %s867_s28 = sshll.u32 %s1255_s24, 6  ;;  %903 = vrcp.f32 %v961_v16  ;;  %s848_s23 = sshll.u32 %s1255_s24, 3 }
   0xe   : > { %s304_s8 = scalar_lea.vmem %s1238_s0, %s867_s28  ;;  %s312_s30 = scalar_lea.vmem %s1245_s7, %s848_s23 }
   0xf   : > { %v1026_v0 = vld [vmem:[%s304_s8 + $0x20] sm:$0xff]  ;;  %v1028_v1 = vld [vmem:[%s304_s8 + $0x10] sm:$0xff]  ;;  %v1038_v6 = vld [vmem:[%s304_s8 + $0x28] sm:$0xff] }
  0x10   : > { %v1030_v2 = vld [vmem:[%s304_s8] sm:$0xff]  ;;  %v335_v3 = vsel %vm322_vm0, %v1026_v0, 0.0  ;;  %v329_v4 = vsel %vm322_vm0, %v1028_v1, 0.0  ;;  %v1040_v7 = vld [vmem:[%s304_s8 + $0x18] sm:$0xff]  ;;  %v1042_v8 = vld [vmem:[%s304_s8 + $0x8] sm:$0xff]  ;;  %v338_v9 = vsel %vm322_vm0, %v1038_v6, 0.0 }
  0x11   : > { %v323_v5 = vsel %vm322_vm0, %v1030_v2, 0.0  ;;  %336 = vadd.xlane.f32.xlu2 %v335_v3  ;;  %330 = vadd.xlane.f32.xlu0 %v329_v4  ;;  %v332_v10 = vsel %vm322_vm0, %v1040_v7, 0.0  ;;  %v326_v11 = vsel %vm322_vm0, %v1042_v8, 0.0  ;;  %v1050_v12 = vld [vmem:[%s304_s8 + $0x30] sm:$0xff]  ;;  %v1052_v13 = vld [vmem:[%s304_s8 + $0x38] sm:$0xff] }
  0x12   : > { %324 = vadd.xlane.f32.xlu1 %v323_v5  ;;  %v341_v14 = vsel %vm322_vm0, %v1050_v12, 0.0  ;;  %v344_v15 = vsel %vm322_vm0, %v1052_v13, 0.0 }
  0x13   : > { %v904_v17 = vpop.eup %903 }
  0x14   : > { %v348_v18 = vmul.f32 8.0, %v904_v17  ;;  %vm352_vm1 = vweird.f32 %v904_v17 }
  0x16   : > { %v349_v19 = vsub.f32 1.0, %v348_v18 }
  0x18   : > { %v350_v20 = vmul.f32 %v904_v17, %v349_v19 }
  0x19   : > { %339 = vadd.xlane.f32.xlu2 %v338_v9  ;;  %333 = vadd.xlane.f32.xlu0 %v332_v10 }
  0x1a   : > { %327 = vadd.xlane.f32.xlu1 %v326_v11  ;;  %v351_v21 = vadd.f32 %v904_v17, %v350_v20  ;;  %v534_v11 = vld [vmem:[%s1241_s3] sm:$0xf] }
  0x1c   : > { %v1058_v22 = vsel %vm352_vm1, %v904_v17, %v351_v21 }
  0x21   : > { %342 = vadd.xlane.f32.xlu0 %v341_v14  ;;  %v553_v14 = vsel %vm551_vm2, %v534_v11, 0 }
  0x22   : > { %345 = vadd.xlane.f32.xlu1 %v344_v15  ;;  %562 = vmatpush.bf16.msra.mxu0 %v553_v14 }
  0x23   : > { %870 = vmatpush.bf16.msra.mxu3 %v553_v14  ;;  %v1151_v14 = vld [vmem:[%s1239_s1] ss:$0 sm:$0xff] }
  0x84   : > { %v337_v23 = vpop.xlane.xlu2 %336  ;;  %v331_v24 = vpop.xlane.xlu0 %330 }
  0x85   : > { %v356_v25 = vmul.f32 %v1058_v22, %v331_v24  ;;  %v325_v26 = vpop.xlane.xlu1 %324  ;;  %v358_v36 = vmul.f32 %v1058_v22, %v337_v23 }
  0x86   : > { %v354_v27 = vmul.f32 %v1058_v22, %v325_v26 }
  0x87   : > { %v1063_v28 = vsub.f32 %v1028_v1, %v356_v25  ;;  %v1088_v44 = vsub.f32 %v1026_v0, %v358_v36 }
  0x88   : > { %v1066_v29 = vsub.f32 %v1030_v2, %v354_v27 }
  0x89   : > { %v372_v30 = vmul.f32 %v1063_v28, %v1063_v28  ;;  %v374_v53 = vmul.f32 %v1088_v44, %v1088_v44 }
  0x8a   : > { %v370_v31 = vmul.f32 %v1066_v29, %v1066_v29 }
  0x8b   : > { %v384_v32 = vsel %vm322_vm0, %v372_v30, 0.0  ;;  %v390_v57 = vsel %vm322_vm0, %v374_v53, 0.0 }
  0x8c   : > { %v340_v33 = vpop.xlane.xlu2 %339  ;;  %385 = vadd.xlane.f32.xlu2 %v384_v32  ;;  %v334_v34 = vpop.xlane.xlu0 %333  ;;  %v378_v35 = vsel %vm322_vm0, %v370_v31, 0.0 }
  0x8d   : > { %v359_v37 = vmul.f32 %v1058_v22, %v340_v33  ;;  %v357_v38 = vmul.f32 %v1058_v22, %v334_v34  ;;  %379 = vadd.xlane.f32.xlu1 %v378_v35  ;;  %v328_v39 = vpop.xlane.xlu1 %327 }
  0x8e   : > { %v355_v40 = vmul.f32 %v1058_v22, %v328_v39 }
  0x8f   : > { %v1079_v41 = vsub.f32 %v1038_v6, %v359_v37  ;;  %v1082_v42 = vsub.f32 %v1040_v7, %v357_v38 }
  0x90   : > { %v1085_v43 = vsub.f32 %v1042_v8, %v355_v40 }
  0x91   : > { %v373_v45 = vmul.f32 %v1082_v42, %v1082_v42  ;;  %v375_v46 = vmul.f32 %v1079_v41, %v1079_v41 }
  0x92   : > { %v371_v47 = vmul.f32 %v1085_v43, %v1085_v43 }
  0x93   : > { %v387_v48 = vsel %vm322_vm0, %v373_v45, 0.0  ;;  %v393_v49 = vsel %vm322_vm0, %v375_v46, 0.0 }
  0x94   : > { %388 = vadd.xlane.f32.xlu0 %v387_v48  ;;  %v343_v50 = vpop.xlane.xlu0 %342  ;;  %v381_v51 = vsel %vm322_vm0, %v371_v47, 0.0 }
  0x95   : > { %v360_v52 = vmul.f32 %v1058_v22, %v343_v50  ;;  %394 = vadd.xlane.f32.xlu1 %v393_v49  ;;  %382 = vadd.xlane.f32.xlu2 %v381_v51  ;;  %v346_v54 = vpop.xlane.xlu1 %345 }
  0x96   : > { %v361_v55 = vmul.f32 %v1058_v22, %v346_v54 }
  0x97   : > { %v1104_v56 = vsub.f32 %v1050_v12, %v360_v52 }
  0x98   : > { %v1110_v59 = vsub.f32 %v1052_v13, %v361_v55 }
  0x99   : > { %v376_v58 = vmul.f32 %v1104_v56, %v1104_v56 }
  0x9a   : > { %v377_v61 = vmul.f32 %v1110_v59, %v1110_v59 }
  0x9b   : > { %v396_v60 = vsel %vm322_vm0, %v376_v58, 0.0 }
  0x9c   : > { %391 = vadd.xlane.f32.xlu0 %v390_v57  ;;  %v399_v62 = vsel %vm322_vm0, %v377_v61, 0.0 }
  0x9d   : > { %397 = vadd.xlane.f32.xlu2 %v396_v60 }
  0xa4   : > { %400 = vadd.xlane.f32.xlu0 %v399_v62 }
  0xff   : > { %v386_v63 = vpop.xlane.xlu2 %385 }
 0x100   : > { %v404_v3 = vmul.f32 %v386_v63, %v1058_v22  ;;  %v380_v4 = vpop.xlane.xlu1 %379 }
 0x101   : > { %v402_v5 = vmul.f32 %v380_v4, %v1058_v22 }
 0x102   : > { %v412_v9 = vadd.f32 1e-05, %v404_v3 }
 0x103   : > { %v410_v10 = vadd.f32 1e-05, %v402_v5 }
 0x104   : > { %905 = vrsqrt.f32 %v412_v9  ;;  %vm444_vm5 = vweird.f32 %v412_v9 }
 0x105   : > { %907 = vrsqrt.f32 %v410_v10  ;;  %vm424_vm7 = vweird.f32 %v410_v10 }
 0x107   : > { %v389_v15 = vpop.xlane.xlu0 %388 }
 0x108   : > { %v405_v16 = vmul.f32 %v389_v15, %v1058_v22  ;;  %v383_v17 = vpop.xlane.xlu2 %382  ;;  %v395_v18 = vpop.xlane.xlu1 %394 }
 0x109   : > { %v403_v19 = vmul.f32 %v383_v17, %v1058_v22  ;;  %v407_v20 = vmul.f32 %v395_v18, %v1058_v22 }
 0x10a   : > { %v906_v21 = vpop.eup %905  ;;  %v413_v23 = vadd.f32 1e-05, %v405_v16 }
 0x10b   : > { %v908_v24 = vpop.eup %907  ;;  %v439_v25 = vmul.f32 %v906_v21, %v412_v9  ;;  %v411_v26 = vadd.f32 1e-05, %v403_v19  ;;  %v1124_v27 = vadd.f32 1e-05, %v407_v20  ;;  %vm445_vm3 = vweird.f32 %v906_v21 }
 0x10c   : > { %v419_v30 = vmul.f32 %v908_v24, %v410_v10  ;;  %909 = vrsqrt.f32 %v413_v23  ;;  %vm425_vm4 = vweird.f32 %v908_v24  ;;  %vm1133_vm6 = vmor %vm444_vm5, %vm445_vm3  ;;  %vm454_vm11 = vweird.f32 %v413_v23 }
 0x10d   : > { %v440_v31 = vmul.f32 %v906_v21, %v439_v25  ;;  %911 = vrsqrt.f32 %v411_v26  ;;  %vm426_vm8 = vmor %vm424_vm7, %vm425_vm4  ;;  %vm434_vm13 = vweird.f32 %v411_v26  ;;  %vm474_vm15 = vweird.f32 %v1124_v27 }
 0x10e   : > { %v420_v32 = vmul.f32 %v908_v24, %v419_v30  ;;  %913 = vrsqrt.f32 %v1124_v27 }
 0x10f   : > { %v441_v33 = vmul.f32 0.5, %v440_v31  ;;  %v392_v34 = vpop.xlane.xlu0 %391 }
 0x110   : > { %v421_v35 = vmul.f32 0.5, %v420_v32  ;;  %v406_v36 = vmul.f32 %v392_v34, %v1058_v22  ;;  %v398_v37 = vpop.xlane.xlu2 %397 }
 0x111   : > { %v442_v38 = vsub.f32 1.5, %v441_v33  ;;  %v408_v46 = vmul.f32 %v398_v37, %v1058_v22 }
 0x112   : > { %v910_v39 = vpop.eup %909  ;;  %v422_v40 = vsub.f32 1.5, %v421_v35  ;;  %v1128_v45 = vadd.f32 1e-05, %v406_v36 }
 0x113   : > { %v912_v47 = vpop.eup %911  ;;  %v443_v48 = vmul.f32 %v906_v21, %v442_v38  ;;  %v449_v49 = vmul.f32 %v910_v39, %v413_v23  ;;  %v1142_v61 = vadd.f32 1e-05, %v408_v46  ;;  %vm455_vm9 = vweird.f32 %v910_v39  ;;  %v900_v23 = vld [vmem:[%s1240_s2] ss:$0 sm:$0xff] }
 0x114   : > { %v1131_v50 = vpop.eup %913  ;;  %v423_v52 = vmul.f32 %v908_v24, %v422_v40  ;;  %v429_v53 = vmul.f32 %v912_v47, %v411_v26  ;;  %915 = vrsqrt.f32 %v1128_v45  ;;  %vm435_vm10 = vweird.f32 %v912_v47  ;;  %vm456_vm12 = vmor %vm454_vm11, %vm455_vm9 }
 0x115   : > { %v450_v54 = vmul.f32 %v910_v39, %v449_v49  ;;  %v469_v55 = vmul.f32 %v1131_v50, %v1124_v27  ;;  %v447_v57 = vsel %vm1133_vm6, %v906_v21, %v443_v48  ;;  %917 = vrsqrt.f32 %v1142_v61  ;;  %vm436_vm14 = vmor %vm434_vm13, %vm435_vm10 }
 0x116   : > { %v427_v58 = vsel %vm426_vm8, %v908_v24, %v423_v52  ;;  %v430_v60 = vmul.f32 %v912_v47, %v429_v53  ;;  %v500_v9 = vmul.f32 %v447_v57, %v1063_v28  ;;  %vm475_vm1 = vweird.f32 %v1131_v50 }
 0x117   : > { %v451_v62 = vmul.f32 0.5, %v450_v54  ;;  %v470_v63 = vmul.f32 %v1131_v50, %v469_v55  ;;  %v401_v3 = vpop.xlane.xlu0 %400  ;;  %v498_v10 = vmul.f32 %v427_v58, %v1066_v29  ;;  %vm464_vm2 = vweird.f32 %v1128_v45  ;;  %vm1170_vm4 = vmor %vm474_vm15, %vm475_vm1 }
 0x118   : > { %v431_v4 = vmul.f32 0.5, %v430_v60  ;;  %v409_v5 = vmul.f32 %v401_v3, %v1058_v22  ;;  %v512_v21 = vmul.f32 %v1151_v14, %v500_v9  ;;  %vm484_vm8 = vweird.f32 %v1142_v61 }
 0x119   : > { %v452_v11 = vsub.f32 1.5, %v451_v62  ;;  %v471_v17 = vmul.f32 0.5, %v470_v63  ;;  %v510_v31 = vmul.f32 %v1151_v14, %v498_v10 }
 0x11a   : > { %v916_v15 = vpop.eup %915  ;;  %v432_v16 = vsub.f32 1.5, %v431_v4  ;;  %v417_v18 = vadd.f32 1e-05, %v409_v5 }
 0x11b   : > { %v453_v19 = vmul.f32 %v910_v39, %v452_v11  ;;  %v459_v22 = vmul.f32 %v916_v15, %v1128_v45  ;;  %v472_v30 = vsub.f32 1.5, %v471_v17  ;;  %v918_v33 = vpop.eup %917  ;;  %vm465_vm3 = vweird.f32 %v916_v15 }
 0x11c   : > { %v433_v28 = vmul.f32 %v912_v47, %v432_v16  ;;  %919 = vrsqrt.f32 %v417_v18  ;;  %v522_v38 = vadd.f32 %v900_v23, %v510_v31  ;;  %v479_v46 = vmul.f32 %v918_v33, %v1142_v61  ;;  %vm466_vm5 = vmor %vm464_vm2, %vm465_vm3 }
 0x11d   : > { %v457_v29 = vsel %vm456_vm12, %v910_v39, %v453_v19  ;;  %v460_v20 = vmul.f32 %v916_v15, %v459_v22  ;;  %v473_v37 = vmul.f32 %v1131_v50, %v472_v30  ;;  %v524_v39 = vadd.f32 %v900_v23, %v512_v21 }
 0x11e   : > { %v501_v24 = vmul.f32 %v457_v29, %v1082_v42  ;;  %v437_v25 = vsel %vm436_vm14, %v912_v47, %v433_v28  ;;  %v480_v54 = vmul.f32 %v918_v33, %v479_v46  ;;  %vm494_vm6 = vweird.f32 %v417_v18  ;;  %v869_v28 = vld [vmem:[%s1243_s5 + $0x8] sm:$0xff] }
 0x11f   : > { %v499_v32 = vmul.f32 %v437_v25, %v1085_v43  ;;  %v461_v26 = vmul.f32 0.5, %v460_v20  ;;  %v477_v53 = vsel %vm1170_vm4, %v1131_v50, %v473_v37  ;;  %vm485_vm9 = vweird.f32 %v918_v33  ;;  %699 = vmatpush.bf16.msra.mxu1 %v869_v28  ;;  %871 = vmatpush.bf16.msra.mxu2 %v869_v28 }
 0x120   : > { %v513_v34 = vmul.f32 %v1151_v14, %v501_v24  ;;  %v503_v58 = vmul.f32 %v477_v53, %v1079_v41  ;;  %v481_v60 = vmul.f32 0.5, %v480_v54  ;;  %vm486_vm11 = vmor %vm484_vm8, %vm485_vm9  ;;  %vm762_vm12 = vcmask 523264  }
 0x121   : > { %v462_v35 = vsub.f32 1.5, %v461_v26  ;;  %v511_v42 = vmul.f32 %v1151_v14, %v499_v32 }
 0x122   : > { %v920_v36 = vpop.eup %919  ;;  %v525_v43 = vadd.f32 %v900_v23, %v513_v34  ;;  %v515_v3 = vmul.f32 %v1151_v14, %v503_v58  ;;  %v482_v4 = vsub.f32 1.5, %v481_v60 }
 0x123   : > { %v463_v27 = vmul.f32 %v916_v15, %v462_v35  ;;  %v489_v47 = vmul.f32 %v920_v36, %v417_v18  ;;  %v523_v48 = vadd.f32 %v900_v23, %v511_v42  ;;  %vm495_vm7 = vweird.f32 %v920_v36 }
 0x124   : > { %v531_v45 = vpack.c.bf16 %v525_v43, %v524_v39  ;;  %vm496_vm10 = vmor %vm494_vm6, %vm495_vm7  ;;  %v527_v9 = vadd.f32 %v900_v23, %v515_v3 }
 0x125   : > { %v467_v49 = vsel %vm466_vm5, %v916_v15, %v463_v27  ;;  %v490_v51 = vmul.f32 %v920_v36, %v489_v47  ;;  %v530_v52 = vpack.c.bf16 %v523_v48, %v522_v38 }
 0x126   : > { %850 = vmatmul.msk.bf16.vlgmr.msra.gmra.mxu3 %vm322_vm0, %v531_v45  ;;  %v502_v55 = vmul.f32 %v467_v49, %v1088_v44  ;;  %v483_v44 = vmul.f32 %v918_v33, %v482_v4 }
 0x127   : > { %849 = vmatmul.msk.bf16.vlgmr.msra.gmra.mxu0 %vm322_vm0, %v530_v52  ;;  %v491_v57 = vmul.f32 0.5, %v490_v51 }
 0x128   : > { %v514_v62 = vmul.f32 %v1151_v14, %v502_v55  ;;  %v487_v11 = vsel %vm486_vm11, %v918_v33, %v483_v44 }
 0x129   : > { %v492_v63 = vsub.f32 1.5, %v491_v57  ;;  %v504_v16 = vmul.f32 %v487_v11, %v1104_v56  ;;  %v868_v56 = vld [vmem:[%s1243_s5] sm:$0xff] }
 0x12a   : > { %v526_v5 = vadd.f32 %v900_v23, %v514_v62  ;;  %700 = vmatpush.bf16.msra.mxu1 %v868_v56  ;;  %872 = vmatpush.bf16.msra.mxu2 %v868_v56 }
 0x12b   : > { %v493_v50 = vmul.f32 %v920_v36, %v492_v63  ;;  %v516_v18 = vmul.f32 %v1151_v14, %v504_v16 }
 0x12c   : > { %v532_v10 = vpack.c.bf16 %v527_v9, %v526_v5 }
 0x12d   : > { %v497_v41 = vsel %vm496_vm10, %v920_v36, %v493_v50  ;;  %v528_v19 = vadd.f32 %v900_v23, %v516_v18 }
 0x12e   : > { %v505_v15 = vmul.f32 %v497_v41, %v1110_v59  ;;  %v1197_v59 = vld [vmem:[%s1242_s4] ss:$0 sm:$0xff] }
 0x130   : > { %v517_v17 = vmul.f32 %v1151_v14, %v505_v15 }
 0x132   : > { %v529_v61 = vadd.f32 %v900_v23, %v517_v17 }
 0x134   : > { %v533_v22 = vpack.c.bf16 %v529_v61, %v528_v19 }
 0x136   : > { %851 = vmatmul.msk.bf16.gmra.mxu3 %vm322_vm0, %v532_v10 }
 0x146   : > { %852 = vmatmul.msk.bf16.gmra.mxu3 %vm322_vm0, %v533_v22  ;;  %vm680_vm0 = vcmask 261120  }
 0x1a4   : > { %v564_v14 = vpop.f32.mrf.mxu0 }
 0x1a5   : > { %v565_v29 = vadd.f32 %v1197_v59, %v564_v14 }
 0x1a7   : > { %v592_v20 = vmul.f32 0.044715, %v565_v29  ;;  %v584_v60 = vmul.f32 0.5, %v565_v29 }
 0x1a9   : > { %v600_v21 = vmul.f32 %v592_v20, %v565_v29  ;;  %v569_v24 = vpop.f32.mrf.mxu3 }
 0x1aa   : > { %v570_v31 = vadd.f32 %v1197_v59, %v569_v24 }
 0x1ab   : > { %v608_v25 = vmul.f32 %v600_v21, %v565_v29 }
 0x1ac   : > { %v566_v30 = vpop.f32.mrf.mxu0  ;;  %v594_v33 = vmul.f32 0.044715, %v570_v31 }
 0x1ad   : > { %v567_v23 = vadd.f32 %v1197_v59, %v566_v30  ;;  %v616_v32 = vadd.f32 %v608_v25, %v565_v29  ;;  %v586_v30 = vmul.f32 0.5, %v570_v31 }
 0x1ae   : > { %v602_v39 = vmul.f32 %v594_v33, %v570_v31 }
 0x1af   : > { %v593_v26 = vmul.f32 0.044715, %v567_v23  ;;  %v624_v42 = vmul.f32 0.7978846, %v616_v32  ;;  %v585_v62 = vmul.f32 0.5, %v567_v23 }
 0x1b0   : > { %v610_v48 = vmul.f32 %v602_v39, %v570_v31 }
 0x1b1   : > { %v601_v34 = vmul.f32 %v593_v26, %v567_v23  ;;  %v571_v35 = vpop.f32.mrf.mxu3  ;;  %921 = vtanh.f32 %v624_v42 }
 0x1b2   : > { %v572_v36 = vadd.f32 %v1197_v59, %v571_v35  ;;  %v618_v53 = vadd.f32 %v610_v48, %v570_v31 }
 0x1b3   : > { %v609_v37 = vmul.f32 %v601_v34, %v567_v23 }
 0x1b4   : > { %v595_v38 = vmul.f32 0.044715, %v572_v36  ;;  %v626_v5 = vmul.f32 0.7978846, %v618_v53  ;;  %v587_v21 = vmul.f32 0.5, %v572_v36 }
 0x1b5   : > { %v617_v43 = vadd.f32 %v609_v37, %v567_v23 }
 0x1b6   : > { %v603_v40 = vmul.f32 %v595_v38, %v572_v36 }
 0x1b7   : > { %v625_v27 = vmul.f32 0.7978846, %v617_v43  ;;  %v922_v49 = vpop.eup %921 }
 0x1b8   : > { %v611_v46 = vmul.f32 %v603_v40, %v572_v36  ;;  %v640_v55 = vadd.f32 1.0, %v922_v49 }
 0x1b9   : > { %v574_v47 = vpop.f32.mrf.mxu3  ;;  %923 = vtanh.f32 %v625_v27 }
 0x1ba   : > { %v575_v45 = vadd.f32 %v1197_v59, %v574_v47  ;;  %v619_v51 = vadd.f32 %v611_v46, %v572_v36  ;;  %v648_v9 = vmul.f32 %v640_v55, %v584_v60 }
 0x1bc   : > { %v596_v52 = vmul.f32 0.044715, %v575_v45  ;;  %v627_v58 = vmul.f32 0.7978846, %v619_v51  ;;  %v588_v43 = vmul.f32 0.5, %v575_v45 }
 0x1be   : > { %v604_v54 = vmul.f32 %v596_v52, %v575_v45  ;;  %925 = vtanh.f32 %v627_v58 }
 0x1bf   : > { %v924_v57 = vpop.eup %923  ;;  %927 = vtanh.f32 %v626_v5 }
 0x1c0   : > { %v641_v63 = vadd.f32 1.0, %v924_v57  ;;  %v612_v3 = vmul.f32 %v604_v54, %v575_v45 }
 0x1c1   : > { %v576_v4 = vpop.f32.mrf.mxu3 }
 0x1c2   : > { %v577_v50 = vadd.f32 %v1197_v59, %v576_v4  ;;  %v649_v44 = vmul.f32 %v641_v63, %v585_v62  ;;  %v620_v10 = vadd.f32 %v612_v3, %v575_v45  ;;  %v902_v63 = vld [vmem:[%s1244_s6] ss:$0 sm:$0xff] }
 0x1c4   : > { %v597_v41 = vmul.f32 0.044715, %v577_v50  ;;  %v656_v11 = vpack.c.bf16 %v649_v44, %v648_v9  ;;  %v628_v16 = vmul.f32 0.7978846, %v620_v10  ;;  %v926_v18 = vpop.eup %925  ;;  %v589_v40 = vmul.f32 0.5, %v577_v50 }
 0x1c5   : > { %v928_v28 = vpop.eup %927  ;;  %v643_v14 = vadd.f32 1.0, %v926_v18 }
 0x1c6   : > { %v605_v15 = vmul.f32 %v597_v41, %v577_v50  ;;  %861 = vmatmul.msk.bf16.vlgmr.msra.gmra.mxu1 %vm680_vm0, %v656_v11  ;;  %929 = vtanh.f32 %v628_v16  ;;  %v642_v24 = vadd.f32 1.0, %v928_v28 }
 0x1c7   : > { %v651_v23 = vmul.f32 %v643_v14, %v587_v21 }
 0x1c8   : > { %v613_v17 = vmul.f32 %v605_v15, %v577_v50  ;;  %v650_v34 = vmul.f32 %v642_v24, %v586_v30 }
 0x1c9   : > { %v579_v61 = vpop.f32.mrf.mxu3 }
 0x1ca   : > { %v580_v19 = vadd.f32 %v1197_v59, %v579_v61  ;;  %v621_v22 = vadd.f32 %v613_v17, %v577_v50  ;;  %v657_v39 = vpack.c.bf16 %v651_v23, %v650_v34 }
 0x1cc   : > { %v598_v56 = vmul.f32 0.044715, %v580_v19  ;;  %v629_v29 = vmul.f32 0.7978846, %v621_v22  ;;  %v930_v25 = vpop.eup %929  ;;  %v590_v45 = vmul.f32 0.5, %v580_v19 }
 0x1cd   : > { %v644_v42 = vadd.f32 1.0, %v930_v25 }
 0x1ce   : > { %v606_v20 = vmul.f32 %v598_v56, %v580_v19  ;;  %931 = vtanh.f32 %v629_v29 }
 0x1cf   : > { %v652_v47 = vmul.f32 %v644_v42, %v588_v43 }
 0x1d0   : > { %v614_v32 = vmul.f32 %v606_v20, %v580_v19 }
 0x1d1   : > { %v581_v26 = vpop.f32.mrf.mxu3 }
 0x1d2   : > { %v582_v33 = vadd.f32 %v1197_v59, %v581_v26  ;;  %v622_v35 = vadd.f32 %v614_v32, %v580_v19 }
 0x1d4   : > { %v932_v37 = vpop.eup %931  ;;  %v599_v38 = vmul.f32 0.044715, %v582_v33  ;;  %v630_v36 = vmul.f32 0.7978846, %v622_v35  ;;  %v591_v55 = vmul.f32 0.5, %v582_v33 }
 0x1d5   : > { %v645_v27 = vadd.f32 1.0, %v932_v37 }
 0x1d6   : > { %v607_v46 = vmul.f32 %v599_v38, %v582_v33  ;;  %862 = vmatmul.msk.bf16.gmra.mxu1 %vm680_vm0, %v657_v39  ;;  %933 = vtanh.f32 %v630_v36 }
 0x1d7   : > { %v653_v31 = vmul.f32 %v645_v27, %v589_v40 }
 0x1d8   : > { %v615_v48 = vmul.f32 %v607_v46, %v582_v33 }
 0x1d9   : > { %v658_v49 = vpack.c.bf16 %v653_v31, %v652_v47 }
 0x1da   : > { %v623_v51 = vadd.f32 %v615_v48, %v582_v33 }
 0x1db   : > { %863 = vmatmul.msk.bf16.vlgmr.msra.gmra.mxu2 %vm680_vm0, %v658_v49 }
 0x1dc   : > { %v631_v59 = vmul.f32 0.7978846, %v623_v51  ;;  %v934_v52 = vpop.eup %933 }
 0x1dd   : > { %v646_v53 = vadd.f32 1.0, %v934_v52 }
 0x1de   : > { %935 = vtanh.f32 %v631_v59 }
 0x1df   : > { %v654_v58 = vmul.f32 %v646_v53, %v590_v45 }
 0x1e4   : > { %v936_v54 = vpop.eup %935 }
 0x1e5   : > { %v647_v57 = vadd.f32 1.0, %v936_v54 }
 0x1e7   : > { %v655_v60 = vmul.f32 %v647_v57, %v591_v55 }
 0x1e9   : > { %v659_v62 = vpack.c.bf16 %v655_v60, %v654_v58 }
 0x1eb   : > { %864 = vmatmul.msk.bf16.gmra.mxu2 %vm680_vm0, %v659_v62 }
 0x243   : > { %v702_v3 = vpop.f32.mrf.mxu1 }
 0x244   : > { %v703_v4 = vadd.f32 %v902_v63, %v702_v3 }
 0x246   : > { %v722_v5 = vadd.f32 %v703_v4, %v1030_v2 }
 0x248   : > { %730 = vxpose.xlu1.b32.start [1/8] (short) (narrow) %v722_v5, 8 }
 0x24b   : > { %v704_v50 = vpop.f32.mrf.mxu1 }
 0x24c   : > { %v705_v9 = vadd.f32 %v902_v63, %v704_v50 }
 0x24e   : > { %v723_v44 = vadd.f32 %v705_v9, %v1042_v8 }
 0x250   : > { %731 = vxpose.xlu1.b32.cont [2/8] (short) (narrow) %v723_v44, 8 }
 0x253   : > { %v707_v10 = vpop.f32.mrf.mxu1 }
 0x254   : > { %v708_v41 = vadd.f32 %v902_v63, %v707_v10 }
 0x256   : > { %v724_v11 = vadd.f32 %v708_v41, %v1028_v1 }
 0x258   : > { %732 = vxpose.xlu1.b32.cont [3/8] (short) (narrow) %v724_v11, 8 }
 0x25b   : > { %v709_v15 = vpop.f32.mrf.mxu1 }
 0x25c   : > { %v710_v16 = vadd.f32 %v902_v63, %v709_v15 }
 0x25e   : > { %v725_v17 = vadd.f32 %v710_v16, %v1040_v7  ;;  %v712_v18 = vpop.f32.mrf.mxu2 }
 0x25f   : > { %v713_v61 = vadd.f32 %v902_v63, %v712_v18 }
 0x260   : > { %733 = vxpose.xlu1.b32.cont [4/8] (short) (narrow) %v725_v17, 8 }
 0x261   : > { %v726_v2 = vadd.f32 %v713_v61, %v1026_v0 }
 0x266   : > { %v714_v19 = vpop.f32.mrf.mxu2 }
 0x267   : > { %v715_v22 = vadd.f32 %v902_v63, %v714_v19 }
 0x268   : > { %734 = vxpose.xlu1.b32.cont [5/8] (short) (narrow) %v726_v2, 8 }
 0x269   : > { %v727_v8 = vadd.f32 %v715_v22, %v1038_v6 }
 0x26e   : > { %v717_v28 = vpop.f32.mrf.mxu2 }
 0x26f   : > { %v718_v56 = vadd.f32 %v902_v63, %v717_v28 }
 0x270   : > { %735 = vxpose.xlu1.b32.cont [6/8] (short) (narrow) %v727_v8, 8 }
 0x271   : > { %v728_v1 = vadd.f32 %v718_v56, %v1050_v12 }
 0x276   : > { %v719_v14 = vpop.f32.mrf.mxu2 }
 0x277   : > { %v720_v29 = vadd.f32 %v902_v63, %v719_v14 }
 0x278   : > { %736 = vxpose.xlu1.b32.cont [7/8] (short) (narrow) %v728_v1, 8 }
 0x279   : > { %v729_v7 = vadd.f32 %v720_v29, %v1052_v13 }
 0x280   : > { %737 = vxpose.xlu1.b32.end [8/8] (short) (narrow) %v729_v7, 8 }
 0x2ec   : > { %v746_v0 = vpop.trf.xlu1 }
 0x2ed   : > { %763 = vst.msk [vmem:[%s312_s30] sm:$0xff] %vm762_vm12, %v746_v0 }
 0x2ee PF: > { %s17_s26 = sadd.s32 1, %s959_s26   ;;  %s1250_s24 = smov %s955_s25 }
 0x2ef   : > { %p14_p5 = scmp.ge.s32.totalorder %s17_s26, 4   ;;  %s1251_s25 = smov %s1253_s27 }
 0x2f1   :  { %16 = sbr.rel (!%p14_p5) target bundleno = 2 (0x2), region = 78 }

// kernel: block_forward.2
= control target key start
LH: loop header
LB: loop body
LE: loop exit
PB: predicated region body
PF: predicated region fallthrough
CT: control target
= control target key end

     0   :  { %vm88_vm0 = vcmask 64512   ;;  %v4254_v22 = vmov 8.0   ;;  %s7934_s0 = inlined_call_operand.vmem [shape: f32[2,8,64], index: 0, kind: input, shape index: {}]   ;;  %s7935_s1 = inlined_call_operand.vmem [shape: f32[1,8], index: 1, kind: input, shape index: {}]   ;;  %s7936_s2 = inlined_call_operand.vmem [shape: f32[1,8], index: 2, kind: input, shape index: {}]   ;;  %s7937_s3 = inlined_call_operand.vmem [shape: bf16[9,8,8], index: 3, kind: input, shape index: {}]   ;;  %s7938_s4 = inlined_call_operand.vmem [shape: bf16[9,8,8], index: 4, kind: input, shape index: {}]   ;;  %s7939_s5 = inlined_call_operand.vmem [shape: f32[128,8], index: 5, kind: output, shape index: {}]  }
   0x1   :  { %v21_v0 = vld [vmem:[%s7934_s0] sm:$0xff]  ;;  %v3685_v1 = vld [vmem:[%s7934_s0 + $0x8] sm:$0xff]  ;;  %3988 = vrcp.f32 %v4254_v22 }
   0x2   :  { %22 = vxpose.xlu0.b32.start.end [1/1] (short) (narrow) %v21_v0, 64 }
   0x7   :  { %v3989_v24 = vpop.eup %3988 }
   0x8   :  { %v138_v27 = vmul.f32 8.0, %v3989_v24  ;;  %vm142_vm1 = vweird.f32 %v3989_v24 }
   0xa   :  { %v139_v28 = vsub.f32 1.0, %v138_v27 }
   0xc   :  { %v140_v32 = vmul.f32 %v3989_v24, %v139_v28 }
   0xe   :  { %v141_v34 = vadd.f32 %v3989_v24, %v140_v32 }
  0x10   :  { %v4349_v37 = vsel %vm142_vm1, %v3989_v24, %v141_v34 }
  0x42   :  { %56 = vxpose.xlu0.b32.start.end [1/1] (short) (narrow) %v3685_v1, 64 }
  0xa6   :  { %v4291_v2 = vpop.trf.xlu0 }
  0xa7   :  { %8105 = vst [vmem:[#allocation2_spill] sm:$0xff] %v4291_v2  ;;  %v89_v3 = vsel %vm88_vm0, %v4291_v2, 0.0 }
  0xa8   :  { %90 = vadd.xlane.f32.xlu1 %v89_v3 }
  0xae   :  { %v4295_v4 = vpop.trf.xlu0 }
  0xaf   :  { %8106 = vst [vmem:[#allocation3_spill] sm:$0xff] %v4295_v4  ;;  %v92_v14 = vsel %vm88_vm0, %v4295_v4, 0.0 }
  0xb6   :  { %v4297_v5 = vpop.trf.xlu0 }
  0xb7   :  { %8107 = vst [vmem:[#allocation4_spill] sm:$0xff] %v4297_v5  ;;  %v95_v17 = vsel %vm88_vm0, %v4297_v5, 0.0 }
  0xbe   :  { %v4299_v6 = vpop.trf.xlu0 }
  0xbf   :  { %8108 = vst [vmem:[#allocation5_spill] sm:$0xff] %v4299_v6  ;;  %v98_v20 = vsel %vm88_vm0, %v4299_v6, 0.0 }
  0xc6   :  { %v4301_v7 = vpop.trf.xlu0 }
  0xc7   :  { %8109 = vst [vmem:[#allocation6_spill] sm:$0xff] %v4301_v7  ;;  %v101_v21 = vsel %vm88_vm0, %v4301_v7, 0.0 }
  0xce   :  { %v4303_v8 = vpop.trf.xlu0 }
  0xcf   :  { %8110 = vst [vmem:[#allocation7_spill] sm:$0xff] %v4303_v8  ;;  %v104_v30 = vsel %vm88_vm0, %v4303_v8, 0.0 }
  0xd6   :  { %v4305_v9 = vpop.trf.xlu0 }
  0xd7   :  { %8111 = vst [vmem:[#allocation8_spill] sm:$0xff] %v4305_v9  ;;  %v107_v31 = vsel %vm88_vm0, %v4305_v9, 0.0 }
  0xde   :  { %v4307_v10 = vpop.trf.xlu0 }
  0xdf   :  { %8112 = vst [vmem:[#allocation9_spill] sm:$0xff] %v4307_v10  ;;  %v110_v41 = vsel %vm88_vm0, %v4307_v10, 0.0 }
  0xe6   :  { %v4309_v11 = vpop.trf.xlu0 }
  0xe7   :  { %8113 = vst [vmem:[#allocation10_spill] sm:$0xff] %v4309_v11  ;;  %v113_v12 = vsel %vm88_vm0, %v4309_v11, 0.0 }
  0xe8   :  { %114 = vadd.xlane.f32.xlu1 %v113_v12 }
  0xee   :  { %v4313_v13 = vpop.trf.xlu0 }
  0xef   :  { %8114 = vst [vmem:[#allocation11_spill] sm:$0xff] %v4313_v13  ;;  %v116_v15 = vsel %vm88_vm0, %v4313_v13, 0.0 }
  0xf0   :  { %93 = vadd.xlane.f32.xlu1 %v92_v14  ;;  %117 = vadd.xlane.f32.xlu2 %v116_v15 }
  0xf6   :  { %v4319_v16 = vpop.trf.xlu0 }
  0xf7   :  { %8115 = vst [vmem:[#allocation12_spill] sm:$0xff] %v4319_v16  ;;  %v119_v18 = vsel %vm88_vm0, %v4319_v16, 0.0 }
  0xf8   :  { %96 = vadd.xlane.f32.xlu2 %v95_v17  ;;  %120 = vadd.xlane.f32.xlu1 %v119_v18 }
  0xfe   :  { %v4325_v19 = vpop.trf.xlu0 }
  0xff   :  { %8116 = vst [vmem:[#allocation13_spill] sm:$0xff] %v4325_v19  ;;  %v122_v23 = vsel %vm88_vm0, %v4325_v19, 0.0 }
 0x100   :  { %99 = vadd.xlane.f32.xlu2 %v98_v20  ;;  %102 = vadd.xlane.f32.xlu1 %v101_v21 }
 0x106   :  { %v4333_v25 = vpop.trf.xlu0 }
 0x107   :  { %8117 = vst [vmem:[#allocation14_spill] sm:$0xff] %v4333_v25  ;;  %v125_v26 = vsel %vm88_vm0, %v4333_v25, 0.0 }
 0x108   :  { %123 = vadd.xlane.f32.xlu2 %v122_v23  ;;  %126 = vadd.xlane.f32.xlu1 %v125_v26 }
 0x10e   :  { %v4337_v29 = vpop.trf.xlu0 }
 0x10f   :  { %8118 = vst [vmem:[#allocation15_spill] sm:$0xff] %v4337_v29  ;;  %v128_v33 = vsel %vm88_vm0, %v4337_v29, 0.0 }
 0x110   :  { %105 = vadd.xlane.f32.xlu2 %v104_v30  ;;  %108 = vadd.xlane.f32.xlu1 %v107_v31 }
 0x116   :  { %v4345_v35 = vpop.trf.xlu0 }
 0x117   :  { %8119 = vst [vmem:[#allocation16_spill] sm:$0xff] %v4345_v35  ;;  %v131_v36 = vsel %vm88_vm0, %v4345_v35, 0.0 }
 0x118   :  { %129 = vadd.xlane.f32.xlu2 %v128_v33  ;;  %132 = vadd.xlane.f32.xlu1 %v131_v36 }
 0x11b   :  { %v91_v38 = vpop.xlane.xlu1 %90 }
 0x11c   :  { %v144_v39 = vmul.f32 %v4349_v37, %v91_v38 }
 0x11e   :  { %v4353_v40 = vsub.f32 %v4291_v2, %v144_v39  ;;  %v4360_v44 = vpop.trf.xlu0 }
 0x11f   :  { %8120 = vst [vmem:[#allocation17_spill] sm:$0xff] %v4360_v44  ;;  %v134_v45 = vsel %vm88_vm0, %v4360_v44, 0.0 }
 0x120   :  { %111 = vadd.xlane.f32.xlu2 %v110_v41  ;;  %v176_v42 = vmul.f32 %v4353_v40, %v4353_v40 }
 0x122   :  { %v192_v43 = vsel %vm88_vm0, %v176_v42, 0.0 }
 0x123   :  { %193 = vadd.xlane.f32.xlu1 %v192_v43 }
 0x128   :  { %135 = vadd.xlane.f32.xlu2 %v134_v45 }
 0x15b   :  { %v115_v46 = vpop.xlane.xlu1 %114 }
 0x15c   :  { %v152_v51 = vmul.f32 %v4349_v37, %v115_v46 }
 0x15e   :  { %v4378_v56 = vsub.f32 %v4309_v11, %v152_v51 }
 0x160   :  { %v184_v0 = vmul.f32 %v4378_v56, %v4378_v56 }
 0x162   :  { %v216_v14 = vsel %vm88_vm0, %v184_v0, 0.0 }
 0x163   :  { %v94_v47 = vpop.xlane.xlu1 %93  ;;  %v118_v48 = vpop.xlane.xlu2 %117 }
 0x164   :  { %v145_v49 = vmul.f32 %v4349_v37, %v94_v47  ;;  %v153_v50 = vmul.f32 %v4349_v37, %v118_v48 }
 0x166   :  { %v4368_v52 = vsub.f32 %v4295_v4, %v145_v49  ;;  %v4371_v53 = vsub.f32 %v4313_v13, %v153_v50 }
 0x168   :  { %v185_v54 = vmul.f32 %v4371_v53, %v4371_v53  ;;  %v177_v55 = vmul.f32 %v4368_v52, %v4368_v52 }
 0x16a   :  { %v219_v57 = vsel %vm88_vm0, %v185_v54, 0.0  ;;  %v195_v58 = vsel %vm88_vm0, %v177_v55, 0.0 }
 0x16b   :  { %v97_v59 = vpop.xlane.xlu2 %96  ;;  %v121_v60 = vpop.xlane.xlu1 %120  ;;  %220 = vadd.xlane.f32.xlu1 %v219_v57  ;;  %196 = vadd.xlane.f32.xlu2 %v195_v58 }
 0x16c   :  { %v146_v61 = vmul.f32 %v4349_v37, %v97_v59  ;;  %v154_v63 = vmul.f32 %v4349_v37, %v121_v60 }
 0x16e   :  { %v4384_v62 = vsub.f32 %v4297_v5, %v146_v61  ;;  %v4392_v3 = vsub.f32 %v4319_v16, %v154_v63 }
 0x170   :  { %v178_v1 = vmul.f32 %v4384_v62, %v4384_v62  ;;  %v186_v22 = vmul.f32 %v4392_v3, %v4392_v3 }
 0x172   :  { %v198_v12 = vsel %vm88_vm0, %v178_v1, 0.0  ;;  %v222_v27 = vsel %vm88_vm0, %v186_v22, 0.0 }
 0x173   :  { %199 = vadd.xlane.f32.xlu0 %v198_v12  ;;  %v100_v15 = vpop.xlane.xlu2 %99  ;;  %v103_v17 = vpop.xlane.xlu1 %102  ;;  %217 = vadd.xlane.f32.xlu2 %v216_v14 }
 0x174   :  { %v147_v18 = vmul.f32 %v4349_v37, %v100_v15  ;;  %v148_v21 = vmul.f32 %v4349_v37, %v103_v17 }
 0x176   :  { %v4398_v20 = vsub.f32 %v4299_v6, %v147_v18  ;;  %v4406_v24 = vsub.f32 %v4301_v7, %v148_v21 }
 0x178   :  { %v179_v23 = vmul.f32 %v4398_v20, %v4398_v20  ;;  %v180_v34 = vmul.f32 %v4406_v24, %v4406_v24 }
 0x17a   :  { %v201_v26 = vsel %vm88_vm0, %v179_v23, 0.0  ;;  %v204_v41 = vsel %vm88_vm0, %v180_v34, 0.0 }
 0x17b   :  { %v124_v28 = vpop.xlane.xlu2 %123  ;;  %v127_v30 = vpop.xlane.xlu1 %126  ;;  %202 = vadd.xlane.f32.xlu1 %v201_v26  ;;  %223 = vadd.xlane.f32.xlu2 %v222_v27 }
 0x17c   :  { %v155_v31 = vmul.f32 %v4349_v37, %v124_v28  ;;  %v156_v33 = vmul.f32 %v4349_v37, %v127_v30 }
 0x17e   :  { %v4412_v32 = vsub.f32 %v4325_v19, %v155_v31  ;;  %v4420_v38 = vsub.f32 %v4333_v25, %v156_v33 }
 0x180   :  { %v187_v36 = vmul.f32 %v4412_v32, %v4412_v32  ;;  %v188_v48 = vmul.f32 %v4420_v38, %v4420_v38 }
 0x182   :  { %v225_v39 = vsel %vm88_vm0, %v187_v36, 0.0  ;;  %v228_v54 = vsel %vm88_vm0, %v188_v48, 0.0  ;;  %v4473_v48 = vld [vmem:[%s7935_s1] ss:$0 sm:$0xff]  ;;  %s5441_s1 = smov 0  }
 0x183   :  { %v106_v42 = vpop.xlane.xlu2 %105  ;;  %v109_v43 = vpop.xlane.xlu1 %108  ;;  %226 = vadd.xlane.f32.xlu1 %v225_v39  ;;  %205 = vadd.xlane.f32.xlu2 %v204_v41 }
 0x184   :  { %v149_v45 = vmul.f32 %v4349_v37, %v106_v42  ;;  %v150_v47 = vmul.f32 %v4349_v37, %v109_v43 }
 0x186   :  { %v4426_v46 = vsub.f32 %v4303_v8, %v149_v45  ;;  %v4434_v50 = vsub.f32 %v4305_v9, %v150_v47 }
 0x188   :  { %v181_v49 = vmul.f32 %v4426_v46, %v4426_v46  ;;  %v182_v61 = vmul.f32 %v4434_v50, %v4434_v50 }
 0x18a   :  { %v207_v51 = vsel %vm88_vm0, %v181_v49, 0.0  ;;  %v210_v12 = vsel %vm88_vm0, %v182_v61, 0.0 }
 0x18b   :  { %v130_v55 = vpop.xlane.xlu2 %129  ;;  %208 = vadd.xlane.f32.xlu1 %v207_v51  ;;  %v133_v57 = vpop.xlane.xlu1 %132  ;;  %229 = vadd.xlane.f32.xlu2 %v228_v54  ;;  %v4479_v54 = vld [vmem:[%s7936_s2] ss:$0 sm:$0xff] }
 0x18c   :  { %v157_v58 = vmul.f32 %v4349_v37, %v130_v55  ;;  %v158_v60 = vmul.f32 %v4349_v37, %v133_v57 }
 0x18e   :  { %v4440_v59 = vsub.f32 %v4337_v29, %v157_v58  ;;  %v4448_v0 = vsub.f32 %v4345_v35, %v158_v60 }
 0x190   :  { %v189_v63 = vmul.f32 %v4440_v59, %v4440_v59  ;;  %v190_v21 = vmul.f32 %v4448_v0, %v4448_v0 }
 0x192   :  { %v231_v1 = vsel %vm88_vm0, %v189_v63, 0.0  ;;  %v234_v28 = vsel %vm88_vm0, %v190_v21, 0.0 }
 0x193   :  { %v112_v14 = vpop.xlane.xlu2 %111  ;;  %232 = vadd.xlane.f32.xlu1 %v231_v1  ;;  %211 = vadd.xlane.f32.xlu2 %v210_v12 }
 0x194   :  { %v151_v15 = vmul.f32 %v4349_v37, %v112_v14 }
 0x196   :  { %v4454_v17 = vsub.f32 %v4307_v10, %v151_v15  ;;  %v194_v18 = vpop.xlane.xlu1 %193 }
 0x197   :  { %v240_v22 = vmul.f32 %v194_v18, %v4349_v37 }
 0x198   :  { %v183_v23 = vmul.f32 %v4454_v17, %v4454_v17 }
 0x199   :  { %v256_v26 = vadd.f32 1e-06, %v240_v22 }
 0x19a   :  { %v213_v27 = vsel %vm88_vm0, %v183_v23, 0.0 }
 0x19b   :  { %3990 = vrsqrt.f32 %v256_v26  ;;  %214 = vadd.xlane.f32.xlu1 %v213_v27  ;;  %235 = vadd.xlane.f32.xlu2 %v234_v28  ;;  %v136_v30 = vpop.xlane.xlu2 %135  ;;  %vm278_vm3 = vweird.f32 %v256_v26 }
 0x19c   :  { %v159_v31 = vmul.f32 %v4349_v37, %v136_v30 }
 0x19e   :  { %v4465_v33 = vsub.f32 %v4360_v44, %v159_v31 }
 0x1a0   :  { %v191_v34 = vmul.f32 %v4465_v33, %v4465_v33 }
 0x1a1   :  { %v3991_v36 = vpop.eup %3990 }
 0x1a2   :  { %v273_v39 = vmul.f32 %v3991_v36, %v256_v26  ;;  %v237_v41 = vsel %vm88_vm0, %v191_v34, 0.0  ;;  %vm279_vm2 = vweird.f32 %v3991_v36 }
 0x1a3   :  { %238 = vadd.xlane.f32.xlu1 %v237_v41  ;;  %vm280_vm4 = vmor %vm278_vm3, %vm279_vm2 }
 0x1a4   :  { %v274_v42 = vmul.f32 %v3991_v36, %v273_v39 }
 0x1a6   :  { %v275_v43 = vmul.f32 0.5, %v274_v42 }
 0x1a8   :  { %v276_v45 = vsub.f32 1.5, %v275_v43 }
 0x1aa   :  { %v277_v47 = vmul.f32 %v3991_v36, %v276_v45 }
 0x1ac   :  { %v281_v49 = vsel %vm280_vm4, %v3991_v36, %v277_v47 }
 0x1ad   :  { %v432_v51 = vmul.f32 %v281_v49, %v4353_v40 }
 0x1af   :  { %v452_v55 = vmul.f32 %v4473_v48, %v432_v51 }
 0x1b1   :  { %v4483_v57 = vadd.f32 %v4479_v54, %v452_v55 }
 0x1b3   :  { %v488_v58 = vmax.f32 %v4483_v57, 0.0 }
 0x1b5   :  { %v504_v60 = vsel %vm88_vm0, %v488_v58, 0.0 }
 0x1b6   :  { %505 = vadd.xlane.f32.xlu2 %v504_v60 }
 0x1de   :  { %v221_v61 = vpop.xlane.xlu1 %220  ;;  %v197_v63 = vpop.xlane.xlu2 %196 }
 0x1df   :  { %v249_v40 = vmul.f32 %v221_v61, %v4349_v37  ;;  %v241_v1 = vmul.f32 %v197_v63, %v4349_v37 }
 0x1e1   :  { %v265_v12 = vadd.f32 1e-06, %v249_v40  ;;  %v257_v14 = vadd.f32 1e-06, %v241_v1 }
 0x1e3   :  { %3992 = vrsqrt.f32 %v265_v12  ;;  %vm368_vm7 = vweird.f32 %v265_v12  ;;  %vm288_vm9 = vweird.f32 %v257_v14 }
 0x1e4   :  { %3994 = vrsqrt.f32 %v257_v14 }
 0x1e6   :  { %v218_v15 = vpop.xlane.xlu2 %217  ;;  %v200_v18 = vpop.xlane.xlu0 %199 }
 0x1e7   :  { %v248_v21 = vmul.f32 %v218_v15, %v4349_v37  ;;  %v242_v22 = vmul.f32 %v200_v18, %v4349_v37 }
 0x1e9   :  { %v3993_v23 = vpop.eup %3992  ;;  %v264_v26 = vadd.f32 1e-06, %v248_v21  ;;  %v4493_v27 = vadd.f32 1e-06, %v242_v22 }
 0x1ea   :  { %v3995_v28 = vpop.eup %3994  ;;  %v363_v30 = vmul.f32 %v3993_v23, %v265_v12  ;;  %vm369_vm5 = vweird.f32 %v3993_v23 }
 0x1eb   :  { %v283_v31 = vmul.f32 %v3995_v28, %v257_v14  ;;  %3996 = vrsqrt.f32 %v264_v26  ;;  %vm289_vm6 = vweird.f32 %v3995_v28  ;;  %vm370_vm8 = vmor %vm368_vm7, %vm369_vm5  ;;  %vm358_vm13 = vweird.f32 %v264_v26 }
 0x1ec   :  { %v364_v34 = vmul.f32 %v3993_v23, %v363_v30  ;;  %3998 = vrsqrt.f32 %v4493_v27  ;;  %vm290_vm10 = vmor %vm288_vm9, %vm289_vm6  ;;  %vm298_vm15 = vweird.f32 %v4493_v27 }
 0x1ed   :  { %v284_v36 = vmul.f32 %v3995_v28, %v283_v31 }
 0x1ee   :  { %v365_v39 = vmul.f32 0.5, %v364_v34  ;;  %v203_v41 = vpop.xlane.xlu1 %202  ;;  %v224_v42 = vpop.xlane.xlu2 %223 }
 0x1ef   :  { %v285_v43 = vmul.f32 0.5, %v284_v36  ;;  %v243_v45 = vmul.f32 %v203_v41, %v4349_v37  ;;  %v250_v47 = vmul.f32 %v224_v42, %v4349_v37 }
 0x1f0   :  { %v366_v49 = vsub.f32 1.5, %v365_v39 }
 0x1f1   :  { %v3997_v51 = vpop.eup %3996  ;;  %v286_v55 = vsub.f32 1.5, %v285_v43  ;;  %v4498_v60 = vadd.f32 1e-06, %v243_v45  ;;  %v4500_v61 = vadd.f32 1e-06, %v250_v47 }
 0x1f2   :  { %v4502_v63 = vpop.eup %3998  ;;  %v367_v40 = vmul.f32 %v3993_v23, %v366_v49  ;;  %v353_v1 = vmul.f32 %v3997_v51, %v264_v26  ;;  %vm359_vm11 = vweird.f32 %v3997_v51 }
 0x1f3   :  { %v287_v15 = vmul.f32 %v3995_v28, %v286_v55  ;;  %v293_v18 = vmul.f32 %v4502_v63, %v4493_v27  ;;  %4000 = vrsqrt.f32 %v4498_v60  ;;  %vm299_vm12 = vweird.f32 %v4502_v63  ;;  %vm360_vm14 = vmor %vm358_vm13, %vm359_vm11 }
 0x1f4   :  { %v354_v21 = vmul.f32 %v3997_v51, %v353_v1  ;;  %4002 = vrsqrt.f32 %v4500_v61  ;;  %v371_v31 = vsel %vm370_vm8, %v3993_v23, %v367_v40  ;;  %vm4539_vm1 = vmor %vm298_vm15, %vm299_vm12  ;;  %vm308_vm4 = vweird.f32 %v4498_v60 }
 0x1f5   :  { %v294_v22 = vmul.f32 %v4502_v63, %v293_v18  ;;  %v291_v30 = vsel %vm290_vm10, %v3995_v28, %v287_v15  ;;  %v441_v14 = vmul.f32 %v371_v31, %v4371_v53  ;;  %vm378_vm6 = vweird.f32 %v4500_v61 }
 0x1f6   :  { %v355_v34 = vmul.f32 0.5, %v354_v21  ;;  %v227_v36 = vpop.xlane.xlu1 %226  ;;  %v206_v12 = vpop.xlane.xlu2 %205  ;;  %v433_v39 = vmul.f32 %v291_v30, %v4368_v52 }
 0x1f7   :  { %v295_v41 = vmul.f32 0.5, %v294_v22  ;;  %v251_v42 = vmul.f32 %v227_v36, %v4349_v37  ;;  %v244_v43 = vmul.f32 %v206_v12, %v4349_v37  ;;  %v461_v15 = vmul.f32 %v4473_v48, %v441_v14 }
 0x1f8   :  { %v356_v45 = vsub.f32 1.5, %v355_v34  ;;  %v453_v47 = vmul.f32 %v4473_v48, %v433_v39 }
 0x1f9   :  { %v4514_v49 = vpop.eup %4000  ;;  %v296_v28 = vsub.f32 1.5, %v295_v41  ;;  %v4517_v23 = vadd.f32 1e-06, %v251_v42  ;;  %v4519_v55 = vadd.f32 1e-06, %v244_v43  ;;  %v4546_v27 = vadd.f32 %v4479_v54, %v461_v15 }
 0x1fa   :  { %v4521_v52 = vpop.eup %4002  ;;  %v357_v53 = vmul.f32 %v3997_v51, %v356_v45  ;;  %v303_v40 = vmul.f32 %v4514_v49, %v4498_v60  ;;  %v4526_v1 = vadd.f32 %v4479_v54, %v453_v47  ;;  %vm309_vm2 = vweird.f32 %v4514_v49 }
 0x1fb   :  { %v297_v18 = vmul.f32 %v4502_v63, %v296_v28  ;;  %v373_v21 = vmul.f32 %v4521_v52, %v4500_v61  ;;  %4004 = vrsqrt.f32 %v4517_v23  ;;  %vm379_vm3 = vweird.f32 %v4521_v52  ;;  %vm310_vm5 = vmor %vm308_vm4, %vm309_vm2 }
 0x1fc   :  { %v304_v22 = vmul.f32 %v4514_v49, %v303_v40  ;;  %4006 = vrsqrt.f32 %v4519_v55  ;;  %v489_v31 = vmax.f32 %v4526_v1, 0.0  ;;  %v361_v34 = vsel %vm360_vm14, %v3997_v51, %v357_v53  ;;  %vm4584_vm8 = vmor %vm378_vm6, %vm379_vm3 }
 0x1fd   :  { %v374_v26 = vmul.f32 %v4521_v52, %v373_v21  ;;  %v440_v14 = vmul.f32 %v361_v34, %v4378_v56  ;;  %v301_v41 = vsel %vm4539_vm1, %v4502_v63, %v297_v18  ;;  %v497_v30 = vmax.f32 %v4546_v27, 0.0 }
 0x1fe   :  { %v305_v36 = vmul.f32 0.5, %v304_v22  ;;  %v209_v12 = vpop.xlane.xlu1 %208  ;;  %v230_v39 = vpop.xlane.xlu2 %229  ;;  %v507_v45 = vsel %vm88_vm0, %v489_v31, 0.0  ;;  %v434_v15 = vmul.f32 %v301_v41, %v4384_v62  ;;  %vm388_vm10 = vweird.f32 %v4517_v23 }
 0x1ff   :  { %v375_v42 = vmul.f32 0.5, %v374_v26  ;;  %v245_v43 = vmul.f32 %v209_v12, %v4349_v37  ;;  %v252_v51 = vmul.f32 %v230_v39, %v4349_v37  ;;  %508 = vadd.xlane.f32.xlu1 %v507_v45  ;;  %v460_v28 = vmul.f32 %v4473_v48, %v440_v14 }
 0x200   :  { %v306_v47 = vsub.f32 1.5, %v305_v36  ;;  %v454_v14 = vmul.f32 %v4473_v48, %v434_v15  ;;  %vm318_vm12 = vweird.f32 %v4519_v55 }
 0x201   :  { %v4559_v56 = vpop.eup %4004  ;;  %v376_v53 = vsub.f32 1.5, %v375_v42  ;;  %v4561_v40 = vadd.f32 1e-06, %v245_v43  ;;  %v4563_v63 = vadd.f32 1e-06, %v252_v51  ;;  %v4590_v12 = vadd.f32 %v4479_v54, %v460_v28 }
 0x202   :  { %v4566_v18 = vpop.eup %4006  ;;  %v307_v21 = vmul.f32 %v4514_v49, %v306_v47  ;;  %v383_v22 = vmul.f32 %v4559_v56, %v4517_v23  ;;  %vm389_vm7 = vweird.f32 %v4559_v56  ;;  %v531_v42 = vsel %vm88_vm0, %v497_v30, 0.0 }
 0x203   :  { %v377_v26 = vmul.f32 %v4521_v52, %v376_v53  ;;  %v313_v34 = vmul.f32 %v4566_v18, %v4519_v55  ;;  %4008 = vrsqrt.f32 %v4561_v40  ;;  %vm319_vm9 = vweird.f32 %v4566_v18  ;;  %vm390_vm11 = vmor %vm388_vm10, %vm389_vm7 }
 0x204   :  { %v384_v62 = vmul.f32 %v4559_v56, %v383_v22  ;;  %4010 = vrsqrt.f32 %v4563_v63  ;;  %v311_v39 = vsel %vm310_vm5, %v4514_v49, %v307_v21  ;;  %v496_v49 = vmax.f32 %v4590_v12, 0.0  ;;  %vm4640_vm14 = vmor %vm318_vm12, %vm319_vm9 }
 0x205   :  { %v314_v36 = vmul.f32 %v4566_v18, %v313_v34  ;;  %v435_v45 = vmul.f32 %v311_v39, %v4398_v20  ;;  %v381_v51 = vsel %vm4584_vm8, %v4521_v52, %v377_v26  ;;  %v4607_v22 = vadd.f32 %v4479_v54, %v454_v14 }
 0x206   :  { %v385_v61 = vmul.f32 0.5, %v384_v62  ;;  %v233_v41 = vpop.xlane.xlu1 %232  ;;  %v212_v43 = vpop.xlane.xlu2 %211  ;;  %v528_v26 = vsel %vm88_vm0, %v496_v49, 0.0  ;;  %vm328_vm1 = vweird.f32 %v4561_v40  ;;  %vm398_vm3 = vweird.f32 %v4563_v63 }
 0x207   :  { %v315_v47 = vmul.f32 0.5, %v314_v36  ;;  %v253_v28 = vmul.f32 %v233_v41, %v4349_v37  ;;  %v246_v53 = vmul.f32 %v212_v43, %v4349_v37  ;;  %532 = vadd.xlane.f32.xlu1 %v531_v42  ;;  %v455_v21 = vmul.f32 %v4473_v48, %v435_v45  ;;  %529 = vadd.xlane.f32.xlu2 %v528_v26 }
 0x208   :  { %v386_v15 = vsub.f32 1.5, %v385_v61  ;;  %v442_v61 = vmul.f32 %v381_v51, %v4392_v3  ;;  %v7940_v51 = vmax.f32 %v4607_v22, 0.0 }
 0x209   :  { %v4609_v20 = vpop.eup %4008  ;;  %v316_v34 = vsub.f32 1.5, %v315_v47  ;;  %v4611_v52 = vadd.f32 1e-06, %v253_v28  ;;  %v4616_v62 = vadd.f32 1e-06, %v246_v53  ;;  %v4624_v14 = vadd.f32 %v4479_v54, %v455_v21 }
 0x20a   :  { %v4618_v60 = vpop.eup %4010  ;;  %v387_v36 = vmul.f32 %v4559_v56, %v386_v15  ;;  %v323_v39 = vmul.f32 %v4609_v20, %v4561_v40  ;;  %vm329_vm13 = vweird.f32 %v4609_v20  ;;  %v462_v21 = vmul.f32 %v4473_v48, %v442_v61 }
 0x20b   :  { %v317_v41 = vmul.f32 %v4566_v18, %v316_v34  ;;  %v393_v42 = vmul.f32 %v4618_v60, %v4563_v63  ;;  %4012 = vrsqrt.f32 %v4611_v52  ;;  %v7941_v45 = vmax.f32 %v4624_v14, 0.0  ;;  %vm330_vm2 = vmor %vm328_vm1, %vm329_vm13 }
 0x20c   :  { %v324_v43 = vmul.f32 %v4609_v20, %v323_v39  ;;  %4014 = vrsqrt.f32 %v4616_v62  ;;  %v391_v55 = vsel %vm390_vm11, %v4559_v56, %v387_v36  ;;  %vm399_vm15 = vweird.f32 %v4618_v60 }
 0x20d   :  { %v394_v23 = vmul.f32 %v4618_v60, %v393_v42  ;;  %v443_v15 = vmul.f32 %v391_v55, %v4412_v32  ;;  %v321_v34 = vsel %vm4640_vm14, %v4566_v18, %v317_v41  ;;  %v513_v42 = vsel %vm88_vm0, %v7941_v45, 0.0  ;;  %vm4693_vm4 = vmor %vm398_vm3, %vm399_vm15 }
 0x20e   :  { %v325_v47 = vmul.f32 0.5, %v324_v43  ;;  %v215_v28 = vpop.xlane.xlu1 %214  ;;  %v236_v53 = vpop.xlane.xlu2 %235  ;;  %v510_v32 = vsel %vm88_vm0, %v7940_v51, 0.0  ;;  %vm408_vm7 = vweird.f32 %v4611_v52  ;;  %vm338_vm9 = vweird.f32 %v4616_v62 }
 0x20f   :  { %v395_v26 = vmul.f32 0.5, %v394_v23  ;;  %v247_v39 = vmul.f32 %v215_v28, %v4349_v37  ;;  %v254_v56 = vmul.f32 %v236_v53, %v4349_v37  ;;  %514 = vadd.xlane.f32.xlu1 %v513_v42  ;;  %v463_v61 = vmul.f32 %v4473_v48, %v443_v15  ;;  %511 = vadd.xlane.f32.xlu2 %v510_v32 }
 0x210   :  { %v326_v36 = vsub.f32 1.5, %v325_v47  ;;  %v4670_v23 = vadd.f32 %v4479_v54, %v462_v21  ;;  %v436_v15 = vmul.f32 %v321_v34, %v4406_v24 }
 0x211   :  { %v4663_v18 = vpop.eup %4012  ;;  %v396_v41 = vsub.f32 1.5, %v395_v26  ;;  %v4665_v43 = vadd.f32 1e-06, %v247_v39  ;;  %v4667_v3 = vadd.f32 1e-06, %v254_v56  ;;  %v4678_v53 = vadd.f32 %v4479_v54, %v463_v61 }
 0x212   :  { %v4672_v55 = vpop.eup %4014  ;;  %v327_v47 = vmul.f32 %v4609_v20, %v326_v36  ;;  %v403_v28 = vmul.f32 %v4663_v18, %v4611_v52  ;;  %v498_v42 = vmax.f32 %v4670_v23, 0.0  ;;  %v456_v61 = vmul.f32 %v4473_v48, %v436_v15 }
 0x213   :  { %v397_v26 = vmul.f32 %v4618_v60, %v396_v41  ;;  %v333_v21 = vmul.f32 %v4672_v55, %v4616_v62  ;;  %4016 = vrsqrt.f32 %v4665_v43  ;;  %v499_v34 = vmax.f32 %v4678_v53, 0.0 }
 0x214   :  { %v404_v39 = vmul.f32 %v4663_v18, %v403_v28  ;;  %4018 = vrsqrt.f32 %v4667_v3  ;;  %v331_v56 = vsel %vm330_vm2, %v4609_v20, %v327_v47  ;;  %vm409_vm5 = vweird.f32 %v4663_v18 }
 0x215   :  { %v334_v40 = vmul.f32 %v4672_v55, %v333_v21  ;;  %v437_v32 = vmul.f32 %v331_v56, %v4426_v46  ;;  %v401_v41 = vsel %vm4693_vm4, %v4618_v60, %v397_v26  ;;  %v537_v21 = vsel %vm88_vm0, %v499_v34, 0.0  ;;  %vm410_vm8 = vmor %vm408_vm7, %vm409_vm5 }
 0x216   :  { %v405_v36 = vmul.f32 0.5, %v404_v39  ;;  %v239_v63 = vpop.xlane.xlu1 %238  ;;  %v534_v46 = vsel %vm88_vm0, %v498_v42, 0.0  ;;  %v444_v26 = vmul.f32 %v401_v41, %v4420_v38  ;;  %vm339_vm6 = vweird.f32 %v4672_v55 }
 0x217   :  { %v335_v28 = vmul.f32 0.5, %v334_v40  ;;  %v255_v51 = vmul.f32 %v239_v63, %v4349_v37  ;;  %538 = vadd.xlane.f32.xlu1 %v537_v21  ;;  %v457_v20 = vmul.f32 %v4473_v48, %v437_v32  ;;  %v4718_v37 = vadd.f32 %v4479_v54, %v456_v61  ;;  %535 = vadd.xlane.f32.xlu2 %v534_v46  ;;  %vm4735_vm10 = vmor %vm338_vm9, %vm339_vm6 }
 0x218   :  { %v406_v45 = vsub.f32 1.5, %v405_v36  ;;  %v464_v41 = vmul.f32 %v4473_v48, %v444_v26  ;;  %vm348_vm11 = vweird.f32 %v4665_v43  ;;  %vm418_vm15 = vweird.f32 %v4667_v3 }
 0x219   :  { %v4017_v47 = vpop.eup %4016  ;;  %v336_v15 = vsub.f32 1.5, %v335_v28  ;;  %v4715_v60 = vadd.f32 1e-06, %v255_v51  ;;  %v4725_v56 = vadd.f32 %v4479_v54, %v457_v20  ;;  %v492_v52 = vmax.f32 %v4718_v37, 0.0 }
 0x21a   :  { %v4019_v39 = vpop.eup %4018  ;;  %v407_v24 = vmul.f32 %v4663_v18, %v406_v45  ;;  %v343_v40 = vmul.f32 %v4017_v47, %v4665_v43  ;;  %vm349_vm12 = vweird.f32 %v4017_v47 }
 0x21b   :  { %v337_v51 = vmul.f32 %v4672_v55, %v336_v15  ;;  %v413_v36 = vmul.f32 %v4019_v39, %v4667_v3  ;;  %4020 = vrsqrt.f32 %v4715_v60  ;;  %v493_v45 = vmax.f32 %v4725_v56, 0.0  ;;  %vm350_vm14 = vmor %vm348_vm11, %vm349_vm12 }
 0x21c   :  { %v344_v38 = vmul.f32 %v4017_v47, %v343_v40  ;;  %v411_v61 = vsel %vm410_vm8, %v4663_v18, %v407_v24  ;;  %v516_v40 = vsel %vm88_vm0, %v492_v52, 0.0  ;;  %vm419_vm13 = vweird.f32 %v4019_v39 }
 0x21d   :  { %v414_v32 = vmul.f32 %v4019_v39, %v413_v36  ;;  %v519_v21 = vsel %vm88_vm0, %v493_v45, 0.0  ;;  %v445_v62 = vmul.f32 %v411_v61, %v4440_v59  ;;  %v341_v46 = vsel %vm4735_vm10, %v4672_v55, %v337_v51  ;;  %vm420_vm1 = vmor %vm418_vm15, %vm419_vm13 }
 0x21e   :  { %v345_v28 = vmul.f32 0.5, %v344_v38  ;;  %v4755_v59 = vadd.f32 %v4479_v54, %v464_v41  ;;  %v438_v36 = vmul.f32 %v341_v46, %v4434_v50  ;;  %vm428_vm3 = vweird.f32 %v4715_v60 }
 0x21f   :  { %v415_v20 = vmul.f32 0.5, %v414_v32  ;;  %520 = vadd.xlane.f32.xlu1 %v519_v21  ;;  %v465_v18 = vmul.f32 %v4473_v48, %v445_v62  ;;  %517 = vadd.xlane.f32.xlu2 %v516_v40 }
 0x220   :  { %v346_v15 = vsub.f32 1.5, %v345_v28  ;;  %v7946_v41 = vmax.f32 %v4755_v59, 0.0  ;;  %v458_v28 = vmul.f32 %v4473_v48, %v438_v36 }
 0x221   :  { %v4021_v26 = vpop.eup %4020  ;;  %v416_v24 = vsub.f32 1.5, %v415_v20  ;;  %v4760_v43 = vadd.f32 %v4479_v54, %v465_v18 }
 0x222   :  { %v347_v55 = vmul.f32 %v4017_v47, %v346_v15  ;;  %v423_v51 = vmul.f32 %v4021_v26, %v4715_v60  ;;  %vm429_vm2 = vweird.f32 %v4021_v26  ;;  %v4778_v18 = vadd.f32 %v4479_v54, %v458_v28 }
 0x223   :  { %v417_v38 = vmul.f32 %v4019_v39, %v416_v24  ;;  %v501_v32 = vmax.f32 %v4760_v43, 0.0  ;;  %vm430_vm4 = vmor %vm428_vm3, %vm429_vm2 }
 0x224   :  { %v424_v63 = vmul.f32 %v4021_v26, %v423_v51  ;;  %v351_v61 = vsel %vm350_vm14, %v4017_v47, %v347_v55  ;;  %v540_v47 = vsel %vm88_vm0, %v7946_v41, 0.0  ;;  %v7944_v51 = vmax.f32 %v4778_v18, 0.0 }
 0x225   :  { %v439_v50 = vmul.f32 %v351_v61, %v4454_v17  ;;  %v543_v62 = vsel %vm88_vm0, %v501_v32, 0.0  ;;  %v421_v46 = vsel %vm420_vm1, %v4019_v39, %v417_v38  ;;  %v8177_v16 = vmax.f32 %v4778_v18, 0.0 }
 0x226   :  { %v425_v21 = vmul.f32 0.5, %v424_v63  ;;  %v446_v24 = vmul.f32 %v421_v46, %v4448_v0  ;;  %v522_v60 = vsel %vm88_vm0, %v7944_v51, 0.0 }
 0x227   :  { %v459_v20 = vmul.f32 %v4473_v48, %v439_v50  ;;  %544 = vadd.xlane.f32.xlu1 %v543_v62  ;;  %541 = vadd.xlane.f32.xlu2 %v540_v47 }
 0x228   :  { %v426_v3 = vsub.f32 1.5, %v425_v21  ;;  %v466_v63 = vmul.f32 %v4473_v48, %v446_v24 }
 0x229   :  { %v506_v15 = vpop.xlane.xlu2 %505  ;;  %v4775_v17 = vadd.f32 %v4479_v54, %v459_v20 }
 0x22a   :  { %v427_v40 = vmul.f32 %v4021_v26, %v426_v3  ;;  %v552_v39 = vmax.f32 %v506_v15, 1e-12  ;;  %v4794_v50 = vadd.f32 %v4479_v54, %v466_v63 }
 0x22b   :  { %v7945_v36 = vmax.f32 %v4775_v17, 0.0 }
 0x22c   :  { %4022 = vrcp.f32 %v552_v39  ;;  %v431_v38 = vsel %vm430_vm4, %v4021_v26, %v427_v40  ;;  %v579_v20 = vand.u32 2147483648, %v552_v39  ;;  %v577_v47 = vand.u32 2147483647, %v552_v39 }
 0x22d   :  { %v525_v55 = vsel %vm88_vm0, %v7945_v36, 0.0  ;;  %v447_v0 = vmul.f32 %v431_v38, %v4465_v33  ;;  %v7942_v33 = vmax.f32 %v4794_v50, 0.0  ;;  %vm573_vm6 = vweird.f32 %v552_v39 }
 0x22e   :  { %v580_v24 = vor.u32 1.1754944e-38, %v579_v20  ;;  %vm578_vm8 = vcmp.eq.f32.partialorder %v577_v47, 8.507059e+37 }
 0x22f   :  { %526 = vadd.xlane.f32.xlu1 %v525_v55  ;;  %v467_v61 = vmul.f32 %v4473_v48, %v447_v0  ;;  %523 = vadd.xlane.f32.xlu2 %v522_v60 }
 0x231   :  { %v4797_v21 = vadd.f32 %v4479_v54, %v467_v61  ;;  %v546_v54 = vsel %vm88_vm0, %v7942_v33, 0.0 }
 0x232   :  { %v4023_v28 = vpop.eup %4022 }
 0x233   :  { %v569_v26 = vmul.f32 %v4023_v28, %v552_v39  ;;  %v7943_v62 = vmax.f32 %v4797_v21, 0.0  ;;  %vm574_vm5 = vweird.f32 %v4023_v28 }
 0x234   :  { %vm575_vm7 = vmor %vm573_vm6, %vm574_vm5 }
 0x235   :  { %v570_v46 = vsub.f32 1.0, %v569_v26  ;;  %v549_v48 = vsel %vm88_vm0, %v7943_v62, 0.0 }
 0x237   :  { %v571_v3 = vmul.f32 %v4023_v28, %v570_v46  ;;  %550 = vadd.xlane.f32.xlu1 %v549_v48  ;;  %547 = vadd.xlane.f32.xlu2 %v546_v54 }
 0x239   :  { %v572_v15 = vadd.f32 %v4023_v28, %v571_v3 }
 0x23b   :  { %v576_v40 = vsel %vm575_vm7, %v4023_v28, %v572_v15 }
 0x23c   :  { %v581_v55 = vsel %vm578_vm8, %v580_v24, %v576_v40 }
 0x23d   :  { %v4809_v38 = vmul.f32 %v581_v55, %v488_v58 }
 0x23f   :  { %8131 = vst [vmem:[#allocation18_spill] sm:$0xff] %v4809_v38 }
 0x272   :  { %v509_v63 = vpop.xlane.xlu1 %508 }
 0x273   :  { %v553_v0 = vmax.f32 %v509_v63, 1e-12 }
 0x275   :  { %4024 = vrcp.f32 %v553_v0  ;;  %v594_v20 = vand.u32 2147483648, %v553_v0  ;;  %v592_v28 = vand.u32 2147483647, %v553_v0  ;;  %vm588_vm10 = vweird.f32 %v553_v0 }
 0x277   :  { %v595_v15 = vor.u32 1.1754944e-38, %v594_v20  ;;  %vm593_vm12 = vcmp.eq.f32.partialorder %v592_v28, 8.507059e+37 }
 0x27a   :  { %v533_v61 = vpop.xlane.xlu1 %532  ;;  %v530_v46 = vpop.xlane.xlu2 %529 }
 0x27b   :  { %v4025_v60 = vpop.eup %4024  ;;  %v561_v39 = vmax.f32 %v533_v61, 1e-12  ;;  %v560_v3 = vmax.f32 %v530_v46, 1e-12 }
 0x27c   :  { %v584_v26 = vmul.f32 %v4025_v60, %v553_v0  ;;  %vm589_vm9 = vweird.f32 %v4025_v60 }
 0x27d   :  { %4026 = vrcp.f32 %v561_v39  ;;  %vm590_vm11 = vmor %vm588_vm10, %vm589_vm9  ;;  %vm708_vm14 = vweird.f32 %v561_v39  ;;  %vm693_vm1 = vweird.f32 %v560_v3 }
 0x27e   :  { %v585_v48 = vsub.f32 1.0, %v584_v26  ;;  %4028 = vrcp.f32 %v560_v3  ;;  %v712_v26 = vand.u32 2147483647, %v561_v39 }
 0x280   :  { %v586_v54 = vmul.f32 %v4025_v60, %v585_v48  ;;  %vm4821_vm15 = vcmp.eq.f32.partialorder %v712_v26, 8.507059e+37 }
 0x282   :  { %v587_v47 = vadd.f32 %v4025_v60, %v586_v54  ;;  %v515_v57 = vpop.xlane.xlu1 %514  ;;  %v512_v63 = vpop.xlane.xlu2 %511  ;;  %v714_v54 = vand.u32 2147483648, %v561_v39 }
 0x283   :  { %v4027_v58 = vpop.eup %4026  ;;  %v4811_v24 = vmax.f32 %v515_v57, 1e-12  ;;  %v4818_v33 = vmax.f32 %v512_v63, 1e-12  ;;  %v697_v57 = vand.u32 2147483647, %v560_v3 }
 0x284   :  { %v591_v40 = vsel %vm590_vm11, %v4025_v60, %v587_v47  ;;  %v704_v55 = vmul.f32 %v4027_v58, %v561_v39  ;;  %v4029_v46 = vpop.eup %4028  ;;  %vm709_vm13 = vweird.f32 %v4027_v58  ;;  %v699_v60 = vand.u32 2147483648, %v560_v3 }
 0x285   :  { %v596_v61 = vsel %vm593_vm12, %v595_v15, %v591_v40  ;;  %4030 = vrcp.f32 %v4811_v24  ;;  %v689_v20 = vmul.f32 %v4029_v46, %v560_v3  ;;  %v622_v15 = vand.u32 2147483647, %v4811_v24  ;;  %vm710_vm2 = vmor %vm708_vm14, %vm709_vm13 }
 0x286   :  { %v4816_v48 = vmul.f32 %v596_v61, %v489_v31  ;;  %v705_v0 = vsub.f32 1.0, %v704_v55  ;;  %4032 = vrcp.f32 %v4818_v33  ;;  %v715_v31 = vor.u32 1.1754944e-38, %v714_v54 }
 0x287   :  { %v690_v47 = vsub.f32 1.0, %v689_v20  ;;  %vm694_vm3 = vweird.f32 %v4029_v46  ;;  %vm4826_vm4 = vcmp.eq.f32.partialorder %v697_v57, 8.507059e+37  ;;  %vm618_vm5 = vweird.f32 %v4811_v24 }
 0x288   :  { %8132 = vst [vmem:[#allocation19_spill] sm:$0xff] %v4816_v48  ;;  %v706_v62 = vmul.f32 %v4027_v58, %v705_v0  ;;  %v700_v0 = vor.u32 1.1754944e-38, %v699_v60  ;;  %vm695_vm6 = vmor %vm693_vm1, %vm694_vm3  ;;  %vm4843_vm7 = vcmp.eq.f32.partialorder %v622_v15, 8.507059e+37  ;;  %v607_v28 = vand.u32 2147483647, %v4818_v33 }
 0x289   :  { %v691_v63 = vmul.f32 %v4029_v46, %v690_v47  ;;  %v624_v47 = vand.u32 2147483648, %v4811_v24  ;;  %vm603_vm9 = vweird.f32 %v4818_v33 }
 0x28a   :  { %v707_v1 = vadd.f32 %v4027_v58, %v706_v62  ;;  %v539_v40 = vpop.xlane.xlu1 %538  ;;  %v536_v62 = vpop.xlane.xlu2 %535  ;;  %vm4862_vm10 = vcmp.eq.f32.partialorder %v607_v28, 8.507059e+37 }
 0x28b   :  { %v4031_v55 = vpop.eup %4030  ;;  %v4830_v39 = vmax.f32 %v539_v40, 1e-12  ;;  %v692_v51 = vadd.f32 %v4029_v46, %v691_v63  ;;  %v609_v63 = vand.u32 2147483648, %v4818_v33 }
 0x28c   :  { %v711_v26 = vsel %vm710_vm2, %v4027_v58, %v707_v1  ;;  %v614_v20 = vmul.f32 %v4031_v55, %v4811_v24  ;;  %v4033_v57 = vpop.eup %4032  ;;  %vm619_vm8 = vweird.f32 %v4031_v55 }
 0x28d   :  { %v716_v54 = vsel %vm4821_vm15, %v715_v31, %v711_v26  ;;  %4034 = vrcp.f32 %v4830_v39  ;;  %v696_v1 = vsel %vm695_vm6, %v4029_v46, %v692_v51  ;;  %v599_v31 = vmul.f32 %v4033_v57, %v4818_v33  ;;  %vm620_vm11 = vmor %vm618_vm5, %vm619_vm8 }
 0x28e   :  { %v4840_v40 = vmul.f32 %v716_v54, %v497_v30  ;;  %v615_v58 = vsub.f32 1.0, %v614_v20  ;;  %v4850_v26 = vmax.f32 %v536_v62, 1e-12  ;;  %v701_v27 = vsel %vm4826_vm4, %v700_v0, %v696_v1 }
 0x28f   :  { %v742_v3 = vand.u32 2147483647, %v4830_v39  ;;  %v4857_v15 = vmul.f32 %v701_v27, %v496_v49  ;;  %v600_v20 = vsub.f32 1.0, %v599_v31  ;;  %v744_v51 = vand.u32 2147483648, %v4830_v39 }
 0x290   :  { %8137 = vst [vmem:[#allocation20_spill] sm:$0xff] %v4840_v40  ;;  %v616_v30 = vmul.f32 %v4031_v55, %v615_v58  ;;  %4036 = vrcp.f32 %v4850_v26  ;;  %v625_v54 = vor.u32 1.1754944e-38, %v624_v47  ;;  %vm604_vm12 = vweird.f32 %v4033_v57 }
 0x291   :  { %8140 = vst [vmem:[#allocation21_spill] sm:$0xff] %v4857_v15  ;;  %v601_v12 = vmul.f32 %v4033_v57, %v600_v20  ;;  %v610_v49 = vor.u32 1.1754944e-38, %v609_v63  ;;  %vm738_vm13 = vweird.f32 %v4830_v39  ;;  %vm4872_vm14 = vcmp.eq.f32.partialorder %v742_v3, 8.507059e+37  ;;  %vm605_vm15 = vmor %vm603_vm9, %vm604_vm12 }
 0x292   :  { %v617_v46 = vadd.f32 %v4031_v55, %v616_v30  ;;  %v521_v0 = vpop.xlane.xlu1 %520  ;;  %v518_v28 = vpop.xlane.xlu2 %517  ;;  %v745_v30 = vor.u32 1.1754944e-38, %v744_v51  ;;  %v8145_v63 = vmax.f32 %v4624_v14, 0.0  ;;  %v727_v3 = vand.u32 2147483647, %v4850_v26 }
 0x293   :  { %v4035_v62 = vpop.eup %4034  ;;  %v4868_v58 = vmax.f32 %v521_v0, 1e-12  ;;  %v602_v24 = vadd.f32 %v4033_v57, %v601_v12  ;;  %v4887_v60 = vmax.f32 %v518_v28, 1e-12  ;;  %v824_v51 = vlaneseq }
 0x294   :  { %v621_v1 = vsel %vm620_vm11, %v4031_v55, %v617_v46  ;;  %v734_v31 = vmul.f32 %v4035_v62, %v4830_v39  ;;  %v729_v46 = vand.u32 2147483648, %v4850_v26  ;;  %vm739_vm1 = vweird.f32 %v4035_v62 }
 0x295   :  { %v626_v27 = vsel %vm4843_vm7, %v625_v54, %v621_v1  ;;  %4038 = vrcp.f32 %v4868_v58  ;;  %v606_v36 = vsel %vm605_vm15, %v4033_v57, %v602_v24  ;;  %v652_v33 = vand.u32 2147483647, %v4868_v58  ;;  %vm740_vm4 = vmor %vm738_vm13, %vm739_vm1 }
 0x296   :  { %v4881_v20 = vmul.f32 %v626_v27, %v8145_v63  ;;  %v735_v55 = vsub.f32 1.0, %v734_v31  ;;  %v4037_v0 = vpop.eup %4036  ;;  %v611_v54 = vsel %vm4862_vm10, %v610_v49, %v606_v36  ;;  %v8147_v1 = vmax.f32 %v4607_v22, 0.0 }
 0x297   :  { %v719_v12 = vmul.f32 %v4037_v0, %v4850_v26  ;;  %vm723_vm2 = vweird.f32 %v4850_v26  ;;  %v654_v57 = vand.u32 2147483648, %v4868_v58  ;;  %4040 = vrcp.f32 %v4887_v60 }
 0x298   :  { %8146 = vst [vmem:[#allocation22_spill] sm:$0xff] %v4881_v20  ;;  %v736_v14 = vmul.f32 %v4035_v62, %v735_v55  ;;  %v4895_v31 = vmul.f32 %v611_v54, %v8147_v1  ;;  %vm4900_vm3 = vcmp.eq.f32.partialorder %v727_v3, 8.507059e+37  ;;  %v730_v36 = vor.u32 1.1754944e-38, %v729_v46 }
 0x299   :  { %v720_v27 = vsub.f32 1.0, %v719_v12  ;;  %vm724_vm5 = vweird.f32 %v4037_v0  ;;  %vm648_vm6 = vweird.f32 %v4868_v58  ;;  %v4910_v63 = vshrl.u32 %v824_v51, 7 }
 0x29a   :  { %8148 = vst [vmem:[#allocation23_spill] sm:$0xff] %v4895_v31  ;;  %v737_v28 = vadd.f32 %v4035_v62, %v736_v14  ;;  %v545_v49 = vpop.xlane.xlu1 %544  ;;  %vm4913_vm7 = vcmp.eq.f32.partialorder %v652_v33, 8.507059e+37  ;;  %v542_v46 = vpop.xlane.xlu2 %541  ;;  %v655_v12 = vor.u32 1.1754944e-38, %v654_v57  ;;  %v637_v1 = vand.u32 2147483647, %v4887_v60  ;;  %vm725_vm9 = vmor %vm723_vm2, %vm724_vm5 }
 0x29b   :  { %v4039_v24 = vpop.eup %4038  ;;  %v4908_v22 = vmax.f32 %v545_v49, 1e-12  ;;  %8151 = vst [vmem:[#allocation24_spill] sm:$0xff] %v4910_v63  ;;  %v721_v54 = vmul.f32 %v4037_v0, %v720_v27  ;;  %vm633_vm8 = vweird.f32 %v4887_v60  ;;  %v639_v33 = vand.u32 2147483648, %v4887_v60 }
 0x29c   :  { %v741_v55 = vsel %vm740_vm4, %v4035_v62, %v737_v28  ;;  %v644_v3 = vmul.f32 %v4039_v24, %v4868_v58  ;;  %vm649_vm10 = vweird.f32 %v4039_v24  ;;  %v4930_v47 = vmax.f32 %v542_v46, 1e-12 }
 0x29d   :  { %v746_v39 = vsel %vm4872_vm14, %v745_v30, %v741_v55  ;;  %4042 = vrcp.f32 %v4908_v22  ;;  %v722_v62 = vadd.f32 %v4037_v0, %v721_v54  ;;  %v4041_v27 = vpop.eup %4040  ;;  %v4933_v30 = vadd.s32 8, %v4910_v63  ;;  %vm650_vm12 = vmor %vm648_vm6, %vm649_vm10 }
 0x29e   :  { %v4923_v51 = vmul.f32 %v746_v39, %v499_v34  ;;  %v645_v28 = vsub.f32 1.0, %v644_v3  ;;  %v4936_v53 = vadd.s32 16, %v4910_v63  ;;  %v629_v49 = vmul.f32 %v4041_v27, %v4887_v60 }
 0x29f   :  { %v726_v34 = vsel %vm725_vm9, %v4037_v0, %v722_v62  ;;  %v772_v55 = vand.u32 2147483647, %v4908_v22  ;;  %vm4942_vm11 = vcmp.eq.f32.partialorder %v637_v1, 8.507059e+37  ;;  %v774_v3 = vand.u32 2147483648, %v4908_v22 }
 0x2a0   :  { %8154 = vst [vmem:[#allocation25_spill] sm:$0xff] %v4923_v51  ;;  %v646_v57 = vmul.f32 %v4039_v24, %v645_v28  ;;  %v731_v54 = vsel %vm4900_vm3, %v730_v36, %v726_v34  ;;  %4044 = vrcp.f32 %v4930_v47  ;;  %v630_v39 = vsub.f32 1.0, %v629_v49 }
 0x2a1   :  { %v4950_v46 = vmul.f32 %v731_v54, %v498_v42  ;;  %v640_v62 = vor.u32 1.1754944e-38, %v639_v33  ;;  %vm634_vm13 = vweird.f32 %v4041_v27  ;;  %vm768_vm14 = vweird.f32 %v4908_v22 }
 0x2a2   :  { %v647_v0 = vadd.f32 %v4039_v24, %v646_v57  ;;  %v527_v28 = vpop.xlane.xlu1 %526  ;;  %v4959_v36 = vadd.s32 24, %v4910_v63  ;;  %v631_v42 = vmul.f32 %v4041_v27, %v630_v39  ;;  %vm4962_vm15 = vcmp.eq.f32.partialorder %v772_v55, 8.507059e+37  ;;  %v524_v34 = vpop.xlane.xlu2 %523  ;;  %vm635_vm1 = vmor %vm633_vm8, %vm634_vm13 }
 0x2a3   :  { %8157 = vst [vmem:[#allocation26_spill] sm:$0xff] %v4950_v46  ;;  %v4043_v41 = vpop.eup %4042  ;;  %v4956_v61 = vmax.f32 %v527_v28, 1e-12  ;;  %v775_v57 = vor.u32 1.1754944e-38, %v774_v3  ;;  %v757_v49 = vand.u32 2147483647, %v4930_v47  ;;  %vm753_vm3 = vweird.f32 %v4930_v47 }
 0x2a4   :  { %v651_v23 = vsel %vm650_vm12, %v4039_v24, %v647_v0  ;;  %v764_v1 = vmul.f32 %v4043_v41, %v4908_v22  ;;  %v632_v24 = vadd.f32 %v4041_v27, %v631_v42  ;;  %v759_v55 = vand.u32 2147483648, %v4930_v47 }
 0x2a5   :  { %v656_v58 = vsel %vm4913_vm7, %v655_v12, %v651_v23  ;;  %4046 = vrcp.f32 %v4956_v61  ;;  %vm769_vm2 = vweird.f32 %v4043_v41  ;;  %v4979_v14 = vmax.f32 %v524_v34, 1e-12 }
 0x2a6   :  { %v4972_v54 = vmul.f32 %v656_v58, %v493_v45  ;;  %v765_v0 = vsub.f32 1.0, %v764_v1  ;;  %v4045_v39 = vpop.eup %4044  ;;  %v4982_v12 = vadd.s32 32, %v4910_v63  ;;  %v636_v56 = vsel %vm635_vm1, %v4041_v27, %v632_v24  ;;  %vm770_vm5 = vmor %vm768_vm14, %vm769_vm2 }
 0x2a7   :  { %v749_v3 = vmul.f32 %v4045_v39, %v4930_v47  ;;  %v682_v28 = vand.u32 2147483647, %v4956_v61  ;;  %v641_v23 = vsel %vm4942_vm11, %v640_v62, %v636_v56  ;;  %vm4988_vm4 = vcmp.eq.f32.partialorder %v757_v49, 8.507059e+37 }
 0x2a8   :  { %8160 = vst [vmem:[#allocation27_spill] sm:$0xff] %v4972_v54  ;;  %v766_v45 = vmul.f32 %v4043_v41, %v765_v0  ;;  %v684_v42 = vand.u32 2147483648, %v4956_v61  ;;  %4048 = vrcp.f32 %v4979_v14  ;;  %v4996_v1 = vmul.f32 %v641_v23, %v492_v52 }
 0x2a9   :  { %v750_v34 = vsub.f32 1.0, %v749_v3  ;;  %v760_v58 = vor.u32 1.1754944e-38, %v759_v55  ;;  %vm754_vm6 = vweird.f32 %v4045_v39  ;;  %vm678_vm7 = vweird.f32 %v4956_v61 }
 0x2aa   :  { %8163 = vst [vmem:[#allocation28_spill] sm:$0xff] %v4996_v1  ;;  %v767_v27 = vadd.f32 %v4043_v41, %v766_v45  ;;  %v551_v24 = vpop.xlane.xlu1 %550  ;;  %v5005_v62 = vadd.s32 40, %v4910_v63  ;;  %vm5008_vm8 = vcmp.eq.f32.partialorder %v682_v28, 8.507059e+37  ;;  %v667_v56 = vand.u32 2147483647, %v4979_v14  ;;  %v548_v22 = vpop.xlane.xlu2 %547  ;;  %vm755_vm10 = vmor %vm753_vm3, %vm754_vm6 }
 0x2ab   :  { %v4047_v0 = vpop.eup %4046  ;;  %v5002_v26 = vmax.f32 %v551_v24, 1e-12  ;;  %v751_v52 = vmul.f32 %v4045_v39, %v750_v34  ;;  %v685_v3 = vor.u32 1.1754944e-38, %v684_v42  ;;  %v669_v23 = vand.u32 2147483648, %v4979_v14 }
 0x2ac   :  { %v771_v37 = vsel %vm770_vm5, %v4043_v41, %v767_v27  ;;  %v674_v49 = vmul.f32 %v4047_v0, %v4956_v61  ;;  %vm663_vm9 = vweird.f32 %v4979_v14  ;;  %vm679_vm11 = vweird.f32 %v4047_v0 }
 0x2ad   :  { %v776_v45 = vsel %vm4962_vm15, %v775_v57, %v771_v37  ;;  %4050 = vrcp.f32 %v5002_v26  ;;  %v752_v27 = vadd.f32 %v4045_v39, %v751_v52  ;;  %v804_v33 = vand.u32 2147483648, %v5002_v26  ;;  %vm680_vm15 = vmor %vm678_vm7, %vm679_vm11 }
 0x2ae   :  { %v5019_v41 = vmul.f32 %v776_v45, %v501_v32  ;;  %v675_v28 = vsub.f32 1.0, %v674_v49  ;;  %v4049_v34 = vpop.eup %4048  ;;  %v5026_v57 = vmax.f32 %v548_v22, 1e-12  ;;  %v5029_v42 = vadd.s32 48, %v4910_v63 }
 0x2af   :  { %v756_v43 = vsel %vm755_vm10, %v4045_v39, %v752_v27  ;;  %v659_v24 = vmul.f32 %v4049_v34, %v4979_v14  ;;  %vm5032_vm12 = vcmp.eq.f32.partialorder %v667_v56, 8.507059e+37  ;;  %v802_v52 = vand.u32 2147483647, %v5002_v26 }
 0x2b0   :  { %8166 = vst [vmem:[#allocation29_spill] sm:$0xff] %v5019_v41  ;;  %v676_v32 = vmul.f32 %v4047_v0, %v675_v28  ;;  %v761_v47 = vsel %vm4988_vm4, %v760_v58, %v756_v43  ;;  %v670_v49 = vor.u32 1.1754944e-38, %v669_v23  ;;  %4052 = vrcp.f32 %v5026_v57 }
 0x2b1   :  { %v5041_v22 = vadd.s32 56, %v4910_v63  ;;  %v8169_v39 = vmax.f32 %v4755_v59, 0.0  ;;  %v660_v56 = vsub.f32 1.0, %v659_v24  ;;  %vm664_vm13 = vweird.f32 %v4049_v34 }
 0x2b2   :  { %v677_v27 = vadd.f32 %v4047_v0, %v676_v32  ;;  %vm798_vm14 = vweird.f32 %v5002_v26  ;;  %v805_v60 = vor.u32 1.1754944e-38, %v804_v33  ;;  %v787_v58 = vand.u32 2147483647, %v5026_v57  ;;  %vm665_vm4 = vmor %vm663_vm9, %vm664_vm13 }
 0x2b3   :  { %v5045_v45 = vmul.f32 %v761_v47, %v8169_v39  ;;  %v4051_v28 = vpop.eup %4050  ;;  %v789_v23 = vand.u32 2147483648, %v5026_v57  ;;  %v5054_v43 = vadd.s32 64, %v4910_v63  ;;  %v661_v47 = vmul.f32 %v4049_v34, %v660_v56 }
 0x2b4   :  { %v681_v59 = vsel %vm680_vm15, %v4047_v0, %v677_v27  ;;  %v794_v32 = vmul.f32 %v4051_v28, %v5002_v26  ;;  %vm5057_vm1 = vcmp.eq.f32.partialorder %v802_v52, 8.507059e+37  ;;  %v5062_v39 = vadd.s32 72, %v4910_v63 }
 0x2b5   :  { %8170 = vst [vmem:[#allocation30_spill] sm:$0xff] %v5045_v45  ;;  %v686_v61 = vsel %vm5008_vm8, %v685_v3, %v681_v59  ;;  %vm799_vm2 = vweird.f32 %v4051_v28  ;;  %v790_v33 = vor.u32 1.1754944e-38, %v789_v23  ;;  %v5067_v44 = vadd.s32 80, %v4910_v63 }
 0x2b6   :  { %v8173_v0 = vmax.f32 %v4775_v17, 0.0  ;;  %v662_v56 = vadd.f32 %v4049_v34, %v661_v47  ;;  %v795_v52 = vsub.f32 1.0, %v794_v32  ;;  %vm783_vm3 = vweird.f32 %v5026_v57  ;;  %v4053_v29 = vpop.eup %4052  ;;  %vm800_vm7 = vmor %vm798_vm14, %vm799_vm2 }
 0x2b7   :  { %v5075_v35 = vadd.s32 88, %v4910_v63  ;;  %v5081_v55 = vadd.s32 96, %v4910_v63  ;;  %v5084_v3 = vadd.s32 104, %v4910_v63  ;;  %v5087_v17 = vadd.s32 112, %v4910_v63 }
 0x2b8   :  { %v5071_v27 = vmul.f32 %v686_v61, %v8173_v0  ;;  %v5090_v23 = vadd.s32 120, %v4910_v63  ;;  %v666_v59 = vsel %vm665_vm4, %v4049_v34, %v662_v56  ;;  %v796_v47 = vmul.f32 %v4051_v28, %v795_v52 }
 0x2b9   :  { %v779_v32 = vmul.f32 %v4053_v29, %v5026_v57  ;;  %vm784_vm5 = vweird.f32 %v4053_v29  ;;  %vm5093_vm6 = vcmp.eq.f32.partialorder %v787_v58, 8.507059e+37  ;;  %v671_v61 = vsel %vm5032_vm12, %v670_v49, %v666_v59 }
 0x2ba   :  { %8174 = vst [vmem:[#allocation31_spill] sm:$0xff] %v5071_v27  ;;  %v7953_v0 = vcvt.s32.f32 %v4910_v63  ;;  %v5104_v34 = vmul.f32 %v671_v61, %v8177_v16  ;;  %v797_v56 = vadd.f32 %v4051_v28, %v796_v47  ;;  %v7954_v58 = vcvt.s32.f32 %v4959_v36  ;;  %vm785_vm8 = vmor %vm783_vm3, %vm784_vm5 }
 0x2bb   :  { %v780_v52 = vsub.f32 1.0, %v779_v32  ;;  %v7956_v16 = vcvt.s32.f32 %v5054_v43  ;;  %v7958_v47 = vcvt.s32.f32 %v5062_v39  ;;  %v8179_v49 = vmax.f32 %v4797_v21, 0.0 }
 0x2bc   :  { %8178 = vst [vmem:[#allocation32_spill] sm:$0xff] %v5104_v34  ;;  %v801_v25 = vsel %vm800_vm7, %v4051_v28, %v797_v56  ;;  %v8181_v24 = vcvt.s32.f32 %v4933_v30  ;;  %v8182_v21 = vcvt.s32.f32 %v4936_v53  ;;  %v8183_v56 = vcvt.s32.f32 %v4982_v12 }
 0x2bd   :  { %v781_v18 = vmul.f32 %v4053_v29, %v780_v52  ;;  %v806_v32 = vsel %vm5057_vm1, %v805_v60, %v801_v25  ;;  %v857_v60 = vadd.f32 0.5, %v7953_v0  ;;  %v8184_v57 = vcvt.s32.f32 %v5005_v62 }
 0x2be   :  { %v5123_v59 = vmul.f32 %v806_v32, %v8179_v49  ;;  %v858_v52 = vadd.f32 0.5, %v8181_v24  ;;  %v859_v49 = vadd.f32 0.5, %v8182_v21  ;;  %v860_v32 = vadd.f32 0.5, %v7954_v58 }
 0x2bf   :  { %v782_v19 = vadd.f32 %v4053_v29, %v781_v18  ;;  %v861_v28 = vadd.f32 0.5, %v8183_v56  ;;  %v862_v37 = vadd.f32 0.5, %v8184_v57  ;;  %v8185_v0 = vcvt.s32.f32 %v5029_v42 }
 0x2c0   :  { %8180 = vst [vmem:[#allocation33_spill] sm:$0xff] %v5123_v59  ;;  %v8186_v24 = vcvt.s32.f32 %v5041_v22  ;;  %v866_v56 = vadd.f32 0.5, %v7958_v47  ;;  %v8189_v57 = vcvt.s32.f32 %v5067_v44  ;;  %v873_v11 = vmul.f32 0.125, %v857_v60 }
 0x2c1   :  { %v786_v18 = vsel %vm785_vm8, %v4053_v29, %v782_v19  ;;  %v863_v61 = vadd.f32 0.5, %v8185_v0  ;;  %v865_v19 = vadd.f32 0.5, %v7956_v16  ;;  %v8187_v29 = vmax.f32 %v4794_v50, 0.0 }
 0x2c2   :  { %v791_v25 = vsel %vm5093_vm6, %v790_v33, %v786_v18  ;;  %v864_v26 = vadd.f32 0.5, %v8186_v24  ;;  %v867_v14 = vadd.f32 0.5, %v8189_v57  ;;  %v8190_v33 = vcvt.s32.f32 %v5075_v35 }
 0x2c3   :  { %v5153_v21 = vmul.f32 %v791_v25, %v8187_v29  ;;  %v8191_v0 = vcvt.s32.f32 %v5081_v55  ;;  %v8192_v24 = vcvt.s32.f32 %v5084_v3  ;;  %v8193_v16 = vcvt.s32.f32 %v5087_v17 }
 0x2c4   :  { %v868_v18 = vadd.f32 0.5, %v8190_v33  ;;  %v8194_v25 = vcvt.s32.f32 %v5090_v23  ;;  %v874_v47 = vmul.f32 0.125, %v858_v52  ;;  %v875_v10 = vmul.f32 0.125, %v859_v49 }
 0x2c5   :  { %8188 = vst [vmem:[#allocation34_spill] sm:$0xff] %v5153_v21  ;;  %v869_v58 = vadd.f32 0.5, %v8191_v0  ;;  %v870_v13 = vadd.f32 0.5, %v8192_v24  ;;  %v871_v50 = vadd.f32 0.5, %v8193_v16  ;;  %v876_v9 = vmul.f32 0.125, %v860_v32 }
 0x2c6   :  { %v872_v29 = vadd.f32 0.5, %v8194_v25  ;;  %v877_v57 = vmul.f32 0.125, %v861_v28  ;;  %v878_v8 = vmul.f32 0.125, %v862_v37  ;;  %v879_v7 = vmul.f32 0.125, %v863_v61 }
 0x2c7   :  { %v880_v33 = vmul.f32 0.125, %v864_v26  ;;  %v881_v6 = vmul.f32 0.125, %v865_v19  ;;  %v882_v5 = vmul.f32 0.125, %v866_v56  ;;  %v883_v0 = vmul.f32 0.125, %v867_v14 }
 0x2c8   :  { %v884_v4 = vmul.f32 0.125, %v868_v18  ;;  %v885_v2 = vmul.f32 0.125, %v869_v58  ;;  %v886_v24 = vmul.f32 0.125, %v870_v13  ;;  %v887_v21 = vmul.f32 0.125, %v871_v50 }
 0x2c9   :  { %v888_v59 = vmul.f32 0.125, %v872_v29  ;;  %v5169_v16 = vfloor.f32 %v873_v11  ;;  %v5171_v41 = vfloor.f32 %v874_v47  ;;  %v5173_v60 = vfloor.f32 %v875_v10 }
 0x2ca   :  { %v5175_v52 = vfloor.f32 %v876_v9  ;;  %v5177_v28 = vfloor.f32 %v877_v57  ;;  %v5179_v37 = vfloor.f32 %v878_v8  ;;  %v5181_v26 = vfloor.f32 %v879_v7 }
 0x2cb   :  { %v5183_v61 = vfloor.f32 %v880_v33  ;;  %v5185_v58 = vfloor.f32 %v881_v6  ;;  %v5187_v13 = vfloor.f32 %v882_v5  ;;  %v5189_v11 = vfloor.f32 %v883_v0 }
 0x2cc   :  { %v5191_v47 = vfloor.f32 %v884_v4  ;;  %v5193_v10 = vfloor.f32 %v885_v2  ;;  %v5195_v9 = vfloor.f32 %v886_v24  ;;  %v5197_v49 = vfloor.f32 %v887_v21 }
 0x2cd   :  { %v5199_v8 = vfloor.f32 %v888_v59  ;;  %v905_v7 = vmul.f32 8.0, %v5169_v16  ;;  %v906_v32 = vmul.f32 8.0, %v5171_v41  ;;  %v907_v6 = vmul.f32 8.0, %v5173_v60 }
 0x2ce   :  { %v908_v5 = vmul.f32 8.0, %v5175_v52  ;;  %v909_v19 = vmul.f32 8.0, %v5177_v28  ;;  %v910_v4 = vmul.f32 8.0, %v5179_v37  ;;  %v911_v2 = vmul.f32 8.0, %v5181_v26 }
 0x2cf   :  { %v912_v56 = vmul.f32 8.0, %v5183_v61  ;;  %v913_v21 = vmul.f32 8.0, %v5185_v58  ;;  %v914_v59 = vmul.f32 8.0, %v5187_v13  ;;  %v915_v14 = vmul.f32 8.0, %v5189_v11 }
 0x2d0   :  { %v916_v18 = vmul.f32 8.0, %v5191_v47  ;;  %v917_v50 = vmul.f32 8.0, %v5193_v10  ;;  %v918_v25 = vmul.f32 8.0, %v5195_v9  ;;  %v919_v29 = vmul.f32 8.0, %v5197_v49 }
 0x2d1   :  { %v920_v57 = vmul.f32 8.0, %v5199_v8  ;;  %v8195_v33 = vcvt.s32.f32 %v4910_v63  ;;  %v8197_v24 = vcvt.s32.f32 %v4933_v30  ;;  %v8199_v51 = vcvt.s32.f32 %v4936_v53 }
 0x2d2   :  { %v8200_v40 = vcvt.s32.f32 %v4959_v36  ;;  %v8202_v27 = vcvt.s32.f32 %v4982_v12  ;;  %v8203_v54 = vcvt.s32.f32 %v5005_v62  ;;  %v8204_v30 = vcvt.s32.f32 %v5029_v42 }
 0x2d3   :  { %v5219_v0 = vsub.f32 %v8195_v33, %v905_v7  ;;  %v5223_v45 = vsub.f32 %v8197_v24, %v906_v32  ;;  %v5227_v46 = vsub.f32 %v8199_v51, %v907_v6  ;;  %v8205_v53 = vcvt.s32.f32 %v5041_v22 }
 0x2d4   :  { %v5231_v15 = vsub.f32 %v8200_v40, %v908_v5  ;;  %v5235_v34 = vsub.f32 %v8202_v27, %v909_v19  ;;  %v5239_v7 = vsub.f32 %v8203_v54, %v910_v4  ;;  %v5243_v32 = vsub.f32 %v8204_v30, %v911_v2 }
 0x2d5   :  { %8196 = vst [vmem:[#allocation35_spill] sm:$0xff] %v5219_v0  ;;  %v5247_v51 = vsub.f32 %v8205_v53, %v912_v56  ;;  %v8207_v36 = vcvt.s32.f32 %v5054_v43  ;;  %v8209_v12 = vcvt.s32.f32 %v5062_v39  ;;  %v8211_v62 = vcvt.s32.f32 %v5067_v44 }
 0x2d6   :  { %8198 = vst [vmem:[#allocation36_spill] sm:$0xff] %v5223_v45  ;;  %v8213_v42 = vcvt.s32.f32 %v5075_v35  ;;  %v8215_v22 = vcvt.s32.f32 %v5081_v55  ;;  %v8217_v43 = vcvt.s32.f32 %v5084_v3  ;;  %v8219_v39 = vcvt.s32.f32 %v5087_v17 }
 0x2d7   :  { %8201 = vst [vmem:[#allocation37_spill] sm:$0xff] %v5231_v15  ;;  %v5251_v40 = vsub.f32 %v8207_v36, %v913_v21  ;;  %v5255_v27 = vsub.f32 %v8209_v12, %v914_v59  ;;  %v5259_v54 = vsub.f32 %v8211_v62, %v915_v14  ;;  %v8221_v44 = vcvt.s32.f32 %v5090_v23 }
 0x2d8   :  { %8206 = vst [vmem:[#allocation38_spill] sm:$0xff] %v5247_v51  ;;  %v5263_v6 = vsub.f32 %v8213_v42, %v916_v18  ;;  %v5267_v5 = vsub.f32 %v8215_v22, %v917_v50  ;;  %v5271_v19 = vsub.f32 %v8217_v43, %v918_v25  ;;  %v5275_v4 = vsub.f32 %v8219_v39, %v919_v29 }
 0x2d9   :  { %8208 = vst [vmem:[#allocation39_spill] sm:$0xff] %v5251_v40  ;;  %v5279_v2 = vsub.f32 %v8221_v44, %v920_v57  ;;  %v937_v35 = vadd.f32 0.5, %v5169_v16  ;;  %v938_v56 = vadd.f32 0.5, %v5171_v41  ;;  %v939_v55 = vadd.f32 0.5, %v5173_v60 }
 0x2da   :  { %8210 = vst [vmem:[#allocation40_spill] sm:$0xff] %v5255_v27  ;;  %v940_v21 = vadd.f32 0.5, %v5175_v52  ;;  %v941_v3 = vadd.f32 0.5, %v5177_v28  ;;  %v942_v59 = vadd.f32 0.5, %v5179_v37  ;;  %v943_v17 = vadd.f32 0.5, %v5181_v26 }
 0x2db   :  { %8212 = vst [vmem:[#allocation41_spill] sm:$0xff] %v5259_v54  ;;  %v944_v14 = vadd.f32 0.5, %v5183_v61  ;;  %v945_v23 = vadd.f32 0.5, %v5185_v58  ;;  %v946_v18 = vadd.f32 0.5, %v5187_v13  ;;  %v947_v50 = vadd.f32 0.5, %v5189_v11 }
 0x2dc   :  { %8214 = vst [vmem:[#allocation42_spill] sm:$0xff] %v5263_v6  ;;  %v948_v25 = vadd.f32 0.5, %v5191_v47  ;;  %v949_v29 = vadd.f32 0.5, %v5193_v10  ;;  %v950_v57 = vadd.f32 0.5, %v5195_v9  ;;  %v951_v33 = vadd.f32 0.5, %v5197_v49 }
 0x2dd   :  { %8216 = vst [vmem:[#allocation43_spill] sm:$0xff] %v5267_v5  ;;  %v952_v24 = vadd.f32 0.5, %v5199_v8  ;;  %v953_v30 = vmul.f32 0.125, %v937_v35  ;;  %v954_v53 = vmul.f32 0.125, %v938_v56  ;;  %v955_v36 = vmul.f32 0.125, %v939_v55 }
 0x2de   :  { %8218 = vst [vmem:[#allocation44_spill] sm:$0xff] %v5271_v19  ;;  %v956_v12 = vmul.f32 0.125, %v940_v21  ;;  %v957_v62 = vmul.f32 0.125, %v941_v3  ;;  %v958_v42 = vmul.f32 0.125, %v942_v59  ;;  %v959_v22 = vmul.f32 0.125, %v943_v17 }
 0x2df   :  { %8220 = vst [vmem:[#allocation45_spill] sm:$0xff] %v5275_v4  ;;  %v960_v43 = vmul.f32 0.125, %v944_v14  ;;  %v961_v39 = vmul.f32 0.125, %v945_v23  ;;  %v962_v44 = vmul.f32 0.125, %v946_v18  ;;  %v963_v1 = vmul.f32 0.125, %v947_v50 }
 0x2e0   :  { %8222 = vst [vmem:[#allocation46_spill] sm:$0xff] %v5279_v2  ;;  %v964_v20 = vmul.f32 0.125, %v948_v25  ;;  %v965_v31 = vmul.f32 0.125, %v949_v29  ;;  %v966_v48 = vmul.f32 0.125, %v950_v57  ;;  %v967_v38 = vmul.f32 0.125, %v951_v33 }
 0x2e1   :  { %v968_v63 = vmul.f32 0.125, %v952_v24  ;;  %v969_v2 = vfloor.f32 %v953_v30  ;;  %v970_v4 = vfloor.f32 %v954_v53  ;;  %v971_v19 = vfloor.f32 %v955_v36 }
 0x2e2   :  { %v972_v5 = vfloor.f32 %v956_v12  ;;  %v973_v35 = vfloor.f32 %v957_v62  ;;  %v974_v56 = vfloor.f32 %v958_v42  ;;  %v975_v55 = vfloor.f32 %v959_v22 }
 0x2e3   :  { %v976_v21 = vfloor.f32 %v960_v43  ;;  %v977_v3 = vfloor.f32 %v961_v39  ;;  %v978_v59 = vfloor.f32 %v962_v44  ;;  %v979_v17 = vfloor.f32 %v963_v1 }
 0x2e4   :  { %v980_v14 = vfloor.f32 %v964_v20  ;;  %v981_v23 = vfloor.f32 %v965_v31  ;;  %v982_v18 = vfloor.f32 %v966_v48  ;;  %v983_v50 = vfloor.f32 %v967_v38 }
 0x2e5   :  { %v984_v25 = vfloor.f32 %v968_v63  ;;  %v985_v29 = vmul.f32 8.0, %v969_v2  ;;  %v986_v57 = vmul.f32 8.0, %v970_v4  ;;  %v987_v33 = vmul.f32 8.0, %v971_v19 }
 0x2e6   :  { %v988_v24 = vmul.f32 8.0, %v972_v5  ;;  %v989_v30 = vmul.f32 8.0, %v973_v35  ;;  %v990_v53 = vmul.f32 8.0, %v974_v56  ;;  %v991_v36 = vmul.f32 8.0, %v975_v55 }
 0x2e7   :  { %v992_v12 = vmul.f32 8.0, %v976_v21  ;;  %v993_v62 = vmul.f32 8.0, %v977_v3  ;;  %v994_v42 = vmul.f32 8.0, %v978_v59  ;;  %v995_v22 = vmul.f32 8.0, %v979_v17 }
 0x2e8   :  { %v996_v43 = vmul.f32 8.0, %v980_v14  ;;  %v997_v39 = vmul.f32 8.0, %v981_v23  ;;  %v998_v44 = vmul.f32 8.0, %v982_v18  ;;  %v999_v1 = vmul.f32 8.0, %v983_v50 }
 0x2e9   :  { %v1000_v20 = vmul.f32 8.0, %v984_v25  ;;  %v5298_v48 = vsub.f32 %v5169_v16, %v985_v29  ;;  %v5301_v38 = vsub.f32 %v5171_v41, %v986_v57  ;;  %v5304_v31 = vsub.f32 %v5173_v60, %v987_v33 }
 0x2ea   :  { %v5307_v63 = vsub.f32 %v5175_v52, %v988_v24  ;;  %v5310_v5 = vsub.f32 %v5177_v28, %v989_v30  ;;  %v5313_v19 = vsub.f32 %v5179_v37, %v990_v53  ;;  %v5316_v4 = vsub.f32 %v5181_v26, %v991_v36 }
 0x2eb   :  { %8223 = vst [vmem:[#allocation47_spill] sm:$0xff] %v5298_v48  ;;  %v5319_v16 = vsub.f32 %v5183_v61, %v992_v12  ;;  %v5322_v41 = vsub.f32 %v5185_v58, %v993_v62  ;;  %v5325_v60 = vsub.f32 %v5187_v13, %v994_v42  ;;  %v5328_v52 = vsub.f32 %v5189_v11, %v995_v22 }
 0x2ec   :  { %8224 = vst [vmem:[#allocation48_spill] sm:$0xff] %v5301_v38  ;;  %v5331_v28 = vsub.f32 %v5191_v47, %v996_v43  ;;  %v5334_v37 = vsub.f32 %v5193_v10, %v997_v39  ;;  %v5337_v26 = vsub.f32 %v5195_v9, %v998_v44  ;;  %v5340_v61 = vsub.f32 %v5197_v49, %v999_v1 }
 0x2ed   :  { %8225 = vst [vmem:[#allocation49_spill] sm:$0xff] %v5304_v31  ;;  %v5343_v58 = vsub.f32 %v5199_v8, %v1000_v20  ;;  %vm1071_vm13 = vcmp.le.f32.partialorder %v5243_v32, 6.5  ;;  %vm1072_vm9 = vcmp.le.f32.partialorder %v5247_v51, 6.5  ;;  %vm1073_vm15 = vcmp.le.f32.partialorder %v5251_v40, 6.5 }
 0x2ee   :  { %8226 = vst [vmem:[#allocation50_spill] sm:$0xff] %v5307_v63  ;;  %vm1076_vm12 = vcmp.le.f32.partialorder %v5263_v6, 6.5  ;;  %v5409_v9 = vmov 0.125   ;;  %v5411_v49 = vmov 0.125   ;;  %v5413_v8 = vmov 0.125  }
 0x2ef   :  { %8227 = vst [vmem:[#allocation51_spill] sm:$0xff] %v5310_v5  ;;  %v5415_v2 = vmov 0.125   ;;  %v5417_v35 = vmov 0.125   ;;  %v5419_v56 = vmov 0.125   ;;  %v5421_v55 = vmov 0.125  }
 0x2f0   :  { %8228 = vst [vmem:[#allocation52_spill] sm:$0xff] %v5313_v19  ;;  %v5423_v21 = vmov 0.125   ;;  %v5425_v3 = vmov 0.125   ;;  %v5427_v59 = vmov 0.125   ;;  %v5429_v17 = vmov 0.125  }
 0x2f1   :  { %8229 = vst [vmem:[#allocation53_spill] sm:$0xff] %v5316_v4  ;;  %v5431_v14 = vmov 0.125   ;;  %v5433_v23 = vmov 0.125   ;;  %v5435_v18 = vmov 0.125   ;;  %v5437_v50 = vmov 0.125  }
 0x2f2   :  { %8230 = vst [vmem:[#allocation54_spill] sm:$0xff] %v5319_v16  ;;  %v5439_v25 = vmov 0.125  }
 0x2f3   :  { %8231 = vst [vmem:[#allocation55_spill] sm:$0xff] %v5322_v41 }
 0x2f4   :  { %8232 = vst [vmem:[#allocation56_spill] sm:$0xff] %v5325_v60 }
 0x2f5   :  { %8233 = vst [vmem:[#allocation57_spill] sm:$0xff] %v5328_v52 }
 0x2f6   :  { %8234 = vst [vmem:[#allocation58_spill] sm:$0xff] %v5331_v28 }
 0x2f7   :  { %8235 = vst [vmem:[#allocation59_spill] sm:$0xff] %v5334_v37 }
 0x2f8   :  { %8236 = vst [vmem:[#allocation60_spill] sm:$0xff] %v5337_v26 }
 0x2f9   :  { %8237 = vst [vmem:[#allocation61_spill] sm:$0xff] %v5340_v61 }
 0x2fa   :  { %8238 = vst [vmem:[#allocation62_spill] sm:$0xff] %v5343_v58 }
 0x2fb LB: > { %v8243_v40 = vld [vmem:[#allocation39_spill] sm:$0xff]  ;;  %v8244_v27 = vld [vmem:[#allocation40_spill] sm:$0xff]  ;;  %v8246_v4 = vld [vmem:[#allocation53_spill] sm:$0xff]  ;;  %8262 = vst [vmem:[#allocation63_spill] sm:$0xff] %v4188_v9  ;;  %vm1136_vm14 = vcmask 1043456   ;;  %v5510_v36 = vpack.c.bf16 %v4244_v50, %v4248_v25  ;;  %v5520_v43 = vpack.c.bf16 %v4212_v55, %v4216_v21  ;;  %v5532_v39 = vpack.c.bf16 %v4236_v23, %v4240_v18  ;;  %s1086_s1 = sadd.s32 1, %s4252_s1   ;;  %v4192_v49 = vphi %v5411_v49, %v8867_v49   ;;  %v4188_v9 = vphi %v5409_v9, %v8866_v9   ;;  %s4252_s1 = sphi %s5441_s1, %s1086_s1   ;;  %v4248_v25 = vphi %v5439_v25, %v8881_v25   ;;  %v4244_v50 = vphi %v5437_v50, %v8880_v50   ;;  %v4240_v18 = vphi %v5435_v18, %v8879_v18   ;;  %v4236_v23 = vphi %v5433_v23, %v8878_v23   ;;  %v4232_v14 = vphi %v5431_v14, %v8877_v14   ;;  %v4228_v17 = vphi %v5429_v17, %v8876_v17   ;;  %v4224_v59 = vphi %v5427_v59, %v8875_v59   ;;  %v4220_v3 = vphi %v5425_v3, %v8874_v3   ;;  %v4216_v21 = vphi %v5423_v21, %v8873_v21   ;;  %v4212_v55 = vphi %v5421_v55, %v8872_v55   ;;  %v4208_v56 = vphi %v5419_v56, %v8871_v56   ;;  %v4204_v35 = vphi %v5417_v35, %v8870_v35   ;;  %v4200_v2 = vphi %v5415_v2, %v8869_v2   ;;  %v4196_v8 = vphi %v5413_v8, %v8868_v8  }
 0x2fc   : > { %v8245_v41 = vld [vmem:[#allocation55_spill] sm:$0xff]  ;;  %v8248_v15 = vld [vmem:[#allocation37_spill] sm:$0xff]  ;;  %v8250_v6 = vld [vmem:[#allocation42_spill] sm:$0xff]  ;;  %8263 = vst [vmem:[#allocation64_spill] sm:$0xff] %v4192_v49  ;;  %v5536_v44 = vpack.c.bf16 %v4204_v35, %v4208_v56  ;;  %v5552_v13 = vpack.c.bf16 %v4228_v17, %v4232_v14  ;;  %v5556_v11 = vpack.c.bf16 %v4196_v8, %v4200_v2  ;;  %vm8303_vm8 = vcmp.ge.f32.partialorder %v5227_v46, 0.5  ;;  %p7788_p0 = scmp.ge.s32.totalorder %s1086_s1, 25  }
 0x2fd   : > { %v8247_v5 = vld [vmem:[#allocation51_spill] sm:$0xff]  ;;  %v8249_v54 = vld [vmem:[#allocation41_spill] sm:$0xff]  ;;  %v8252_v28 = vld [vmem:[#allocation58_spill] sm:$0xff]  ;;  %8264 = vst [vmem:[#allocation65_spill] sm:$0xff] %v4196_v8  ;;  %vm8338_vm1 = vcmp.le.f32.partialorder %v8244_v27, 6.5 }
 0x2fe   : > { %v8251_v37 = vld [vmem:[#allocation59_spill] sm:$0xff]  ;;  %v8253_v52 = vld [vmem:[#allocation57_spill] sm:$0xff]  ;;  %v8254_v60 = vld [vmem:[#allocation56_spill] sm:$0xff]  ;;  %8265 = vst [vmem:[#allocation66_spill] sm:$0xff] %v4200_v2  ;;  %vm8346_vm2 = vcmp.le.f32.partialorder %v8249_v54, 6.5 }
 0x2ff   : > { %v8255_v51 = vld [vmem:[#allocation38_spill] sm:$0xff]  ;;  %v8257_v19 = vld [vmem:[#allocation52_spill] sm:$0xff]  ;;  %v8259_v31 = vld [vmem:[#allocation49_spill] sm:$0xff]  ;;  %8266 = vst [vmem:[#allocation67_spill] sm:$0xff] %v4204_v35 }
 0x300   : > { %v8256_v16 = vld [vmem:[#allocation54_spill] sm:$0xff]  ;;  %v8260_v45 = vld [vmem:[#allocation36_spill] sm:$0xff]  ;;  %8267 = vst [vmem:[#allocation68_spill] sm:$0xff] %v4208_v56  ;;  %v3703_v30 = vld [vmem:[%s7938_s4 + $0x8] sm:$0xf]  ;;  %vm8302_vm11 = vcmp.ge.f32.partialorder %v8259_v31, 0.5 }
 0x301   : > { %v8258_v63 = vld [vmem:[#allocation50_spill] sm:$0xff]  ;;  %v8261_v38 = vld [vmem:[#allocation48_spill] sm:$0xff]  ;;  %8268 = vst [vmem:[#allocation69_spill] sm:$0xff] %v4212_v55  ;;  %v1327_v12 = vsel %vm1136_vm14, %v3703_v30, 0  ;;  %v3712_v62 = vld [vmem:[%s7938_s4 + $0xc] sm:$0xf]  ;;  %v5580_v30 = vpack.c.bf16 %v4220_v3, %v4224_v59 }
 0x302   : > { %8269 = vst [vmem:[#allocation70_spill] sm:$0xff] %v4216_v21  ;;  %v1111_v29 = vld [vmem:[%s7938_s4] sm:$0xf]  ;;  %v3694_v57 = vld [vmem:[%s7938_s4 + $0x4] sm:$0xf]  ;;  %v1462_v22 = vsel %vm1136_vm14, %v3712_v62, 0 }
 0x303   : > { %8270 = vst [vmem:[#allocation71_spill] sm:$0xff] %v4220_v3  ;;  %v1138_v33 = vsel %vm1136_vm14, %v1111_v29, 0  ;;  %v1257_v24 = vsel %vm1136_vm14, %v3694_v57, 0  ;;  %v3721_v53 = vld [vmem:[%s7938_s4 + $0x10] sm:$0xf]  ;;  %vm8298_vm10 = vcmp.ge.f32.partialorder %v8261_v38, 0.5 }
 0x304   : > { %8271 = vst [vmem:[#allocation72_spill] sm:$0xff] %v4224_v59  ;;  %1147 = vmatpush.bf16.msra.mxu0 %v1138_v33  ;;  %3846 = vmatpush.bf16.msra.mxu2 %v1138_v33  ;;  %v1580_v42 = vsel %vm1136_vm14, %v3721_v53, 0  ;;  %v3730_v1 = vld [vmem:[%s7938_s4 + $0x14] sm:$0xf]  ;;  %v3739_v47 = vld [vmem:[%s7938_s4 + $0x18] sm:$0xf]  ;;  %v5584_v53 = vpack.c.bf16 %v4188_v9, %v4192_v49 }
 0x305   : > { %8272 = vst [vmem:[#allocation73_spill] sm:$0xff] %v4228_v17  ;;  %1266 = vmatpush.bf16.msra.mxu1 %v1257_v24  ;;  %3847 = vmatpush.bf16.msra.mxu3 %v1257_v24  ;;  %v1650_v20 = vsel %vm1136_vm14, %v3730_v1, 0  ;;  %v3757_v10 = vld [vmem:[%s7938_s4 + $0x20] sm:$0xf]  ;;  %v3748_v29 = vld [vmem:[%s7938_s4 + $0x1c] sm:$0xf] }
 0x306   : > { %8273 = vst [vmem:[#allocation74_spill] sm:$0xff] %v4232_v14  ;;  %v1768_v57 = vsel %vm1136_vm14, %v3739_v47, 0  ;;  %v1988_v33 = vsel %vm1136_vm14, %v3757_v10, 0  ;;  %v1902_v24 = vsel %vm1136_vm14, %v3748_v29, 0  ;;  %vm8300_vm7 = vcmp.ge.f32.partialorder %v8260_v45, 0.5 }
 0x307   : > { %8274 = vst [vmem:[#allocation75_spill] sm:$0xff] %v4236_v23  ;;  %3686 = vmatmul.msk.bf16.vlgmr.msra.gmra.mxu0 %vm88_vm0, %v5510_v36  ;;  %3690 = vmatmul.msk.bf16.vlgmr.msra.gmra.mxu2 %vm88_vm0, %v5520_v43  ;;  %vm8301_vm3 = vcmp.le.f32.partialorder %v8260_v45, 6.5 }
 0x308   : > { %8275 = vst [vmem:[#allocation76_spill] sm:$0xff] %v4240_v18  ;;  %1336 = vmatpush.bf16.msrb.mxu2 %v1327_v12  ;;  %1589 = vmatpush.bf16.msrb.mxu0 %v1580_v42 }
 0x309   : > { %8276 = vst [vmem:[#allocation77_spill] sm:$0xff] %v4244_v50  ;;  %1471 = vmatpush.bf16.msrb.mxu3 %v1462_v22  ;;  %3695 = vmatmul.msk.bf16.vlgmr.msra.gmra.mxu1 %vm88_vm0, %v5510_v36 }
 0x30a   : > { %8277 = vst [vmem:[#allocation78_spill] sm:$0xff] %v4248_v25  ;;  %3699 = vmatmul.msk.bf16.vlgmr.msra.gmra.mxu3 %vm88_vm0, %v5520_v43  ;;  %1659 = vmatpush.bf16.msrb.mxu1 %v1650_v20  ;;  %v8279_v20 = vld [vmem:[#allocation24_spill] sm:$0xff] }
 0x30b   : > { %8278 = vst [vmem:[#allocation79_spill] sm:$0xff] %v5584_v53  ;;  %vm1205_vm6 = vcmp.lt.s32.totalorder %v8279_v20, 1  ;;  %vm1394_vm5 = vcmp.lt.s32.totalorder %v8279_v20, 7  ;;  %v8889_v20 = vld [vmem:[#allocation9_spill] sm:$0xff] (%p7788_p0) }
 0x30c   : > { %1777 = vmatpush.bf16.msra.mxu2 %v1768_v57  ;;  %1997 = vmatpush.bf16.msra.mxu0 %v1988_v33 }
 0x30d   : > { %1911 = vmatpush.bf16.msra.mxu3 %v1902_v24 }
 0x317   : > { %3687 = vmatmul.msk.bf16.gmra.mxu0 %vm88_vm0, %v5532_v39  ;;  %3691 = vmatmul.msk.bf16.gmra.mxu2 %vm88_vm0, %v5536_v44 }
 0x319   : > { %3696 = vmatmul.msk.bf16.gmra.mxu1 %vm88_vm0, %v5532_v39 }
 0x31a   : > { %3700 = vmatmul.msk.bf16.gmra.mxu3 %vm88_vm0, %v5536_v44 }
 0x327   : > { %3688 = vmatmul.msk.bf16.gmra.mxu0 %vm88_vm0, %v5552_v13  ;;  %3692 = vmatmul.msk.bf16.gmra.mxu2 %vm88_vm0, %v5556_v11 }
 0x329   : > { %3697 = vmatmul.msk.bf16.gmra.mxu1 %vm88_vm0, %v5552_v13 }
 0x32a   : > { %3701 = vmatmul.msk.bf16.gmra.mxu3 %vm88_vm0, %v5556_v11 }
 0x337   : > { %3689 = vmatmul.msk.bf16.gmra.mxu0 %vm88_vm0, %v5580_v30  ;;  %3693 = vmatmul.msk.bf16.gmra.mxu2 %vm88_vm0, %v5584_v53 }
 0x339   : > { %3698 = vmatmul.msk.bf16.gmra.mxu1 %vm88_vm0, %v5580_v30 }
 0x33a   : > { %3702 = vmatmul.msk.bf16.gmra.mxu3 %vm88_vm0, %v5584_v53 }
 0x347   : > { %3722 = vmatmul.msk.bf16.vlgmr.msrb.gmra.mxu0 %vm88_vm0, %v5510_v36  ;;  %3704 = vmatmul.msk.bf16.vlgmr.msrb.gmra.mxu2 %vm88_vm0, %v5510_v36 }
 0x349   : > { %3731 = vmatmul.msk.bf16.vlgmr.msrb.gmra.mxu1 %vm88_vm0, %v5510_v36 }
 0x34a   : > { %3713 = vmatmul.msk.bf16.vlgmr.msrb.gmra.mxu3 %vm88_vm0, %v5510_v36 }
 0x357   : > { %3723 = vmatmul.msk.bf16.gmra.mxu0 %vm88_vm0, %v5532_v39  ;;  %3705 = vmatmul.msk.bf16.gmra.mxu2 %vm88_vm0, %v5532_v39 }
 0x359   : > { %3732 = vmatmul.msk.bf16.gmra.mxu1 %vm88_vm0, %v5532_v39 }
 0x35a   : > { %3714 = vmatmul.msk.bf16.gmra.mxu3 %vm88_vm0, %v5532_v39 }
 0x367   : > { %3724 = vmatmul.msk.bf16.gmra.mxu0 %vm88_vm0, %v5552_v13  ;;  %3706 = vmatmul.msk.bf16.gmra.mxu2 %vm88_vm0, %v5552_v13 }
 0x369   : > { %3733 = vmatmul.msk.bf16.gmra.mxu1 %vm88_vm0, %v5552_v13 }
 0x36a   : > { %3715 = vmatmul.msk.bf16.gmra.mxu3 %vm88_vm0, %v5552_v13 }
 0x377   : > { %3725 = vmatmul.msk.bf16.gmra.mxu0 %vm88_vm0, %v5580_v30  ;;  %3707 = vmatmul.msk.bf16.gmra.mxu2 %vm88_vm0, %v5580_v30 }
 0x379   : > { %3734 = vmatmul.msk.bf16.gmra.mxu1 %vm88_vm0, %v5580_v30 }
 0x37a   : > { %3716 = vmatmul.msk.bf16.gmra.mxu3 %vm88_vm0, %v5580_v30 }
 0x384   : > { %v5626_v12 = vpop.f32.mrf.mxu0 }
 0x385   : > { %v7983_v47 = vrot.slane %v5626_v12, 7 }
 0x386   : > { %v5628_v62 = vpop.f32.mrf.mxu1 }
 0x387   : > { %3726 = vmatmul.msk.bf16.gmra.mxu0 %vm88_vm0, %v5520_v43  ;;  %3708 = vmatmul.msk.bf16.gmra.mxu2 %vm88_vm0, %v5520_v43 }
 0x389   : > { %3735 = vmatmul.msk.bf16.gmra.mxu1 %vm88_vm0, %v5520_v43 }
 0x38a   : > { %3717 = vmatmul.msk.bf16.gmra.mxu3 %vm88_vm0, %v5520_v43  ;;  %v5638_v42 = vpop.f32.mrf.mxu2 }
 0x38b   : > { %v1197_v24 = vrot.slane %v5638_v42, 7 }
 0x38c   : > { %v1151_v1 = vpop.f32.mrf.mxu0 }
 0x38d   : > { %v5640_v22 = vpop.f32.mrf.mxu3  ;;  %v1190_v10 = vrot.slane %v1151_v1, 7 }
 0x38e   : > { %v5644_v29 = vpop.f32.mrf.mxu1 }
 0x38f   : > { %8280 = vst [vmem:[#allocation80_spill] sm:$0xff] %v5644_v29  ;;  %v5650_v57 = vsel %vm1205_vm6, %v7983_v47, %v1190_v10 }
 0x392   : > { %v1171_v33 = vpop.f32.mrf.mxu2 }
 0x393   : > { %v1198_v8 = vrot.slane %v1171_v33, 7 }
 0x394   : > { %v1154_v9 = vpop.f32.mrf.mxu0 }
 0x395   : > { %v5653_v49 = vpop.f32.mrf.mxu3  ;;  %v1191_v2 = vrot.slane %v1154_v9, 7  ;;  %v5659_v1 = vsel %vm1205_vm6, %v1197_v24, %v1198_v8 }
 0x396   : > { %v5655_v35 = vpop.f32.mrf.mxu1 }
 0x397   : > { %v5663_v56 = vsel %vm1205_vm6, %v1190_v10, %v1191_v2  ;;  %3727 = vmatmul.msk.bf16.gmra.mxu0 %vm88_vm0, %v5536_v44  ;;  %3709 = vmatmul.msk.bf16.gmra.mxu2 %vm88_vm0, %v5536_v44 }
 0x399   : > { %3736 = vmatmul.msk.bf16.gmra.mxu1 %vm88_vm0, %v5536_v44 }
 0x39a   : > { %3718 = vmatmul.msk.bf16.gmra.mxu3 %vm88_vm0, %v5536_v44  ;;  %v1174_v9 = vpop.f32.mrf.mxu2 }
 0x39b   : > { %v1199_v42 = vrot.slane %v1174_v9, 7 }
 0x39c   : > { %v1156_v47 = vpop.f32.mrf.mxu0 }
 0x39d   : > { %v5673_v33 = vpop.f32.mrf.mxu3  ;;  %v1192_v55 = vrot.slane %v1156_v47, 7  ;;  %v5679_v21 = vsel %vm1205_vm6, %v1198_v8, %v1199_v42 }
 0x39e   : > { %v5675_v10 = vpop.f32.mrf.mxu1 }
 0x39f   : > { %8281 = vst [vmem:[#allocation81_spill] sm:$0xff] %v5675_v10  ;;  %v5683_v3 = vsel %vm1205_vm6, %v1191_v2, %v1192_v55 }
 0x3a2   : > { %v1176_v59 = vpop.f32.mrf.mxu2 }
 0x3a3   : > { %v1200_v17 = vrot.slane %v1176_v59, 7 }
 0x3a4   : > { %v1159_v23 = vpop.f32.mrf.mxu0 }
 0x3a5   : > { %v5685_v14 = vpop.f32.mrf.mxu3  ;;  %v1193_v9 = vrot.slane %v1159_v23, 7  ;;  %v5691_v47 = vsel %vm1205_vm6, %v1199_v42, %v1200_v17 }
 0x3a6   : > { %v5687_v18 = vpop.f32.mrf.mxu1 }
 0x3a7   : > { %v5695_v8 = vsel %vm1205_vm6, %v1192_v55, %v1193_v9  ;;  %3728 = vmatmul.msk.bf16.gmra.mxu0 %vm88_vm0, %v5556_v11  ;;  %3710 = vmatmul.msk.bf16.gmra.mxu2 %vm88_vm0, %v5556_v11 }
 0x3a9   : > { %3737 = vmatmul.msk.bf16.gmra.mxu1 %vm88_vm0, %v5556_v11 }
 0x3aa   : > { %3719 = vmatmul.msk.bf16.gmra.mxu3 %vm88_vm0, %v5556_v11  ;;  %v1179_v2 = vpop.f32.mrf.mxu2 }
 0x3ab   : > { %v1201_v59 = vrot.slane %v1179_v2, 7 }
 0x3ac   : > { %v1161_v42 = vpop.f32.mrf.mxu0 }
 0x3ad   : > { %v5705_v23 = vpop.f32.mrf.mxu3  ;;  %v1194_v50 = vrot.slane %v1161_v42, 7  ;;  %v5711_v25 = vsel %vm1205_vm6, %v1200_v17, %v1201_v59 }
 0x3ae   : > { %8282 = vst [vmem:[#allocation82_spill] sm:$0xff] %v5705_v23  ;;  %v5707_v55 = vpop.f32.mrf.mxu1 }
 0x3af   : > { %8283 = vst [vmem:[#allocation83_spill] sm:$0xff] %v5707_v55  ;;  %v5715_v10 = vsel %vm1205_vm6, %v1193_v9, %v1194_v50 }
 0x3b0   : > { %8284 = vst [vmem:[#allocation84_spill] sm:$0xff] %v5711_v25 }
 0x3b2   : > { %v1181_v29 = vpop.f32.mrf.mxu2 }
 0x3b3   : > { %v1202_v0 = vrot.slane %v1181_v29, 7 }
 0x3b4   : > { %v1164_v58 = vpop.f32.mrf.mxu0 }
 0x3b5   : > { %v5717_v48 = vpop.f32.mrf.mxu3  ;;  %v1195_v2 = vrot.slane %v1164_v58, 7  ;;  %v5723_v42 = vsel %vm1205_vm6, %v1201_v59, %v1202_v0 }
 0x3b6   : > { %8285 = vst [vmem:[#allocation85_spill] sm:$0xff] %v5717_v48  ;;  %v5719_v61 = vpop.f32.mrf.mxu1 }
 0x3b7   : > { %8286 = vst [vmem:[#allocation86_spill] sm:$0xff] %v5723_v42  ;;  %v5727_v17 = vsel %vm1205_vm6, %v1194_v50, %v1195_v2  ;;  %3729 = vmatmul.msk.bf16.gmra.mxu0 %vm88_vm0, %v5584_v53  ;;  %3711 = vmatmul.msk.bf16.gmra.mxu2 %vm88_vm0, %v5584_v53 }
 0x3b9   : > { %3738 = vmatmul.msk.bf16.gmra.mxu1 %vm88_vm0, %v5584_v53 }
 0x3ba   : > { %3720 = vmatmul.msk.bf16.gmra.mxu3 %vm88_vm0, %v5584_v53  ;;  %v1184_v58 = vpop.f32.mrf.mxu2 }
 0x3bb   : > { %v1203_v29 = vrot.slane %v1184_v58, 7 }
 0x3bc   : > { %v1166_v59 = vpop.f32.mrf.mxu0 }
 0x3bd   : > { %v5737_v9 = vpop.f32.mrf.mxu3  ;;  %v1196_v55 = vrot.slane %v1166_v59, 7  ;;  %v5743_v48 = vsel %vm1205_vm6, %v1202_v0, %v1203_v29 }
 0x3be   : > { %8287 = vst [vmem:[#allocation87_spill] sm:$0xff] %v5737_v9  ;;  %v5739_v50 = vpop.f32.mrf.mxu1 }
 0x3bf   : > { %8288 = vst [vmem:[#allocation88_spill] sm:$0xff] %v5739_v50  ;;  %v5747_v42 = vsel %vm1205_vm6, %v1196_v55, %v1197_v24  ;;  %v5751_v23 = vsel %vm1205_vm6, %v1195_v2, %v1196_v55  ;;  %v8294_v50 = vrot.slane %v5626_v12, 7 }
 0x3c0   : > { %8289 = vst [vmem:[#allocation89_spill] sm:$0xff] %v5743_v48 }
 0x3c2   : > { %v1186_v53 = vpop.f32.mrf.mxu2 }
 0x3c3   : > { %v1204_v58 = vrot.slane %v1186_v53, 7 }
 0x3c4   : > { %v5755_v9 = vpop.f32.mrf.mxu0 }
 0x3c5   : > { %v5753_v26 = vpop.f32.mrf.mxu3  ;;  %8291 = vst [vmem:[#allocation91_spill] sm:$0xff] %v5755_v9  ;;  %v5761_v0 = vsel %vm1205_vm6, %v1203_v29, %v1204_v58  ;;  %v1221_v24 = vsel %vm1205_vm6, %v1204_v58, %v8294_v50 }
 0x3c6   : > { %8290 = vst [vmem:[#allocation90_spill] sm:$0xff] %v5753_v26  ;;  %v5757_v59 = vpop.f32.mrf.mxu1 }
 0x3c7   : > { %8292 = vst [vmem:[#allocation92_spill] sm:$0xff] %v5757_v59  ;;  %3758 = vmatmul.msk.bf16.vlgmr.msra.gmra.mxu0 %vm88_vm0, %v5510_v36  ;;  %3740 = vmatmul.msk.bf16.vlgmr.msra.gmra.mxu2 %vm88_vm0, %v5510_v36 }
 0x3c8   : > { %8293 = vst [vmem:[#allocation93_spill] sm:$0xff] %v5761_v0  ;;  %v1223_v0 = vsel %vm8298_vm10, %v1221_v24, 0.0 }
 0x3ca   : > { %3749 = vmatmul.msk.bf16.vlgmr.msra.gmra.mxu3 %vm88_vm0, %v5510_v36  ;;  %v5773_v53 = vpop.f32.mrf.mxu2 }
 0x3cb   : > { %8295 = vst [vmem:[#allocation94_spill] sm:$0xff] %v5773_v53  ;;  %v8006_v50 = vrot.slane %v5773_v53, 1 }
 0x3cc   : > { %v1593_v2 = vpop.f32.mrf.mxu0 }
 0x3cd   : > { %v5775_v55 = vpop.f32.mrf.mxu3 }
 0x3ce   : > { %8296 = vst [vmem:[#allocation95_spill] sm:$0xff] %v5775_v55  ;;  %v5777_v29 = vpop.f32.mrf.mxu1  ;;  %v8007_v36 = vrot.slane %v5775_v55, 7 }
 0x3cf   : > { %8297 = vst [vmem:[#allocation96_spill] sm:$0xff] %v5777_v29  ;;  %v1309_v29 = vsel %vm8298_vm10, %v5628_v62, 0.0 }
 0x3d2   : > { %v1340_v12 = vpop.f32.mrf.mxu2 }
 0x3d3   : > { %v1379_v58 = vrot.slane %v1340_v12, 1 }
 0x3d4   : > { %v1596_v26 = vpop.f32.mrf.mxu0 }
 0x3d5   : > { %v1475_v9 = vpop.f32.mrf.mxu3  ;;  %v1409_v25 = vsel %vm1394_vm5, %v8006_v50, %v1379_v58 }
 0x3d6   : > { %v1514_v48 = vrot.slane %v1475_v9, 7  ;;  %v5784_v59 = vpop.f32.mrf.mxu1  ;;  %v1412_v12 = vsel %vm8298_vm10, %v1409_v25, 0.0  ;;  %v1239_v9 = vsel %vm8300_vm7, %v1223_v0, 0.0  ;;  %vm8304_vm10 = vcmp.le.f32.partialorder %v5227_v46, 6.5 }
 0x3d7   : > { %8299 = vst [vmem:[#allocation97_spill] sm:$0xff] %v5784_v59  ;;  %3759 = vmatmul.msk.bf16.gmra.mxu0 %vm88_vm0, %v5532_v39  ;;  %v1428_v62 = vsel %vm8301_vm3, %v1412_v12, 0.0  ;;  %3741 = vmatmul.msk.bf16.gmra.mxu2 %vm88_vm0, %v5532_v39 }
 0x3d8   : > { %v1543_v24 = vsel %vm1205_vm6, %v8007_v36, %v1514_v48  ;;  %v1444_v50 = vadd.f32 %v1428_v62, %v1239_v9  ;;  %v2239_v36 = vld [vmem:[%s7937_s3] sm:$0xf] }
 0x3d9   : > { %v1546_v25 = vsel %vm8300_vm7, %v1543_v24, 0.0  ;;  %v2265_v0 = vsel %vm1136_vm14, %v2239_v36, 0  ;;  %v1224_v24 = vsel %vm8302_vm11, %v5650_v57, 0.0  ;;  %vm8310_vm7 = vcmp.le.f32.partialorder %v8248_v15, 6.5 }
 0x3da   : > { %3750 = vmatmul.msk.bf16.gmra.mxu3 %vm88_vm0, %v5532_v39  ;;  %v5814_v38 = vadd.f32 %v1546_v25, %v1309_v29  ;;  %v1343_v59 = vpop.f32.mrf.mxu2  ;;  %2274 = vmatpush.bf16.msra.mxu1 %v2265_v0  ;;  %v5817_v12 = vadd.f32 %v1593_v2, %v1444_v50 }
 0x3db   : > { %v1380_v55 = vrot.slane %v1343_v59, 1  ;;  %v1240_v59 = vsel %vm8303_vm8, %v1224_v24, 0.0 }
 0x3dc   : > { %v1598_v45 = vpop.f32.mrf.mxu0 }
 0x3dd   : > { %v1478_v53 = vpop.f32.mrf.mxu3  ;;  %v1408_v29 = vsel %vm1394_vm5, %v1379_v58, %v1380_v55 }
 0x3de   : > { %v1515_v39 = vrot.slane %v1478_v53, 7  ;;  %v5822_v9 = vpop.f32.mrf.mxu1  ;;  %v1413_v36 = vsel %vm8302_vm11, %v1408_v29, 0.0  ;;  %vm8306_vm11 = vcmp.ge.f32.partialorder %v8258_v63, 0.5 }
 0x3df   : > { %v1429_v50 = vsel %vm8304_vm10, %v1413_v36, 0.0  ;;  %v1225_v29 = vsel %vm8306_vm11, %v5663_v56, 0.0  ;;  %vm8307_vm8 = vmmov %vm8306_vm11  ;;  %vm8309_vm11 = vcmp.ge.f32.partialorder %v8248_v15, 0.5 }
 0x3e0   : > { %v5830_v2 = vsel %vm1205_vm6, %v1514_v48, %v1515_v39  ;;  %v1445_v57 = vadd.f32 %v1429_v50, %v1240_v59  ;;  %v1311_v24 = vsel %vm8307_vm8, %v5655_v35, 0.0  ;;  %vm8308_vm10 = vmmov %vm8307_vm8  ;;  %v1241_v56 = vsel %vm8309_vm11, %v1225_v29, 0.0 }
 0x3e1   : > { %vm8311_vm8 = vmmov %vm8309_vm11  ;;  %vm8314_vm11 = vcmp.ge.f32.partialorder %v5235_v34, 0.5 }
 0x3e2   : > { %v5836_v53 = vadd.f32 %v1596_v26, %v1445_v57  ;;  %v1345_v62 = vpop.f32.mrf.mxu2 }
 0x3e3   : > { %v1381_v25 = vrot.slane %v1345_v62, 1 }
 0x3e4   : > { %8305 = vst [vmem:[#allocation98_spill] sm:$0xff] %v5836_v53  ;;  %v1601_v58 = vpop.f32.mrf.mxu0 }
 0x3e5   : > { %v1480_v0 = vpop.f32.mrf.mxu3  ;;  %v1407_v36 = vsel %vm1394_vm5, %v1380_v55, %v1381_v25 }
 0x3e6   : > { %v1516_v31 = vrot.slane %v1480_v0, 7  ;;  %v5841_v48 = vpop.f32.mrf.mxu1  ;;  %v1414_v26 = vsel %vm8308_vm10, %v1407_v36, 0.0 }
 0x3e7   : > { %3760 = vmatmul.msk.bf16.gmra.mxu0 %vm88_vm0, %v5552_v13  ;;  %v1430_v50 = vsel %vm8310_vm7, %v1414_v26, 0.0  ;;  %3742 = vmatmul.msk.bf16.gmra.mxu2 %vm88_vm0, %v5552_v13  ;;  %vm8312_vm7 = vcmp.ge.f32.partialorder %v8247_v5, 0.5 }
 0x3e8   : > { %v1541_v59 = vsel %vm1205_vm6, %v1515_v39, %v1516_v31  ;;  %v1446_v55 = vadd.f32 %v1430_v50, %v1241_v56  ;;  %v1226_v26 = vsel %vm8312_vm7, %v5683_v3, 0.0  ;;  %vm8313_vm10 = vmmov %vm8312_vm7  ;;  %vm8317_vm7 = vcmp.ge.f32.partialorder %v8257_v19, 0.5 }
 0x3e9   : > { %v1548_v35 = vsel %vm8311_vm8, %v1541_v59, 0.0  ;;  %vm8315_vm8 = vcmp.le.f32.partialorder %v5235_v34, 6.5 }
 0x3ea   : > { %3751 = vmatmul.msk.bf16.gmra.mxu3 %vm88_vm0, %v5552_v13  ;;  %v5864_v39 = vadd.f32 %v1548_v35, %v1311_v24  ;;  %v1348_v57 = vpop.f32.mrf.mxu2  ;;  %v5866_v62 = vadd.f32 %v1598_v45, %v1446_v55  ;;  %v1242_v24 = vsel %vm8314_vm11, %v1226_v26, 0.0  ;;  %vm8319_vm11 = vmmov %vm8317_vm7 }
 0x3eb   : > { %v1382_v0 = vrot.slane %v1348_v57, 1 }
 0x3ec   : > { %v1603_v36 = vpop.f32.mrf.mxu0 }
 0x3ed   : > { %v1483_v29 = vpop.f32.mrf.mxu3  ;;  %v1406_v59 = vsel %vm1394_vm5, %v1381_v25, %v1382_v0 }
 0x3ee   : > { %v1517_v63 = vrot.slane %v1483_v29, 7  ;;  %v5871_v53 = vpop.f32.mrf.mxu1  ;;  %v1415_v13 = vsel %vm8313_vm10, %v1406_v59, 0.0  ;;  %v1227_v29 = vsel %vm8317_vm7, %v5695_v8, 0.0  ;;  %vm8318_vm10 = vmmov %vm8317_vm7  ;;  %vm8321_vm7 = vcmp.le.f32.partialorder %v5239_v7, 6.5 }
 0x3ef   : > { %v1431_v56 = vsel %vm8315_vm8, %v1415_v13, 0.0  ;;  %v1313_v26 = vsel %vm8318_vm10, %v5687_v18, 0.0  ;;  %vm8320_vm8 = vcmp.ge.f32.partialorder %v5239_v7, 0.5 }
 0x3f0   : > { %v5879_v45 = vsel %vm1205_vm6, %v1516_v31, %v1517_v63  ;;  %v1447_v3 = vadd.f32 %v1431_v56, %v1242_v24  ;;  %v1243_v8 = vsel %vm8320_vm8, %v1227_v29, 0.0  ;;  %vm8322_vm10 = vmmov %vm8320_vm8 }
 0x3f2   : > { %v5885_v50 = vadd.f32 %v1601_v58, %v1447_v3  ;;  %v1350_v35 = vpop.f32.mrf.mxu2 }
 0x3f3   : > { %v1383_v55 = vrot.slane %v1350_v35, 1 }
 0x3f4   : > { %8316 = vst [vmem:[#allocation99_spill] sm:$0xff] %v5885_v50  ;;  %v1606_v25 = vpop.f32.mrf.mxu0 }
 0x3f5   : > { %v1485_v57 = vpop.f32.mrf.mxu3  ;;  %v1405_v13 = vsel %vm1394_vm5, %v1382_v0, %v1383_v55 }
 0x3f6   : > { %v1518_v59 = vrot.slane %v1485_v57, 7  ;;  %v5890_v31 = vpop.f32.mrf.mxu1  ;;  %v1416_v58 = vsel %vm8319_vm11, %v1405_v13, 0.0  ;;  %vm8323_vm11 = vcmp.ge.f32.partialorder %v8246_v4, 0.5 }
 0x3f7   : > { %3761 = vmatmul.msk.bf16.gmra.mxu0 %vm88_vm0, %v5580_v30  ;;  %v1432_v56 = vsel %vm8321_vm7, %v1416_v58, 0.0  ;;  %3743 = vmatmul.msk.bf16.gmra.mxu2 %vm88_vm0, %v5580_v30  ;;  %v1228_v58 = vsel %vm8323_vm11, %v5715_v10, 0.0  ;;  %vm8324_vm8 = vmmov %vm8323_vm11  ;;  %vm8325_vm7 = vcmp.ge.f32.partialorder %v5243_v32, 0.5 }
 0x3f8   : > { %v1539_v24 = vsel %vm1205_vm6, %v1517_v63, %v1518_v59  ;;  %v1448_v0 = vadd.f32 %v1432_v56, %v1243_v8 }
 0x3f9   : > { %v1550_v18 = vsel %vm8322_vm10, %v1539_v24, 0.0  ;;  %vm8326_vm10 = vcmp.ge.f32.partialorder %v8256_v16, 0.5 }
 0x3fa   : > { %3752 = vmatmul.msk.bf16.gmra.mxu3 %vm88_vm0, %v5580_v30  ;;  %v5913_v63 = vadd.f32 %v1550_v18, %v1313_v26  ;;  %v1353_v3 = vpop.f32.mrf.mxu2  ;;  %v5915_v35 = vadd.f32 %v1603_v36, %v1448_v0  ;;  %v1244_v26 = vsel %vm8325_vm7, %v1228_v58, 0.0  ;;  %vm8327_vm11 = vmmov %vm8326_vm10  ;;  %vm8329_vm7 = vcmp.ge.f32.partialorder %v8255_v51, 0.5 }
 0x3fb   : > { %v1384_v57 = vrot.slane %v1353_v3, 1  ;;  %v1315_v58 = vsel %vm8327_vm11, %v5719_v61, 0.0  ;;  %vm8331_vm11 = vcmp.ge.f32.partialorder %v8245_v41, 0.5 }
 0x3fc   : > { %v1608_v13 = vpop.f32.mrf.mxu0 }
 0x3fd   : > { %v1488_v29 = vpop.f32.mrf.mxu3  ;;  %v1404_v24 = vsel %vm1394_vm5, %v1383_v55, %v1384_v57 }
 0x3fe   : > { %v1519_v19 = vrot.slane %v1488_v29, 7  ;;  %v5920_v50 = vpop.f32.mrf.mxu1  ;;  %v1417_v30 = vsel %vm8324_vm8, %v1404_v24, 0.0  ;;  %v1229_v29 = vsel %vm8326_vm10, %v5727_v17, 0.0  ;;  %vm8328_vm8 = vmmov %vm8326_vm10 }
 0x3ff   : > { %v1433_v8 = vsel %vm1071_vm13, %v1417_v30, 0.0  ;;  %v1245_v17 = vsel %vm8329_vm7, %v1229_v29, 0.0  ;;  %vm8330_vm10 = vmmov %vm8329_vm7  ;;  %vm8333_vm7 = vcmp.ge.f32.partialorder %v8243_v40, 0.5 }
 0x400   : > { %v5928_v36 = vsel %vm1205_vm6, %v1518_v59, %v1519_v19  ;;  %v1449_v10 = vadd.f32 %v1433_v8, %v1244_v26 }
 0x402   : > { %v5934_v56 = vadd.f32 %v1606_v25, %v1449_v10  ;;  %v1355_v18 = vpop.f32.mrf.mxu2 }
 0x403   : > { %v1385_v0 = vrot.slane %v1355_v18, 1 }
 0x404   : > { %v1611_v55 = vpop.f32.mrf.mxu0 }
 0x405   : > { %v1490_v3 = vpop.f32.mrf.mxu3  ;;  %v1403_v30 = vsel %vm1394_vm5, %v1384_v57, %v1385_v0 }
 0x406   : > { %v1520_v24 = vrot.slane %v1490_v3, 7  ;;  %v5939_v59 = vpop.f32.mrf.mxu1  ;;  %v1418_v25 = vsel %vm8328_vm8, %v1403_v30, 0.0  ;;  %vm8332_vm8 = vmmov %vm8331_vm11 }
 0x407   : > { %3762 = vmatmul.msk.bf16.gmra.mxu0 %vm88_vm0, %v5520_v43  ;;  %v1434_v8 = vsel %vm1072_vm9, %v1418_v25, 0.0  ;;  %3744 = vmatmul.msk.bf16.gmra.mxu2 %vm88_vm0, %v5520_v43  ;;  %v1230_v25 = vsel %vm8331_vm11, %v5751_v23, 0.0 }
 0x408   : > { %v1537_v26 = vsel %vm1205_vm6, %v1519_v19, %v1520_v24  ;;  %v1450_v57 = vadd.f32 %v1434_v8, %v1245_v17 }
 0x409   : > { %v1552_v61 = vsel %vm8330_vm10, %v1537_v26, 0.0  ;;  %vm8334_vm10 = vcmp.ge.f32.partialorder %v8254_v60, 0.5 }
 0x40a   : > { %3753 = vmatmul.msk.bf16.gmra.mxu3 %vm88_vm0, %v5520_v43  ;;  %v5962_v19 = vadd.f32 %v1552_v61, %v1315_v58  ;;  %v1358_v10 = vpop.f32.mrf.mxu2  ;;  %v5964_v18 = vadd.f32 %v1608_v13, %v1450_v57  ;;  %v1246_v58 = vsel %vm8333_vm7, %v1230_v25, 0.0  ;;  %vm8335_vm11 = vmmov %vm8334_vm10  ;;  %vm8337_vm7 = vcmp.ge.f32.partialorder %v8244_v27, 0.5 }
 0x40b   : > { %v1386_v3 = vrot.slane %v1358_v10, 1 }
 0x40c   : > { %v5966_v30 = vpop.f32.mrf.mxu0 }
 0x40d   : > { %v1493_v29 = vpop.f32.mrf.mxu3  ;;  %v1402_v26 = vsel %vm1394_vm5, %v1385_v0, %v1386_v3 }
 0x40e   : > { %v1521_v16 = vrot.slane %v1493_v29, 7  ;;  %v5971_v51 = vpop.f32.mrf.mxu1  ;;  %v1419_v43 = vsel %vm8332_vm8, %v1402_v26, 0.0  ;;  %v1231_v29 = vsel %vm8334_vm10, %v5747_v42, 0.0  ;;  %vm8336_vm8 = vmmov %vm8334_vm10 }
 0x40f   : > { %v1435_v17 = vsel %vm1073_vm15, %v1419_v43, 0.0  ;;  %v1247_v42 = vsel %vm8337_vm7, %v1231_v29, 0.0  ;;  %vm8339_vm10 = vmmov %vm8337_vm7  ;;  %vm8344_vm7 = vcmp.ge.f32.partialorder %v8249_v54, 0.5 }
 0x410   : > { %v5979_v13 = vsel %vm1205_vm6, %v1520_v24, %v1521_v16  ;;  %v1451_v23 = vadd.f32 %v1435_v17, %v1246_v58  ;;  %v1317_v58 = vsel %vm8336_vm8, %v5640_v22, 0.0 }
 0x412   : > { %v5985_v8 = vadd.f32 %v1611_v55, %v1451_v23  ;;  %v1360_v61 = vpop.f32.mrf.mxu2 }
 0x413   : > { %v1387_v57 = vrot.slane %v1360_v61, 1 }
 0x414   : > { %v1616_v0 = vpop.f32.mrf.mxu0 }
 0x415   : > { %v1495_v10 = vpop.f32.mrf.mxu3  ;;  %v1401_v25 = vsel %vm1394_vm5, %v1386_v3, %v1387_v57 }
 0x416   : > { %v1522_v26 = vrot.slane %v1495_v10, 7  ;;  %v5990_v24 = vpop.f32.mrf.mxu1  ;;  %v1420_v43 = vsel %vm8335_vm11, %v1401_v25, 0.0  ;;  %vm8342_vm11 = vcmp.ge.f32.partialorder %v8253_v52, 0.5 }
 0x417   : > { %3763 = vmatmul.msk.bf16.gmra.mxu0 %vm88_vm0, %v5536_v44  ;;  %v1436_v17 = vsel %vm8338_vm1, %v1420_v43, 0.0  ;;  %3745 = vmatmul.msk.bf16.gmra.mxu2 %vm88_vm0, %v5536_v44  ;;  %v1232_v25 = vsel %vm8342_vm11, %v5659_v1, 0.0  ;;  %vm8343_vm8 = vmmov %vm8342_vm11 }
 0x418   : > { %v1535_v55 = vsel %vm1205_vm6, %v1521_v16, %v1522_v26  ;;  %v6011_v16 = vadd.f32 %v1436_v17, %v1247_v42  ;;  %v1248_v42 = vsel %vm8344_vm7, %v1232_v25, 0.0  ;;  %vm8347_vm11 = vmmov %vm8344_vm7 }
 0x419   : > { %v1554_v3 = vsel %vm8339_vm10, %v1535_v55, 0.0  ;;  %vm8345_vm10 = vmmov %vm8343_vm8 }
 0x41a   : > { %3754 = vmatmul.msk.bf16.gmra.mxu3 %vm88_vm0, %v5536_v44  ;;  %v6015_v23 = vadd.f32 %v1554_v3, %v1317_v58  ;;  %v1363_v22 = vpop.f32.mrf.mxu2  ;;  %v1318_v17 = vsel %vm8345_vm10, %v5653_v49, 0.0  ;;  %vm8353_vm10 = vcmp.ge.f32.partialorder %v8250_v6, 0.5  ;;  %v8402_v6 = vld [vmem:[#allocation47_spill] sm:$0xff] }
 0x41b   : > { %v1388_v61 = vrot.slane %v1363_v22, 1 }
 0x41c   : > { %8340 = vst [vmem:[#allocation100_spill] sm:$0xff] %v6015_v23  ;;  %v6017_v29 = vpop.f32.mrf.mxu0 }
 0x41d   : > { %v1498_v10 = vpop.f32.mrf.mxu3  ;;  %8341 = vst [vmem:[#allocation101_spill] sm:$0xff] %v6017_v29  ;;  %v1400_v55 = vsel %vm1394_vm5, %v1387_v57, %v1388_v61 }
 0x41e   : > { %v1523_v43 = vrot.slane %v1498_v10, 7  ;;  %v6022_v60 = vpop.f32.mrf.mxu1  ;;  %v1421_v44 = vsel %vm8343_vm8, %v1400_v55, 0.0  ;;  %vm8350_vm8 = vcmp.ge.f32.partialorder %v8252_v28, 0.5  ;;  %v8370_v28 = vld [vmem:[#allocation60_spill] sm:$0xff] }
 0x41f   : > { %v1437_v1 = vsel %vm8346_vm2, %v1421_v44, 0.0  ;;  %v1233_v25 = vsel %vm8350_vm8, %v5679_v21, 0.0  ;;  %vm8352_vm7 = vmmov %vm8350_vm8 }
 0x420   : > { %v1534_v58 = vsel %vm1205_vm6, %v1522_v26, %v1523_v43  ;;  %v1453_v57 = vadd.f32 %v1437_v1, %v1248_v42  ;;  %v1249_v42 = vsel %vm8353_vm10, %v1233_v25, 0.0  ;;  %vm8355_vm8 = vmmov %vm8353_vm10 }
 0x421   : > { %v1555_v3 = vsel %vm8347_vm11, %v1534_v58, 0.0  ;;  %vm8354_vm11 = vmmov %vm8352_vm7 }
 0x422   : > { %v6039_v22 = vadd.f32 %v1555_v3, %v1318_v17  ;;  %v6041_v10 = vadd.f32 %v1616_v0, %v1453_v57  ;;  %v1365_v55 = vpop.f32.mrf.mxu2  ;;  %v1319_v21 = vsel %vm8354_vm11, %v5673_v33, 0.0 }
 0x423   : > { %v1389_v26 = vrot.slane %v1365_v55, 1 }
 0x424   : > { %8348 = vst [vmem:[#allocation102_spill] sm:$0xff] %v6039_v22  ;;  %v1621_v23 = vpop.f32.mrf.mxu0 }
 0x425   : > { %8349 = vst [vmem:[#allocation103_spill] sm:$0xff] %v6041_v10  ;;  %v1500_v29 = vpop.f32.mrf.mxu3  ;;  %v1399_v44 = vsel %vm1394_vm5, %v1388_v61, %v1389_v26 }
 0x426   : > { %v1524_v49 = vrot.slane %v1500_v29, 7  ;;  %v6046_v52 = vpop.f32.mrf.mxu1  ;;  %v1422_v58 = vsel %vm8352_vm7, %v1399_v44, 0.0  ;;  %vm8359_vm7 = vcmp.ge.f32.partialorder %v8251_v37, 0.5 }
 0x427   : > { %8351 = vst [vmem:[#allocation104_spill] sm:$0xff] %v6046_v52  ;;  %3764 = vmatmul.msk.bf16.gmra.mxu0 %vm88_vm0, %v5556_v11  ;;  %v1438_v29 = vsel %vm1076_vm12, %v1422_v58, 0.0  ;;  %3746 = vmatmul.msk.bf16.gmra.mxu2 %vm88_vm0, %v5556_v11  ;;  %v1234_v55 = vsel %vm8359_vm7, %v5691_v47, 0.0  ;;  %vm8361_vm10 = vmmov %vm8359_vm7 }
 0x428   : > { %v1533_v0 = vsel %vm1205_vm6, %v1523_v43, %v1524_v49  ;;  %v6067_v43 = vadd.f32 %v1438_v29, %v1249_v42  ;;  %v8362_v42 = vld [vmem:[#allocation43_spill] sm:$0xff] }
 0x429   : > { %v1556_v61 = vsel %vm8355_vm8, %v1533_v0, 0.0  ;;  %vm8363_vm11 = vcmp.ge.f32.partialorder %v8362_v42, 0.5  ;;  %vm8364_vm8 = vmmov %vm8359_vm7  ;;  %vm8365_vm4 = vcmp.le.f32.partialorder %v8362_v42, 6.5 }
 0x42a   : > { %8356 = vst [vmem:[#allocation105_spill] sm:$0xff] %v6067_v43  ;;  %3755 = vmatmul.msk.bf16.gmra.mxu3 %vm88_vm0, %v5556_v11  ;;  %v6071_v17 = vadd.f32 %v1556_v61, %v1319_v21  ;;  %v1368_v1 = vpop.f32.mrf.mxu2  ;;  %v1250_v21 = vsel %vm8363_vm11, %v1234_v55, 0.0  ;;  %v1320_v29 = vsel %vm8364_vm8, %v5685_v14, 0.0  ;;  %vm8366_vm7 = vmmov %vm8363_vm11  ;;  %v8369_v55 = vld [vmem:[#allocation84_spill] sm:$0xff] }
 0x42b   : > { %v1390_v3 = vrot.slane %v1368_v1, 1 }
 0x42c   : > { %8357 = vst [vmem:[#allocation106_spill] sm:$0xff] %v6071_v17  ;;  %v6073_v33 = vpop.f32.mrf.mxu0 }
 0x42d   : > { %v1503_v57 = vpop.f32.mrf.mxu3  ;;  %8358 = vst [vmem:[#allocation107_spill] sm:$0xff] %v6073_v33  ;;  %v1398_v58 = vsel %vm1394_vm5, %v1389_v26, %v1390_v3 }
 0x42e   : > { %v1525_v25 = vrot.slane %v1503_v57, 7  ;;  %v6078_v44 = vpop.f32.mrf.mxu1  ;;  %v1423_v11 = vsel %vm8361_vm10, %v1398_v58, 0.0  ;;  %vm8371_vm10 = vcmp.ge.f32.partialorder %v8370_v28, 0.5  ;;  %v8384_v28 = vld [vmem:[#allocation86_spill] sm:$0xff] }
 0x42f   : > { %8360 = vst [vmem:[#allocation108_spill] sm:$0xff] %v6078_v44  ;;  %v1439_v47 = vsel %vm8365_vm4, %v1423_v11, 0.0  ;;  %v1235_v37 = vsel %vm8371_vm10, %v8369_v55, 0.0  ;;  %vm8373_vm11 = vmmov %vm8371_vm10 }
 0x430   : > { %v1532_v0 = vsel %vm1205_vm6, %v1524_v49, %v1525_v25  ;;  %v1455_v26 = vadd.f32 %v1439_v47, %v1250_v21  ;;  %v8374_v21 = vld [vmem:[#allocation79_spill] sm:$0xff] }
 0x431   : > { %v1557_v61 = vsel %vm8366_vm7, %v1532_v0, 0.0  ;;  %vm8378_vm7 = vmmov %vm8371_vm10 }
 0x432   : > { %v6095_v1 = vadd.f32 %v1557_v61, %v1320_v29  ;;  %v6097_v57 = vadd.f32 %v1621_v23, %v1455_v26  ;;  %v1370_v58 = vpop.f32.mrf.mxu2  ;;  %v8375_v29 = vld [vmem:[#allocation44_spill] sm:$0xff]  ;;  %v8377_v61 = vld [vmem:[#allocation82_spill] sm:$0xff] }
 0x433   : > { %v1391_v49 = vrot.slane %v1370_v58, 1  ;;  %vm8376_vm8 = vcmp.ge.f32.partialorder %v8375_v29, 0.5  ;;  %vm8379_vm10 = vcmp.le.f32.partialorder %v8375_v29, 6.5  ;;  %v8397_v29 = vld [vmem:[#allocation89_spill] sm:$0xff] }
 0x434   : > { %8367 = vst [vmem:[#allocation109_spill] sm:$0xff] %v6095_v1  ;;  %v1626_v17 = vpop.f32.mrf.mxu0  ;;  %v1251_v47 = vsel %vm8376_vm8, %v1235_v37, 0.0 }
 0x435   : > { %8368 = vst [vmem:[#allocation110_spill] sm:$0xff] %v6097_v57  ;;  %v1505_v33 = vpop.f32.mrf.mxu3  ;;  %v1397_v11 = vsel %vm1394_vm5, %v1390_v3, %v1391_v49 }
 0x436   : > { %v1526_v14 = vrot.slane %v1505_v33, 7  ;;  %v6102_v44 = vpop.f32.mrf.mxu1  ;;  %v1424_v0 = vsel %vm8373_vm11, %v1397_v11, 0.0  ;;  %v1321_v33 = vsel %vm8378_vm7, %v8377_v61, 0.0  ;;  %vm8380_vm11 = vmmov %vm8376_vm8 }
 0x437   : > { %8372 = vst [vmem:[#allocation84_spill] sm:$0xff] %v6102_v44  ;;  %3765 = vmatmul.msk.bf16.gmra.mxu0 %vm88_vm0, %v8374_v21  ;;  %v1440_v26 = vsel %vm8379_vm10, %v1424_v0, 0.0  ;;  %3747 = vmatmul.msk.bf16.gmra.mxu2 %vm88_vm0, %v8374_v21  ;;  %v8385_v0 = vld [vmem:[#allocation61_spill] sm:$0xff] }
 0x438   : > { %v1531_v23 = vsel %vm1205_vm6, %v1525_v25, %v1526_v14  ;;  %v6123_v25 = vadd.f32 %v1440_v26, %v1251_v47  ;;  %vm8386_vm8 = vcmp.ge.f32.partialorder %v8385_v0, 0.5  ;;  %v8388_v26 = vld [vmem:[#allocation92_spill] sm:$0xff] }
 0x439   : > { %v1558_v3 = vsel %vm8380_vm11, %v1531_v23, 0.0  ;;  %v1236_v1 = vsel %vm8386_vm8, %v8384_v28, 0.0  ;;  %vm8389_vm7 = vmmov %vm8386_vm8 }
 0x43a   : > { %8381 = vst [vmem:[#allocation79_spill] sm:$0xff] %v6123_v25  ;;  %3756 = vmatmul.msk.bf16.gmra.mxu3 %vm88_vm0, %v8374_v21  ;;  %v6127_v58 = vadd.f32 %v1558_v3, %v1321_v33  ;;  %v1373_v37 = vpop.f32.mrf.mxu2  ;;  %v1701_v25 = vrot.slane %v8388_v26, 1  ;;  %v8390_v3 = vld [vmem:[#allocation45_spill] sm:$0xff]  ;;  %vm8393_vm11 = vmmov %vm8389_vm7 }
 0x43b   : > { %v1392_v55 = vrot.slane %v1373_v37, 1  ;;  %vm8391_vm10 = vcmp.ge.f32.partialorder %v8390_v3, 0.5  ;;  %vm8394_vm8 = vcmp.le.f32.partialorder %v8390_v3, 6.5 }
 0x43c   : > { %8382 = vst [vmem:[#allocation82_spill] sm:$0xff] %v6127_v58  ;;  %v6129_v61 = vpop.f32.mrf.mxu0  ;;  %v1252_v37 = vsel %vm8391_vm10, %v1236_v1, 0.0  ;;  %vm8395_vm4 = vmmov %vm8391_vm10  ;;  %v8401_v1 = vld [vmem:[#allocation93_spill] sm:$0xff]  ;;  %vm8403_vm10 = vcmp.ge.f32.partialorder %v8402_v6, 0.5 }
 0x43d   : > { %v1508_v11 = vpop.f32.mrf.mxu3  ;;  %8383 = vst [vmem:[#allocation111_spill] sm:$0xff] %v6129_v61  ;;  %v1396_v23 = vsel %vm1394_vm5, %v1391_v49, %v1392_v55  ;;  %v8392_v61 = vld [vmem:[#allocation85_spill] sm:$0xff]  ;;  %v1222_v0 = vsel %vm8403_vm10, %v8401_v1, 0.0  ;;  %v8409_v1 = vld [vmem:[#allocation90_spill] sm:$0xff] }
 0x43e   : > { %v1527_v57 = vrot.slane %v1508_v11, 7  ;;  %v6136_v47 = vpop.f32.mrf.mxu1  ;;  %v1425_v21 = vsel %vm8389_vm7, %v1396_v23, 0.0  ;;  %v1322_v28 = vsel %vm8393_vm11, %v8392_v61, 0.0 }
 0x43f   : > { %8387 = vst [vmem:[#allocation86_spill] sm:$0xff] %v6136_v47  ;;  %v1441_v49 = vsel %vm8394_vm8, %v1425_v21, 0.0  ;;  %v8050_v23 = vrot.slane %v6136_v47, 1  ;;  %vm8410_vm8 = vmmov %vm8403_vm10 }
 0x440   : > { %v1530_v33 = vsel %vm1205_vm6, %v1526_v14, %v1527_v57  ;;  %v1457_v26 = vadd.f32 %v1441_v49, %v1252_v37  ;;  %v8398_v14 = vld [vmem:[#allocation62_spill] sm:$0xff] }
 0x441   : > { %v1559_v11 = vsel %vm8395_vm4, %v1530_v33, 0.0  ;;  %v8399_v44 = vmov %v8398_v14  ;;  %vm8400_vm7 = vcmp.ge.f32.partialorder %v8398_v14, 0.5  ;;  %v1732_v21 = vsel %vm1394_vm5, %v8050_v23, %v1701_v25  ;;  %v8405_v49 = vld [vmem:[#allocation46_spill] sm:$0xff] }
 0x442   : > { %v6152_v58 = vadd.f32 %v1559_v11, %v1322_v28  ;;  %v1237_v42 = vsel %vm8400_vm7, %v8397_v29, 0.0  ;;  %v6161_v61 = vadd.f32 %v1626_v17, %v1457_v26  ;;  %v1375_v43 = vpop.f32.mrf.mxu2  ;;  %vm8406_vm4 = vcmp.ge.f32.partialorder %v8405_v49, 0.5  ;;  %v8407_v29 = vld [vmem:[#allocation87_spill] sm:$0xff]  ;;  %vm8408_vm11 = vmmov %vm8400_vm7  ;;  %v8413_v23 = vld [vmem:[#allocation94_spill] sm:$0xff] }
 0x443   : > { %v1393_v33 = vrot.slane %v1375_v43, 1  ;;  %v1253_v11 = vsel %vm8406_vm4, %v1237_v42, 0.0  ;;  %v1323_v14 = vsel %vm8408_vm11, %v8407_v29, 0.0  ;;  %v1308_v17 = vsel %vm8410_vm8, %v8409_v1, 0.0  ;;  %vm8416_vm4 = vmmov %vm8410_vm8  ;;  %v8417_v1 = vld [vmem:[#allocation95_spill] sm:$0xff] }
 0x444   : > { %8396 = vst [vmem:[#allocation92_spill] sm:$0xff] %v6152_v58  ;;  %v6167_v28 = vpop.f32.mrf.mxu0  ;;  %v8411_v58 = vld [vmem:[#allocation35_spill] sm:$0xff]  ;;  %v8414_v3 = vrot.slane %v8413_v23, 1  ;;  %vm8415_vm10 = vcmp.le.f32.partialorder %v8405_v49, 6.5  ;;  %v8418_v22 = vrot.slane %v8417_v1, 7 }
 0x445   : > { %8404 = vst [vmem:[#allocation85_spill] sm:$0xff] %v6161_v61  ;;  %v1510_v37 = vpop.f32.mrf.mxu3  ;;  %vm8412_vm7 = vcmp.ge.f32.partialorder %v8411_v58, 0.5  ;;  %v1395_v43 = vsel %vm1394_vm5, %v1392_v55, %v1393_v33  ;;  %v1748_v47 = vsel %vm8415_vm10, %v1732_v21, 0.0  ;;  %vm8419_vm8 = vcmp.le.f32.partialorder %v8411_v58, 6.5 }
 0x446   : > { %v1528_v26 = vrot.slane %v1510_v37, 7  ;;  %v1238_v61 = vsel %vm8412_vm7, %v1222_v0, 0.0  ;;  %v1410_v42 = vsel %vm1394_vm5, %v1393_v33, %v8414_v3  ;;  %v1426_v37 = vsel %vm8408_vm11, %v1395_v43, 0.0  ;;  %vm8420_vm7 = vmmov %vm8415_vm10 }
 0x447   : > { %v1411_v29 = vsel %vm8416_vm4, %v1410_v42, 0.0  ;;  %v1442_v23 = vsel %vm8420_vm7, %v1426_v37, 0.0  ;;  %vm8421_vm10 = vcmp.ge.f32.partialorder %v8411_v58, 0.5  ;;  %vm8422_vm4 = vcmp.ge.f32.partialorder %v8405_v49, 0.5 }
 0x448   : > { %v1529_v0 = vsel %vm1205_vm6, %v1527_v57, %v1528_v26  ;;  %v1544_v55 = vsel %vm1205_vm6, %v1528_v26, %v8418_v22  ;;  %v1427_v3 = vsel %vm8419_vm8, %v1411_v29, 0.0  ;;  %v6205_v42 = vadd.f32 %v1442_v23, %v1253_v11  ;;  %v8427_v11 = vld [vmem:[#allocation96_spill] sm:$0xff] }
 0x449   : > { %v1545_v21 = vsel %vm8421_vm10, %v1544_v55, 0.0  ;;  %v1560_v33 = vsel %vm8422_vm4, %v1529_v0, 0.0  ;;  %v1443_v43 = vadd.f32 %v1427_v3, %v1238_v61  ;;  %v8057_v29 = vrot.slane %v6167_v28, 1 }
 0x44a   : > { %8423 = vst [vmem:[#allocation89_spill] sm:$0xff] %v6205_v42  ;;  %v1576_v57 = vadd.f32 %v1560_v33, %v1323_v14  ;;  %v1561_v1 = vadd.f32 %v1545_v21, %v1308_v17  ;;  %v6207_v10 = vpop.f32.mrf.mxu2  ;;  %vm8425_vm11 = vcmp.le.f32.partialorder %v8399_v44, 6.5  ;;  %v1702_v14 = vrot.slane %v8427_v11, 1 }
 0x44b   : > { %8424 = vst [vmem:[#allocation93_spill] sm:$0xff] %v6207_v10  ;;  %v8056_v0 = vrot.slane %v6207_v10, 7  ;;  %vm8430_vm7 = vcmp.le.f32.partialorder %v8402_v6, 6.5 }
 0x44c   : > { %v1764_v22 = vadd.f32 %v1748_v47, %v1576_v57  ;;  %v2001_v52 = vpop.f32.mrf.mxu0  ;;  %v1731_v47 = vsel %vm1394_vm5, %v1701_v25, %v1702_v14  ;;  %v3783_v25 = vld [vmem:[%s7937_s3 + $0x8] sm:$0xf]  ;;  %vm8431_vm4 = vmmov %vm8430_vm7 }
 0x44d   : > { %v1913_v26 = vpop.f32.mrf.mxu3  ;;  %v2040_v54 = vrot.slane %v2001_v52, 1  ;;  %v8428_v52 = vld [vmem:[#allocation97_spill] sm:$0xff]  ;;  %v1733_v57 = vsel %vm8419_vm8, %v1731_v47, 0.0  ;;  %v3792_v47 = vld [vmem:[%s7937_s3 + $0xc] sm:$0xf] }
 0x44e   : > { %v1968_v37 = vsel %vm8425_vm11, %v1913_v26, 0.0  ;;  %v1703_v33 = vrot.slane %v8428_v52, 1  ;;  %v8429_v26 = vld [vmem:[#allocation91_spill] sm:$0xff]  ;;  %v2453_v52 = vsel %vm1136_vm14, %v3783_v25, 0  ;;  %vm8432_vm11 = vmmov %vm8431_vm4  ;;  %v1749_v10 = vadd.f32 %v1733_v57, %v1561_v1 }
 0x44f   : > { %v6212_v55 = vadd.f32 %v1968_v37, %v1764_v22  ;;  %v6218_v61 = vsel %vm1394_vm5, %v8057_v29, %v2040_v54  ;;  %v1631_v37 = vadd.f32 %v8429_v26, %v1443_v43  ;;  %2462 = vmatpush.bf16.msrb.mxu3 %v2453_v52 }
 0x451   : > { %8426 = vst [vmem:[#allocation87_spill] sm:$0xff] %v6212_v55 }
 0x452   : > { %v1781_v17 = vpop.f32.mrf.mxu2 }
 0x453   : > { %v1820_v3 = vrot.slane %v1781_v17, 7  ;;  %v3774_v17 = vld [vmem:[%s7937_s3 + $0x4] sm:$0xf] }
 0x454   : > { %v2004_v21 = vpop.f32.mrf.mxu0  ;;  %v2383_v26 = vsel %vm1136_vm14, %v3774_v17, 0 }
 0x455   : > { %v1915_v23 = vpop.f32.mrf.mxu3  ;;  %v2041_v22 = vrot.slane %v2004_v21, 1  ;;  %v1849_v11 = vsel %vm1205_vm6, %v8056_v0, %v1820_v3  ;;  %2392 = vmatpush.bf16.msrb.mxu2 %v2383_v26  ;;  %v8439_v26 = vld [vmem:[#allocation80_spill] sm:$0xff] }
 0x456   : > { %v1851_v43 = vsel %vm8430_vm7, %v1849_v11, 0.0  ;;  %v1953_v29 = vsel %vm8431_vm4, %v1915_v23, 0.0  ;;  %v2587_v11 = vsel %vm1136_vm14, %v3792_v47, 0 }
 0x457   : > { %v2068_v21 = vsel %vm1394_vm5, %v2040_v54, %v2041_v22  ;;  %v1867_v0 = vsel %vm8421_vm10, %v1851_v43, 0.0  ;;  %2596 = vmatpush.bf16.msrb.mxu0 %v2587_v11  ;;  %v1969_v25 = vadd.f32 %v1953_v29, %v1749_v10  ;;  %v1730_v43 = vsel %vm1394_vm5, %v1702_v14, %v1703_v33  ;;  %v8434_v10 = vld [vmem:[#allocation48_spill] sm:$0xff]  ;;  %v8440_v11 = vld [vmem:[#allocation49_spill] sm:$0xff] }
 0x458   : > { %v2071_v55 = vsel %vm8432_vm11, %v2068_v21, 0.0  ;;  %v1883_v49 = vadd.f32 %v1867_v0, %v1631_v37  ;;  %v8433_v0 = vld [vmem:[#allocation36_spill] sm:$0xff]  ;;  %v1734_v1 = vsel %vm8301_vm3, %v1730_v43, 0.0  ;;  %vm8435_vm7 = vcmp.le.f32.partialorder %v8434_v10, 6.5 }
 0x459   : > { %v2087_v54 = vsel %vm8419_vm8, %v2071_v55, 0.0  ;;  %v1704_v55 = vrot.slane %v5822_v9, 1  ;;  %vm8436_vm10 = vcmp.ge.f32.partialorder %v8433_v0, 0.5  ;;  %vm8437_vm4 = vmmov %vm8435_vm7  ;;  %v1750_v9 = vadd.f32 %v1734_v1, %v5814_v38 }
 0x45a   : > { %v2103_v17 = vadd.f32 %v2087_v54, %v1883_v49  ;;  %v1784_v42 = vpop.f32.mrf.mxu2  ;;  %vm8438_vm11 = vmmov %vm8437_vm4  ;;  %vm8441_vm8 = vcmp.ge.f32.partialorder %v8440_v11, 0.5 }
 0x45b   : > { %v1821_v23 = vrot.slane %v1784_v42, 7  ;;  %v1729_v43 = vsel %vm1394_vm5, %v1703_v33, %v1704_v55 }
 0x45c   : > { %v2006_v6 = vpop.f32.mrf.mxu0  ;;  %v2119_v21 = vadd.f32 %v2103_v17, %v1969_v25 }
 0x45d   : > { %v1918_v44 = vpop.f32.mrf.mxu3  ;;  %v2042_v52 = vrot.slane %v2006_v6, 1  ;;  %v1848_v47 = vsel %vm1205_vm6, %v1820_v3, %v1821_v23 }
 0x45e   : > { %v2135_v57 = vmax.f32 %v2119_v21, 1e-06  ;;  %v1852_v49 = vsel %vm8435_vm7, %v1848_v47, 0.0  ;;  %v1954_v6 = vsel %vm8437_vm4, %v1918_v44, 0.0  ;;  %vm8442_vm7 = vcmp.ge.f32.partialorder %v5227_v46, 0.5 }
 0x45f   : > { %v2067_v29 = vsel %vm1394_vm5, %v2041_v22, %v2042_v52  ;;  %v1868_v42 = vsel %vm8436_vm10, %v1852_v49, 0.0  ;;  %v1310_v22 = vsel %vm8441_vm8, %v8439_v26, 0.0  ;;  %v1547_v54 = vsel %vm8442_vm7, %v5830_v2, 0.0  ;;  %v8448_v26 = vld [vmem:[#allocation98_spill] sm:$0xff] }
 0x460   : > { %v2072_v14 = vsel %vm8438_vm11, %v2067_v29, 0.0  ;;  %4054 = vrcp.f32 %v2135_v57  ;;  %v1884_v3 = vadd.f32 %v1868_v42, %v5817_v12  ;;  %v1970_v44 = vadd.f32 %v1954_v6, %v1750_v9  ;;  %vm8445_vm11 = vmmov %vm8442_vm7 }
 0x461   : > { %v2088_v37 = vsel %vm8301_vm3, %v2072_v14, 0.0  ;;  %v1563_v47 = vadd.f32 %v1547_v54, %v1310_v22  ;;  %vm8443_vm10 = vcmp.le.f32.partialorder %v5227_v46, 6.5  ;;  %v1705_v2 = vrot.slane %v5841_v48, 1 }
 0x462   : > { %v2104_v25 = vadd.f32 %v2088_v37, %v1884_v3  ;;  %v1786_v17 = vpop.f32.mrf.mxu2  ;;  %v1735_v42 = vsel %vm8443_vm10, %v1729_v43, 0.0  ;;  %vm8444_vm4 = vcmp.le.f32.partialorder %v8440_v11, 6.5 }
 0x463   : > { %v1822_v12 = vrot.slane %v1786_v17, 7  ;;  %vm8446_vm8 = vmmov %vm8444_vm4  ;;  %v1751_v48 = vadd.f32 %v1735_v42, %v1563_v47  ;;  %v1728_v43 = vsel %vm1394_vm5, %v1704_v55, %v1705_v2  ;;  %v3801_v42 = vld [vmem:[%s7937_s3 + $0x10] sm:$0xf] }
 0x464   : > { %v2009_v38 = vpop.f32.mrf.mxu0  ;;  %v2120_v1 = vadd.f32 %v2104_v25, %v1970_v44  ;;  %vm8447_vm7 = vmmov %vm8444_vm4 }
 0x465   : > { %v1920_v21 = vpop.f32.mrf.mxu3  ;;  %v2043_v49 = vrot.slane %v2009_v38, 1  ;;  %v1847_v29 = vsel %vm1205_vm6, %v1821_v23, %v1822_v12 }
 0x466   : > { %v4055_v14 = vpop.eup %4054  ;;  %v2136_v6 = vmax.f32 %v2120_v1, 1e-06  ;;  %v1853_v3 = vsel %vm8444_vm4, %v1847_v29, 0.0  ;;  %v1955_v37 = vsel %vm8446_vm8, %v1920_v21, 0.0  ;;  %vm8449_vm4 = vcmp.le.f32.partialorder %v8248_v15, 6.5 }
 0x467   : > { %v2066_v33 = vsel %vm1394_vm5, %v2042_v52, %v2043_v49  ;;  %v1869_v9 = vsel %vm8445_vm11, %v1853_v3, 0.0  ;;  %v2167_v44 = vmul.f32 %v4055_v14, %v2135_v57  ;;  %v1971_v25 = vadd.f32 %v1955_v37, %v1751_v48  ;;  %v8450_v37 = vld [vmem:[#allocation50_spill] sm:$0xff] }
 0x468   : > { %v2073_v23 = vsel %vm8447_vm7, %v2066_v33, 0.0  ;;  %4056 = vrcp.f32 %v2136_v6  ;;  %v1885_v22 = vadd.f32 %v1869_v9, %v8448_v26  ;;  %v1706_v33 = vrot.slane %v5871_v53, 1 }
 0x469   : > { %v2089_v54 = vsel %vm8443_vm10, %v2073_v23, 0.0  ;;  %v2183_v58 = vsub.f32 2.0, %v2167_v44  ;;  %v1736_v57 = vsel %vm8449_vm4, %v1728_v43, 0.0  ;;  %vm8451_vm11 = vcmp.le.f32.partialorder %v8450_v37, 6.5 }
 0x46a   : > { %v2105_v17 = vadd.f32 %v2089_v54, %v1885_v22  ;;  %v1789_v52 = vpop.f32.mrf.mxu2  ;;  %v2705_v53 = vsel %vm1136_vm14, %v3801_v42, 0  ;;  %vm8452_vm8 = vcmp.ge.f32.partialorder %v8248_v15, 0.5  ;;  %vm8453_vm7 = vmmov %vm8451_vm11  ;;  %v8459_v15 = vld [vmem:[#allocation19_spill] sm:$0xff] }
 0x46b   : > { %v1823_v38 = vrot.slane %v1789_v52, 7  ;;  %vm8454_vm10 = vmmov %vm8453_vm7  ;;  %2714 = vmatpush.bf16.msrb.mxu1 %v2705_v53  ;;  %v2199_v43 = vmul.f32 %v4055_v14, %v2183_v58 }
 0x46c   : > { %v2011_v21 = vpop.f32.mrf.mxu0  ;;  %v2121_v29 = vadd.f32 %v2105_v17, %v1971_v25  ;;  %v1752_v25 = vadd.f32 %v1736_v57, %v5864_v39  ;;  %v8455_v17 = vld [vmem:[#allocation81_spill] sm:$0xff] }
 0x46d   : > { %v1923_v1 = vpop.f32.mrf.mxu3  ;;  %v2044_v3 = vrot.slane %v2011_v21, 1  ;;  %v1846_v47 = vsel %vm1205_vm6, %v1822_v12, %v1823_v38 }
 0x46e   : > { %v4057_v9 = vpop.eup %4056  ;;  %v2137_v55 = vmax.f32 %v2121_v29, 1e-06  ;;  %v1854_v23 = vsel %vm8451_vm11, %v1846_v47, 0.0  ;;  %v1956_v48 = vsel %vm8453_vm7, %v1923_v1, 0.0  ;;  %vm8456_vm11 = vcmp.ge.f32.partialorder %v8247_v5, 0.5 }
 0x46f   : > { %v2065_v26 = vsel %vm1394_vm5, %v2043_v49, %v2044_v3  ;;  %v2168_v22 = vmul.f32 %v4057_v9, %v2136_v6  ;;  %v1870_v12 = vsel %vm8452_vm8, %v1854_v23, 0.0  ;;  %v1312_v6 = vsel %vm8456_vm11, %v8455_v17, 0.0 }
 0x470   : > { %v2074_v54 = vsel %vm8454_vm10, %v2065_v26, 0.0  ;;  %4058 = vrcp.f32 %v2137_v55  ;;  %v1886_v44 = vadd.f32 %v1870_v12, %v5866_v62  ;;  %vm8457_vm8 = vcmp.ge.f32.partialorder %v5235_v34, 0.5 }
 0x471   : > { %v2090_v49 = vsel %vm8449_vm4, %v2074_v54, 0.0  ;;  %v1549_v52 = vsel %vm8457_vm8, %v5879_v45, 0.0  ;;  %v2184_v1 = vsub.f32 2.0, %v2168_v22  ;;  %v1972_v21 = vadd.f32 %v1956_v48, %v1752_v25  ;;  %v8458_v54 = vld [vmem:[#allocation18_spill] sm:$0xff]  ;;  %vm8462_vm4 = vmmov %vm8457_vm8 }
 0x472   : > { %v2106_v29 = vadd.f32 %v2090_v49, %v1886_v44  ;;  %v1791_v47 = vpop.f32.mrf.mxu2  ;;  %v1727_v62 = vsel %vm1394_vm5, %v1705_v2, %v1706_v33  ;;  %v1565_v26 = vadd.f32 %v1549_v52, %v1312_v6  ;;  %v2215_v17 = vmul.f32 %v2199_v43, %v8458_v54 }
 0x473   : > { %v2200_v39 = vmul.f32 %v4057_v9, %v2184_v1  ;;  %v1824_v57 = vrot.slane %v1791_v47, 7  ;;  %vm8460_vm7 = vcmp.le.f32.partialorder %v5235_v34, 6.5  ;;  %v1707_v2 = vrot.slane %v5890_v31, 1  ;;  %v8465_v31 = vld [vmem:[#allocation99_spill] sm:$0xff] }
 0x474   : > { %v2014_v23 = vpop.f32.mrf.mxu0  ;;  %v2122_v53 = vadd.f32 %v2106_v29, %v1972_v21  ;;  %v1737_v58 = vsel %vm8460_vm7, %v1727_v62, 0.0  ;;  %vm8461_vm10 = vcmp.le.f32.partialorder %v8247_v5, 6.5  ;;  %v1708_v54 = vrot.slane %v5920_v50, 1 }
 0x475   : > { %v1925_v42 = vpop.f32.mrf.mxu3  ;;  %v2045_v12 = vrot.slane %v2014_v23, 1  ;;  %v2216_v37 = vmul.f32 %v2200_v39, %v8459_v15  ;;  %v1845_v45 = vsel %vm1205_vm6, %v1823_v38, %v1824_v57  ;;  %vm8463_vm11 = vmmov %vm8461_vm10  ;;  %v1753_v6 = vadd.f32 %v1737_v58, %v1565_v26 }
 0x476   : > { %v4059_v14 = vpop.eup %4058  ;;  %v2138_v9 = vmax.f32 %v2122_v53, 1e-06  ;;  %v1855_v22 = vsel %vm8461_vm10, %v1845_v45, 0.0  ;;  %v1957_v38 = vsel %vm8463_vm11, %v1925_v42, 0.0  ;;  %vm8464_vm8 = vmmov %vm8461_vm10  ;;  %v1726_v21 = vsel %vm1394_vm5, %v1706_v33, %v1707_v2  ;;  %v8467_v45 = vld [vmem:[#allocation52_spill] sm:$0xff] }
 0x477   : > { %v2064_v48 = vsel %vm1394_vm5, %v2044_v3, %v2045_v12  ;;  %v6347_v44 = vpack.c.bf16 %v2216_v37, %v2215_v17  ;;  %v1871_v15 = vsel %vm8462_vm4, %v1855_v22, 0.0  ;;  %v2169_v43 = vmul.f32 %v4059_v14, %v2137_v55 }
 0x478   : > { %v2075_v25 = vsel %vm8464_vm8, %v2064_v48, 0.0  ;;  %4060 = vrcp.f32 %v2138_v9  ;;  %v1887_v49 = vadd.f32 %v1871_v15, %v8465_v31  ;;  %v1973_v3 = vadd.f32 %v1957_v38, %v1753_v6  ;;  %v8472_v31 = vld [vmem:[#allocation83_spill] sm:$0xff] }
 0x479   : > { %v2091_v52 = vsel %vm8460_vm7, %v2075_v25, 0.0  ;;  %3766 = vmatmul.msk.bf16.vlgmr.msra.gmra.mxu1 %vm88_vm0, %v6347_v44  ;;  %3775 = vmatmul.msk.bf16.vlgmr.msrb.gmra.mxu2 %vm88_vm0, %v6347_v44  ;;  %v2185_v42 = vsub.f32 2.0, %v2169_v43  ;;  %vm8466_vm10 = vcmp.le.f32.partialorder %v5239_v7, 6.5  ;;  %vm8468_vm4 = vcmp.le.f32.partialorder %v8467_v45, 6.5 }
 0x47a   : > { %v2107_v37 = vadd.f32 %v2091_v52, %v1887_v49  ;;  %3784 = vmatmul.msk.bf16.vlgmr.msrb.gmra.mxu3 %vm88_vm0, %v6347_v44  ;;  %3793 = vmatmul.msk.bf16.vlgmr.msrb.gmra.mxu0 %vm88_vm0, %v6347_v44  ;;  %v1794_v1 = vpop.f32.mrf.mxu2  ;;  %v1738_v26 = vsel %vm8466_vm10, %v1726_v21, 0.0  ;;  %vm8469_vm11 = vcmp.ge.f32.partialorder %v5239_v7, 0.5  ;;  %vm8470_vm8 = vmmov %vm8468_vm4 }
 0x47b   : > { %v1825_v29 = vrot.slane %v1794_v1, 7  ;;  %vm8471_vm7 = vmmov %vm8468_vm4  ;;  %v1754_v38 = vadd.f32 %v1738_v26, %v5913_v63  ;;  %v2201_v49 = vmul.f32 %v4059_v14, %v2185_v42 }
 0x47c   : > { %v2016_v47 = vpop.f32.mrf.mxu0  ;;  %v2123_v62 = vadd.f32 %v2107_v37, %v1973_v3 }
 0x47d   : > { %v1928_v55 = vpop.f32.mrf.mxu3  ;;  %v2046_v39 = vrot.slane %v2016_v47, 1  ;;  %v1844_v23 = vsel %vm1205_vm6, %v1824_v57, %v1825_v29 }
 0x47e   : > { %v4061_v53 = vpop.eup %4060  ;;  %v2139_v17 = vmax.f32 %v2123_v62, 1e-06  ;;  %v1856_v58 = vsel %vm8468_vm4, %v1844_v23, 0.0  ;;  %v1958_v57 = vsel %vm8470_vm8, %v1928_v55, 0.0  ;;  %vm8473_vm4 = vcmp.ge.f32.partialorder %v8246_v4, 0.5  ;;  %v8475_v23 = vld [vmem:[#allocation23_spill] sm:$0xff] }
 0x47f   : > { %v2063_v33 = vsel %vm1394_vm5, %v2045_v12, %v2046_v39  ;;  %v2170_v22 = vmul.f32 %v4061_v53, %v2138_v9  ;;  %v1872_v48 = vsel %vm8469_vm11, %v1856_v58, 0.0  ;;  %v1314_v12 = vsel %vm8473_vm4, %v8472_v31, 0.0  ;;  %v8476_v58 = vld [vmem:[#allocation22_spill] sm:$0xff] }
 0x480   : > { %v2076_v15 = vsel %vm8471_vm7, %v2063_v33, 0.0  ;;  %4062 = vrcp.f32 %v2139_v17  ;;  %v1888_v50 = vadd.f32 %v1872_v48, %v5915_v35  ;;  %vm8474_vm11 = vcmp.ge.f32.partialorder %v5243_v32, 0.5 }
 0x481   : > { %v2092_v25 = vsel %vm8466_vm10, %v2076_v15, 0.0  ;;  %v1551_v9 = vsel %vm8474_vm11, %v5928_v36, 0.0  ;;  %v2186_v6 = vsub.f32 2.0, %v2170_v22  ;;  %v1974_v52 = vadd.f32 %v1958_v57, %v1754_v38  ;;  %vm8478_vm7 = vmmov %vm8474_vm11 }
 0x482   : > { %v2108_v43 = vadd.f32 %v2092_v25, %v1888_v50  ;;  %v1796_v3 = vpop.f32.mrf.mxu2  ;;  %v1725_v35 = vsel %vm1394_vm5, %v1707_v2, %v1708_v54  ;;  %v1567_v55 = vadd.f32 %v1551_v9, %v1314_v12  ;;  %v2217_v26 = vmul.f32 %v2201_v49, %v8475_v23  ;;  %v8482_v23 = vld [vmem:[#allocation54_spill] sm:$0xff] }
 0x483   : > { %v2202_v63 = vmul.f32 %v4061_v53, %v2186_v6  ;;  %v1826_v37 = vrot.slane %v1796_v3, 7  ;;  %v1739_v14 = vsel %vm1071_vm13, %v1725_v35, 0.0  ;;  %v1709_v2 = vrot.slane %v5939_v59, 1 }
 0x484   : > { %v2019_v21 = vpop.f32.mrf.mxu0  ;;  %v2124_v47 = vadd.f32 %v2108_v43, %v1974_v52  ;;  %vm8477_vm8 = vcmp.le.f32.partialorder %v8246_v4, 6.5  ;;  %v1755_v38 = vadd.f32 %v1739_v14, %v1567_v55  ;;  %v1710_v55 = vrot.slane %v5971_v51, 1 }
 0x485   : > { %v1930_v1 = vpop.f32.mrf.mxu3  ;;  %v2047_v62 = vrot.slane %v2019_v21, 1  ;;  %v2218_v33 = vmul.f32 %v2202_v63, %v8476_v58  ;;  %v1843_v36 = vsel %vm1205_vm6, %v1825_v29, %v1826_v37  ;;  %vm8479_vm10 = vmmov %vm8477_vm8  ;;  %v1724_v9 = vsel %vm1394_vm5, %v1708_v54, %v1709_v2  ;;  %v8481_v63 = vld [vmem:[#allocation38_spill] sm:$0xff] }
 0x486   : > { %v4063_v42 = vpop.eup %4062  ;;  %v2140_v53 = vmax.f32 %v2124_v47, 1e-06  ;;  %v1857_v22 = vsel %vm8477_vm8, %v1843_v36, 0.0  ;;  %v1959_v29 = vsel %vm8479_vm10, %v1930_v1, 0.0  ;;  %vm8480_vm4 = vmmov %vm8477_vm8  ;;  %v1740_v1 = vsel %vm1072_vm9, %v1724_v9, 0.0 }
 0x487   : > { %v2062_v48 = vsel %vm1394_vm5, %v2046_v39, %v2047_v62  ;;  %v6406_v57 = vpack.c.bf16 %v2218_v33, %v2217_v26  ;;  %v1873_v15 = vsel %vm8478_vm7, %v1857_v22, 0.0  ;;  %v2171_v31 = vmul.f32 %v4063_v42, %v2139_v17 }
 0x488   : > { %v2077_v50 = vsel %vm8480_vm4, %v2062_v48, 0.0  ;;  %4064 = vrcp.f32 %v2140_v53  ;;  %v1889_v59 = vadd.f32 %v1873_v15, %v5934_v56  ;;  %v1975_v39 = vadd.f32 %v1959_v29, %v1755_v38  ;;  %v8487_v48 = vld [vmem:[#allocation88_spill] sm:$0xff] }
 0x489   : > { %v2093_v25 = vsel %vm1071_vm13, %v2077_v50, 0.0  ;;  %3767 = vmatmul.msk.bf16.gmra.mxu1 %vm88_vm0, %v6406_v57  ;;  %3776 = vmatmul.msk.bf16.gmra.mxu2 %vm88_vm0, %v6406_v57  ;;  %v2187_v3 = vsub.f32 2.0, %v2171_v31  ;;  %vm8483_vm11 = vcmp.le.f32.partialorder %v8482_v23, 6.5  ;;  %vm8484_vm8 = vcmp.ge.f32.partialorder %v8481_v63, 0.5 }
 0x48a   : > { %v2109_v12 = vadd.f32 %v2093_v25, %v1889_v59  ;;  %3785 = vmatmul.msk.bf16.gmra.mxu3 %vm88_vm0, %v6406_v57  ;;  %3794 = vmatmul.msk.bf16.gmra.mxu0 %vm88_vm0, %v6406_v57  ;;  %v1799_v56 = vpop.f32.mrf.mxu2  ;;  %vm8485_vm7 = vmmov %vm8483_vm11  ;;  %v1756_v14 = vadd.f32 %v1740_v1, %v5962_v19  ;;  %vm8488_vm4 = vcmp.ge.f32.partialorder %v8245_v41, 0.5 }
 0x48b   : > { %v1827_v49 = vrot.slane %v1799_v56, 7  ;;  %vm8486_vm10 = vmmov %vm8485_vm7  ;;  %v2203_v15 = vmul.f32 %v4063_v42, %v2187_v3 }
 0x48c   : > { %v2021_v6 = vpop.f32.mrf.mxu0  ;;  %v2125_v52 = vadd.f32 %v2109_v12, %v1975_v39 }
 0x48d   : > { %v1933_v17 = vpop.f32.mrf.mxu3  ;;  %v2048_v43 = vrot.slane %v2021_v6, 1  ;;  %v1842_v35 = vsel %vm1205_vm6, %v1826_v37, %v1827_v49 }
 0x48e   : > { %v4065_v21 = vpop.eup %4064  ;;  %v2141_v47 = vmax.f32 %v2125_v52, 1e-06  ;;  %v1858_v26 = vsel %vm8483_vm11, %v1842_v35, 0.0  ;;  %v1960_v37 = vsel %vm8485_vm7, %v1933_v17, 0.0  ;;  %vm8489_vm11 = vcmp.ge.f32.partialorder %v8243_v40, 0.5  ;;  %v8490_v17 = vld [vmem:[#allocation28_spill] sm:$0xff] }
 0x48f   : > { %v2061_v54 = vsel %vm1394_vm5, %v2047_v62, %v2048_v43  ;;  %v2172_v58 = vmul.f32 %v4065_v21, %v2140_v53  ;;  %v1874_v33 = vsel %vm8484_vm8, %v1858_v26, 0.0  ;;  %v1316_v62 = vsel %vm8488_vm4, %v8487_v48, 0.0  ;;  %v8491_v52 = vld [vmem:[#allocation27_spill] sm:$0xff]  ;;  %vm8493_vm7 = vmmov %vm8489_vm11 }
 0x490   : > { %v2078_v36 = vsel %vm8486_vm10, %v2061_v54, 0.0  ;;  %4066 = vrcp.f32 %v2141_v47  ;;  %v1890_v51 = vadd.f32 %v1874_v33, %v5964_v18  ;;  %v1553_v53 = vsel %vm8489_vm11, %v5979_v13, 0.0 }
 0x491   : > { %v2094_v22 = vsel %vm1072_vm9, %v2078_v36, 0.0  ;;  %v2188_v29 = vsub.f32 2.0, %v2172_v58  ;;  %v1976_v50 = vadd.f32 %v1960_v37, %v1756_v14  ;;  %v1723_v18 = vsel %vm1394_vm5, %v1709_v2, %v1710_v55 }
 0x492   : > { %v2110_v59 = vadd.f32 %v2094_v22, %v1890_v51  ;;  %v1801_v38 = vpop.f32.mrf.mxu2  ;;  %v1569_v12 = vadd.f32 %v1553_v53, %v1316_v62  ;;  %v2219_v6 = vmul.f32 %v2203_v15, %v8490_v17  ;;  %v1741_v42 = vsel %vm1073_vm15, %v1723_v18, 0.0 }
 0x493   : > { %v2204_v19 = vmul.f32 %v4065_v21, %v2188_v29  ;;  %v1828_v25 = vrot.slane %v1801_v38, 7  ;;  %v1711_v2 = vrot.slane %v5990_v24, 1  ;;  %vm8492_vm8 = vcmp.le.f32.partialorder %v8245_v41, 6.5 }
 0x494   : > { %v2024_v39 = vpop.f32.mrf.mxu0  ;;  %v2126_v56 = vadd.f32 %v2110_v59, %v1976_v50  ;;  %vm8494_vm10 = vmmov %vm8492_vm8  ;;  %v1757_v37 = vadd.f32 %v1741_v42, %v1569_v12  ;;  %v1640_v50 = vadd.f32 %v5966_v30, %v6011_v16 }
 0x495   : > { %v1935_v31 = vpop.f32.mrf.mxu3  ;;  %v2049_v9 = vrot.slane %v2024_v39, 1  ;;  %v2220_v35 = vmul.f32 %v2204_v19, %v8491_v52  ;;  %v1841_v13 = vsel %vm1205_vm6, %v1827_v49, %v1828_v25  ;;  %vm8495_vm4 = vmmov %vm8492_vm8  ;;  %v1722_v22 = vsel %vm1394_vm5, %v1710_v55, %v1711_v2  ;;  %v8496_v55 = vld [vmem:[#allocation56_spill] sm:$0xff] }
 0x496   : > { %v4067_v3 = vpop.eup %4066  ;;  %v2142_v1 = vmax.f32 %v2126_v56, 1e-06  ;;  %v1859_v21 = vsel %vm8492_vm8, %v1841_v13, 0.0  ;;  %v1961_v49 = vsel %vm8494_vm10, %v1935_v31, 0.0  ;;  %v1742_v38 = vsel %vm8338_vm1, %v1722_v22, 0.0 }
 0x497   : > { %v2060_v26 = vsel %vm1394_vm5, %v2048_v43, %v2049_v9  ;;  %v6465_v54 = vpack.c.bf16 %v2220_v35, %v2219_v6  ;;  %v1875_v58 = vsel %vm8493_vm7, %v1859_v21, 0.0  ;;  %v2173_v51 = vmul.f32 %v4067_v3, %v2141_v47 }
 0x498   : > { %v2079_v33 = vsel %vm8495_vm4, %v2060_v26, 0.0  ;;  %4068 = vrcp.f32 %v2142_v1  ;;  %v1891_v24 = vadd.f32 %v1875_v58, %v5985_v8  ;;  %v1977_v43 = vadd.f32 %v1961_v49, %v1757_v37 }
 0x499   : > { %v2095_v36 = vsel %vm1073_vm15, %v2079_v33, 0.0  ;;  %3768 = vmatmul.msk.bf16.gmra.mxu1 %vm88_vm0, %v6465_v54  ;;  %3777 = vmatmul.msk.bf16.gmra.mxu2 %vm88_vm0, %v6465_v54  ;;  %v2189_v29 = vsub.f32 2.0, %v2173_v51  ;;  %v1712_v19 = vrot.slane %v6022_v60, 1  ;;  %vm8497_vm11 = vcmp.le.f32.partialorder %v8496_v55, 6.5  ;;  %v8501_v60 = vld [vmem:[#allocation100_spill] sm:$0xff] }
 0x49a   : > { %v2111_v14 = vadd.f32 %v2095_v36, %v1891_v24  ;;  %3786 = vmatmul.msk.bf16.gmra.mxu3 %vm88_vm0, %v6465_v54  ;;  %3795 = vmatmul.msk.bf16.gmra.mxu0 %vm88_vm0, %v6465_v54  ;;  %v1804_v8 = vpop.f32.mrf.mxu2  ;;  %vm8498_vm8 = vcmp.ge.f32.partialorder %v8244_v27, 0.5  ;;  %vm8499_vm7 = vmmov %vm8497_vm11  ;;  %v1758_v6 = vadd.f32 %v1742_v38, %v8501_v60  ;;  %v8502_v36 = vld [vmem:[#allocation32_spill] sm:$0xff] }
 0x49b   : > { %v1829_v48 = vrot.slane %v1804_v8, 7  ;;  %vm8500_vm10 = vmmov %vm8499_vm7  ;;  %v2205_v35 = vmul.f32 %v4067_v3, %v2189_v29  ;;  %v1721_v21 = vsel %vm1394_vm5, %v1711_v2, %v1712_v19  ;;  %v8504_v8 = vld [vmem:[#allocation41_spill] sm:$0xff] }
 0x49c   : > { %v2026_v62 = vpop.f32.mrf.mxu0  ;;  %v2127_v53 = vadd.f32 %v2111_v14, %v1977_v43  ;;  %v8503_v43 = vld [vmem:[#allocation31_spill] sm:$0xff]  ;;  %v1743_v22 = vsel %vm8346_vm2, %v1721_v21, 0.0  ;;  %v8506_v29 = vld [vmem:[#allocation57_spill] sm:$0xff] }
 0x49d   : > { %v1938_v47 = vpop.f32.mrf.mxu3  ;;  %v2050_v15 = vrot.slane %v2026_v62, 1  ;;  %v1840_v59 = vsel %vm1205_vm6, %v1828_v25, %v1829_v48  ;;  %v2221_v51 = vmul.f32 %v2205_v35, %v8502_v36  ;;  %v8505_v62 = vld [vmem:[#allocation104_spill] sm:$0xff]  ;;  %vm8507_vm4 = vcmp.le.f32.partialorder %v8506_v29, 6.5  ;;  %v8513_v21 = vld [vmem:[#allocation105_spill] sm:$0xff] }
 0x49e   : > { %v4069_v18 = vpop.eup %4068  ;;  %v2143_v31 = vmax.f32 %v2127_v53, 1e-06  ;;  %v1860_v39 = vsel %vm8497_vm11, %v1840_v59, 0.0  ;;  %v1962_v16 = vsel %vm8499_vm7, %v1938_v47, 0.0  ;;  %v1713_v53 = vrot.slane %v8505_v62, 1  ;;  %vm8510_vm7 = vmmov %vm8507_vm4 }
 0x49f   : > { %v2059_v12 = vsel %vm1394_vm5, %v2049_v9, %v2050_v15  ;;  %v2174_v56 = vmul.f32 %v4069_v18, %v2142_v1  ;;  %v1876_v30 = vsel %vm8498_vm8, %v1860_v39, 0.0  ;;  %v1978_v9 = vadd.f32 %v1962_v16, %v1758_v6  ;;  %vm8509_vm8 = vmmov %vm8507_vm4 }
 0x4a0   : > { %v2080_v25 = vsel %vm8500_vm10, %v2059_v12, 0.0  ;;  %4070 = vrcp.f32 %v2143_v31  ;;  %v1892_v17 = vadd.f32 %v1876_v30, %v1640_v50  ;;  %vm8508_vm11 = vcmp.ge.f32.partialorder %v8504_v8, 0.5  ;;  %v8511_v12 = vld [vmem:[#allocation103_spill] sm:$0xff]  ;;  %v8512_v30 = vld [vmem:[#allocation102_spill] sm:$0xff] }
 0x4a1   : > { %v2096_v52 = vsel %vm8338_vm1, %v2080_v25, 0.0  ;;  %v2190_v13 = vsub.f32 2.0, %v2174_v56  ;;  %v1759_v16 = vadd.f32 %v1743_v22, %v8512_v30 }
 0x4a2   : > { %v2112_v42 = vadd.f32 %v2096_v52, %v1892_v17  ;;  %v1806_v1 = vpop.f32.mrf.mxu2  ;;  %v1720_v52 = vsel %vm1394_vm5, %v1712_v19, %v1713_v53  ;;  %v8517_v19 = vld [vmem:[#allocation58_spill] sm:$0xff] }
 0x4a3   : > { %v2206_v26 = vmul.f32 %v4069_v18, %v2190_v13  ;;  %v1830_v58 = vrot.slane %v1806_v1, 7  ;;  %v1744_v36 = vsel %vm1076_vm12, %v1720_v52, 0.0  ;;  %vm8518_vm10 = vcmp.le.f32.partialorder %v8517_v19, 6.5 }
 0x4a4   : > { %v2029_v33 = vpop.f32.mrf.mxu0  ;;  %v2128_v24 = vadd.f32 %v2112_v42, %v1978_v9 }
 0x4a5   : > { %v1940_v49 = vpop.f32.mrf.mxu3  ;;  %v2051_v37 = vrot.slane %v2029_v33, 1  ;;  %v2222_v14 = vmul.f32 %v2206_v26, %v8503_v43  ;;  %v1839_v3 = vsel %vm1205_vm6, %v1829_v48, %v1830_v58  ;;  %v8514_v26 = vld [vmem:[#allocation101_spill] sm:$0xff]  ;;  %v8516_v43 = vld [vmem:[#allocation108_spill] sm:$0xff] }
 0x4a6   : > { %v4071_v47 = vpop.eup %4070  ;;  %v2144_v2 = vmax.f32 %v2128_v24, 1e-06  ;;  %v1861_v50 = vsel %vm8507_vm4, %v1839_v3, 0.0  ;;  %v1963_v48 = vsel %vm8509_vm8, %v1940_v49, 0.0  ;;  %v1642_v49 = vadd.f32 %v8514_v26, %v8513_v21  ;;  %v8515_v24 = vld [vmem:[#allocation42_spill] sm:$0xff]  ;;  %vm8521_vm8 = vmmov %vm8518_vm10  ;;  %v8524_v26 = vld [vmem:[#allocation20_spill] sm:$0xff] }
 0x4a7   : > { %v2058_v59 = vsel %vm1394_vm5, %v2050_v15, %v2051_v37  ;;  %v6519_v38 = vpack.c.bf16 %v2222_v14, %v2221_v51  ;;  %v1877_v18 = vsel %vm8508_vm11, %v1861_v50, 0.0  ;;  %v2175_v15 = vmul.f32 %v4071_v47, %v2143_v31  ;;  %vm8520_vm11 = vmmov %vm8518_vm10 }
 0x4a8   : > { %v2081_v39 = vsel %vm8510_vm7, %v2058_v59, 0.0  ;;  %4072 = vrcp.f32 %v2144_v2  ;;  %v1893_v56 = vadd.f32 %v1877_v18, %v8511_v12  ;;  %v1979_v17 = vadd.f32 %v1963_v48, %v1759_v16 }
 0x4a9   : > { %v2097_v25 = vsel %vm8346_vm2, %v2081_v39, 0.0  ;;  %3769 = vmatmul.msk.bf16.gmra.mxu1 %vm88_vm0, %v6519_v38  ;;  %3778 = vmatmul.msk.bf16.gmra.mxu2 %vm88_vm0, %v6519_v38  ;;  %v2191_v1 = vsub.f32 2.0, %v2175_v15  ;;  %v1714_v14 = vrot.slane %v8516_v43, 1  ;;  %vm8519_vm4 = vcmp.ge.f32.partialorder %v8515_v24, 0.5  ;;  %v8522_v39 = vld [vmem:[#allocation106_spill] sm:$0xff]  ;;  %v8527_v43 = vld [vmem:[#allocation84_spill] sm:$0xff] }
 0x4aa   : > { %v2113_v60 = vadd.f32 %v2097_v25, %v1893_v56  ;;  %3787 = vmatmul.msk.bf16.gmra.mxu3 %vm88_vm0, %v6519_v38  ;;  %3796 = vmatmul.msk.bf16.gmra.mxu0 %vm88_vm0, %v6519_v38  ;;  %v1809_v6 = vpop.f32.mrf.mxu2  ;;  %v1760_v12 = vadd.f32 %v1744_v36, %v8522_v39 }
 0x4ab   : > { %v1831_v35 = vrot.slane %v1809_v6, 7  ;;  %v2207_v30 = vmul.f32 %v4071_v47, %v2191_v1  ;;  %v1719_v15 = vsel %vm1394_vm5, %v1713_v53, %v1714_v14  ;;  %v8525_v1 = vld [vmem:[#allocation43_spill] sm:$0xff] }
 0x4ac   : > { %v2031_v13 = vpop.f32.mrf.mxu0  ;;  %v2129_v9 = vadd.f32 %v2113_v60, %v1979_v17  ;;  %vm8526_vm7 = vcmp.le.f32.partialorder %v8525_v1, 6.5 }
 0x4ad   : > { %v1943_v31 = vpop.f32.mrf.mxu3  ;;  %v2052_v42 = vrot.slane %v2031_v13, 1  ;;  %v1838_v33 = vsel %vm1205_vm6, %v1830_v58, %v1831_v35 }
 0x4ae   : > { %v4073_v51 = vpop.eup %4072  ;;  %v2145_v3 = vmax.f32 %v2129_v9, 1e-06  ;;  %v1862_v22 = vsel %vm8518_vm10, %v1838_v33, 0.0  ;;  %v1964_v58 = vsel %vm8520_vm11, %v1943_v31, 0.0  ;;  %v8523_v9 = vld [vmem:[#allocation21_spill] sm:$0xff]  ;;  %v1745_v33 = vsel %vm8526_vm7, %v1719_v15, 0.0 }
 0x4af   : > { %v2057_v62 = vsel %vm1394_vm5, %v2051_v37, %v2052_v42  ;;  %v2176_v50 = vmul.f32 %v4073_v51, %v2144_v2  ;;  %v1878_v59 = vsel %vm8519_vm4, %v1862_v22, 0.0  ;;  %v1980_v37 = vadd.f32 %v1964_v58, %v1760_v12  ;;  %v8534_v12 = vld [vmem:[#allocation109_spill] sm:$0xff] }
 0x4b0   : > { %v2082_v18 = vsel %vm8521_vm8, %v2057_v62, 0.0  ;;  %4074 = vrcp.f32 %v2145_v3  ;;  %v1894_v48 = vadd.f32 %v1878_v59, %v1642_v49  ;;  %v2223_v21 = vmul.f32 %v2207_v30, %v8523_v9 }
 0x4b1   : > { %v2098_v56 = vsel %vm1076_vm12, %v2082_v18, 0.0  ;;  %v2192_v16 = vsub.f32 2.0, %v2176_v50  ;;  %v1715_v22 = vrot.slane %v8527_v43, 1  ;;  %vm8530_vm4 = vcmp.ge.f32.partialorder %v8525_v1, 0.5  ;;  %v8538_v43 = vld [vmem:[#allocation107_spill] sm:$0xff] }
 0x4b2   : > { %v2114_v2 = vadd.f32 %v2098_v56, %v1894_v48  ;;  %v1811_v25 = vpop.f32.mrf.mxu2  ;;  %v8533_v48 = vld [vmem:[#allocation110_spill] sm:$0xff]  ;;  %v1761_v56 = vadd.f32 %v1745_v33, %v8534_v12  ;;  %v8537_v33 = vld [vmem:[#allocation79_spill] sm:$0xff] }
 0x4b3   : > { %v2208_v17 = vmul.f32 %v4073_v51, %v2192_v16  ;;  %v1832_v60 = vrot.slane %v1811_v25, 7  ;;  %v8528_v51 = vld [vmem:[#allocation59_spill] sm:$0xff]  ;;  %v1718_v25 = vsel %vm1394_vm5, %v1714_v14, %v1715_v22 }
 0x4b4   : > { %v2034_v52 = vpop.f32.mrf.mxu0  ;;  %v2130_v31 = vadd.f32 %v2114_v2, %v1980_v37  ;;  %vm8529_vm10 = vcmp.le.f32.partialorder %v8528_v51, 6.5 }
 0x4b5   : > { %v1945_v6 = vpop.f32.mrf.mxu3  ;;  %v2053_v13 = vrot.slane %v2034_v52, 1  ;;  %v2224_v49 = vmul.f32 %v2208_v17, %v8524_v26  ;;  %v1837_v47 = vsel %vm1205_vm6, %v1831_v35, %v1832_v60  ;;  %vm8531_vm11 = vmmov %vm8529_vm10 }
 0x4b6   : > { %v4075_v36 = vpop.eup %4074  ;;  %v2146_v53 = vmax.f32 %v2130_v31, 1e-06  ;;  %v1863_v62 = vsel %vm8529_vm10, %v1837_v47, 0.0  ;;  %v1965_v35 = vsel %vm8531_vm11, %v1945_v6, 0.0  ;;  %vm8532_vm8 = vmmov %vm8529_vm10 }
 0x4b7   : > { %v2056_v50 = vsel %vm1394_vm5, %v2052_v42, %v2053_v13  ;;  %v6574_v59 = vpack.c.bf16 %v2224_v49, %v2223_v21  ;;  %v1879_v58 = vsel %vm8530_vm4, %v1863_v62, 0.0  ;;  %v2177_v42 = vmul.f32 %v4075_v36, %v2145_v3  ;;  %v8535_v21 = vld [vmem:[#allocation44_spill] sm:$0xff] }
 0x4b8   : > { %v2083_v18 = vsel %vm8532_vm8, %v2056_v50, 0.0  ;;  %4076 = vrcp.f32 %v2146_v53  ;;  %v1895_v39 = vadd.f32 %v1879_v58, %v8533_v48  ;;  %v1981_v16 = vadd.f32 %v1965_v35, %v1761_v56  ;;  %v8539_v50 = vld [vmem:[#allocation60_spill] sm:$0xff]  ;;  %v8545_v56 = vld [vmem:[#allocation82_spill] sm:$0xff] }
 0x4b9   : > { %v2099_v30 = vsel %vm8526_vm7, %v2083_v18, 0.0  ;;  %3770 = vmatmul.msk.bf16.gmra.mxu1 %vm88_vm0, %v6574_v59  ;;  %3779 = vmatmul.msk.bf16.gmra.mxu2 %vm88_vm0, %v6574_v59  ;;  %v2193_v31 = vsub.f32 2.0, %v2177_v42  ;;  %vm8536_vm10 = vcmp.le.f32.partialorder %v8535_v21, 6.5  ;;  %v1644_v62 = vadd.f32 %v8538_v43, %v8537_v33  ;;  %v8549_v43 = vld [vmem:[#allocation62_spill] sm:$0xff] }
 0x4ba   : > { %v2115_v37 = vadd.f32 %v2099_v30, %v1895_v39  ;;  %3788 = vmatmul.msk.bf16.gmra.mxu3 %vm88_vm0, %v6574_v59  ;;  %3797 = vmatmul.msk.bf16.gmra.mxu0 %vm88_vm0, %v6574_v59  ;;  %v1814_v2 = vpop.f32.mrf.mxu2  ;;  %v1746_v26 = vsel %vm8536_vm10, %v1718_v25, 0.0  ;;  %v8540_v58 = vmov %v8539_v50  ;;  %vm8541_vm4 = vcmp.le.f32.partialorder %v8539_v50, 6.5  ;;  %v8552_v50 = vld [vmem:[#allocation111_spill] sm:$0xff] }
 0x4bb   : > { %v1833_v15 = vrot.slane %v1814_v2, 7  ;;  %vm8542_vm11 = vcmp.ge.f32.partialorder %v8535_v21, 0.5  ;;  %vm8543_vm8 = vmmov %vm8541_vm4  ;;  %v1762_v30 = vadd.f32 %v1746_v26, %v8545_v56 }
 0x4bc   : > { %v2036_v17 = vpop.f32.mrf.mxu0  ;;  %v2131_v6 = vadd.f32 %v2115_v37, %v1981_v16  ;;  %vm8544_vm7 = vmmov %vm8541_vm4  ;;  %v2209_v16 = vmul.f32 %v4075_v36, %v2193_v31 }
 0x4bd   : > { %v1948_v3 = vpop.f32.mrf.mxu3  ;;  %v2054_v52 = vrot.slane %v2036_v17, 1  ;;  %v1836_v9 = vsel %vm1205_vm6, %v1832_v60, %v1833_v15 }
 0x4be   : > { %v4077_v49 = vpop.eup %4076  ;;  %v2147_v47 = vmax.f32 %v2131_v6, 1e-06  ;;  %v1864_v14 = vsel %vm8541_vm4, %v1836_v9, 0.0  ;;  %v1966_v60 = vsel %vm8543_vm8, %v1948_v3, 0.0  ;;  %v8548_v9 = vrot.slane %v6167_v28, 1 }
 0x4bf   : > { %v2055_v35 = vsel %vm1394_vm5, %v2053_v13, %v2054_v52  ;;  %v2178_v18 = vmul.f32 %v4077_v49, %v2146_v53  ;;  %v1880_v48 = vsel %vm8542_vm11, %v1864_v14, 0.0  ;;  %v8546_v13 = vld [vmem:[#allocation86_spill] sm:$0xff]  ;;  %v1982_v25 = vadd.f32 %v1966_v60, %v1762_v30  ;;  %v8556_v60 = vld [vmem:[#allocation25_spill] sm:$0xff] }
 0x4c0   : > { %v2084_v39 = vsel %vm8544_vm7, %v2055_v35, 0.0  ;;  %4078 = vrcp.f32 %v2147_v47  ;;  %v1896_v12 = vadd.f32 %v1880_v48, %v1644_v62  ;;  %v8547_v53 = vrot.slane %v8546_v13, 1  ;;  %v8551_v62 = vld [vmem:[#allocation89_spill] sm:$0xff]  ;;  %v8555_v48 = vld [vmem:[#allocation26_spill] sm:$0xff] }
 0x4c1   : > { %v2100_v42 = vsel %vm8536_vm10, %v2084_v39, 0.0  ;;  %v2194_v37 = vsub.f32 2.0, %v2178_v18  ;;  %v2070_v33 = vsel %vm1394_vm5, %v2054_v52, %v8548_v9  ;;  %vm8550_vm4 = vcmp.le.f32.partialorder %v8549_v43, 6.5  ;;  %v8553_v35 = vld [vmem:[#allocation45_spill] sm:$0xff] }
 0x4c2   : > { %v1717_v2 = vsel %vm1394_vm5, %v1715_v22, %v8547_v53  ;;  %v2116_v17 = vadd.f32 %v2100_v42, %v1896_v12  ;;  %v1816_v3 = vpop.f32.mrf.mxu2  ;;  %v2086_v36 = vsel %vm8550_vm4, %v6218_v61, 0.0  ;;  %v1646_v14 = vadd.f32 %v8552_v50, %v8551_v62  ;;  %v8557_v39 = vld [vmem:[#allocation93_spill] sm:$0xff]  ;;  %vm8562_vm10 = vmmov %vm8550_vm4 }
 0x4c3   : > { %v2210_v6 = vmul.f32 %v4077_v49, %v2194_v37  ;;  %v1834_v26 = vrot.slane %v1816_v3, 7  ;;  %vm8554_vm11 = vcmp.le.f32.partialorder %v8553_v35, 6.5  ;;  %v2225_v49 = vmul.f32 %v2209_v16, %v8555_v48  ;;  %v8559_v30 = vld [vmem:[#allocation61_spill] sm:$0xff] }
 0x4c4   : > { %v2132_v31 = vadd.f32 %v2116_v17, %v1982_v25  ;;  %v1747_v22 = vsel %vm8554_vm11, %v1717_v2, 0.0  ;;  %v8558_v12 = vrot.slane %v8557_v39, 7  ;;  %vm8560_vm8 = vcmp.le.f32.partialorder %v8559_v30, 6.5  ;;  %v8564_v2 = vld [vmem:[#allocation46_spill] sm:$0xff]  ;;  %v8567_v3 = vld [vmem:[#allocation85_spill] sm:$0xff] }
 0x4c5   : > { %v1950_v18 = vpop.f32.mrf.mxu3  ;;  %v2226_v28 = vmul.f32 %v2210_v6, %v8556_v60  ;;  %v1835_v52 = vsel %vm1205_vm6, %v1833_v15, %v1834_v26  ;;  %v2085_v42 = vsel %vm8560_vm8, %v2070_v33, 0.0  ;;  %vm8561_vm7 = vmmov %vm8560_vm8  ;;  %vm8563_vm4 = vcmp.ge.f32.partialorder %v8553_v35, 0.5  ;;  %v8568_v33 = vld [vmem:[#allocation92_spill] sm:$0xff]  ;;  %v8571_v60 = vld [vmem:[#allocation87_spill] sm:$0xff] }
 0x4c6   : > { %v1850_v61 = vsel %vm1205_vm6, %v1834_v26, %v8558_v12  ;;  %v4079_v56 = vpop.eup %4078  ;;  %v2148_v37 = vmax.f32 %v2132_v31, 1e-06  ;;  %v1865_v13 = vsel %vm8561_vm7, %v1835_v52, 0.0  ;;  %vm8565_vm11 = vcmp.ge.f32.partialorder %v8564_v2, 0.5  ;;  %vm8566_vm3 = vmmov %vm8561_vm7 }
 0x4c7   : > { %v1866_v16 = vsel %vm8562_vm10, %v1850_v61, 0.0  ;;  %v6644_v53 = vpack.c.bf16 %v2226_v28, %v2225_v49  ;;  %v1881_v15 = vsel %vm8563_vm4, %v1865_v13, 0.0  ;;  %v1967_v17 = vsel %vm8566_vm3, %v1950_v18, 0.0 }
 0x4c8   : > { %v1882_v25 = vsel %vm8565_vm11, %v1866_v16, 0.0  ;;  %4080 = vrcp.f32 %v2148_v37  ;;  %v1897_v6 = vadd.f32 %v1881_v15, %v8567_v3  ;;  %v1763_v26 = vadd.f32 %v1747_v22, %v8568_v33  ;;  %v3828_v33 = vld [vmem:[%s7937_s3 + $0x1c] sm:$0xf] }
 0x4c9   : > { %v1898_v9 = vadd.f32 %v1882_v25, %v1646_v14  ;;  %vm8569_vm8 = vcmp.le.f32.partialorder %v8564_v2, 6.5  ;;  %v2179_v62 = vmul.f32 %v4079_v56, %v2147_v47  ;;  %vm8570_vm7 = vcmp.le.f32.partialorder %v8553_v35, 6.5  ;;  %3771 = vmatmul.msk.bf16.gmra.mxu1 %vm88_vm0, %v6644_v53  ;;  %3780 = vmatmul.msk.bf16.gmra.mxu2 %vm88_vm0, %v6644_v53  ;;  %v3819_v47 = vld [vmem:[%s7937_s3 + $0x18] sm:$0xf] }
 0x4ca   : > { %v2102_v31 = vsel %vm8569_vm8, %v2086_v36, 0.0  ;;  %v2101_v50 = vsel %vm8570_vm7, %v2085_v42, 0.0  ;;  %v1983_v48 = vadd.f32 %v1967_v17, %v1763_v26  ;;  %3789 = vmatmul.msk.bf16.gmra.mxu3 %vm88_vm0, %v6644_v53  ;;  %3798 = vmatmul.msk.bf16.gmra.mxu0 %vm88_vm0, %v6644_v53  ;;  %v3810_v36 = vld [vmem:[%s7937_s3 + $0x14] sm:$0xf]  ;;  %v2893_v14 = vsel %vm1136_vm14, %v3819_v47, 0  ;;  %v8572_v17 = vld [vmem:[#allocation30_spill] sm:$0xff] }
 0x4cb   : > { %v2118_v18 = vadd.f32 %v2102_v31, %v1898_v9  ;;  %v2117_v49 = vadd.f32 %v2101_v50, %v1897_v6  ;;  %v2775_v22 = vsel %vm1136_vm14, %v3810_v36, 0  ;;  %2902 = vmatpush.bf16.msra.mxu3 %v2893_v14  ;;  %v2195_v39 = vsub.f32 2.0, %v2179_v62  ;;  %v8573_v6 = vld [vmem:[#allocation29_spill] sm:$0xff] }
 0x4cc   : > { %2784 = vmatpush.bf16.msra.mxu2 %v2775_v22  ;;  %v3027_v31 = vsel %vm1136_vm14, %v3828_v33, 0  ;;  %v8574_v22 = vld [vmem:[#allocation33_spill] sm:$0xff]  ;;  %vm8577_vm3 = vcmp.ge.f32.partialorder %v8433_v0, 0.5  ;;  %vm8578_vm10 = vcmp.ge.f32.partialorder %v8440_v11, 0.5  ;;  %vm8579_vm4 = vcmp.ge.f32.partialorder %v5227_v46, 0.5 }
 0x4cd   : > { %v2134_v28 = vadd.f32 %v2118_v18, %v8571_v60  ;;  %v2133_v52 = vadd.f32 %v2117_v49, %v1983_v48  ;;  %v2211_v16 = vmul.f32 %v4079_v56, %v2195_v39  ;;  %3036 = vmatpush.bf16.msra.mxu0 %v3027_v31  ;;  %v3837_v49 = vld [vmem:[%s7937_s3 + $0x20] sm:$0xf]  ;;  %vm8581_vm11 = vmmov %vm8578_vm10 }
 0x4ce   : > { %v4081_v12 = vpop.eup %4080  ;;  %v3113_v36 = vsel %vm1136_vm14, %v3837_v49, 0  ;;  %vm8576_vm14 = vcmp.ge.f32.partialorder %v8434_v10, 0.5  ;;  %vm8582_vm8 = vmmov %vm8578_vm10 }
 0x4cf   : > { %v2150_v61 = vmax.f32 %v2134_v28, 1e-06  ;;  %v2149_v42 = vmax.f32 %v2133_v52, 1e-06  ;;  %v2180_v13 = vmul.f32 %v4081_v12, %v2148_v37  ;;  %v2227_v3 = vmul.f32 %v2211_v16, %v8572_v17  ;;  %3122 = vmatpush.bf16.msra.mxu1 %v3113_v36  ;;  %v8575_v28 = vld [vmem:[#allocation34_spill] sm:$0xff]  ;;  %vm8583_vm7 = vmmov %vm8579_vm4 }
 0x4d1   : > { %4082 = vrcp.f32 %v2150_v61  ;;  %v2196_v15 = vsub.f32 2.0, %v2180_v13 }
 0x4d2   : > { %4084 = vrcp.f32 %v2149_v42 }
 0x4d3   : > { %v2212_v25 = vmul.f32 %v4081_v12, %v2196_v15 }
 0x4d5   : > { %v2228_v9 = vmul.f32 %v2212_v25, %v8573_v6 }
 0x4d7   : > { %v4083_v26 = vpop.eup %4082  ;;  %v6681_v50 = vpack.c.bf16 %v2228_v9, %v2227_v3 }
 0x4d8   : > { %v4085_v62 = vpop.eup %4084  ;;  %v2182_v37 = vmul.f32 %v4083_v26, %v2150_v61 }
 0x4d9   : > { %v2181_v56 = vmul.f32 %v4085_v62, %v2149_v42  ;;  %3772 = vmatmul.msk.bf16.gmra.mxu1 %vm88_vm0, %v6681_v50  ;;  %3781 = vmatmul.msk.bf16.gmra.mxu2 %vm88_vm0, %v6681_v50 }
 0x4da   : > { %v2198_v18 = vsub.f32 2.0, %v2182_v37  ;;  %3790 = vmatmul.msk.bf16.gmra.mxu3 %vm88_vm0, %v6681_v50  ;;  %3799 = vmatmul.msk.bf16.gmra.mxu0 %vm88_vm0, %v6681_v50 }
 0x4db   : > { %v2197_v48 = vsub.f32 2.0, %v2181_v56 }
 0x4dc   : > { %v2214_v47 = vmul.f32 %v4083_v26, %v2198_v18 }
 0x4dd   : > { %v2213_v14 = vmul.f32 %v4085_v62, %v2197_v48 }
 0x4de   : > { %v2230_v60 = vmul.f32 %v2214_v47, %v8574_v22 }
 0x4df   : > { %v2229_v52 = vmul.f32 %v2213_v14, %v8575_v28 }
 0x4e1   : > { %v6697_v39 = vpack.c.bf16 %v2230_v60, %v2229_v52 }
 0x4e9   : > { %3773 = vmatmul.msk.bf16.gmra.mxu1 %vm88_vm0, %v6697_v39  ;;  %3782 = vmatmul.msk.bf16.gmra.mxu2 %vm88_vm0, %v6697_v39 }
 0x4ea   : > { %3791 = vmatmul.msk.bf16.gmra.mxu3 %vm88_vm0, %v6697_v39  ;;  %3800 = vmatmul.msk.bf16.gmra.mxu0 %vm88_vm0, %v6697_v39 }
 0x4f6   : > { %v6707_v12 = vpop.f32.mrf.mxu1 }
 0x4f7   : > { %v6709_v61 = vpop.f32.mrf.mxu0  ;;  %v8069_v15 = vrot.slane %v6707_v12, 7 }
 0x4f8   : > { %v8067_v3 = vrot.slane %v6709_v61, 7 }
 0x4f9   : > { %3802 = vmatmul.msk.bf16.vlgmr.msrb.gmra.mxu1 %vm88_vm0, %v6347_v44  ;;  %3811 = vmatmul.msk.bf16.vlgmr.msra.gmra.mxu2 %vm88_vm0, %v6347_v44 }
 0x4fa   : > { %3820 = vmatmul.msk.bf16.vlgmr.msra.gmra.mxu3 %vm88_vm0, %v6347_v44  ;;  %3829 = vmatmul.msk.bf16.vlgmr.msra.gmra.mxu0 %vm88_vm0, %v6347_v44 }
 0x4fc   : > { %v2394_v42 = vpop.f32.mrf.mxu2 }
 0x4fd   : > { %v6719_v13 = vpop.f32.mrf.mxu3  ;;  %v2435_v26 = vsel %vm8576_vm14, %v2394_v42, 0.0  ;;  %vm8584_vm14 = vcmp.le.f32.partialorder %v5227_v46, 6.5 }
 0x4fe   : > { %v2278_v16 = vpop.f32.mrf.mxu1  ;;  %v8068_v18 = vrot.slane %v6719_v13, 1 }
 0x4ff   : > { %v2317_v25 = vrot.slane %v2278_v16, 7  ;;  %v2600_v17 = vpop.f32.mrf.mxu0 }
 0x500   : > { %v2639_v6 = vrot.slane %v2600_v17, 7 }
 0x501   : > { %v2346_v9 = vsel %vm1205_vm6, %v8069_v15, %v2317_v25 }
 0x502   : > { %v2668_v33 = vsel %vm1205_vm6, %v8067_v3, %v2639_v6 }
 0x503   : > { %v2671_v31 = vsel %vm8577_vm3, %v2668_v33, 0.0 }
 0x504   : > { %v6735_v62 = vadd.f32 %v2671_v31, %v2435_v26  ;;  %v2396_v37 = vpop.f32.mrf.mxu2 }
 0x505   : > { %v2466_v56 = vpop.f32.mrf.mxu3  ;;  %v2436_v52 = vsel %vm8578_vm10, %v2396_v37, 0.0 }
 0x506   : > { %v2505_v48 = vrot.slane %v2466_v56, 1  ;;  %v2281_v49 = vpop.f32.mrf.mxu1  ;;  %v2350_v56 = vsel %vm8581_vm11, %v2346_v9, 0.0  ;;  %v8585_v9 = vld [vmem:[#allocation50_spill] sm:$0xff] }
 0x507   : > { %v2318_v47 = vrot.slane %v2281_v49, 7  ;;  %v2603_v36 = vpop.f32.mrf.mxu0  ;;  %vm8586_vm3 = vcmp.ge.f32.partialorder %v8585_v9, 0.5 }
 0x508   : > { %v2640_v14 = vrot.slane %v2603_v36, 7  ;;  %v6742_v22 = vsel %vm1394_vm5, %v8068_v18, %v2505_v48  ;;  %vm8591_vm11 = vmmov %vm8586_vm3 }
 0x509   : > { %v2345_v60 = vsel %vm1205_vm6, %v2317_v25, %v2318_v47  ;;  %3803 = vmatmul.msk.bf16.gmra.mxu1 %vm88_vm0, %v6406_v57  ;;  %3812 = vmatmul.msk.bf16.gmra.mxu2 %vm88_vm0, %v6406_v57 }
 0x50a   : > { %v2667_v28 = vsel %vm1205_vm6, %v2639_v6, %v2640_v14  ;;  %3821 = vmatmul.msk.bf16.gmra.mxu3 %vm88_vm0, %v6406_v57  ;;  %3830 = vmatmul.msk.bf16.gmra.mxu0 %vm88_vm0, %v6406_v57 }
 0x50b   : > { %v2672_v42 = vsel %vm8579_vm4, %v2667_v28, 0.0  ;;  %vm8590_vm4 = vmmov %vm8586_vm3 }
 0x50c   : > { %v6760_v16 = vadd.f32 %v2672_v42, %v2436_v52  ;;  %v2399_v25 = vpop.f32.mrf.mxu2  ;;  %v2366_v42 = vsel %vm8583_vm7, %v2350_v56, 0.0  ;;  %v2351_v56 = vsel %vm8590_vm4, %v2345_v60, 0.0 }
 0x50d   : > { %v2469_v17 = vpop.f32.mrf.mxu3 }
 0x50e   : > { %8580 = vst [vmem:[#allocation90_spill] sm:$0xff] %v6760_v16  ;;  %v2506_v33 = vrot.slane %v2469_v17, 1  ;;  %v2283_v26 = vpop.f32.mrf.mxu1 }
 0x50f   : > { %v2319_v31 = vrot.slane %v2283_v26, 7  ;;  %v2605_v6 = vpop.f32.mrf.mxu0  ;;  %v2437_v26 = vsel %vm8586_vm3, %v2399_v25, 0.0  ;;  %vm8595_vm3 = vcmp.ge.f32.partialorder %v5235_v34, 0.5 }
 0x510   : > { %v2641_v49 = vrot.slane %v2605_v6, 7  ;;  %v2533_v36 = vsel %vm1394_vm5, %v2505_v48, %v2506_v33  ;;  %v8587_v6 = vld [vmem:[#allocation37_spill] sm:$0xff] }
 0x511   : > { %v2538_v37 = vsel %vm8582_vm8, %v2533_v36, 0.0  ;;  %v2344_v28 = vsel %vm1205_vm6, %v2318_v47, %v2319_v31  ;;  %vm8588_vm10 = vcmp.ge.f32.partialorder %v8587_v6, 0.5  ;;  %vm8593_vm7 = vcmp.le.f32.partialorder %v8587_v6, 6.5 }
 0x512   : > { %v2666_v52 = vsel %vm1205_vm6, %v2640_v14, %v2641_v49  ;;  %v2554_v17 = vsel %vm8584_vm14, %v2538_v37, 0.0  ;;  %vm8592_vm8 = vmmov %vm8588_vm10  ;;  %vm8594_vm14 = vcmp.ge.f32.partialorder %v8247_v5, 0.5 }
 0x513   : > { %v2673_v48 = vsel %vm8588_vm10, %v2666_v52, 0.0  ;;  %v6780_v3 = vadd.f32 %v2554_v17, %v2366_v42  ;;  %vm8597_vm10 = vmmov %vm8594_vm14 }
 0x514   : > { %v6782_v36 = vadd.f32 %v2673_v48, %v2437_v26  ;;  %v2401_v47 = vpop.f32.mrf.mxu2  ;;  %vm8598_vm4 = vmmov %vm8597_vm10 }
 0x515   : > { %v2471_v18 = vpop.f32.mrf.mxu3 }
 0x516   : > { %8589 = vst [vmem:[#allocation94_spill] sm:$0xff] %v6782_v36  ;;  %v2507_v15 = vrot.slane %v2471_v18, 1  ;;  %v2286_v14 = vpop.f32.mrf.mxu1 }
 0x517   : > { %v2320_v16 = vrot.slane %v2286_v14, 7  ;;  %v2608_v11 = vpop.f32.mrf.mxu0 }
 0x518   : > { %v2642_v37 = vrot.slane %v2608_v11, 7  ;;  %v2532_v25 = vsel %vm1394_vm5, %v2506_v33, %v2507_v15  ;;  %v2367_v11 = vsel %vm8592_vm8, %v2351_v56, 0.0  ;;  %v2438_v33 = vsel %vm8594_vm14, %v2401_v47, 0.0 }
 0x519   : > { %v2343_v52 = vsel %vm1205_vm6, %v2319_v31, %v2320_v16  ;;  %3804 = vmatmul.msk.bf16.gmra.mxu1 %vm88_vm0, %v6465_v54  ;;  %3813 = vmatmul.msk.bf16.gmra.mxu2 %vm88_vm0, %v6465_v54  ;;  %v2539_v18 = vsel %vm8591_vm11, %v2532_v25, 0.0  ;;  %v2352_v56 = vsel %vm8597_vm10, %v2344_v28, 0.0  ;;  %vm8599_vm11 = vmmov %vm8595_vm3  ;;  %vm8600_vm8 = vcmp.le.f32.partialorder %v5235_v34, 6.5 }
 0x51a   : > { %v2665_v42 = vsel %vm1205_vm6, %v2641_v49, %v2642_v37  ;;  %3822 = vmatmul.msk.bf16.gmra.mxu3 %vm88_vm0, %v6465_v54  ;;  %3831 = vmatmul.msk.bf16.gmra.mxu0 %vm88_vm0, %v6465_v54  ;;  %v2555_v60 = vsel %vm8593_vm7, %v2539_v18, 0.0  ;;  %vm8601_vm7 = vcmp.ge.f32.partialorder %v8467_v45, 0.5  ;;  %vm8602_vm14 = vcmp.ge.f32.partialorder %v5239_v7, 0.5 }
 0x51b   : > { %v2674_v31 = vsel %vm8595_vm3, %v2665_v42, 0.0  ;;  %v6810_v17 = vadd.f32 %v2555_v60, %v2367_v11  ;;  %vm8604_vm3 = vmmov %vm8601_vm7 }
 0x51c   : > { %v6812_v49 = vadd.f32 %v2674_v31, %v2438_v33  ;;  %v2404_v26 = vpop.f32.mrf.mxu2  ;;  %v2368_v33 = vsel %vm8599_vm11, %v2352_v56, 0.0  ;;  %v2353_v56 = vsel %vm8604_vm3, %v2343_v52, 0.0  ;;  %vm8605_vm10 = vmmov %vm8604_vm3  ;;  %vm8607_vm11 = vcmp.le.f32.partialorder %v5239_v7, 6.5 }
 0x51d   : > { %v2474_v48 = vpop.f32.mrf.mxu3  ;;  %v2439_v28 = vsel %vm8601_vm7, %v2404_v26, 0.0  ;;  %vm8609_vm7 = vcmp.ge.f32.partialorder %v5243_v32, 0.5 }
 0x51e   : > { %8596 = vst [vmem:[#allocation95_spill] sm:$0xff] %v6812_v49  ;;  %v2508_v14 = vrot.slane %v2474_v48, 1  ;;  %v2288_v25 = vpop.f32.mrf.mxu1 }
 0x51f   : > { %v2321_v36 = vrot.slane %v2288_v25, 7  ;;  %v2610_v9 = vpop.f32.mrf.mxu0 }
 0x520   : > { %v2643_v18 = vrot.slane %v2610_v9, 7  ;;  %v2531_v47 = vsel %vm1394_vm5, %v2507_v15, %v2508_v14 }
 0x521   : > { %v2540_v42 = vsel %vm8598_vm4, %v2531_v47, 0.0  ;;  %v2342_v11 = vsel %vm1205_vm6, %v2320_v16, %v2321_v36  ;;  %vm8606_vm4 = vmmov %vm8602_vm14 }
 0x522   : > { %v2664_v60 = vsel %vm1205_vm6, %v2642_v37, %v2643_v18  ;;  %v2556_v31 = vsel %vm8600_vm8, %v2540_v42, 0.0  ;;  %vm8608_vm8 = vcmp.ge.f32.partialorder %v8246_v4, 0.5 }
 0x523   : > { %v2675_v15 = vsel %vm8602_vm14, %v2664_v60, 0.0  ;;  %v6832_v9 = vadd.f32 %v2556_v31, %v2368_v33  ;;  %vm8611_vm14 = vmmov %vm8608_vm8 }
 0x524   : > { %v6834_v48 = vadd.f32 %v2675_v15, %v2439_v28  ;;  %v2406_v16 = vpop.f32.mrf.mxu2  ;;  %vm8612_vm3 = vmmov %vm8608_vm8 }
 0x525   : > { %v2476_v25 = vpop.f32.mrf.mxu3  ;;  %v2440_v52 = vsel %vm8608_vm8, %v2406_v16, 0.0 }
 0x526   : > { %8603 = vst [vmem:[#allocation96_spill] sm:$0xff] %v6834_v48  ;;  %v2509_v47 = vrot.slane %v2476_v25, 1  ;;  %v2291_v37 = vpop.f32.mrf.mxu1 }
 0x527   : > { %v2322_v49 = vrot.slane %v2291_v37, 7  ;;  %v2613_v5 = vpop.f32.mrf.mxu0 }
 0x528   : > { %v2644_v42 = vrot.slane %v2613_v5, 7  ;;  %v2530_v26 = vsel %vm1394_vm5, %v2508_v14, %v2509_v47  ;;  %v2369_v5 = vsel %vm8606_vm4, %v2353_v56, 0.0  ;;  %v2354_v56 = vsel %vm8611_vm14, %v2342_v11, 0.0 }
 0x529   : > { %v2341_v60 = vsel %vm1205_vm6, %v2321_v36, %v2322_v49  ;;  %3805 = vmatmul.msk.bf16.gmra.mxu1 %vm88_vm0, %v6519_v38  ;;  %3814 = vmatmul.msk.bf16.gmra.mxu2 %vm88_vm0, %v6519_v38  ;;  %v2541_v33 = vsel %vm8605_vm10, %v2530_v26, 0.0  ;;  %vm8613_vm10 = vmmov %vm8609_vm7  ;;  %vm8614_vm4 = vcmp.ge.f32.partialorder %v8482_v23, 0.5 }
 0x52a   : > { %v2663_v31 = vsel %vm1205_vm6, %v2643_v18, %v2644_v42  ;;  %3823 = vmatmul.msk.bf16.gmra.mxu3 %vm88_vm0, %v6519_v38  ;;  %3832 = vmatmul.msk.bf16.gmra.mxu0 %vm88_vm0, %v6519_v38  ;;  %v2557_v36 = vsel %vm8607_vm11, %v2541_v33, 0.0  ;;  %vm8615_vm11 = vcmp.ge.f32.partialorder %v8481_v63, 0.5  ;;  %vm8617_vm8 = vmmov %vm8614_vm4 }
 0x52b   : > { %v2676_v14 = vsel %vm8609_vm7, %v2663_v31, 0.0  ;;  %v6862_v28 = vadd.f32 %v2557_v36, %v2369_v5  ;;  %vm8618_vm7 = vmmov %vm8614_vm4 }
 0x52c   : > { %v6864_v18 = vadd.f32 %v2676_v14, %v2440_v52  ;;  %v2409_v15 = vpop.f32.mrf.mxu2  ;;  %v2370_v52 = vsel %vm8613_vm10, %v2354_v56, 0.0  ;;  %v2355_v56 = vsel %vm8617_vm8, %v2341_v60, 0.0  ;;  %vm8619_vm14 = vmmov %vm8615_vm11  ;;  %vm8621_vm10 = vcmp.ge.f32.partialorder %v8243_v40, 0.5 }
 0x52d   : > { %v2479_v25 = vpop.f32.mrf.mxu3  ;;  %vm8625_vm8 = vmmov %vm8621_vm10 }
 0x52e   : > { %8610 = vst [vmem:[#allocation97_spill] sm:$0xff] %v6864_v18  ;;  %v2510_v37 = vrot.slane %v2479_v25, 1  ;;  %v2293_v26 = vpop.f32.mrf.mxu1 }
 0x52f   : > { %v2323_v48 = vrot.slane %v2293_v26, 7  ;;  %v2615_v45 = vpop.f32.mrf.mxu0 }
 0x530   : > { %v2645_v33 = vrot.slane %v2615_v45, 7  ;;  %v2529_v16 = vsel %vm1394_vm5, %v2509_v47, %v2510_v37  ;;  %v2441_v45 = vsel %vm8614_vm4, %v2409_v15, 0.0 }
 0x531   : > { %v2542_v31 = vsel %vm8612_vm3, %v2529_v16, 0.0  ;;  %v2340_v5 = vsel %vm1205_vm6, %v2322_v49, %v2323_v48  ;;  %vm8620_vm3 = vcmp.ge.f32.partialorder %v8245_v41, 0.5 }
 0x532   : > { %v2662_v36 = vsel %vm1205_vm6, %v2644_v42, %v2645_v33  ;;  %v2558_v14 = vsel %vm1071_vm13, %v2542_v31, 0.0  ;;  %vm8623_vm4 = vmmov %vm8620_vm3 }
 0x533   : > { %v2677_v11 = vsel %vm8615_vm11, %v2662_v36, 0.0  ;;  %v6884_v47 = vadd.f32 %v2558_v14, %v2370_v52  ;;  %vm8624_vm11 = vmmov %vm8620_vm3 }
 0x534   : > { %v6886_v25 = vadd.f32 %v2677_v11, %v2441_v45  ;;  %v2411_v49 = vpop.f32.mrf.mxu2 }
 0x535   : > { %v2481_v26 = vpop.f32.mrf.mxu3 }
 0x536   : > { %8616 = vst [vmem:[#allocation91_spill] sm:$0xff] %v6886_v25  ;;  %v2511_v16 = vrot.slane %v2481_v26, 1  ;;  %v2296_v42 = vpop.f32.mrf.mxu1 }
 0x537   : > { %v2324_v18 = vrot.slane %v2296_v42, 7  ;;  %v2618_v4 = vpop.f32.mrf.mxu0 }
 0x538   : > { %v2646_v31 = vrot.slane %v2618_v4, 7  ;;  %v2528_v15 = vsel %vm1394_vm5, %v2510_v37, %v2511_v16  ;;  %v2371_v4 = vsel %vm8619_vm14, %v2355_v56, 0.0  ;;  %v2442_v37 = vsel %vm8620_vm3, %v2411_v49, 0.0 }
 0x539   : > { %3806 = vmatmul.msk.bf16.gmra.mxu1 %vm88_vm0, %v6574_v59  ;;  %3815 = vmatmul.msk.bf16.gmra.mxu2 %vm88_vm0, %v6574_v59  ;;  %v2543_v36 = vsel %vm8618_vm7, %v2528_v15, 0.0  ;;  %v2339_v52 = vsel %vm1205_vm6, %v2323_v48, %v2324_v18  ;;  %v2356_v56 = vsel %vm8623_vm4, %v2340_v5, 0.0  ;;  %vm8626_vm7 = vcmp.ge.f32.partialorder %v8496_v55, 0.5 }
 0x53a   : > { %v2661_v14 = vsel %vm1205_vm6, %v2645_v33, %v2646_v31  ;;  %3824 = vmatmul.msk.bf16.gmra.mxu3 %vm88_vm0, %v6574_v59  ;;  %3833 = vmatmul.msk.bf16.gmra.mxu0 %vm88_vm0, %v6574_v59  ;;  %v2559_v60 = vsel %vm1072_vm9, %v2543_v36, 0.0  ;;  %vm8627_vm14 = vcmp.ge.f32.partialorder %v8244_v27, 0.5  ;;  %vm8629_vm3 = vmmov %vm8626_vm7 }
 0x53b   : > { %v2678_v48 = vsel %vm8621_vm10, %v2661_v14, 0.0  ;;  %v6914_v45 = vadd.f32 %v2559_v60, %v2371_v4  ;;  %vm8630_vm10 = vmmov %vm8629_vm3 }
 0x53c   : > { %v6916_v33 = vadd.f32 %v2678_v48, %v2442_v37  ;;  %v2414_v11 = vpop.f32.mrf.mxu2  ;;  %v2372_v37 = vsel %vm8625_vm8, %v2356_v56, 0.0  ;;  %v2357_v56 = vsel %vm8629_vm3, %v2339_v52, 0.0  ;;  %vm8631_vm4 = vmmov %vm8627_vm14  ;;  %vm8633_vm8 = vcmp.ge.f32.partialorder %v8504_v8, 0.5 }
 0x53d   : > { %v2484_v26 = vpop.f32.mrf.mxu3  ;;  %vm8637_vm3 = vmmov %vm8633_vm8 }
 0x53e   : > { %8622 = vst [vmem:[#allocation80_spill] sm:$0xff] %v6916_v33  ;;  %v2512_v42 = vrot.slane %v2484_v26, 1  ;;  %v2298_v15 = vpop.f32.mrf.mxu1 }
 0x53f   : > { %v2325_v25 = vrot.slane %v2298_v15, 7  ;;  %v2620_v23 = vpop.f32.mrf.mxu0 }
 0x540   : > { %v2647_v36 = vrot.slane %v2620_v23, 7  ;;  %v2527_v49 = vsel %vm1394_vm5, %v2511_v16, %v2512_v42  ;;  %v2443_v23 = vsel %vm8626_vm7, %v2414_v11, 0.0 }
 0x541   : > { %v2544_v14 = vsel %vm8624_vm11, %v2527_v49, 0.0  ;;  %v2338_v4 = vsel %vm1205_vm6, %v2324_v18, %v2325_v25  ;;  %vm8632_vm11 = vcmp.ge.f32.partialorder %v8506_v29, 0.5 }
 0x542   : > { %v2660_v60 = vsel %vm1205_vm6, %v2646_v31, %v2647_v36  ;;  %v2560_v48 = vsel %vm1073_vm15, %v2544_v14, 0.0  ;;  %vm8635_vm7 = vmmov %vm8632_vm11 }
 0x543   : > { %v2679_v5 = vsel %vm8627_vm14, %v2660_v60, 0.0  ;;  %v6936_v16 = vadd.f32 %v2560_v48, %v2372_v37  ;;  %vm8636_vm14 = vmmov %vm8635_vm7 }
 0x544   : > { %v6938_v26 = vadd.f32 %v2679_v5, %v2443_v23  ;;  %v2416_v18 = vpop.f32.mrf.mxu2 }
 0x545   : > { %v2486_v15 = vpop.f32.mrf.mxu3 }
 0x546   : > { %8628 = vst [vmem:[#allocation98_spill] sm:$0xff] %v6938_v26  ;;  %v2513_v49 = vrot.slane %v2486_v15, 1  ;;  %v2301_v31 = vpop.f32.mrf.mxu1 }
 0x547   : > { %v2326_v33 = vrot.slane %v2301_v31, 7  ;;  %v2623_v41 = vpop.f32.mrf.mxu0 }
 0x548   : > { %v2648_v14 = vrot.slane %v2623_v41, 7  ;;  %v2526_v11 = vsel %vm1394_vm5, %v2512_v42, %v2513_v49  ;;  %v2373_v41 = vsel %vm8631_vm4, %v2357_v56, 0.0  ;;  %v2444_v42 = vsel %vm8632_vm11, %v2416_v18, 0.0 }
 0x549   : > { %3807 = vmatmul.msk.bf16.gmra.mxu1 %vm88_vm0, %v6644_v53  ;;  %3816 = vmatmul.msk.bf16.gmra.mxu2 %vm88_vm0, %v6644_v53  ;;  %v2545_v60 = vsel %vm8630_vm10, %v2526_v11, 0.0  ;;  %v2337_v37 = vsel %vm1205_vm6, %v2325_v25, %v2326_v33  ;;  %v2358_v56 = vsel %vm8635_vm7, %v2338_v4, 0.0  ;;  %vm8638_vm10 = vcmp.ge.f32.partialorder %v8517_v19, 0.5 }
 0x54a   : > { %v2659_v48 = vsel %vm1205_vm6, %v2647_v36, %v2648_v14  ;;  %3825 = vmatmul.msk.bf16.gmra.mxu3 %vm88_vm0, %v6644_v53  ;;  %3834 = vmatmul.msk.bf16.gmra.mxu0 %vm88_vm0, %v6644_v53  ;;  %v2561_v52 = vsel %vm8338_vm1, %v2545_v60, 0.0  ;;  %vm8639_vm4 = vcmp.ge.f32.partialorder %v8515_v24, 0.5  ;;  %vm8641_vm11 = vmmov %vm8638_vm10 }
 0x54b   : > { %v2680_v25 = vsel %vm8633_vm8, %v2659_v48, 0.0  ;;  %v6966_v23 = vadd.f32 %v2561_v52, %v2373_v41  ;;  %vm8642_vm8 = vmmov %vm8638_vm10 }
 0x54c   : > { %v6968_v36 = vadd.f32 %v2680_v25, %v2444_v42  ;;  %v2419_v5 = vpop.f32.mrf.mxu2  ;;  %v2374_v42 = vsel %vm8637_vm3, %v2358_v56, 0.0  ;;  %v2359_v56 = vsel %vm8641_vm11, %v2337_v37, 0.0  ;;  %vm8643_vm7 = vmmov %vm8639_vm4  ;;  %vm8645_vm3 = vcmp.ge.f32.partialorder %v8525_v1, 0.5 }
 0x54d   : > { %v2489_v15 = vpop.f32.mrf.mxu3  ;;  %vm8649_vm11 = vmmov %vm8645_vm3 }
 0x54e   : > { %8634 = vst [vmem:[#allocation81_spill] sm:$0xff] %v6968_v36  ;;  %v2514_v31 = vrot.slane %v2489_v15, 1  ;;  %v2303_v11 = vpop.f32.mrf.mxu1 }
 0x54f   : > { %v2327_v26 = vrot.slane %v2303_v11, 7  ;;  %v2625_v55 = vpop.f32.mrf.mxu0 }
 0x550   : > { %v2649_v60 = vrot.slane %v2625_v55, 7  ;;  %v2525_v18 = vsel %vm1394_vm5, %v2513_v49, %v2514_v31  ;;  %v2445_v55 = vsel %vm8638_vm10, %v2419_v5, 0.0 }
 0x551   : > { %v2546_v48 = vsel %vm8636_vm14, %v2525_v18, 0.0  ;;  %v2336_v41 = vsel %vm1205_vm6, %v2326_v33, %v2327_v26  ;;  %vm8644_vm14 = vcmp.ge.f32.partialorder %v8528_v51, 0.5 }
 0x552   : > { %v2658_v52 = vsel %vm1205_vm6, %v2648_v14, %v2649_v60  ;;  %v2562_v25 = vsel %vm8346_vm2, %v2546_v48, 0.0  ;;  %vm8647_vm10 = vmmov %vm8644_vm14 }
 0x553   : > { %v2681_v4 = vsel %vm8639_vm4, %v2658_v52, 0.0  ;;  %v6988_v49 = vadd.f32 %v2562_v25, %v2374_v42  ;;  %vm8648_vm4 = vmmov %vm8647_vm10 }
 0x554   : > { %v6990_v15 = vadd.f32 %v2681_v4, %v2445_v55  ;;  %v2421_v33 = vpop.f32.mrf.mxu2 }
 0x555   : > { %v2491_v11 = vpop.f32.mrf.mxu3 }
 0x556   : > { %8640 = vst [vmem:[#allocation99_spill] sm:$0xff] %v6990_v15  ;;  %v2515_v18 = vrot.slane %v2491_v11, 1  ;;  %v2306_v14 = vpop.f32.mrf.mxu1 }
 0x557   : > { %v2328_v36 = vrot.slane %v2306_v14, 7  ;;  %v2628_v29 = vpop.f32.mrf.mxu0 }
 0x558   : > { %v2650_v48 = vrot.slane %v2628_v29, 7  ;;  %v2524_v5 = vsel %vm1394_vm5, %v2514_v31, %v2515_v18  ;;  %v2375_v29 = vsel %vm8643_vm7, %v2359_v56, 0.0  ;;  %v2446_v31 = vsel %vm8644_vm14, %v2421_v33, 0.0 }
 0x559   : > { %3808 = vmatmul.msk.bf16.gmra.mxu1 %vm88_vm0, %v6681_v50  ;;  %3817 = vmatmul.msk.bf16.gmra.mxu2 %vm88_vm0, %v6681_v50  ;;  %v2547_v52 = vsel %vm8642_vm8, %v2524_v5, 0.0  ;;  %v2335_v42 = vsel %vm1205_vm6, %v2327_v26, %v2328_v36  ;;  %v2360_v56 = vsel %vm8647_vm10, %v2336_v41, 0.0  ;;  %vm8650_vm8 = vcmp.le.f32.partialorder %v8525_v1, 6.5 }
 0x55a   : > { %v2657_v25 = vsel %vm1205_vm6, %v2649_v60, %v2650_v48  ;;  %3826 = vmatmul.msk.bf16.gmra.mxu3 %vm88_vm0, %v6681_v50  ;;  %3835 = vmatmul.msk.bf16.gmra.mxu0 %vm88_vm0, %v6681_v50  ;;  %v2563_v37 = vsel %vm1076_vm12, %v2547_v52, 0.0  ;;  %vm8651_vm7 = vcmp.ge.f32.partialorder %v8540_v58, 0.5  ;;  %vm8652_vm14 = vcmp.ge.f32.partialorder %v8535_v21, 0.5 }
 0x55b   : > { %v2682_v26 = vsel %vm8645_vm3, %v2657_v25, 0.0  ;;  %v7018_v55 = vadd.f32 %v2563_v37, %v2375_v29  ;;  %vm8654_vm3 = vmmov %vm8651_vm7 }
 0x55c   : > { %v7020_v60 = vadd.f32 %v2682_v26, %v2446_v31  ;;  %v2424_v4 = vpop.f32.mrf.mxu2  ;;  %v2376_v31 = vsel %vm8649_vm11, %v2360_v56, 0.0  ;;  %v2361_v56 = vsel %vm8654_vm3, %v2335_v42, 0.0  ;;  %vm8655_vm10 = vmmov %vm8654_vm3  ;;  %vm8657_vm11 = vcmp.le.f32.partialorder %v8535_v21, 6.5 }
 0x55d   : > { %v2494_v11 = vpop.f32.mrf.mxu3 }
 0x55e   : > { %8646 = vst [vmem:[#allocation83_spill] sm:$0xff] %v7020_v60  ;;  %v2516_v14 = vrot.slane %v2494_v11, 1  ;;  %v2308_v5 = vpop.f32.mrf.mxu1 }
 0x55f   : > { %v2329_v15 = vrot.slane %v2308_v5, 7  ;;  %v2630_v19 = vpop.f32.mrf.mxu0 }
 0x560   : > { %v2651_v52 = vrot.slane %v2630_v19, 7  ;;  %v2523_v33 = vsel %vm1394_vm5, %v2515_v18, %v2516_v14  ;;  %v2447_v19 = vsel %vm8651_vm7, %v2424_v4, 0.0  ;;  %vm8659_vm7 = vcmp.ge.f32.partialorder %v8553_v35, 0.5 }
 0x561   : > { %v2548_v25 = vsel %vm8648_vm4, %v2523_v33, 0.0  ;;  %v2334_v29 = vsel %vm1205_vm6, %v2328_v36, %v2329_v15  ;;  %vm8656_vm4 = vmmov %vm8652_vm14 }
 0x562   : > { %v2656_v37 = vsel %vm1205_vm6, %v2650_v48, %v2651_v52  ;;  %v2564_v26 = vsel %vm8650_vm8, %v2548_v25, 0.0  ;;  %vm8658_vm8 = vcmp.ge.f32.partialorder %v8559_v30, 0.5 }
 0x563   : > { %v2683_v41 = vsel %vm8652_vm14, %v2656_v37, 0.0  ;;  %v7040_v18 = vadd.f32 %v2564_v26, %v2376_v31  ;;  %vm8661_vm14 = vcmp.ge.f32.partialorder %v8434_v10, 0.5  ;;  %vm8663_vm3 = vmmov %vm8658_vm8 }
 0x564   : > { %v7042_v11 = vadd.f32 %v2683_v41, %v2447_v19  ;;  %v2426_v36 = vpop.f32.mrf.mxu2 }
 0x565   : > { %v2496_v5 = vpop.f32.mrf.mxu3 }
 0x566   : > { %8653 = vst [vmem:[#allocation88_spill] sm:$0xff] %v7042_v11  ;;  %v2517_v33 = vrot.slane %v2496_v5, 1  ;;  %v2311_v48 = vpop.f32.mrf.mxu1 }
 0x567   : > { %v2330_v60 = vrot.slane %v2311_v48, 7  ;;  %v2633_v51 = vpop.f32.mrf.mxu0 }
 0x568   : > { %v2652_v25 = vrot.slane %v2633_v51, 7  ;;  %v2522_v4 = vsel %vm1394_vm5, %v2516_v14, %v2517_v33  ;;  %v2377_v51 = vsel %vm8656_vm4, %v2361_v56, 0.0  ;;  %v2448_v14 = vsel %vm8658_vm8, %v2426_v36, 0.0  ;;  %vm8665_vm4 = vmmov %vm8661_vm14 }
 0x569   : > { %3809 = vmatmul.msk.bf16.gmra.mxu1 %vm88_vm0, %v6697_v39  ;;  %3818 = vmatmul.msk.bf16.gmra.mxu2 %vm88_vm0, %v6697_v39  ;;  %v2549_v37 = vsel %vm8655_vm10, %v2522_v4, 0.0  ;;  %v2333_v31 = vsel %vm1205_vm6, %v2329_v15, %v2330_v60  ;;  %v2537_v36 = vsel %vm8661_vm14, %v6742_v22, 0.0  ;;  %vm8664_vm10 = vmmov %vm8663_vm3  ;;  %vm8667_vm8 = vcmp.ge.f32.partialorder %v8564_v2, 0.5 }
 0x56a   : > { %v2655_v26 = vsel %vm1205_vm6, %v2651_v52, %v2652_v25  ;;  %3827 = vmatmul.msk.bf16.gmra.mxu3 %vm88_vm0, %v6697_v39  ;;  %3836 = vmatmul.msk.bf16.gmra.mxu0 %vm88_vm0, %v6697_v39  ;;  %v2565_v42 = vsel %vm8657_vm11, %v2549_v37, 0.0  ;;  %vm8666_vm11 = vcmp.ge.f32.partialorder %v8549_v43, 0.5  ;;  %vm8669_vm14 = vcmp.le.f32.partialorder %v8433_v0, 6.5 }
 0x56b   : > { %v2684_v15 = vsel %vm8659_vm7, %v2655_v26, 0.0  ;;  %v7070_v19 = vadd.f32 %v2565_v42, %v2377_v51  ;;  %v8662_v51 = vrot.slane %v6707_v12, 7  ;;  %vm8668_vm7 = vcmp.ge.f32.partialorder %v8433_v0, 0.5 }
 0x56c   : > { %v7072_v52 = vadd.f32 %v2684_v15, %v2448_v14  ;;  %v2429_v41 = vpop.f32.mrf.mxu2  ;;  %v2362_v14 = vsel %vm8663_vm3, %v2334_v29, 0.0  ;;  %vm8670_vm3 = vcmp.ge.f32.partialorder %v8553_v35, 0.5 }
 0x56d   : > { %v2499_v5 = vpop.f32.mrf.mxu3  ;;  %v2449_v12 = vsel %vm8666_vm11, %v2429_v41, 0.0 }
 0x56e   : > { %8660 = vst [vmem:[#allocation100_spill] sm:$0xff] %v7072_v52  ;;  %v2518_v48 = vrot.slane %v2499_v5, 1  ;;  %v2313_v4 = vpop.f32.mrf.mxu1 }
 0x56f   : > { %v2331_v11 = vrot.slane %v2313_v4, 7  ;;  %v7074_v58 = vpop.f32.mrf.mxu0 }
 0x570   : > { %v8088_v56 = vrot.slane %v7074_v58, 7  ;;  %v2521_v37 = vsel %vm1394_vm5, %v2517_v33, %v2518_v48 }
 0x571   : > { %v2332_v26 = vsel %vm1205_vm6, %v2330_v60, %v2331_v11  ;;  %v2347_v42 = vsel %vm1205_vm6, %v2331_v11, %v8662_v51  ;;  %v2550_v15 = vsel %vm8664_vm10, %v2521_v37, 0.0  ;;  %v2553_v11 = vsel %vm8669_vm14, %v2537_v36, 0.0 }
 0x572   : > { %v2654_v22 = vsel %vm1205_vm6, %v2652_v25, %v8088_v56  ;;  %v2349_v33 = vsel %vm8665_vm4, %v2347_v42, 0.0  ;;  %v2378_v37 = vsel %vm8670_vm3, %v2362_v14, 0.0  ;;  %vm8671_vm10 = vcmp.le.f32.partialorder %v8553_v35, 6.5 }
 0x573   : > { %v2685_v60 = vsel %vm8667_vm8, %v2654_v22, 0.0  ;;  %v2365_v29 = vsel %vm8668_vm7, %v2349_v33, 0.0  ;;  %v2566_v41 = vsel %vm8671_vm10, %v2550_v15, 0.0  ;;  %v8672_v33 = vld [vmem:[#allocation47_spill] sm:$0xff]  ;;  %v2363_v36 = vsel %vm8666_vm11, %v2333_v31, 0.0  ;;  %vm8676_vm7 = vmmov %vm8666_vm11 }
 0x574   : > { %v7106_v5 = vadd.f32 %v2685_v60, %v2449_v12  ;;  %v7108_v4 = vpop.f32.mrf.mxu2  ;;  %v2569_v25 = vadd.f32 %v2553_v11, %v2365_v29  ;;  %v7114_v42 = vadd.f32 %v2566_v41, %v2378_v37  ;;  %vm8673_vm4 = vcmp.ge.f32.partialorder %v8672_v33, 0.5  ;;  %v8677_v29 = vld [vmem:[#allocation35_spill] sm:$0xff] }
 0x575   : > { %v2501_v51 = vpop.f32.mrf.mxu3  ;;  %v2348_v52 = vsel %vm8673_vm4, %v2332_v26, 0.0  ;;  %v8674_v12 = vrot.slane %v6719_v13, 1  ;;  %vm8675_vm8 = vmmov %vm8673_vm4  ;;  %vm8678_vm14 = vcmp.ge.f32.partialorder %v8677_v29, 0.5  ;;  %vm8679_vm3 = vcmp.le.f32.partialorder %v8677_v29, 6.5 }
 0x576   : > { %v2519_v22 = vrot.slane %v2501_v51, 1  ;;  %v2716_v56 = vpop.f32.mrf.mxu1  ;;  %v2364_v31 = vsel %vm8678_vm14, %v2348_v52, 0.0  ;;  %vm8680_vm10 = vcmp.ge.f32.partialorder %v8564_v2, 0.5  ;;  %vm8681_vm4 = vcmp.le.f32.partialorder %v8564_v2, 6.5 }
 0x577   : > { %v2379_v11 = vsel %vm8680_vm10, %v2363_v36, 0.0  ;;  %vm8700_vm11 = vmmov %vm8681_vm4 }
 0x578   : > { %v2535_v60 = vsel %vm1394_vm5, %v2519_v22, %v8674_v12  ;;  %v2520_v14 = vsel %vm1394_vm5, %v2518_v48, %v2519_v22  ;;  %vm8703_vm14 = vmmov %vm8680_vm10  ;;  %vm8707_vm10 = vcmp.ge.f32.partialorder %v8672_v33, 0.5 }
 0x579   : > { %v2536_v15 = vsel %vm8675_vm8, %v2535_v60, 0.0  ;;  %3838 = vmatmul.msk.bf16.vlgmr.msra.gmra.mxu1 %vm88_vm0, %v6347_v44  ;;  %v2551_v26 = vsel %vm8676_vm7, %v2520_v14, 0.0  ;;  %vm8701_vm8 = vcmp.le.f32.partialorder %v8549_v43, 6.5 }
 0x57a   : > { %v2552_v13 = vsel %vm8679_vm3, %v2536_v15, 0.0  ;;  %v2567_v48 = vsel %vm8681_vm4, %v2551_v26, 0.0  ;;  %vm8702_vm7 = vmmov %vm8701_vm8 }
 0x57b   : > { %v2568_v37 = vadd.f32 %v2552_v13, %v2364_v31  ;;  %v7140_v41 = vadd.f32 %v2567_v48, %v2379_v11  ;;  %vm8706_vm3 = vmmov %vm8702_vm7 }
 0x57c   : > { %v7142_v51 = vpop.f32.mrf.mxu2 }
 0x57d   : > { %v7144_v44 = vadd.f32 %v2716_v56, %v2568_v37  ;;  %v7146_v22 = vpop.f32.mrf.mxu3 }
 0x57e   : > { %v2718_v12 = vpop.f32.mrf.mxu1 }
 0x57f   : > { %v7148_v52 = vadd.f32 %v2718_v12, %v2569_v25 }
 0x584   : > { %v7150_v60 = vpop.f32.mrf.mxu2 }
 0x585   : > { %v7152_v14 = vpop.f32.mrf.mxu3 }
 0x586   : > { %v2721_v36 = vpop.f32.mrf.mxu1 }
 0x587   : > { %v7155_v15 = vadd.f32 %v2721_v36, %v6780_v3 }
 0x589   : > { %3839 = vmatmul.msk.bf16.gmra.mxu1 %vm88_vm0, %v6406_v57 }
 0x58c   : > { %v7159_v26 = vpop.f32.mrf.mxu2 }
 0x58d   : > { %v7161_v56 = vpop.f32.mrf.mxu3 }
 0x58e   : > { %v2723_v31 = vpop.f32.mrf.mxu1 }
 0x58f   : > { %v7164_v13 = vadd.f32 %v2723_v31, %v6810_v17 }
 0x594   : > { %v7166_v25 = vpop.f32.mrf.mxu2 }
 0x595   : > { %v7168_v11 = vpop.f32.mrf.mxu3 }
 0x596   : > { %v2726_v48 = vpop.f32.mrf.mxu1 }
 0x597   : > { %v7171_v37 = vadd.f32 %v2726_v48, %v6832_v9 }
 0x599   : > { %3840 = vmatmul.msk.bf16.gmra.mxu1 %vm88_vm0, %v6465_v54 }
 0x59c   : > { %v7175_v57 = vpop.f32.mrf.mxu2 }
 0x59d   : > { %v7177_v3 = vpop.f32.mrf.mxu3 }
 0x59e   : > { %v2728_v12 = vpop.f32.mrf.mxu1 }
 0x59f   : > { %v7180_v36 = vadd.f32 %v2728_v12, %v6862_v28 }
 0x5a4   : > { %v7182_v17 = vpop.f32.mrf.mxu2 }
 0x5a5   : > { %v7184_v31 = vpop.f32.mrf.mxu3 }
 0x5a6   : > { %v2731_v35 = vpop.f32.mrf.mxu1 }
 0x5a7   : > { %v7187_v21 = vadd.f32 %v2731_v35, %v6884_v47 }
 0x5a9   : > { %3841 = vmatmul.msk.bf16.gmra.mxu1 %vm88_vm0, %v6519_v38 }
 0x5ac   : > { %v7191_v54 = vpop.f32.mrf.mxu2 }
 0x5ad   : > { %v7193_v9 = vpop.f32.mrf.mxu3 }
 0x5ae   : > { %v2733_v48 = vpop.f32.mrf.mxu1 }
 0x5af   : > { %v7196_v30 = vadd.f32 %v2733_v48, %v6914_v45 }
 0x5b1   : > { %8682 = vst [vmem:[#allocation104_spill] sm:$0xff] %v7196_v30 }
 0x5b4   : > { %v7198_v28 = vpop.f32.mrf.mxu2 }
 0x5b5   : > { %v7200_v12 = vpop.f32.mrf.mxu3 }
 0x5b6   : > { %v2736_v1 = vpop.f32.mrf.mxu1 }
 0x5b7   : > { %v7203_v24 = vadd.f32 %v2736_v1, %v6936_v16 }
 0x5b9   : > { %8683 = vst [vmem:[#allocation103_spill] sm:$0xff] %v7203_v24  ;;  %3842 = vmatmul.msk.bf16.gmra.mxu1 %vm88_vm0, %v6574_v59 }
 0x5bc   : > { %v7207_v38 = vpop.f32.mrf.mxu2 }
 0x5bd   : > { %v7209_v35 = vpop.f32.mrf.mxu3 }
 0x5be   : > { %v2738_v47 = vpop.f32.mrf.mxu1 }
 0x5bf   : > { %v7212_v8 = vadd.f32 %v2738_v47, %v6966_v23 }
 0x5c1   : > { %8684 = vst [vmem:[#allocation102_spill] sm:$0xff] %v7212_v8 }
 0x5c4   : > { %v7214_v45 = vpop.f32.mrf.mxu2 }
 0x5c5   : > { %v7216_v48 = vpop.f32.mrf.mxu3 }
 0x5c6   : > { %v2741_v27 = vpop.f32.mrf.mxu1 }
 0x5c7   : > { %v7219_v40 = vadd.f32 %v2741_v27, %v6988_v49  ;;  %v3038_v27 = vpop.f32.mrf.mxu0 }
 0x5c9   : > { %8685 = vst [vmem:[#allocation105_spill] sm:$0xff] %v7219_v40  ;;  %3843 = vmatmul.msk.bf16.gmra.mxu1 %vm88_vm0, %v6644_v53 }
 0x5cc   : > { %v7223_v1 = vpop.f32.mrf.mxu2 }
 0x5cd   : > { %8686 = vst [vmem:[#allocation101_spill] sm:$0xff] %v7223_v1  ;;  %v7225_v59 = vpop.f32.mrf.mxu3 }
 0x5ce   : > { %v2743_v16 = vpop.f32.mrf.mxu1 }
 0x5cf   : > { %v7228_v24 = vadd.f32 %v2743_v16, %v7018_v55  ;;  %v3040_v16 = vpop.f32.mrf.mxu0 }
 0x5d1   : > { %8687 = vst [vmem:[#allocation108_spill] sm:$0xff] %v7228_v24 }
 0x5d4   : > { %v7230_v23 = vpop.f32.mrf.mxu2 }
 0x5d5   : > { %8688 = vst [vmem:[#allocation106_spill] sm:$0xff] %v7230_v23  ;;  %v7232_v47 = vpop.f32.mrf.mxu3 }
 0x5d6   : > { %8689 = vst [vmem:[#allocation84_spill] sm:$0xff] %v7232_v47  ;;  %v2746_v8 = vpop.f32.mrf.mxu1 }
 0x5d7   : > { %v7235_v30 = vadd.f32 %v2746_v8, %v7040_v18 }
 0x5d9   : > { %8690 = vst [vmem:[#allocation110_spill] sm:$0xff] %v7235_v30  ;;  %3844 = vmatmul.msk.bf16.gmra.mxu1 %vm88_vm0, %v6681_v50  ;;  %v7259_v30 = vpop.f32.mrf.mxu0 }
 0x5dc   : > { %v7239_v53 = vpop.f32.mrf.mxu2 }
 0x5dd   : > { %8691 = vst [vmem:[#allocation109_spill] sm:$0xff] %v7239_v53  ;;  %v7241_v49 = vpop.f32.mrf.mxu3 }
 0x5de   : > { %8692 = vst [vmem:[#allocation79_spill] sm:$0xff] %v7241_v49  ;;  %v2748_v40 = vpop.f32.mrf.mxu1  ;;  %v2827_v49 = vrot.slane %v7150_v60, 1 }
 0x5df   : > { %v7244_v55 = vadd.f32 %v2748_v40, %v7070_v19 }
 0x5e1   : > { %8693 = vst [vmem:[#allocation107_spill] sm:$0xff] %v7244_v55 }
 0x5e4   : > { %v7246_v24 = vpop.f32.mrf.mxu2 }
 0x5e5   : > { %8694 = vst [vmem:[#allocation82_spill] sm:$0xff] %v7246_v24  ;;  %v7248_v23 = vpop.f32.mrf.mxu3  ;;  %v2826_v24 = vrot.slane %v7142_v51, 1 }
 0x5e6   : > { %8695 = vst [vmem:[#allocation86_spill] sm:$0xff] %v7248_v23  ;;  %v2751_v47 = vpop.f32.mrf.mxu1 }
 0x5e7   : > { %v7251_v8 = vadd.f32 %v2751_v47, %v7114_v42 }
 0x5e9   : > { %8696 = vst [vmem:[#allocation89_spill] sm:$0xff] %v7251_v8  ;;  %3845 = vmatmul.msk.bf16.gmra.mxu1 %vm88_vm0, %v6697_v39  ;;  %v2944_v8 = vrot.slane %v7146_v22, 7  ;;  %v3093_v22 = vsel %vm8701_vm8, %v3038_v27, 0.0  ;;  %vm8709_vm8 = vcmp.ge.f32.partialorder %v8677_v29, 0.5 }
 0x5ec   : > { %v7255_v50 = vpop.f32.mrf.mxu2 }
 0x5ed   : > { %8697 = vst [vmem:[#allocation111_spill] sm:$0xff] %v7255_v50  ;;  %v7257_v18 = vpop.f32.mrf.mxu3 }
 0x5ee   : > { %8698 = vst [vmem:[#allocation93_spill] sm:$0xff] %v7257_v18  ;;  %v2753_v40 = vpop.f32.mrf.mxu1 }
 0x5ef   : > { %v2771_v19 = vadd.f32 %v2753_v40, %v7140_v41  ;;  %v7276_v41 = vpop.f32.mrf.mxu0 }
 0x5f4   : > { %v7262_v55 = vpop.f32.mrf.mxu2 }
 0x5f5   : > { %8699 = vst [vmem:[#allocation85_spill] sm:$0xff] %v7262_v55  ;;  %v8102_v23 = vrot.slane %v7262_v55, 1  ;;  %v7266_v42 = vpop.f32.mrf.mxu3 }
 0x5f6   : > { %v8103_v47 = vrot.slane %v7266_v42, 7  ;;  %v7269_v39 = vpop.f32.mrf.mxu1 }
 0x5f7   : > { %v2857_v50 = vsel %vm1394_vm5, %v8102_v23, %v2826_v24  ;;  %v2945_v23 = vrot.slane %v7152_v14, 7  ;;  %v8705_v14 = vrot.slane %v7074_v58, 7 }
 0x5f8   : > { %v2873_v51 = vsel %vm8700_vm11, %v2857_v50, 0.0  ;;  %v2975_v18 = vsel %vm1205_vm6, %v8103_v47, %v2944_v8  ;;  %v8104_v50 = vrot.slane %v7269_v39, 1  ;;  %vm8708_vm11 = vcmp.le.f32.partialorder %v8672_v33, 6.5  ;;  %v8890_v33 = vld [vmem:[#allocation10_spill] sm:$0xff] (%p7788_p0) }
 0x5f9   : > { %v2889_v40 = vadd.f32 %v2873_v51, %v7106_v5  ;;  %v2991_v55 = vsel %vm8702_vm7, %v2975_v18, 0.0  ;;  %v2974_v47 = vsel %vm1205_vm6, %v2944_v8, %v2945_v23  ;;  %v8704_v18 = vrot.slane %v6709_v61, 7 }
 0x5fa   : > { %v3007_v5 = vsel %vm8703_vm14, %v2991_v55, 0.0  ;;  %v2856_v55 = vsel %vm1394_vm5, %v2826_v24, %v2827_v49  ;;  %v2976_v58 = vsel %vm8708_vm11, %v2974_v47, 0.0  ;;  %vm8710_vm7 = vcmp.le.f32.partialorder %v8677_v29, 6.5  ;;  %vm8711_vm14 = vmmov %vm8709_vm8 }
 0x5fb   : > { %v3109_v53 = vadd.f32 %v3093_v22, %v2889_v40  ;;  %v2669_v60 = vsel %vm1205_vm6, %v8705_v14, %v8704_v18  ;;  %v7308_v40 = vpop.f32.mrf.mxu0  ;;  %v2434_v22 = vsel %vm8707_vm10, %v7108_v4, 0.0  ;;  %v2828_v14 = vrot.slane %v7159_v26, 1 }
 0x5fc   : > { %v2670_v24 = vsel %vm8709_vm8, %v2669_v60, 0.0  ;;  %v2992_v2 = vsel %vm8711_vm14, %v2976_v58, 0.0  ;;  %vm8716_vm8 = vcmp.le.f32.partialorder %v8433_v0, 6.5  ;;  %v2829_v58 = vrot.slane %v7166_v25, 1 }
 0x5fe   : > { %v3126_v1 = vpop.f32.mrf.mxu1  ;;  %v2854_v25 = vsel %vm1394_vm5, %v2828_v14, %v2829_v58 }
 0x5ff   : > { %v3165_v51 = vrot.slane %v3126_v1, 1  ;;  %v3023_v1 = vadd.f32 %v3007_v5, %v2771_v19  ;;  %v2858_v19 = vsel %vm8710_vm7, %v2856_v55, 0.0  ;;  %v2946_v5 = vrot.slane %v7161_v56, 7 }
 0x600   : > { %v3008_v55 = vadd.f32 %v2992_v2, %v7144_v44  ;;  %v2855_v56 = vsel %vm1394_vm5, %v2827_v49, %v2828_v14  ;;  %v2947_v49 = vrot.slane %v7168_v11, 7  ;;  %v8718_v2 = vld [vmem:[#allocation78_spill] sm:$0xff] }
 0x601   : > { %v3194_v27 = vsel %vm1394_vm5, %v8104_v50, %v3165_v51  ;;  %v2859_v44 = vsel %vm8716_vm8, %v2855_v56, 0.0 }
 0x602   : > { %v3211_v8 = vsel %vm8706_vm3, %v3194_v27, 0.0  ;;  %v2686_v27 = vadd.f32 %v2670_v24, %v2434_v22  ;;  %vm8712_vm3 = vmmov %vm8708_vm11  ;;  %vm8715_vm11 = vcmp.le.f32.partialorder %v8434_v10, 6.5 }
 0x603   : > { %v3227_v61 = vsel %vm8681_vm4, %v3211_v8, 0.0  ;;  %vm8713_vm10 = vmmov %vm8712_vm3  ;;  %v7344_v22 = vpop.f32.mrf.mxu0 }
 0x604   : > { %v3243_v18 = vadd.f32 %v3227_v61, %v3023_v1  ;;  %v2874_v47 = vadd.f32 %v2858_v19, %v2686_v27  ;;  %v2973_v1 = vsel %vm1205_vm6, %v2945_v23, %v2946_v5  ;;  %vm8714_vm4 = vmmov %vm8710_vm7  ;;  %vm8717_vm7 = vcmp.ge.f32.partialorder %v8433_v0, 0.5 }
 0x605   : > { %v2977_v23 = vsel %vm8715_vm11, %v2973_v1, 0.0  ;;  %v2875_v27 = vadd.f32 %v2859_v44, %v6735_v62  ;;  %vm8719_vm14 = vmmov %vm8715_vm11  ;;  %v8726_v44 = vld [vmem:[#allocation90_spill] sm:$0xff] }
 0x606   : > { %v3129_v50 = vpop.f32.mrf.mxu1  ;;  %v7325_v4 = vadd.f32 %v3243_v18, %v3109_v53  ;;  %v3078_v53 = vsel %vm8713_vm10, %v3040_v16, 0.0  ;;  %v2993_v16 = vsel %vm8717_vm7, %v2977_v23, 0.0  ;;  %vm8721_vm10 = vmmov %vm8716_vm8  ;;  %v2830_v23 = vrot.slane %v7175_v57, 1 }
 0x607   : > { %v3166_v8 = vrot.slane %v3129_v50, 1  ;;  %v3009_v11 = vadd.f32 %v2993_v16, %v7148_v52  ;;  %vm8725_vm8 = vcmp.ge.f32.partialorder %v5227_v46, 0.5 }
 0x609   : > { %v3193_v60 = vsel %vm1394_vm5, %v3165_v51, %v3166_v8  ;;  %v3094_v51 = vadd.f32 %v3078_v53, %v2874_v47  ;;  %v2972_v47 = vsel %vm1205_vm6, %v2946_v5, %v2947_v49 }
 0x60a   : > { %v3196_v26 = vsel %vm8712_vm3, %v3193_v60, 0.0  ;;  %vm8720_vm3 = vmmov %vm8715_vm11  ;;  %vm8724_vm11 = vcmp.le.f32.partialorder %v5227_v46, 6.5  ;;  %v8887_v46 = vld [vmem:[#allocation7_spill] sm:$0xff] (%p7788_p0) }
 0x60b   : > { %v3212_v50 = vsel %vm8714_vm4, %v3196_v26, 0.0  ;;  %v3079_v56 = vsel %vm8720_vm3, %v7259_v30, 0.0  ;;  %v2860_v14 = vsel %vm8724_vm11, %v2854_v25, 0.0  ;;  %vm8730_vm3 = vmmov %vm8724_vm11  ;;  %vm8734_vm11 = vcmp.ge.f32.partialorder %v8587_v6, 0.5 }
 0x60c   : > { %v3228_v61 = vadd.f32 %v3212_v50, %v3008_v55  ;;  %v3095_v26 = vadd.f32 %v3079_v56, %v2875_v27  ;;  %v2948_v50 = vrot.slane %v7177_v3, 7  ;;  %v2831_v56 = vrot.slane %v7182_v17, 1 }
 0x60e   : > { %v3131_v18 = vpop.f32.mrf.mxu1  ;;  %v3244_v24 = vadd.f32 %v3228_v61, %v3094_v51  ;;  %v7378_v51 = vpop.f32.mrf.mxu0  ;;  %v2971_v27 = vsel %vm1205_vm6, %v2947_v49, %v2948_v50 }
 0x60f   : > { %v3167_v19 = vrot.slane %v3131_v18, 1  ;;  %v2876_v18 = vadd.f32 %v2860_v14, %v8726_v44  ;;  %v2852_v44 = vsel %vm1394_vm5, %v2830_v23, %v2831_v56 }
 0x610   : > { %v7354_v1 = vmul.f32 %v8718_v2, %v3244_v24  ;;  %v8727_v24 = vld [vmem:[#allocation77_spill] sm:$0xff]  ;;  %v2853_v2 = vsel %vm1394_vm5, %v2829_v58, %v2830_v23 }
 0x611   : > { %v3192_v60 = vsel %vm1394_vm5, %v3166_v8, %v3167_v19  ;;  %v8722_v8 = vld [vmem:[#allocation49_spill] sm:$0xff] }
 0x612   : > { %v3197_v55 = vsel %vm8719_vm14, %v3192_v60, 0.0  ;;  %v3276_v62 = vsel %vm88_vm0, %v7354_v1, 0.0  ;;  %vm8723_vm4 = vcmp.le.f32.partialorder %v8722_v8, 6.5 }
 0x613   : > { %v3213_v5 = vsel %vm8721_vm10, %v3197_v55, 0.0  ;;  %3277 = vadd.xlane.f32.xlu0 %v3276_v62  ;;  %v2978_v52 = vsel %vm8723_vm4, %v2972_v47, 0.0  ;;  %vm8728_vm7 = vmmov %vm8723_vm4  ;;  %v2949_v62 = vrot.slane %v7184_v31, 7 }
 0x614   : > { %v3229_v53 = vadd.f32 %v3213_v5, %v3009_v11  ;;  %v2994_v0 = vsel %vm8725_vm8, %v2978_v52, 0.0  ;;  %vm8729_vm14 = vmmov %vm8723_vm4  ;;  %vm8733_vm4 = vcmp.le.f32.partialorder %v8587_v6, 6.5 }
 0x615   : > { %v3010_v57 = vadd.f32 %v2994_v0, %v7155_v15  ;;  %v3080_v11 = vsel %vm8729_vm14, %v7276_v41, 0.0  ;;  %v2861_v58 = vsel %vm8733_vm4, %v2853_v2, 0.0  ;;  %v2970_v0 = vsel %vm1205_vm6, %v2948_v50, %v2949_v62  ;;  %vm8739_vm14 = vmmov %vm8733_vm4 }
 0x616   : > { %v3134_v10 = vpop.f32.mrf.mxu1  ;;  %v3245_v30 = vadd.f32 %v3229_v53, %v3095_v26  ;;  %v3096_v25 = vadd.f32 %v3080_v11, %v2876_v18  ;;  %v8735_v26 = vld [vmem:[#allocation94_spill] sm:$0xff]  ;;  %v7411_v14 = vpop.f32.mrf.mxu0  ;;  %v2950_v2 = vrot.slane %v7193_v9, 7  ;;  %vm8743_vm4 = vcmp.ge.f32.partialorder %v5235_v34, 0.5 }
 0x617   : > { %v3168_v61 = vrot.slane %v3134_v10, 1  ;;  %v2877_v53 = vadd.f32 %v2861_v58, %v8735_v26  ;;  %v8736_v10 = vld [vmem:[#allocation76_spill] sm:$0xff] }
 0x618   : > { %v7384_v16 = vmul.f32 %v8727_v24, %v3245_v30 }
 0x619   : > { %v3191_v3 = vsel %vm1394_vm5, %v3167_v19, %v3168_v61  ;;  %v8731_v19 = vld [vmem:[#allocation50_spill] sm:$0xff] }
 0x61a   : > { %v3198_v47 = vsel %vm8728_vm7, %v3191_v3, 0.0  ;;  %v3279_v60 = vsel %vm88_vm0, %v7384_v16, 0.0  ;;  %vm8732_vm10 = vcmp.le.f32.partialorder %v8731_v19, 6.5 }
 0x61b   : > { %v3214_v49 = vsel %vm8730_vm3, %v3198_v47, 0.0  ;;  %3280 = vadd.xlane.f32.xlu0 %v3279_v60  ;;  %v2979_v15 = vsel %vm8732_vm10, %v2971_v27, 0.0  ;;  %vm8737_vm8 = vmmov %vm8732_vm10  ;;  %vm8742_vm10 = vcmp.le.f32.partialorder %v5235_v34, 6.5  ;;  %v2832_v47 = vrot.slane %v7191_v54, 1 }
 0x61c   : > { %v3230_v55 = vadd.f32 %v3214_v49, %v3010_v57  ;;  %v2995_v41 = vsel %vm8734_vm11, %v2979_v15, 0.0  ;;  %vm8738_vm7 = vmmov %vm8737_vm8  ;;  %v2862_v23 = vsel %vm8742_vm10, %v2852_v44, 0.0  ;;  %v8744_v49 = vld [vmem:[#allocation95_spill] sm:$0xff] }
 0x61d   : > { %v3011_v17 = vadd.f32 %v2995_v41, %v7164_v13  ;;  %v3081_v27 = vsel %vm8738_vm7, %v7308_v40, 0.0  ;;  %v2878_v19 = vadd.f32 %v2862_v23, %v8744_v49  ;;  %v8745_v15 = vld [vmem:[#allocation75_spill] sm:$0xff]  ;;  %v2851_v54 = vsel %vm1394_vm5, %v2831_v56, %v2832_v47  ;;  %vm8748_vm7 = vmmov %vm8742_vm10 }
 0x61e   : > { %v3136_v5 = vpop.f32.mrf.mxu1  ;;  %v3246_v52 = vadd.f32 %v3230_v55, %v3096_v25  ;;  %v3097_v3 = vadd.f32 %v3081_v27, %v2877_v53  ;;  %v2969_v55 = vsel %vm1205_vm6, %v2949_v62, %v2950_v2  ;;  %vm8752_vm10 = vcmp.ge.f32.partialorder %v5239_v7, 0.5 }
 0x61f   : > { %v3169_v8 = vrot.slane %v3136_v5, 1  ;;  %v7451_v5 = vpop.f32.mrf.mxu0 }
 0x620   : > { %v7414_v30 = vmul.f32 %v8736_v10, %v3246_v52 }
 0x621   : > { %v3190_v31 = vsel %vm1394_vm5, %v3168_v61, %v3169_v8  ;;  %v8740_v61 = vld [vmem:[#allocation51_spill] sm:$0xff] }
 0x622   : > { %v3199_v18 = vsel %vm8737_vm8, %v3190_v31, 0.0  ;;  %v3282_v24 = vsel %vm88_vm0, %v7414_v30, 0.0  ;;  %vm8741_vm3 = vcmp.le.f32.partialorder %v8740_v61, 6.5  ;;  %v2833_v31 = vrot.slane %v7198_v28, 1 }
 0x623   : > { %v3215_v50 = vsel %vm8739_vm14, %v3199_v18, 0.0  ;;  %3283 = vadd.xlane.f32.xlu1 %v3282_v24  ;;  %v2980_v13 = vsel %vm8741_vm3, %v2970_v0, 0.0  ;;  %vm8746_vm11 = vmmov %vm8741_vm3  ;;  %v2951_v0 = vrot.slane %v7200_v12, 7  ;;  %v8753_v24 = vld [vmem:[#allocation96_spill] sm:$0xff] }
 0x624   : > { %v3231_v57 = vadd.f32 %v3215_v50, %v3011_v17  ;;  %v2996_v40 = vsel %vm8743_vm4, %v2980_v13, 0.0  ;;  %vm8747_vm8 = vmmov %vm8741_vm3  ;;  %vm8751_vm3 = vcmp.le.f32.partialorder %v5239_v7, 6.5  ;;  %v8754_v50 = vld [vmem:[#allocation74_spill] sm:$0xff]  ;;  %v2850_v28 = vsel %vm1394_vm5, %v2832_v47, %v2833_v31  ;;  %v8888_v7 = vld [vmem:[#allocation8_spill] sm:$0xff] (%p7788_p0) }
 0x625   : > { %v3012_v9 = vadd.f32 %v2996_v40, %v7171_v37  ;;  %v3082_v62 = vsel %vm8747_vm8, %v7344_v22, 0.0  ;;  %v8749_v37 = vld [vmem:[#allocation52_spill] sm:$0xff]  ;;  %v2863_v10 = vsel %vm8751_vm3, %v2851_v54, 0.0  ;;  %v2968_v13 = vsel %vm1205_vm6, %v2950_v2, %v2951_v0  ;;  %vm8757_vm8 = vmmov %vm8751_vm3  ;;  %v8761_v54 = vld [vmem:[#allocation97_spill] sm:$0xff] }
 0x626   : > { %v3139_v60 = vpop.f32.mrf.mxu1  ;;  %v3247_v11 = vadd.f32 %v3231_v57, %v3097_v3  ;;  %vm8750_vm14 = vcmp.le.f32.partialorder %v8749_v37, 6.5  ;;  %v3098_v56 = vadd.f32 %v3082_v62, %v2878_v19  ;;  %v2879_v27 = vadd.f32 %v2863_v10, %v8753_v24 }
 0x627   : > { %v3170_v6 = vrot.slane %v3139_v60, 1  ;;  %v2981_v26 = vsel %vm8750_vm14, %v2969_v55, 0.0  ;;  %vm8755_vm4 = vmmov %vm8750_vm14  ;;  %v3060_v40 = vpop.f32.mrf.mxu0  ;;  %v2864_v49 = vsel %vm1071_vm13, %v2850_v28, 0.0  ;;  %v2952_v19 = vrot.slane %v7209_v35, 7  ;;  %v8769_v28 = vld [vmem:[#allocation72_spill] sm:$0xff] }
 0x628   : > { %v7442_v25 = vmul.f32 %v8745_v15, %v3247_v11  ;;  %v2997_v22 = vsel %vm8752_vm10, %v2981_v26, 0.0  ;;  %v8758_v11 = vld [vmem:[#allocation53_spill] sm:$0xff]  ;;  %v2834_v15 = vrot.slane %v7207_v38, 1  ;;  %vm8760_vm14 = vcmp.ge.f32.partialorder %v5243_v32, 0.5 }
 0x629   : > { %v3189_v58 = vsel %vm1394_vm5, %v3169_v8, %v3170_v6  ;;  %v3013_v12 = vadd.f32 %v2997_v22, %v7180_v36  ;;  %v2953_v22 = vrot.slane %v7216_v48, 7 }
 0x62a   : > { %v3200_v52 = vsel %vm8746_vm11, %v3189_v58, 0.0  ;;  %v3285_v41 = vsel %vm88_vm0, %v7442_v25, 0.0  ;;  %vm8756_vm11 = vmmov %vm8755_vm4  ;;  %v2849_v38 = vsel %vm1394_vm5, %v2833_v31, %v2834_v15 }
 0x62b   : > { %v3216_v8 = vsel %vm8748_vm7, %v3200_v52, 0.0  ;;  %3286 = vadd.xlane.f32.xlu1 %v3285_v41  ;;  %v3083_v60 = vsel %vm8756_vm11, %v7378_v51, 0.0  ;;  %vm8759_vm7 = vcmp.le.f32.partialorder %v8758_v11, 6.5  ;;  %v2880_v52 = vadd.f32 %v2864_v49, %v8761_v54  ;;  %v8762_v41 = vld [vmem:[#allocation73_spill] sm:$0xff]  ;;  %v8773_v49 = vld [vmem:[#allocation55_spill] sm:$0xff] }
 0x62c   : > { %v3232_v53 = vadd.f32 %v3216_v8, %v3012_v9  ;;  %v2982_v36 = vsel %vm8759_vm7, %v2968_v13, 0.0  ;;  %v2967_v8 = vsel %vm1205_vm6, %v2951_v0, %v2952_v19  ;;  %vm8763_vm3 = vmmov %vm8759_vm7  ;;  %v8765_v0 = vld [vmem:[#allocation54_spill] sm:$0xff]  ;;  %v2865_v31 = vsel %vm1072_vm9, %v2849_v38, 0.0  ;;  %v8776_v54 = vld [vmem:[#allocation101_spill] sm:$0xff] }
 0x62d   : > { %v2998_v51 = vsel %vm8760_vm14, %v2982_v36, 0.0  ;;  %vm8764_vm10 = vmmov %vm8763_vm3  ;;  %vm8767_vm11 = vcmp.ge.f32.partialorder %v8481_v63, 0.5  ;;  %vm8774_vm14 = vcmp.le.f32.partialorder %v8773_v49, 6.5 }
 0x62e   : > { %v3141_v17 = vpop.f32.mrf.mxu1  ;;  %v3248_v44 = vadd.f32 %v3232_v53, %v3098_v56  ;;  %v3014_v35 = vadd.f32 %v2998_v51, %v7187_v21  ;;  %v3084_v53 = vsel %vm8764_vm10, %v7411_v14, 0.0  ;;  %vm8781_vm10 = vmmov %vm8774_vm14 }
 0x62f   : > { %v3171_v18 = vrot.slane %v3141_v17, 1  ;;  %v3100_v17 = vadd.f32 %v3084_v53, %v2880_v52  ;;  %v3063_v24 = vpop.f32.mrf.mxu0  ;;  %v2836_v52 = vrot.slane %v8776_v54, 1 }
 0x630   : > { %v7472_v61 = vmul.f32 %v8754_v50, %v3248_v44 }
 0x631   : > { %v3188_v3 = vsel %vm1394_vm5, %v3170_v6, %v3171_v18  ;;  %v3099_v6 = vadd.f32 %v3083_v60, %v2879_v27  ;;  %v8770_v60 = vld [vmem:[#allocation104_spill] sm:$0xff] }
 0x632   : > { %v3201_v57 = vsel %vm8755_vm4, %v3188_v3, 0.0  ;;  %v3288_v23 = vsel %vm88_vm0, %v7472_v61, 0.0  ;;  %vm8766_vm4 = vcmp.le.f32.partialorder %v8765_v0, 6.5  ;;  %v8768_v3 = vld [vmem:[#allocation91_spill] sm:$0xff] }
 0x633   : > { %v3217_v2 = vsel %vm8757_vm8, %v3201_v57, 0.0  ;;  %3289 = vadd.xlane.f32.xlu2 %v3288_v23  ;;  %v2983_v21 = vsel %vm8766_vm4, %v2967_v8, 0.0  ;;  %v2966_v23 = vsel %vm1205_vm6, %v2952_v19, %v2953_v22  ;;  %vm8771_vm8 = vmmov %vm8766_vm4 }
 0x634   : > { %v3233_v47 = vadd.f32 %v3217_v2, %v3013_v12  ;;  %v2999_v14 = vsel %vm8767_vm11, %v2983_v21, 0.0  ;;  %v2881_v12 = vadd.f32 %v2865_v31, %v8768_v3  ;;  %vm8772_vm7 = vmmov %vm8766_vm4  ;;  %v2984_v19 = vsel %vm8774_vm14, %v2966_v23, 0.0  ;;  %v8785_v3 = vld [vmem:[#allocation40_spill] sm:$0xff]  ;;  %v8787_v23 = vld [vmem:[#allocation106_spill] sm:$0xff] }
 0x635   : > { %vm8782_vm4 = vmmov %vm8781_vm10 }
 0x636   : > { %v3144_v55 = vpop.f32.mrf.mxu1  ;;  %v3249_v58 = vadd.f32 %v3233_v47, %v3099_v6  ;;  %v3085_v6 = vsel %vm8772_vm7, %v7451_v5, 0.0  ;;  %v3086_v31 = vsel %vm8782_vm4, %v3060_v40, 0.0 }
 0x637   : > { %v3172_v9 = vrot.slane %v3144_v55, 1  ;;  %v3101_v55 = vadd.f32 %v3085_v6, %v2881_v12  ;;  %v3065_v38 = vpop.f32.mrf.mxu0  ;;  %v8786_v12 = vld [vmem:[#allocation84_spill] sm:$0xff]  ;;  %v8790_v6 = vld [vmem:[#allocation70_spill] sm:$0xff] }
 0x638   : > { %v7500_v62 = vmul.f32 %v8762_v41, %v3249_v58 }
 0x639   : > { %v3187_v37 = vsel %vm1394_vm5, %v3171_v18, %v3172_v9  ;;  %v2835_v18 = vrot.slane %v7214_v45, 1  ;;  %v3015_v45 = vadd.f32 %v2999_v14, %v8770_v60 }
 0x63a   : > { %v3202_v26 = vsel %vm8763_vm3, %v3187_v37, 0.0  ;;  %v3291_v56 = vsel %vm88_vm0, %v7500_v62, 0.0  ;;  %v8778_v37 = vld [vmem:[#allocation80_spill] sm:$0xff] }
 0x63b   : > { %v3218_v10 = vsel %vm1071_vm13, %v3202_v26, 0.0  ;;  %3292 = vadd.xlane.f32.xlu2 %v3291_v56  ;;  %v2848_v2 = vsel %vm1394_vm5, %v2834_v15, %v2835_v18  ;;  %v8775_v15 = vld [vmem:[#allocation39_spill] sm:$0xff]  ;;  %v2847_v21 = vsel %vm1394_vm5, %v2835_v18, %v2836_v52 }
 0x63c   : > { %v3234_v44 = vadd.f32 %v3218_v10, %v3014_v35  ;;  %v2866_v51 = vsel %vm1073_vm15, %v2848_v2, 0.0  ;;  %vm8777_vm3 = vcmp.ge.f32.partialorder %v8775_v15, 0.5  ;;  %v8779_v26 = vld [vmem:[#allocation71_spill] sm:$0xff]  ;;  %v2867_v18 = vsel %vm8338_vm1, %v2847_v21, 0.0 }
 0x63d   : > { %v3000_v5 = vsel %vm8777_vm3, %v2984_v19, 0.0  ;;  %v2882_v35 = vadd.f32 %v2866_v51, %v8778_v37  ;;  %v8780_v10 = vld [vmem:[#allocation103_spill] sm:$0xff] }
 0x63e   : > { %v3146_v27 = vpop.f32.mrf.mxu1  ;;  %v3250_v50 = vadd.f32 %v3234_v44, %v3100_v17  ;;  %v3016_v0 = vadd.f32 %v3000_v5, %v8780_v10  ;;  %v8794_v5 = vld [vmem:[#allocation57_spill] sm:$0xff] }
 0x63f   : > { %v3173_v13 = vrot.slane %v3146_v27, 1  ;;  %v8783_v27 = vld [vmem:[#allocation56_spill] sm:$0xff]  ;;  %v3102_v14 = vadd.f32 %v3086_v31, %v2882_v35  ;;  %v3068_v51 = vpop.f32.mrf.mxu0  ;;  %vm8795_vm3 = vcmp.le.f32.partialorder %v8794_v5, 6.5  ;;  %v8798_v10 = vld [vmem:[#allocation109_spill] sm:$0xff] }
 0x640   : > { %v7528_v57 = vmul.f32 %v8769_v28, %v3250_v50  ;;  %vm8784_vm11 = vcmp.le.f32.partialorder %v8783_v27, 6.5  ;;  %v2955_v28 = vrot.slane %v8786_v12, 7  ;;  %v8800_v31 = vld [vmem:[#allocation81_spill] sm:$0xff]  ;;  %vm8803_vm4 = vmmov %vm8795_vm3 }
 0x641   : > { %v3186_v48 = vsel %vm1394_vm5, %v3172_v9, %v3173_v13  ;;  %v2954_v9 = vrot.slane %v7225_v59, 7  ;;  %vm8792_vm7 = vmmov %vm8784_vm11  ;;  %v8801_v27 = vld [vmem:[#allocation69_spill] sm:$0xff] }
 0x642   : > { %v3203_v11 = vsel %vm8771_vm8, %v3186_v48, 0.0  ;;  %v3294_v36 = vsel %vm88_vm0, %v7528_v57, 0.0  ;;  %v2837_v48 = vrot.slane %v8787_v23, 1  ;;  %vm8788_vm8 = vcmp.ge.f32.partialorder %v8785_v3, 0.5  ;;  %vm8793_vm14 = vmmov %vm8792_vm7  ;;  %v8802_v3 = vld [vmem:[#allocation105_spill] sm:$0xff] }
 0x643   : > { %v3219_v47 = vsel %vm1072_vm9, %v3203_v11, 0.0  ;;  %3295 = vadd.xlane.f32.xlu0 %v3294_v36  ;;  %v2965_v53 = vsel %vm1205_vm6, %v2953_v22, %v2954_v9  ;;  %v8789_v11 = vld [vmem:[#allocation98_spill] sm:$0xff]  ;;  %v2964_v49 = vsel %vm1205_vm6, %v2954_v9, %v2955_v28 }
 0x644   : > { %v3235_v58 = vadd.f32 %v3219_v47, %v3015_v45  ;;  %v2985_v50 = vsel %vm8784_vm11, %v2965_v53, 0.0  ;;  %v2883_v36 = vadd.f32 %v2867_v18, %v8789_v11  ;;  %v2846_v15 = vsel %vm1394_vm5, %v2836_v52, %v2837_v48  ;;  %v8796_v52 = vld [vmem:[#allocation41_spill] sm:$0xff]  ;;  %v8797_v53 = vld [vmem:[#allocation79_spill] sm:$0xff]  ;;  %vm8804_vm11 = vmmov %vm8795_vm3 }
 0x645   : > { %v3001_v40 = vsel %vm8788_vm8, %v2985_v50, 0.0 }
 0x646   : > { %v3149_v41 = vpop.f32.mrf.mxu1  ;;  %v3251_v8 = vadd.f32 %v3235_v58, %v3101_v55  ;;  %v8791_v55 = vld [vmem:[#allocation102_spill] sm:$0xff] }
 0x647   : > { %v3174_v63 = vrot.slane %v3149_v41, 1  ;;  %v3017_v58 = vadd.f32 %v3001_v40, %v8791_v55  ;;  %v8805_v40 = vld [vmem:[#allocation58_spill] sm:$0xff]  ;;  %v3070_v11 = vpop.f32.mrf.mxu0 }
 0x648   : > { %v7556_v56 = vmul.f32 %v8779_v26, %v3251_v8  ;;  %v3087_v8 = vsel %vm8793_vm14, %v3063_v24, 0.0  ;;  %v2868_v26 = vsel %vm8346_vm2, %v2846_v15, 0.0  ;;  %vm8806_vm8 = vcmp.le.f32.partialorder %v8805_v40, 6.5  ;;  %v8823_v40 = vld [vmem:[#allocation83_spill] sm:$0xff] }
 0x649   : > { %v3185_v59 = vsel %vm1394_vm5, %v3173_v13, %v3174_v63  ;;  %v3103_v37 = vadd.f32 %v3087_v8, %v2883_v36  ;;  %v8807_v36 = vld [vmem:[#allocation86_spill] sm:$0xff]  ;;  %vm8814_vm14 = vmmov %vm8806_vm8 }
 0x64a   : > { %v3204_v17 = vsel %vm8781_vm10, %v3185_v59, 0.0  ;;  %v3297_v44 = vsel %vm88_vm0, %v7556_v56, 0.0  ;;  %v2956_v59 = vrot.slane %v8797_v53, 7  ;;  %vm8799_vm10 = vcmp.ge.f32.partialorder %v8796_v52, 0.5 }
 0x64b   : > { %v3220_v22 = vsel %vm1073_vm15, %v3204_v17, 0.0  ;;  %3298 = vadd.xlane.f32.xlu1 %v3297_v44 }
 0x64c   : > { %v3236_v13 = vadd.f32 %v3220_v22, %v3016_v0  ;;  %v2838_v0 = vrot.slane %v8798_v10, 1  ;;  %v2884_v22 = vadd.f32 %v2868_v26, %v8800_v31  ;;  %v8813_v26 = vld [vmem:[#allocation108_spill] sm:$0xff] }
 0x64e   : > { %v3151_v60 = vpop.f32.mrf.mxu1  ;;  %v3252_v45 = vadd.f32 %v3236_v13, %v3102_v14  ;;  %v2963_v14 = vsel %vm1205_vm6, %v2955_v28, %v2956_v59  ;;  %v2845_v12 = vsel %vm1394_vm5, %v2837_v48, %v2838_v0 }
 0x64f   : > { %v3175_v2 = vrot.slane %v3151_v60, 1  ;;  %v2869_v55 = vsel %vm1076_vm12, %v2845_v12, 0.0  ;;  %v3073_v12 = vpop.f32.mrf.mxu0 }
 0x650   : > { %v7583_v47 = vmul.f32 %v8790_v6, %v3252_v45  ;;  %v3088_v45 = vsel %vm8804_vm11, %v3065_v38, 0.0  ;;  %v2957_v6 = vrot.slane %v8807_v36, 7 }
 0x651   : > { %v3184_v19 = vsel %vm1394_vm5, %v3174_v63, %v3175_v2  ;;  %v2986_v63 = vsel %vm8795_vm3, %v2964_v49, 0.0  ;;  %v3104_v48 = vadd.f32 %v3088_v45, %v2884_v22  ;;  %vm8815_vm3 = vmmov %vm8806_vm8  ;;  %v8818_v22 = vld [vmem:[#allocation93_spill] sm:$0xff] }
 0x652   : > { %v3205_v54 = vsel %vm8792_vm7, %v3184_v19, 0.0  ;;  %v3300_v41 = vsel %vm88_vm0, %v7583_v47, 0.0  ;;  %v3002_v24 = vsel %vm8799_vm10, %v2986_v63, 0.0  ;;  %v8808_v19 = vld [vmem:[#allocation42_spill] sm:$0xff]  ;;  %v2962_v63 = vsel %vm1205_vm6, %v2956_v59, %v2957_v6 }
 0x653   : > { %v3221_v9 = vsel %vm8338_vm1, %v3205_v54, 0.0  ;;  %3301 = vadd.xlane.f32.xlu2 %v3300_v41  ;;  %v3018_v18 = vadd.f32 %v3002_v24, %v8802_v3  ;;  %vm8810_vm7 = vcmp.ge.f32.partialorder %v8808_v19, 0.5  ;;  %v3089_v59 = vsel %vm8815_vm3, %v3068_v51, 0.0  ;;  %v8816_v24 = vld [vmem:[#allocation59_spill] sm:$0xff]  ;;  %v8825_v19 = vld [vmem:[#allocation110_spill] sm:$0xff] }
 0x654   : > { %v3237_v35 = vadd.f32 %v3221_v9, %v3017_v58  ;;  %v8809_v58 = vld [vmem:[#allocation82_spill] sm:$0xff]  ;;  %v8811_v9 = vld [vmem:[#allocation99_spill] sm:$0xff]  ;;  %vm8817_vm10 = vcmp.le.f32.partialorder %v8816_v24, 6.5 }
 0x655   : > { %v2839_v15 = vrot.slane %v8809_v58, 1  ;;  %v2885_v5 = vadd.f32 %v2869_v55, %v8811_v9  ;;  %v2988_v31 = vsel %vm8817_vm10, %v2962_v63, 0.0  ;;  %v8826_v58 = vrot.slane %v7266_v42, 7  ;;  %v8827_v9 = vld [vmem:[#allocation85_spill] sm:$0xff] }
 0x656   : > { %v3154_v21 = vpop.f32.mrf.mxu1  ;;  %v3253_v17 = vadd.f32 %v3237_v35, %v3103_v37  ;;  %v8812_v37 = vld [vmem:[#allocation68_spill] sm:$0xff] }
 0x657   : > { %v3176_v44 = vrot.slane %v3154_v21, 1  ;;  %v2844_v10 = vsel %vm1394_vm5, %v2838_v0, %v2839_v15 }
 0x658   : > { %v7610_v50 = vmul.f32 %v8801_v27, %v3253_v17  ;;  %v2958_v27 = vrot.slane %v8818_v22, 7 }
 0x659   : > { %v3183_v13 = vsel %vm1394_vm5, %v3175_v2, %v3176_v44  ;;  %v2987_v2 = vsel %vm8806_vm8, %v2963_v14, 0.0  ;;  %v3105_v14 = vadd.f32 %v3089_v59, %v2885_v5  ;;  %v8828_v5 = vrot.slane %v8827_v9, 1  ;;  %vm8829_vm8 = vmmov %vm8817_vm10 }
 0x65a   : > { %v3206_v23 = vsel %vm8803_vm4, %v3183_v13, 0.0  ;;  %v3303_v60 = vsel %vm88_vm0, %v7610_v50, 0.0  ;;  %v3003_v38 = vsel %vm8810_vm7, %v2987_v2, 0.0  ;;  %v8819_v13 = vld [vmem:[#allocation43_spill] sm:$0xff]  ;;  %v2961_v36 = vsel %vm1205_vm6, %v2957_v6, %v2958_v27  ;;  %vm8830_vm7 = vmmov %vm8829_vm8 }
 0x65b   : > { %v3222_v28 = vsel %vm8346_vm2, %v3206_v23, 0.0  ;;  %3304 = vadd.xlane.f32.xlu0 %v3303_v60  ;;  %v3019_v53 = vadd.f32 %v3003_v38, %v8813_v26  ;;  %vm8820_vm4 = vcmp.le.f32.partialorder %v8819_v13, 6.5  ;;  %vm8821_vm11 = vcmp.ge.f32.partialorder %v8819_v13, 0.5  ;;  %v8822_v23 = vld [vmem:[#allocation111_spill] sm:$0xff]  ;;  %v8834_v26 = vld [vmem:[#allocation61_spill] sm:$0xff] }
 0x65c   : > { %v3238_v49 = vadd.f32 %v3222_v28, %v3018_v18  ;;  %v2870_v3 = vsel %vm8820_vm4, %v2844_v10, 0.0  ;;  %v3004_v18 = vsel %vm8821_vm11, %v2988_v31, 0.0  ;;  %v2840_v51 = vrot.slane %v8822_v23, 1  ;;  %v8838_v31 = vld [vmem:[#allocation45_spill] sm:$0xff] }
 0x65d   : > { %v2886_v2 = vadd.f32 %v2870_v3, %v8823_v40  ;;  %v3020_v55 = vadd.f32 %v3004_v18, %v8825_v19  ;;  %vm8835_vm3 = vcmp.le.f32.partialorder %v8834_v26, 6.5  ;;  %v3075_v3 = vpop.f32.mrf.mxu0  ;;  %v8843_v18 = vld [vmem:[#allocation100_spill] sm:$0xff]  ;;  %v8847_v19 = vld [vmem:[#allocation89_spill] sm:$0xff] }
 0x65e   : > { %v3156_v54 = vpop.f32.mrf.mxu1  ;;  %v3254_v41 = vadd.f32 %v3238_v49, %v3104_v48  ;;  %v8824_v48 = vld [vmem:[#allocation67_spill] sm:$0xff]  ;;  %v2843_v38 = vsel %vm1394_vm5, %v2839_v15, %v2840_v51  ;;  %v2842_v6 = vsel %vm1394_vm5, %v2840_v51, %v8828_v5  ;;  %v8844_v51 = vld [vmem:[#allocation66_spill] sm:$0xff] }
 0x65f   : > { %v3177_v8 = vrot.slane %v3156_v54, 1  ;;  %v2960_v54 = vsel %vm1205_vm6, %v2958_v27, %v8826_v58 }
 0x660   : > { %v7639_v35 = vmul.f32 %v8812_v37, %v3254_v41  ;;  %v3090_v37 = vsel %vm8830_vm7, %v3070_v11, 0.0 }
 0x661   : > { %v3182_v52 = vsel %vm1394_vm5, %v3176_v44, %v3177_v8  ;;  %v3106_v10 = vadd.f32 %v3090_v37, %v2886_v2 }
 0x662   : > { %v3207_v21 = vsel %vm8814_vm14, %v3182_v52, 0.0  ;;  %v3306_v17 = vsel %vm88_vm0, %v7639_v35, 0.0  ;;  %v8831_v52 = vld [vmem:[#allocation60_spill] sm:$0xff]  ;;  %vm8833_vm14 = vmmov %vm8820_vm4  ;;  %vm8839_vm4 = vcmp.le.f32.partialorder %v8838_v31, 6.5 }
 0x663   : > { %v3223_v44 = vsel %vm1076_vm12, %v3207_v21, 0.0  ;;  %3307 = vadd.xlane.f32.xlu1 %v3306_v17  ;;  %vm8832_vm6 = vcmp.le.f32.partialorder %v8831_v52, 6.5  ;;  %v8836_v17 = vld [vmem:[#allocation44_spill] sm:$0xff]  ;;  %v8891_v52 = vld [vmem:[#allocation11_spill] sm:$0xff] (%p7788_p0) }
 0x664   : > { %v3239_v0 = vadd.f32 %v3223_v44, %v3019_v53  ;;  %v2990_v53 = vsel %vm8835_vm3, %v2960_v54, 0.0  ;;  %vm8837_vm10 = vcmp.le.f32.partialorder %v8836_v17, 6.5  ;;  %v2872_v44 = vsel %vm8839_vm4, %v2842_v6, 0.0  ;;  %vm8848_vm7 = vmmov %vm8832_vm6 }
 0x665   : > { %v2871_v59 = vsel %vm8837_vm10, %v2843_v38, 0.0  ;;  %vm8840_vm11 = vcmp.ge.f32.partialorder %v8836_v17, 0.5  ;;  %v2888_v23 = vadd.f32 %v2872_v44, %v8843_v18 }
 0x666   : > { %v3159_v60 = vpop.f32.mrf.mxu1  ;;  %v3255_v45 = vadd.f32 %v3239_v0, %v3105_v14  ;;  %v8842_v0 = vld [vmem:[#allocation88_spill] sm:$0xff] }
 0x667   : > { %v3178_v28 = vrot.slane %v3159_v60, 1  ;;  %v2887_v13 = vadd.f32 %v2871_v59, %v8842_v0 }
 0x668   : > { %v7666_v49 = vmul.f32 %v8824_v48, %v3255_v45  ;;  %v8845_v45 = vld [vmem:[#allocation107_spill] sm:$0xff] }
 0x669   : > { %v3181_v41 = vsel %vm1394_vm5, %v3177_v8, %v3178_v28  ;;  %v2989_v8 = vsel %vm8832_vm6, %v2961_v36, 0.0  ;;  %v8846_v36 = vrot.slane %v7269_v39, 1  ;;  %vm8849_vm6 = vmmov %vm8835_vm3  ;;  %v3092_v39 = vsel %vm8835_vm3, %v3075_v3, 0.0 }
 0x66a   : > { %v3208_v63 = vsel %vm8829_vm8, %v3181_v41, 0.0  ;;  %v3309_v42 = vsel %vm88_vm0, %v7666_v49, 0.0  ;;  %v3005_v11 = vsel %vm8840_vm11, %v2989_v8, 0.0  ;;  %vm8841_vm8 = vcmp.ge.f32.partialorder %v8838_v31, 0.5 }
 0x66b   : > { %v3224_v15 = vsel %vm8833_vm14, %v3208_v63, 0.0  ;;  %3310 = vadd.xlane.f32.xlu2 %v3309_v42  ;;  %v3006_v27 = vsel %vm8841_vm8, %v2990_v53, 0.0  ;;  %v3021_v40 = vadd.f32 %v3005_v11, %v8845_v45  ;;  %vm8850_vm14 = vmmov %vm8848_vm7  ;;  %v3108_v63 = vadd.f32 %v3092_v39, %v2888_v23 }
 0x66c   : > { %v3240_v21 = vadd.f32 %v3224_v15, %v3020_v55  ;;  %v3022_v55 = vadd.f32 %v3006_v27, %v8847_v19  ;;  %v3091_v38 = vsel %vm8850_vm14, %v3073_v12, 0.0  ;;  %v8852_v15 = vld [vmem:[#allocation63_spill] sm:$0xff]  ;;  %v8853_v12 = vld [vmem:[#allocation64_spill] sm:$0xff] }
 0x66d   : > { %v3107_v42 = vadd.f32 %v3091_v38, %v2887_v13  ;;  %v7730_v53 = vmul.f32 %v8852_v15, %v7325_v4 }
 0x66e   : > { %v3161_v24 = vpop.f32.mrf.mxu1  ;;  %v3256_v22 = vadd.f32 %v3240_v21, %v3106_v10  ;;  %v8854_v21 = vld [vmem:[#allocation65_spill] sm:$0xff] }
 0x66f   : > { %v3179_v14 = vrot.slane %v3161_v24, 1  ;;  %v3321_v44 = vsel %vm88_vm0, %v7730_v53, 0.0 }
 0x670   : > { %v7704_v60 = vmul.f32 %v8844_v51, %v3256_v22 }
 0x671   : > { %v3180_v2 = vsel %vm1394_vm5, %v3178_v28, %v3179_v14  ;;  %v3195_v48 = vsel %vm1394_vm5, %v3179_v14, %v8846_v36  ;;  %vm8851_vm5 = vmmov %vm8839_vm4 }
 0x672   : > { %v3209_v58 = vsel %vm8848_vm7, %v3180_v2, 0.0  ;;  %v3210_v54 = vsel %vm8849_vm6, %v3195_v48, 0.0  ;;  %v3312_v41 = vsel %vm88_vm0, %v7704_v60, 0.0 }
 0x673   : > { %v3225_v28 = vsel %vm8837_vm10, %v3209_v58, 0.0  ;;  %v3226_v9 = vsel %vm8851_vm5, %v3210_v54, 0.0  ;;  %3313 = vadd.xlane.f32.xlu0 %v3312_v41 }
 0x674   : > { %v3241_v5 = vadd.f32 %v3225_v28, %v3021_v40  ;;  %v3242_v6 = vadd.f32 %v3226_v9, %v3022_v55 }
 0x676   : > { %v3258_v37 = vadd.f32 %v3242_v6, %v3108_v63  ;;  %v3257_v8 = vadd.f32 %v3241_v5, %v3107_v42 }
 0x678   : > { %v7733_v10 = vmul.f32 %v8853_v12, %v3258_v37  ;;  %v7736_v17 = vmul.f32 %v8854_v21, %v3257_v8 }
 0x67a   : > { %v3318_v59 = vsel %vm88_vm0, %v7733_v10, 0.0  ;;  %v3315_v31 = vsel %vm88_vm0, %v7736_v17, 0.0 }
 0x67b   : > { %3319 = vadd.xlane.f32.xlu2 %v3318_v59  ;;  %3316 = vadd.xlane.f32.xlu1 %v3315_v31 }
 0x67c   : > { %3322 = vadd.xlane.f32.xlu0 %v3321_v44 }
 0x686   : > { %v3278_v4 = vpop.xlane.xlu0 %3277 }
 0x687   : > { %v3324_v11 = vmax.f32 %v3278_v4, 1e-12 }
 0x689   : > { %4086 = vrcp.f32 %v3324_v11  ;;  %v3351_v13 = vand.u32 2147483648, %v3324_v11  ;;  %v3349_v18 = vand.u32 2147483647, %v3324_v11  ;;  %vm3345_vm11 = vweird.f32 %v3324_v11 }
 0x68b   : > { %v3352_v40 = vor.u32 1.1754944e-38, %v3351_v13  ;;  %vm3350_vm7 = vcmp.eq.f32.partialorder %v3349_v18, 8.507059e+37 }
 0x68e   : > { %v3281_v24 = vpop.xlane.xlu0 %3280 }
 0x68f   : > { %v4087_v22 = vpop.eup %4086  ;;  %v3325_v27 = vmax.f32 %v3281_v24, 1e-12 }
 0x690   : > { %v3341_v14 = vmul.f32 %v4087_v22, %v3324_v11  ;;  %vm3346_vm4 = vweird.f32 %v4087_v22 }
 0x691   : > { %4088 = vrcp.f32 %v3325_v27  ;;  %vm3347_vm8 = vmor %vm3345_vm11, %vm3346_vm4  ;;  %v3366_v41 = vand.u32 2147483648, %v3325_v27  ;;  %v3364_v39 = vand.u32 2147483647, %v3325_v27  ;;  %vm3360_vm14 = vweird.f32 %v3325_v27 }
 0x692   : > { %v3342_v0 = vsub.f32 1.0, %v3341_v14 }
 0x693   : > { %v3367_v6 = vor.u32 1.1754944e-38, %v3366_v41  ;;  %vm3365_vm10 = vcmp.eq.f32.partialorder %v3364_v39, 8.507059e+37 }
 0x694   : > { %v3343_v3 = vmul.f32 %v4087_v22, %v3342_v0 }
 0x696   : > { %v3344_v23 = vadd.f32 %v4087_v22, %v3343_v3  ;;  %v3284_v51 = vpop.xlane.xlu1 %3283 }
 0x697   : > { %v4089_v45 = vpop.eup %4088  ;;  %v3326_v2 = vmax.f32 %v3284_v51, 1e-12 }
 0x698   : > { %v3348_v36 = vsel %vm3347_vm8, %v4087_v22, %v3344_v23  ;;  %v3356_v48 = vmul.f32 %v4089_v45, %v3325_v27  ;;  %vm3361_vm6 = vweird.f32 %v4089_v45 }
 0x699   : > { %v3353_v19 = vsel %vm3350_vm7, %v3352_v40, %v3348_v36  ;;  %4090 = vrcp.f32 %v3326_v2  ;;  %vm3362_vm3 = vmor %vm3360_vm14, %vm3361_vm6  ;;  %v3381_v12 = vand.u32 2147483648, %v3326_v2  ;;  %v3379_v59 = vand.u32 2147483647, %v3326_v2 }
 0x69a   : > { %v7745_v55 = vmul.f32 %v3353_v19, %v7354_v1   ;;  %v3357_v54 = vsub.f32 1.0, %v3356_v48  ;;  %vm3375_vm4 = vweird.f32 %v3326_v2 }
 0x69b   : > { %v3382_v11 = vor.u32 1.1754944e-38, %v3381_v12  ;;  %vm3380_vm8 = vcmp.eq.f32.partialorder %v3379_v59, 8.507059e+37 }
 0x69c   : > { %v8855_v58 = vmov %v7745_v55  ;;  %v3358_v38 = vmul.f32 %v4089_v45, %v3357_v54 }
 0x69e   : > { %v3359_v28 = vadd.f32 %v4089_v45, %v3358_v38  ;;  %v3287_v9 = vpop.xlane.xlu1 %3286 }
 0x69f   : > { %v4091_v5 = vpop.eup %4090  ;;  %v3327_v63 = vmax.f32 %v3287_v9, 1e-12 }
 0x6a0   : > { %v3363_v42 = vsel %vm3362_vm3, %v4089_v45, %v3359_v28  ;;  %v3371_v37 = vmul.f32 %v4091_v5, %v3326_v2  ;;  %vm3376_vm5 = vweird.f32 %v4091_v5 }
 0x6a1   : > { %v3368_v8 = vsel %vm3365_vm10, %v3367_v6, %v3363_v42  ;;  %4092 = vrcp.f32 %v3327_v63  ;;  %vm3377_vm11 = vmor %vm3375_vm4, %vm3376_vm5  ;;  %v3396_v13 = vand.u32 2147483648, %v3327_v63  ;;  %v3394_v23 = vand.u32 2147483647, %v3327_v63 }
 0x6a2   : > { %v7748_v1 = vmul.f32 %v3368_v8, %v7384_v16   ;;  %v3372_v15 = vsub.f32 1.0, %v3371_v37  ;;  %vm3390_vm6 = vweird.f32 %v3327_v63 }
 0x6a3   : > { %v3397_v2 = vor.u32 1.1754944e-38, %v3396_v13  ;;  %vm3395_vm3 = vcmp.eq.f32.partialorder %v3394_v23, 8.507059e+37 }
 0x6a4   : > { %v3373_v21 = vmul.f32 %v4091_v5, %v3372_v15 }
 0x6a6   : > { %v3374_v31 = vadd.f32 %v4091_v5, %v3373_v21  ;;  %v3290_v44 = vpop.xlane.xlu2 %3289 }
 0x6a7   : > { %v4093_v4 = vpop.eup %4092  ;;  %v3328_v24 = vmax.f32 %v3290_v44, 1e-12 }
 0x6a8   : > { %v3378_v22 = vsel %vm3377_vm11, %v4091_v5, %v3374_v31  ;;  %v3386_v27 = vmul.f32 %v4093_v4, %v3327_v63  ;;  %vm3391_vm7 = vweird.f32 %v4093_v4 }
 0x6a9   : > { %v3383_v14 = vsel %vm3380_vm8, %v3382_v11, %v3378_v22  ;;  %4094 = vrcp.f32 %v3328_v24  ;;  %vm3392_vm14 = vmor %vm3390_vm6, %vm3391_vm7  ;;  %v3411_v54 = vand.u32 2147483648, %v3328_v24  ;;  %v3409_v38 = vand.u32 2147483647, %v3328_v24 }
 0x6aa   : > { %v7751_v18 = vmul.f32 %v3383_v14, %v7414_v30   ;;  %v3387_v0 = vsub.f32 1.0, %v3386_v27  ;;  %vm3405_vm5 = vweird.f32 %v3328_v24 }
 0x6ab   : > { %v3412_v5 = vor.u32 1.1754944e-38, %v3411_v54  ;;  %vm3410_vm11 = vcmp.eq.f32.partialorder %v3409_v38, 8.507059e+37 }
 0x6ac   : > { %v8856_v16 = vmov %v7751_v18  ;;  %v3388_v3 = vmul.f32 %v4093_v4, %v3387_v0 }
 0x6ae   : > { %v3389_v51 = vadd.f32 %v4093_v4, %v3388_v3  ;;  %v3293_v45 = vpop.xlane.xlu2 %3292 }
 0x6af   : > { %v4095_v40 = vpop.eup %4094  ;;  %v3329_v36 = vmax.f32 %v3293_v45, 1e-12 }
 0x6b0   : > { %v3393_v48 = vsel %vm3392_vm14, %v4093_v4, %v3389_v51  ;;  %v3401_v19 = vmul.f32 %v4095_v40, %v3328_v24  ;;  %vm3406_vm10 = vweird.f32 %v4095_v40 }
 0x6b1   : > { %v3398_v55 = vsel %vm3395_vm3, %v3397_v2, %v3393_v48  ;;  %4096 = vrcp.f32 %v3329_v36  ;;  %vm3407_vm4 = vmor %vm3405_vm5, %vm3406_vm10  ;;  %v3426_v8 = vand.u32 2147483648, %v3329_v36  ;;  %v3424_v21 = vand.u32 2147483647, %v3329_v36 }
 0x6b2   : > { %v7754_v23 = vmul.f32 %v3398_v55, %v7442_v25   ;;  %v3402_v18 = vsub.f32 1.0, %v3401_v19  ;;  %vm3420_vm7 = vweird.f32 %v3329_v36 }
 0x6b3   : > { %v3427_v4 = vor.u32 1.1754944e-38, %v3426_v8  ;;  %vm3425_vm14 = vcmp.eq.f32.partialorder %v3424_v21, 8.507059e+37 }
 0x6b4   : > { %v8857_v30 = vmov %v7754_v23  ;;  %v3403_v41 = vmul.f32 %v4095_v40, %v3402_v18 }
 0x6b6   : > { %v3404_v39 = vadd.f32 %v4095_v40, %v3403_v41  ;;  %v3296_v28 = vpop.xlane.xlu0 %3295 }
 0x6b7   : > { %v4097_v9 = vpop.eup %4096  ;;  %v3330_v6 = vmax.f32 %v3296_v28, 1e-12 }
 0x6b8   : > { %v3408_v63 = vsel %vm3407_vm4, %v4095_v40, %v3404_v39  ;;  %v3416_v42 = vmul.f32 %v4097_v9, %v3329_v36  ;;  %vm3421_vm8 = vweird.f32 %v4097_v9 }
 0x6b9   : > { %v3413_v37 = vsel %vm3410_vm11, %v3412_v5, %v3408_v63  ;;  %4098 = vrcp.f32 %v3330_v6  ;;  %vm3422_vm6 = vmor %vm3420_vm7, %vm3421_vm8  ;;  %v3441_v0 = vand.u32 2147483648, %v3330_v6  ;;  %v3439_v3 = vand.u32 2147483647, %v3330_v6 }
 0x6ba   : > { %v7757_v14 = vmul.f32 %v3413_v37, %v7472_v61   ;;  %v3417_v25 = vsub.f32 1.0, %v3416_v42  ;;  %vm3435_vm10 = vweird.f32 %v3330_v6 }
 0x6bb   : > { %v3442_v40 = vor.u32 1.1754944e-38, %v3441_v0  ;;  %vm3440_vm4 = vcmp.eq.f32.partialorder %v3439_v3, 8.507059e+37 }
 0x6bc   : > { %v8858_v15 = vmov %v7757_v14  ;;  %v3418_v12 = vmul.f32 %v4097_v9, %v3417_v25 }
 0x6be   : > { %v3419_v59 = vadd.f32 %v4097_v9, %v3418_v12  ;;  %v3299_v31 = vpop.xlane.xlu1 %3298 }
 0x6bf   : > { %v4099_v44 = vpop.eup %4098  ;;  %v3331_v11 = vmax.f32 %v3299_v31, 1e-12 }
 0x6c0   : > { %v3423_v24 = vsel %vm3422_vm6, %v4097_v9, %v3419_v59  ;;  %v3431_v22 = vmul.f32 %v4099_v44, %v3330_v6  ;;  %vm3436_vm3 = vweird.f32 %v4099_v44 }
 0x6c1   : > { %v3428_v27 = vsel %vm3425_vm14, %v3427_v4, %v3423_v24  ;;  %4100 = vrcp.f32 %v3331_v11  ;;  %vm3437_vm5 = vmor %vm3435_vm10, %vm3436_vm3  ;;  %v3456_v18 = vand.u32 2147483648, %v3331_v11  ;;  %v3454_v41 = vand.u32 2147483647, %v3331_v11 }
 0x6c2   : > { %v7760_v61 = vmul.f32 %v3428_v27, %v7500_v62   ;;  %v3432_v14 = vsub.f32 1.0, %v3431_v22  ;;  %vm3450_vm8 = vweird.f32 %v3331_v11 }
 0x6c3   : > { %v3457_v9 = vor.u32 1.1754944e-38, %v3456_v18  ;;  %vm3455_vm6 = vcmp.eq.f32.partialorder %v3454_v41, 8.507059e+37 }
 0x6c4   : > { %v3433_v13 = vmul.f32 %v4099_v44, %v3432_v14  ;;  %v3601_v34 = vadd.f32 (%p7788_p0), %v7760_v61, %v8887_v46 }
 0x6c6   : > { %v3434_v23 = vadd.f32 %v4099_v44, %v3433_v13  ;;  %v3302_v51 = vpop.xlane.xlu2 %3301  ;;  %3617 = vst.msk [vmem:[%s7939_s5 + $0x28] sm:$0xff] (%p7788_p0), %vm88_vm0, %v3601_v34 }
 0x6c7   : > { %v4101_v45 = vpop.eup %4100  ;;  %v3332_v2 = vmax.f32 %v3302_v51, 1e-12 }
 0x6c8   : > { %v3438_v36 = vsel %vm3437_vm5, %v4099_v44, %v3434_v23  ;;  %v3446_v48 = vmul.f32 %v4101_v45, %v3331_v11  ;;  %vm3451_vm11 = vweird.f32 %v4101_v45 }
 0x6c9   : > { %v3443_v19 = vsel %vm3440_vm4, %v3442_v40, %v3438_v36  ;;  %4102 = vrcp.f32 %v3332_v2  ;;  %vm3452_vm7 = vmor %vm3450_vm8, %vm3451_vm11  ;;  %v3471_v25 = vand.u32 2147483648, %v3332_v2  ;;  %v3469_v12 = vand.u32 2147483647, %v3332_v2 }
 0x6ca   : > { %v7763_v59 = vmul.f32 %v3443_v19, %v7528_v57   ;;  %v3447_v55 = vsub.f32 1.0, %v3446_v48  ;;  %vm3465_vm3 = vweird.f32 %v3332_v2 }
 0x6cb   : > { %v3472_v44 = vor.u32 1.1754944e-38, %v3471_v25  ;;  %vm3470_vm5 = vcmp.eq.f32.partialorder %v3469_v12, 8.507059e+37 }
 0x6cc   : > { %v8859_v62 = vmov %v7763_v59  ;;  %v3448_v54 = vmul.f32 %v4101_v45, %v3447_v55 }
 0x6cd   :  { %v3602_v32 = vadd.f32 (%p7788_p0), %v8859_v62, %v8888_v7 }
 0x6ce   : > { %v3449_v38 = vadd.f32 %v4101_v45, %v3448_v54  ;;  %v3305_v39 = vpop.xlane.xlu0 %3304 }
 0x6cf   : > { %v4103_v28 = vpop.eup %4102  ;;  %v3333_v5 = vmax.f32 %v3305_v39, 1e-12  ;;  %3618 = vst.msk [vmem:[%s7939_s5 + $0x30] sm:$0xff] (%p7788_p0), %vm88_vm0, %v3602_v32 }
 0x6d0   : > { %v3453_v6 = vsel %vm3452_vm7, %v4101_v45, %v3449_v38  ;;  %v3461_v63 = vmul.f32 %v4103_v28, %v3332_v2  ;;  %vm3466_vm14 = vweird.f32 %v4103_v28 }
 0x6d1   : > { %v3458_v42 = vsel %vm3455_vm6, %v3457_v9, %v3453_v6  ;;  %4104 = vrcp.f32 %v3333_v5  ;;  %vm3467_vm10 = vmor %vm3465_vm3, %vm3466_vm14  ;;  %v3486_v14 = vand.u32 2147483648, %v3333_v5  ;;  %v3484_v13 = vand.u32 2147483647, %v3333_v5 }
 0x6d2   : > { %v7766_v3 = vmul.f32 %v3458_v42, %v7556_v56   ;;  %v3462_v37 = vsub.f32 1.0, %v3461_v63  ;;  %vm3480_vm11 = vweird.f32 %v3333_v5 }
 0x6d3   : > { %v3487_v45 = vor.u32 1.1754944e-38, %v3486_v14  ;;  %vm3485_vm7 = vcmp.eq.f32.partialorder %v3484_v13, 8.507059e+37 }
 0x6d4   : > { %v8860_v57 = vmov %v7766_v3  ;;  %v3463_v8 = vmul.f32 %v4103_v28, %v3462_v37 }
 0x6d5   :  { %v3603_v43 = vadd.f32 (%p7788_p0), %v8860_v57, %v8889_v20 }
 0x6d6   : > { %v3464_v21 = vadd.f32 %v4103_v28, %v3463_v8  ;;  %v3308_v59 = vpop.xlane.xlu1 %3307 }
 0x6d7   : > { %v4105_v31 = vpop.eup %4104  ;;  %v3334_v4 = vmax.f32 %v3308_v59, 1e-12  ;;  %3619 = vst.msk [vmem:[%s7939_s5 + $0x38] sm:$0xff] (%p7788_p0), %vm88_vm0, %v3603_v43 }
 0x6d8   : > { %v3468_v11 = vsel %vm3467_vm10, %v4103_v28, %v3464_v21  ;;  %v3476_v24 = vmul.f32 %v4105_v31, %v3333_v5  ;;  %vm3481_vm4 = vweird.f32 %v4105_v31 }
 0x6d9   : > { %v3473_v22 = vsel %vm3470_vm5, %v3472_v44, %v3468_v11  ;;  %4106 = vrcp.f32 %v3334_v4  ;;  %vm3482_vm8 = vmor %vm3480_vm11, %vm3481_vm4  ;;  %v3501_v18 = vand.u32 2147483648, %v3334_v4  ;;  %v3499_v41 = vand.u32 2147483647, %v3334_v4 }
 0x6da   : > { %v7769_v21 = vmul.f32 %v3473_v22, %v7583_v47   ;;  %v3477_v56 = vsub.f32 1.0, %v3476_v24  ;;  %vm3495_vm14 = vweird.f32 %v3334_v4 }
 0x6db   : > { %v3502_v9 = vor.u32 1.1754944e-38, %v3501_v18  ;;  %vm3500_vm10 = vcmp.eq.f32.partialorder %v3499_v41, 8.507059e+37 }
 0x6dc   : > { %v8861_v27 = vmov %v7769_v21  ;;  %v3478_v0 = vmul.f32 %v4105_v31, %v3477_v56 }
 0x6dd   :  { %v3604_v29 = vadd.f32 (%p7788_p0), %v8861_v27, %v8890_v33 }
 0x6de   : > { %v3479_v3 = vadd.f32 %v4105_v31, %v3478_v0  ;;  %v3311_v23 = vpop.xlane.xlu2 %3310 }
 0x6df   : > { %v4107_v51 = vpop.eup %4106  ;;  %v3335_v40 = vmax.f32 %v3311_v23, 1e-12  ;;  %3620 = vst.msk [vmem:[%s7939_s5 + $0x40] sm:$0xff] (%p7788_p0), %vm88_vm0, %v3604_v29 }
 0x6e0   : > { %v3483_v2 = vsel %vm3482_vm8, %v4105_v31, %v3479_v3  ;;  %v3491_v36 = vmul.f32 %v4107_v51, %v3334_v4  ;;  %vm3496_vm6 = vweird.f32 %v4107_v51 }
 0x6e1   : > { %v3488_v48 = vsel %vm3485_vm7, %v3487_v45, %v3483_v2  ;;  %4108 = vrcp.f32 %v3335_v40  ;;  %vm3497_vm3 = vmor %vm3495_vm14, %vm3496_vm6  ;;  %v3514_v8 = vand.u32 2147483647, %v3335_v40  ;;  %vm3510_vm4 = vweird.f32 %v3335_v40 }
 0x6e2   : > { %v7772_v55 = vmul.f32 %v3488_v48, %v7610_v50   ;;  %v3492_v19 = vsub.f32 1.0, %v3491_v36 }
 0x6e3   : > { %vm3515_vm8 = vcmp.eq.f32.partialorder %v3514_v8, 8.507059e+37 }
 0x6e4   : > { %v8862_v47 = vmov %v7772_v55  ;;  %v3493_v54 = vmul.f32 %v4107_v51, %v3492_v19  ;;  %v3516_v55 = vand.u32 2147483648, %v3335_v40 }
 0x6e5   :  { %v3605_v26 = vadd.f32 (%p7788_p0), %v8862_v47, %v8891_v52 }
 0x6e6   : > { %v3494_v38 = vadd.f32 %v4107_v51, %v3493_v54  ;;  %v3314_v39 = vpop.xlane.xlu0 %3313  ;;  %v3517_v44 = vor.u32 1.1754944e-38, %v3516_v55 }
 0x6e7   : > { %v4109_v28 = vpop.eup %4108  ;;  %v3336_v5 = vmax.f32 %v3314_v39, 1e-12  ;;  %3621 = vst.msk [vmem:[%s7939_s5 + $0x48] sm:$0xff] (%p7788_p0), %vm88_vm0, %v3605_v26 }
 0x6e8   : > { %v3498_v6 = vsel %vm3497_vm3, %v4107_v51, %v3494_v38  ;;  %v3506_v63 = vmul.f32 %v4109_v28, %v3335_v40  ;;  %vm3511_vm5 = vweird.f32 %v4109_v28 }
 0x6e9   : > { %v3503_v42 = vsel %vm3500_vm10, %v3502_v9, %v3498_v6  ;;  %4110 = vrcp.f32 %v3336_v5  ;;  %vm3512_vm11 = vmor %vm3510_vm4, %vm3511_vm5  ;;  %v3531_v3 = vand.u32 2147483648, %v3336_v5  ;;  %v3529_v51 = vand.u32 2147483647, %v3336_v5 }
 0x6ea   : > { %v7775_v56 = vmul.f32 %v3503_v42, %v7639_v35   ;;  %v3507_v50 = vsub.f32 1.0, %v3506_v63  ;;  %vm3525_vm6 = vweird.f32 %v3336_v5 }
 0x6eb   : > { %v3532_v2 = vor.u32 1.1754944e-38, %v3531_v3  ;;  %vm3530_vm3 = vcmp.eq.f32.partialorder %v3529_v51, 8.507059e+37 }
 0x6ec   : > { %v8863_v37 = vmov %v7775_v56  ;;  %v3508_v25 = vmul.f32 %v4109_v28, %v3507_v50 }
 0x6ee   : > { %v3509_v12 = vadd.f32 %v4109_v28, %v3508_v25  ;;  %v3320_v21 = vpop.xlane.xlu2 %3319  ;;  %v3317_v59 = vpop.xlane.xlu1 %3316 }
 0x6ef   : > { %v4111_v31 = vpop.eup %4110  ;;  %v3338_v4 = vmax.f32 %v3320_v21, 1e-12  ;;  %v3337_v11 = vmax.f32 %v3317_v59, 1e-12  ;;  %v3323_v24 = vpop.xlane.xlu0 %3322 }
 0x6f0   : > { %v3513_v22 = vsel %vm3512_vm11, %v4109_v28, %v3509_v12  ;;  %v3521_v14 = vmul.f32 %v4111_v31, %v3336_v5  ;;  %v3339_v35 = vmax.f32 %v3323_v24, 1e-12  ;;  %vm3526_vm7 = vweird.f32 %v4111_v31 }
 0x6f1   : > { %v3518_v56 = vsel %vm3515_vm8, %v3517_v44, %v3513_v22  ;;  %4112 = vrcp.f32 %v3338_v4  ;;  %vm3527_vm14 = vmor %vm3525_vm6, %vm3526_vm7  ;;  %v3561_v39 = vand.u32 2147483648, %v3338_v4  ;;  %vm3555_vm10 = vweird.f32 %v3338_v4 }
 0x6f2   : > { %v7778_v0 = vmul.f32 %v3518_v56, %v7666_v49   ;;  %v3522_v13 = vsub.f32 1.0, %v3521_v14  ;;  %4114 = vrcp.f32 %v3337_v11  ;;  %v3559_v5 = vand.u32 2147483647, %v3338_v4 }
 0x6f3   : > { %4116 = vrcp.f32 %v3339_v35  ;;  %v3546_v63 = vand.u32 2147483648, %v3337_v11  ;;  %v3544_v50 = vand.u32 2147483647, %v3337_v11  ;;  %v3562_v8 = vor.u32 1.1754944e-38, %v3561_v39 }
 0x6f4   : > { %v3523_v23 = vmul.f32 %v4111_v31, %v3522_v13  ;;  %vm3540_vm11 = vweird.f32 %v3337_v11  ;;  %v3576_v12 = vand.u32 2147483648, %v3339_v35  ;;  %v3574_v59 = vand.u32 2147483647, %v3339_v35 }
 0x6f5   : > { %vm3560_vm6 = vcmp.eq.f32.partialorder %v3559_v5, 8.507059e+37  ;;  %v3547_v44 = vor.u32 1.1754944e-38, %v3546_v63  ;;  %vm3545_vm1 = vcmp.eq.f32.partialorder %v3544_v50, 8.507059e+37  ;;  %v8880_v50 = vmov %v7748_v1 }
 0x6f6   : > { %v3524_v45 = vadd.f32 %v4111_v31, %v3523_v23 }
 0x6f7   : > { %v4113_v40 = vpop.eup %4112 }
 0x6f8   : > { %v4115_v36 = vpop.eup %4114  ;;  %v3528_v48 = vsel %vm3527_vm14, %v4111_v31, %v3524_v45  ;;  %v3551_v19 = vmul.f32 %v4113_v40, %v3338_v4  ;;  %vm3556_vm5 = vweird.f32 %v4113_v40  ;;  %v8883_v45 = vld [vmem:[#allocation3_spill] sm:$0xff] (%p7788_p0) }
 0x6f9   : > { %v3533_v18 = vsel %vm3530_vm3, %v3532_v2, %v3528_v48  ;;  %v3536_v54 = vmul.f32 %v4115_v36, %v3337_v11  ;;  %v4117_v49 = vpop.eup %4116  ;;  %vm3541_vm4 = vweird.f32 %v4115_v36  ;;  %vm3557_vm8 = vmor %vm3555_vm10, %vm3556_vm5  ;;  %vm3570_vm3 = vweird.f32 %v3339_v35 }
 0x6fa   : > { %v7781_v2 = vmul.f32 %v3533_v18, %v7704_v60   ;;  %v3552_v38 = vsub.f32 1.0, %v3551_v19  ;;  %v3566_v9 = vmul.f32 %v4117_v49, %v3339_v35  ;;  %vm3571_vm7 = vweird.f32 %v4117_v49  ;;  %vm3542_vm14 = vmor %vm3540_vm11, %vm3541_vm4  ;;  %v8885_v19 = vld [vmem:[#allocation5_spill] sm:$0xff] (%p7788_p0) }
 0x6fb   : > { %v3537_v28 = vsub.f32 1.0, %v3536_v54  ;;  %vm3572_vm2 = vmor %vm3570_vm3, %vm3571_vm7  ;;  %v3577_v11 = vor.u32 1.1754944e-38, %v3576_v12  ;;  %vm3575_vm10 = vcmp.eq.f32.partialorder %v3574_v59, 8.507059e+37  ;;  %v8870_v35 = vmov %v7778_v0 }
 0x6fc   : > { %v8864_v41 = vmov %v7781_v2  ;;  %v3553_v6 = vmul.f32 %v4113_v40, %v3552_v38  ;;  %v3567_v55 = vsub.f32 1.0, %v3566_v9  ;;  %v8875_v59 = vmov %v8859_v62  ;;  %v8886_v38 = vld [vmem:[#allocation6_spill] sm:$0xff] (%p7788_p0) }
 0x6fd   : > { %v3538_v42 = vmul.f32 %v4115_v36, %v3537_v28  ;;  %v8869_v2 = vmov %v8864_v41  ;;  %v8879_v18 = vmov %v8856_v16  ;;  %v3599_v54 = vadd.f32 (%p7788_p0), %v8857_v30, %v8885_v19 }
 0x6fe   : > { %v3554_v25 = vadd.f32 %v4113_v40, %v3553_v6  ;;  %v3568_v21 = vmul.f32 %v4117_v49, %v3567_v55  ;;  %v8872_v55 = vmov %v8862_v47  ;;  %v3600_v39 = vadd.f32 (%p7788_p0), %v8858_v15, %v8886_v38  ;;  %v8897_v47 = vld [vmem:[#allocation17_spill] sm:$0xff] (%p7788_p0) }
 0x6ff   : > { %v3539_v60 = vadd.f32 %v4115_v36, %v3538_v42  ;;  %3615 = vst.msk [vmem:[%s7939_s5 + $0x18] sm:$0xff] (%p7788_p0), %vm88_vm0, %v3599_v54 }
 0x700   : > { %v3558_v31 = vsel %vm3557_vm8, %v4113_v40, %v3554_v25  ;;  %v3569_v14 = vadd.f32 %v4117_v49, %v3568_v21  ;;  %v8873_v21 = vmov %v8861_v27  ;;  %v8881_v25 = vmov %v8855_v58  ;;  %3616 = vst.msk [vmem:[%s7939_s5 + $0x20] sm:$0xff] (%p7788_p0), %vm88_vm0, %v3600_v39 }
 0x701   : > { %v3563_v24 = vsel %vm3560_vm6, %v3562_v8, %v3558_v31  ;;  %v3543_v22 = vsel %vm3542_vm14, %v4115_v36, %v3539_v60  ;;  %v3597_v40 = vadd.f32 (%p7788_p0), %v7748_v1, %v8883_v45  ;;  %v8884_v36 = vld [vmem:[#allocation4_spill] sm:$0xff] (%p7788_p0)  ;;  %v8893_v1 = vld [vmem:[#allocation13_spill] sm:$0xff] (%p7788_p0) }
 0x702   : > { %v3594_v13 = vmul.f32 %v3563_v24, %v7733_v10   ;;  %v3548_v56 = vsel %vm3545_vm1, %v3547_v44, %v3543_v22  ;;  %v3573_v3 = vsel %vm3572_vm2, %v4117_v49, %v3569_v14  ;;  %v8877_v14 = vmov %v8858_v15  ;;  %1085 = sbr.rel (!%p7788_p0) target bundleno = 763 (0x2fb), region = 64 }
 0x703   : > { %v3593_v4 = vmul.f32 %v3548_v56, %v7736_v17   ;;  %v3578_v23 = vsel %vm3575_vm10, %v3577_v11, %v3573_v3  ;;  %v8871_v56 = vmov %v8863_v37  ;;  %v8874_v3 = vmov %v8860_v57  ;;  %3613 = vst.msk [vmem:[%s7939_s5 + $0x8] sm:$0xff] (%p7788_p0), %vm88_vm0, %v3597_v40  ;;  %v8896_v57 = vld [vmem:[#allocation16_spill] sm:$0xff] (%p7788_p0) }
 0x704   : > { %v3595_v51 = vmul.f32 %v3578_v23, %v7730_v53   ;;  %v8867_v49 = vmov %v3594_v13  ;;  %v8876_v17 = vmov %v7760_v61  ;;  %v8878_v23 = vmov %v8857_v30  ;;  %v8882_v53 = vld [vmem:[#allocation2_spill] sm:$0xff] (%p7788_p0)  ;;  %v8895_v61 = vld [vmem:[#allocation15_spill] sm:$0xff] (%p7788_p0) }
 0x705   : > { %v8868_v8 = vmov %v3593_v4  ;;  %v3596_v10 = vadd.f32 (%p7788_p0), %v8855_v58, %v8882_v53  ;;  %v3598_v48 = vadd.f32 (%p7788_p0), %v8856_v16, %v8884_v36  ;;  %v8892_v17 = vld [vmem:[#allocation12_spill] sm:$0xff] (%p7788_p0)  ;;  %v3607_v16 = vadd.f32 (%p7788_p0), %v7778_v0, %v8893_v1  ;;  %v8894_v30 = vld [vmem:[#allocation14_spill] sm:$0xff] (%p7788_p0) }
 0x706   : > { %v8866_v9 = vmov %v3595_v51  ;;  %v3606_v58 = vadd.f32 (%p7788_p0), %v8863_v37, %v8892_v17  ;;  %v3608_v15 = vadd.f32 (%p7788_p0), %v8864_v41, %v8894_v30  ;;  %v3609_v62 = vadd.f32 (%p7788_p0), %v3593_v4, %v8895_v61 }
 0x707   :  { %3612 = vst.msk [vmem:[%s7939_s5] sm:$0xff] %vm88_vm0, %v3596_v10  ;;  %v3610_v27 = vadd.f32 %v3594_v13, %v8896_v57  ;;  %v3611_v37 = vadd.f32 %v3595_v51, %v8897_v47 }
 0x708   :  { %3614 = vst.msk [vmem:[%s7939_s5 + $0x10] sm:$0xff] %vm88_vm0, %v3598_v48 }
 0x709   :  { %3622 = vst.msk [vmem:[%s7939_s5 + $0x50] sm:$0xff] %vm88_vm0, %v3606_v58 }
 0x70a   :  { %3623 = vst.msk [vmem:[%s7939_s5 + $0x58] sm:$0xff] %vm88_vm0, %v3607_v16 }
 0x70b   :  { %3624 = vst.msk [vmem:[%s7939_s5 + $0x60] sm:$0xff] %vm88_vm0, %v3608_v15 }
 0x70c   :  { %3625 = vst.msk [vmem:[%s7939_s5 + $0x68] sm:$0xff] %vm88_vm0, %v3609_v62 }
 0x70d   :  { %3626 = vst.msk [vmem:[%s7939_s5 + $0x70] sm:$0xff] %vm88_vm0, %v3610_v27 }
 0x70e   :  { %3627 = vst.msk [vmem:[%s7939_s5 + $0x78] sm:$0xff] %vm88_vm0, %v3611_v37 }

</bundles_post_ra>
